<compile_context>
chip_gen: v5e
topology: v5e:2x2
jax: 0.10.0
libtpu: 0.0.40
codegen_flags: <defaults>
</compile_context>

<pallas_src>
import functools

import jax
import jax.numpy as jnp
from jax.experimental import pallas as pl
from jax.experimental.pallas import tpu as pltpu


def _round_up(x, m):
    return (x + m - 1) // m * m


def _num_tensorcores():
    # v7x has 2 TensorCores per chip; v5e/v6e have 1.  Detection is best-effort.
    try:
        kind = jax.devices()[0].device_kind.lower()
        return 2 if "v7" in kind else 1
    except Exception:
        return 1


_NUM_TC = _num_tensorcores()
_VMEM_LIMIT = 32 * 1024 * 1024


# ----------------------------- Pallas kernels --------------------------------

def _mm_bias_act_kernel(x_ref, w_ref, b_ref, o_ref, *, act):
    y = jnp.dot(x_ref[...], w_ref[...], preferred_element_type=jnp.float32)
    y = y + b_ref[...]                                   # (1, N) broadcast over rows
    if act == "relu":
        y = jnp.maximum(y, 0.0)
    elif act == "sigmoid":
        y = 0.5 * (jnp.tanh(0.5 * y) + 1.0)              # stable sigmoid on the EUP
    o_ref[...] = y.astype(o_ref.dtype)


def matmul_bias_act(x, w, b, act="none", out_dtype=jnp.bfloat16):
    """act(x @ w + b).

    x:(M,K) any float dtype, w:(K,N) pre-cast bf16 with N % 128 == 0,
    b:(1,N) pre-cast f32.  MXU inputs bf16, f32 accumulate.
    Single whole-M block on single-TC chips (no padding); 2-way parallel M split
    on v7x when M is large enough.
    """
    M, K = x.shape
    K2, N = w.shape
    assert K == K2 and N % 128 == 0 and b.shape == (1, N)
    x = x.astype(jnp.bfloat16)

    if _NUM_TC >= 2 and M >= 384:
        tm = _round_up((M + 1) // 2, 8)
        Mp = 2 * tm
    else:
        tm = M                                           # full-extent block, no pad
        Mp = M
    if Mp != M:
        x = jnp.pad(x, ((0, Mp - M), (0, 0)))

    y = pl.pallas_call(
        functools.partial(_mm_bias_act_kernel, act=act),
        out_shape=jax.ShapeDtypeStruct((Mp, N), out_dtype),
        grid=(Mp // tm,),
        in_specs=[
            pl.BlockSpec((tm, K), lambda i: (i, 0)),
            pl.BlockSpec((K, N), lambda i: (0, 0)),
            pl.BlockSpec((1, N), lambda i: (0, 0)),
        ],
        out_specs=pl.BlockSpec((tm, N), lambda i: (i, 0)),
        compiler_params=pltpu.CompilerParams(
            dimension_semantics=("parallel",),
            vmem_limit_bytes=_VMEM_LIMIT),
    )(x, w, b)
    return y[:M] if Mp != M else y


def _bottleneck_kernel(h_ref, eps_ref, wml_ref, bml_ref, wfc3_ref, bfc3_ref,
                       wd1_ref, bd1_ref, mu_ref, lv_ref, z_ref, d1_ref,
                       hz_ref, *, z_dim):
    # Small fc1|fc2 + reparameterize + fc3 part: run once (grid step 0), keep hz
    # resident in VMEM scratch for all d1 N-tiles.
    @pl.when(pl.program_id(0) == 0)
    def _():
        ml = jnp.dot(h_ref[...], wml_ref[...],
                     preferred_element_type=jnp.float32) + bml_ref[...]
        mu = ml[:, :z_dim]
        lv = ml[:, z_dim:]
        z = mu + jnp.exp(0.5 * lv) * eps_ref[...]        # reparameterize
        mu_ref[...] = mu
        lv_ref[...] = lv
        z_ref[...] = z
        hz = jnp.dot(z.astype(wfc3_ref.dtype), wfc3_ref[...],
                     preferred_element_type=jnp.float32) + bfc3_ref[...]
        hz_ref[...] = hz.astype(hz_ref.dtype)

    # ConvTranspose2d(1024,128,5,2) on a 1x1 spatial input == matmul; + ReLU.
    # One 640-wide N tile per grid step (weight DMA pipelined, lane-dense stores).
    d1 = jnp.dot(hz_ref[...], wd1_ref[...],
                 preferred_element_type=jnp.float32) + bd1_ref[...]
    d1_ref[...] = jnp.maximum(d1, 0.0).astype(d1_ref.dtype)


def bottleneck_d1(h, eps, q, tn=640):
    """One pallas_call for fc1|fc2 -> reparameterize -> fc3 -> d1 (+ReLU)."""
    B, h_dim = h.shape
    z_dim = eps.shape[1]
    n_d1 = q["w_d1"].shape[1]                            # 5*5*128 = 3200
    assert n_d1 % tn == 0 and tn % 128 == 0
    grid_n = n_d1 // tn

    return pl.pallas_call(
        functools.partial(_bottleneck_kernel, z_dim=z_dim),
        out_shape=(
            jax.ShapeDtypeStruct((B, z_dim), jnp.float32),   # mu
            jax.ShapeDtypeStruct((B, z_dim), jnp.float32),   # logvar
            jax.ShapeDtypeStruct((B, z_dim), jnp.float32),   # z
            jax.ShapeDtypeStruct((B, n_d1), jnp.bfloat16),   # relu(d1) (B, 5*5*128)
        ),
        grid=(grid_n,),
        in_specs=[
            pl.BlockSpec((B, h_dim), lambda j: (0, 0)),
            pl.BlockSpec((B, z_dim), lambda j: (0, 0)),
            pl.BlockSpec((h_dim, 2 * z_dim), lambda j: (0, 0)),
            pl.BlockSpec((1, 2 * z_dim), lambda j: (0, 0)),
            pl.BlockSpec((z_dim, h_dim), lambda j: (0, 0)),
            pl.BlockSpec((1, h_dim), lambda j: (0, 0)),
            pl.BlockSpec((h_dim, tn), lambda j: (0, j)),     # w_d1, tiled along N
            pl.BlockSpec((1, tn), lambda j: (0, j)),         # b_d1, tiled along N
        ],
        out_specs=(
            pl.BlockSpec((B, z_dim), lambda j: (0, 0)),
            pl.BlockSpec((B, z_dim), lambda j: (0, 0)),
            pl.BlockSpec((B, z_dim), lambda j: (0, 0)),
            pl.BlockSpec((B, tn), lambda j: (0, j)),
        ),
        scratch_shapes=[pltpu.VMEM((B, h_dim), jnp.bfloat16)],   # hz
        compiler_params=pltpu.CompilerParams(
            dimension_semantics=("arbitrary",),
            vmem_limit_bytes=_VMEM_LIMIT),
    )(h.astype(jnp.bfloat16), eps.astype(jnp.float32),
      q["w_ml"], q["b_ml"], q["w_fc3"], q["b_fc3"], q["w_d1"], q["b_d1"])


# --------------------------- conv glue (NHWC, plain JAX) ----------------------

def _im2col_nhwc(x, k, s):
    """x:(B,H,W,C) NHWC -> ((B*Ho*Wo, k*k*C), Ho, Wo); column order (kh, kw, C)."""
    B, H, W, C = x.shape
    Ho = (H - k) // s + 1
    Wo = (W - k) // s + 1
    patches = [x[:, i:i + s * Ho:s, j:j + s * Wo:s, :]
               for i in range(k) for j in range(k)]
    cols = jnp.concatenate(patches, axis=-1)              # (B, Ho, Wo, k*k*C)
    return cols.reshape(B * Ho * Wo, k * k * C), Ho, Wo


def conv2d_nhwc(x, wmat, b, k, stride, cout, act, out_dtype=jnp.bfloat16):
    """Valid conv, NHWC.  wmat:(k*k*Cin, Np) pre-laid-out bf16; b:(1, Np) f32."""
    B = x.shape[0]
    cols, Ho, Wo = _im2col_nhwc(x, k, stride)
    y = matmul_bias_act(cols, wmat, b, act, out_dtype=out_dtype)
    return y[:, :cout].reshape(B, Ho, Wo, cout)


def conv_transpose2d_s2k6(x, wmat, b, cout, act, out_dtype=jnp.bfloat16):
    """nn.ConvTranspose2d(k=6, stride=2, padding=0), NHWC, sub-pixel phase lowering.

    Output phase (py, px) is a dense stride-1 3x3 conv of the 2-padded input with a
    flipped phase sub-kernel.  The 4 phases are packed side-by-side along N of ONE
    matmul and interleaved back (depth-to-space) afterwards — no zero-dilated input.
    wmat:(9*Cin, Np) pre-laid-out bf16 (rows (t,u,ci), cols (py,px,co)); b:(1,Np) f32.
    """
    B, H, W, Cin = x.shape
    xp = jnp.pad(x, ((0, 0), (2, 2), (2, 2), (0, 0)))
    cols, Hp, Wp = _im2col_nhwc(xp, 3, 1)                        # Hp = H+2
    y = matmul_bias_act(cols, wmat, b, act, out_dtype=out_dtype)
    y = y[:, :4 * cout].reshape(B, Hp, Wp, 2, 2, cout)           # (b,m,n,py,px,co)
    # TODO(synk): fold this depth-to-space transpose into the next layer's patch gather.
    y = y.transpose(0, 1, 3, 2, 4, 5).reshape(B, 2 * Hp, 2 * Wp, cout)
    return y                                                     # (H-1)*2 + 6 per dim


# ---------------------- one-time weight preparation ---------------------------

def prepare_params(p):
    """Hoisted weight re-layout / padding / bf16 casting (done ONCE, not per call)."""
    def conv_w(w, b):
        cout, cin, k, _ = w.shape
        wmat = w.transpose(2, 3, 1, 0).reshape(k * k * cin, cout)   # rows (kh,kw,ci)
        npad = _round_up(cout, 128)
        wmat = jnp.pad(wmat, ((0, 0), (0, npad - cout))).astype(jnp.bfloat16)
        bp = jnp.pad(b, (0, npad - cout)).reshape(1, npad).astype(jnp.float32)
        return wmat, bp

    def convT_w(wt, b):
        cin, cout = wt.shape[0], wt.shape[1]
        # wt[ci,co, 2*ty+py, 2*tu+px] -> flipped phase kernels;
        # rows (t,u,ci), cols (py,px,co)
        wr = wt.reshape(cin, cout, 3, 2, 3, 2)
        wr = jnp.flip(wr, axis=(2, 4))
        wmat = wr.transpose(2, 4, 0, 3, 5, 1).reshape(9 * cin, 4 * cout)
        bm = jnp.tile(b, 4)
        npad = _round_up(4 * cout, 128)
        wmat = jnp.pad(wmat, ((0, 0), (0, npad - 4 * cout))).astype(jnp.bfloat16)
        bm = jnp.pad(bm, (0, npad - 4 * cout)).reshape(1, npad).astype(jnp.float32)
        return wmat, bm

    q = {}
    q["e1_w"], q["e1_b"] = conv_w(p["e1_w"], p["e1_b"])
    q["e2_w"], q["e2_b"] = conv_w(p["e2_w"], p["e2_b"])
    q["e3_w"], q["e3_b"] = conv_w(p["e3_w"], p["e3_b"])

    # Fold the NCHW-flatten convention of fc1/fc2 into the weights (one-time cost).
    def to_hwc_rows(w):
        return w.reshape(256, 2, 2, -1).transpose(1, 2, 0, 3).reshape(1024, -1)

    q["w_ml"] = jnp.concatenate(
        [to_hwc_rows(p["fc1_w"]), to_hwc_rows(p["fc2_w"])], axis=1
    ).astype(jnp.bfloat16)                                         # (1024, 256)
    q["b_ml"] = jnp.concatenate([p["fc1_b"], p["fc2_b"]]).reshape(1, -1).astype(jnp.float32)
    q["w_fc3"] = p["fc3_w"].astype(jnp.bfloat16)                   # (128, 1024)
    q["b_fc3"] = p["fc3_b"].reshape(1, -1).astype(jnp.float32)
    # ConvTranspose2d(1024,128,5,2) on 1x1 spatial input == matmul; columns (kh,kw,co)
    # so the result is already NHWC.
    q["w_d1"] = p["d1_w"].transpose(0, 2, 3, 1).reshape(1024, 5 * 5 * 128).astype(jnp.bfloat16)
    q["b_d1"] = jnp.tile(p["d1_b"], 25).reshape(1, -1).astype(jnp.float32)

    q["d2_w"], q["d2_b"] = convT_w(p["d2_w"], p["d2_b"])
    q["d3_w"], q["d3_b"] = convT_w(p["d3_w"], p["d3_b"])
    return q


# ------------------------------- VAE model ------------------------------------

def init_params(key):
    """Deterministic synthetic weights matching VAE(img_dim=32, h_dim=1024, z_dim=128)."""
    ks = jax.random.split(key, 20)
    w = lambda k, s, sc=0.05: sc * jax.random.normal(k, s, jnp.float32)
    p = {}
    # encoder: Conv2d(3,32,4,2) -> Conv2d(32,64,4,2) -> Conv2d(64,256,4,2)
    p["e1_w"] = w(ks[0], (32, 3, 4, 4));    p["e1_b"] = w(ks[1], (32,), 0.01)
    p["e2_w"] = w(ks[2], (64, 32, 4, 4));   p["e2_b"] = w(ks[3], (64,), 0.01)
    p["e3_w"] = w(ks[4], (256, 64, 4, 4));  p["e3_b"] = w(ks[5], (256,), 0.01)
    # bottleneck linears (stored as (in, out), 'in' in PyTorch NCHW-flatten order)
    p["fc1_w"] = w(ks[6], (1024, 128));     p["fc1_b"] = w(ks[7], (128,), 0.01)
    p["fc2_w"] = w(ks[8], (1024, 128));     p["fc2_b"] = w(ks[9], (128,), 0.01)
    p["fc3_w"] = w(ks[10], (128, 1024));    p["fc3_b"] = w(ks[11], (1024,), 0.01)
    # decoder: ConvT(1024,128,5,2) -> ConvT(128,32,6,2) -> ConvT(32,3,6,2)
    p["d1_w"] = w(ks[12], (1024, 128, 5, 5)); p["d1_b"] = w(ks[13], (128,), 0.01)
    p["d2_w"] = w(ks[14], (128, 32, 6, 6));   p["d2_b"] = w(ks[15], (32,), 0.01)
    p["d3_w"] = w(ks[16], (32, 3, 6, 6));     p["d3_b"] = w(ks[17], (3,), 0.01)
    return p


def vae_forward(q, x, eps):
    """q: prepared (pre-laid-out) params; x: (B,3,32,32) NCHW; eps: (B,128)."""
    B = x.shape[0]
    xh = jnp.transpose(x, (0, 2, 3, 1)).astype(jnp.bfloat16)    # NCHW -> NHWC (once)

    # ---- encode ----
    h = conv2d_nhwc(xh, q["e1_w"], q["e1_b"], 4, 2, 32, "relu")   # (B, 15, 15, 32)
    h = conv2d_nhwc(h,  q["e2_w"], q["e2_b"], 4, 2, 64, "relu")   # (B, 6, 6, 64)
    h = conv2d_nhwc(h,  q["e3_w"], q["e3_b"], 4, 2, 256, "relu")  # (B, 2, 2, 256)
    h = h.reshape(B, 1024)                                        # Flatten (NHWC order)

    # ---- fused bottleneck: fc1|fc2 + reparameterize + fc3 + d1 (+ReLU), one kernel
    mu, logvar, z, d1 = bottleneck_d1(h, eps, q)
    d = d1.reshape(B, 5, 5, 128)                                  # NHWC

    # ---- decode ----
    d = conv_transpose2d_s2k6(d, q["d2_w"], q["d2_b"], 32, "relu")          # (B,14,14,32)
    r = conv_transpose2d_s2k6(d, q["d3_w"], q["d3_b"], 3, "sigmoid",
                              out_dtype=jnp.float32)                         # (B,32,32,3)
    recon = jnp.transpose(r, (0, 3, 1, 2))                        # NHWC -> NCHW (once)
    return recon, z, mu, logvar


if __name__ == "__main__":
    key = jax.random.PRNGKey(0)
    kx, kp, ke = jax.random.split(key, 3)
    x = jax.random.normal(kx, (2, 3, 32, 32), jnp.float32)        # NCHW, like PyTorch
    raw_params = init_params(kp)
    params = prepare_params(raw_params)                           # one-time layout/cast
    # torch.randn(*mu.size()) in reparameterize() is passed in explicitly as eps
    eps = jax.random.normal(ke, (2, 128), jnp.float32)

    fwd = jax.jit(vae_forward)
    recon_x, z, mu, logvar = fwd(params, x, eps)
    jax.block_until_ready((recon_x, z, mu, logvar))

    assert recon_x.shape == (2, 3, 32, 32)
    assert z.shape == (2, 128) and mu.shape == (2, 128) and logvar.shape == (2, 128)
    assert bool(jnp.all(jnp.isfinite(recon_x)))
    assert bool(jnp.all(recon_x >= 0.0)) and bool(jnp.all(recon_x <= 1.0))
    print("KERNEL_OK")
</pallas_src>

<mosaic_0001>
module attributes {stable_mosaic.version = 11 : i64} {
  func.func @_mm_bias_act_kernel(%arg0: i32, %arg1: memref<450x48xbf16, #tpu.memory_space<vmem>>, %arg2: memref<48x128xbf16, #tpu.memory_space<vmem>>, %arg3: memref<1x128xf32, #tpu.memory_space<vmem>>, %arg4: memref<450x128xbf16, #tpu.memory_space<vmem>>) attributes {dimension_semantics = [#tpu.dimension_semantics<parallel>], iteration_bounds = array<i64: 1>, scalar_prefetch = 0 : i64, scratch_operands = 0 : i64, tpu.core_type = #tpu.core_type<tc>, window_params = [{transform_indices = @transform_0, window_bounds = array<i64: 450, 48>}, {pipeline_mode = #tpu.pipeline_mode<synchronous>, transform_indices = @transform_1, window_bounds = array<i64: 48, 128>}, {pipeline_mode = #tpu.pipeline_mode<synchronous>, transform_indices = @transform_2, window_bounds = array<i64: 1, 128>}, {transform_indices = @transform_3, window_bounds = array<i64: 450, 128>}]} {
    %c0 = arith.constant 0 : index
    %c0_0 = arith.constant 0 : index
    %0 = vector.load %arg1[%c0, %c0_0] : memref<450x48xbf16, #tpu.memory_space<vmem>>, vector<450x48xbf16>
    %c0_1 = arith.constant 0 : index
    %c0_2 = arith.constant 0 : index
    %1 = vector.load %arg2[%c0_1, %c0_2] : memref<48x128xbf16, #tpu.memory_space<vmem>>, vector<48x128xbf16>
    %cst = arith.constant dense<0.000000e+00> : vector<450x128xf32>
    %2 = tpu.matmul %0, %1, %cst {dimension_numbers = #tpu.dot_dimension_numbers<[1], [0], [0], [1], [0, 0, 1, 1], [], []>} : vector<450x48xbf16>, vector<48x128xbf16>, vector<450x128xf32> -> vector<450x128xf32>
    %c0_3 = arith.constant 0 : index
    %c0_4 = arith.constant 0 : index
    %3 = vector.load %arg3[%c0_3, %c0_4] : memref<1x128xf32, #tpu.memory_space<vmem>>, vector<1x128xf32>
    %4 = vector.broadcast %3 : vector<1x128xf32> to vector<450x128xf32>
    %5 = arith.addf %2, %4 : vector<450x128xf32>
    %cst_5 = arith.constant 0.000000e+00 : f32
    %6 = vector.broadcast %cst_5 : f32 to vector<450x128xf32>
    %7 = arith.maximumf %5, %6 : vector<450x128xf32>
    %8 = arith.truncf %7 : vector<450x128xf32> to vector<450x128xbf16>
    %c0_6 = arith.constant 0 : index
    %c0_7 = arith.constant 0 : index
    %9 = vector.load %arg4[%c0_6, %c0_7] : memref<450x128xbf16, #tpu.memory_space<vmem>>, vector<450x128xbf16>
    tpu.vector_store %arg4[%c0_6, %c0_7], %8 {strides = array<i32>} : memref<450x128xbf16, #tpu.memory_space<vmem>>, vector<450x128xbf16>,
    return
  }
  func.func @transform_0(%arg0: i32) -> (i32, i32) {
    %c0_i32 = arith.constant 0 : i32
    %c0_i32_0 = arith.constant 0 : i32
    return %arg0, %c0_i32 : i32, i32
  }
  func.func @transform_1(%arg0: i32) -> (i32, i32) {
    %c0_i32 = arith.constant 0 : i32
    %c0_i32_0 = arith.constant 0 : i32
    %c0_i32_1 = arith.constant 0 : i32
    return %c0_i32, %c0_i32_0 : i32, i32
  }
  func.func @transform_2(%arg0: i32) -> (i32, i32) {
    %c0_i32 = arith.constant 0 : i32
    %c0_i32_0 = arith.constant 0 : i32
    %c0_i32_1 = arith.constant 0 : i32
    return %c0_i32, %c0_i32_0 : i32, i32
  }
  func.func @transform_3(%arg0: i32) -> (i32, i32) {
    %c0_i32 = arith.constant 0 : i32
    %c0_i32_0 = arith.constant 0 : i32
    return %arg0, %c0_i32 : i32, i32
  }
}

module attributes {stable_mosaic.version = 11 : i64} {
  func.func @_mm_bias_act_kernel(%arg0: i32, %arg1: memref<72x512xbf16, #tpu.memory_space<vmem>>, %arg2: memref<512x128xbf16, #tpu.memory_space<vmem>>, %arg3: memref<1x128xf32, #tpu.memory_space<vmem>>, %arg4: memref<72x128xbf16, #tpu.memory_space<vmem>>) attributes {dimension_semantics = [#tpu.dimension_semantics<parallel>], iteration_bounds = array<i64: 1>, scalar_prefetch = 0 : i64, scratch_operands = 0 : i64, tpu.core_type = #tpu.core_type<tc>, window_params = [{transform_indices = @transform_0, window_bounds = array<i64: 72, 512>}, {pipeline_mode = #tpu.pipeline_mode<synchronous>, transform_indices = @transform_1, window_bounds = array<i64: 512, 128>}, {pipeline_mode = #tpu.pipeline_mode<synchronous>, transform_indices = @transform_2, window_bounds = array<i64: 1, 128>}, {transform_indices = @transform_3, window_bounds = array<i64: 72, 128>}]} {
    %c0 = arith.constant 0 : index
    %c0_0 = arith.constant 0 : index
    %0 = vector.load %arg1[%c0, %c0_0] : memref<72x512xbf16, #tpu.memory_space<vmem>>, vector<72x512xbf16>
    %c0_1 = arith.constant 0 : index
    %c0_2 = arith.constant 0 : index
    %1 = vector.load %arg2[%c0_1, %c0_2] : memref<512x128xbf16, #tpu.memory_space<vmem>>, vector<512x128xbf16>
    %cst = arith.constant dense<0.000000e+00> : vector<72x128xf32>
    %2 = tpu.matmul %0, %1, %cst {dimension_numbers = #tpu.dot_dimension_numbers<[1], [0], [0], [1], [0, 0, 1, 1], [], []>} : vector<72x512xbf16>, vector<512x128xbf16>, vector<72x128xf32> -> vector<72x128xf32>
    %c0_3 = arith.constant 0 : index
    %c0_4 = arith.constant 0 : index
    %3 = vector.load %arg3[%c0_3, %c0_4] : memref<1x128xf32, #tpu.memory_space<vmem>>, vector<1x128xf32>
    %4 = vector.broadcast %3 : vector<1x128xf32> to vector<72x128xf32>
    %5 = arith.addf %2, %4 : vector<72x128xf32>
    %cst_5 = arith.constant 0.000000e+00 : f32
    %6 = vector.broadcast %cst_5 : f32 to vector<72x128xf32>
    %7 = arith.maximumf %5, %6 : vector<72x128xf32>
    %8 = arith.truncf %7 : vector<72x128xf32> to vector<72x128xbf16>
    %c0_6 = arith.constant 0 : index
    %c0_7 = arith.constant 0 : index
    %9 = vector.load %arg4[%c0_6, %c0_7] : memref<72x128xbf16, #tpu.memory_space<vmem>>, vector<72x128xbf16>
    tpu.vector_store %arg4[%c0_6, %c0_7], %8 {strides = array<i32>} : memref<72x128xbf16, #tpu.memory_space<vmem>>, vector<72x128xbf16>,
    return
  }
  func.func @transform_0(%arg0: i32) -> (i32, i32) {
    %c0_i32 = arith.constant 0 : i32
    %c0_i32_0 = arith.constant 0 : i32
    return %arg0, %c0_i32 : i32, i32
  }
  func.func @transform_1(%arg0: i32) -> (i32, i32) {
    %c0_i32 = arith.constant 0 : i32
    %c0_i32_0 = arith.constant 0 : i32
    %c0_i32_1 = arith.constant 0 : i32
    return %c0_i32, %c0_i32_0 : i32, i32
  }
  func.func @transform_2(%arg0: i32) -> (i32, i32) {
    %c0_i32 = arith.constant 0 : i32
    %c0_i32_0 = arith.constant 0 : i32
    %c0_i32_1 = arith.constant 0 : i32
    return %c0_i32, %c0_i32_0 : i32, i32
  }
  func.func @transform_3(%arg0: i32) -> (i32, i32) {
    %c0_i32 = arith.constant 0 : i32
    %c0_i32_0 = arith.constant 0 : i32
    return %arg0, %c0_i32 : i32, i32
  }
}

module attributes {stable_mosaic.version = 11 : i64} {
  func.func @_mm_bias_act_kernel(%arg0: i32, %arg1: memref<8x1024xbf16, #tpu.memory_space<vmem>>, %arg2: memref<1024x256xbf16, #tpu.memory_space<vmem>>, %arg3: memref<1x256xf32, #tpu.memory_space<vmem>>, %arg4: memref<8x256xbf16, #tpu.memory_space<vmem>>) attributes {dimension_semantics = [#tpu.dimension_semantics<parallel>], iteration_bounds = array<i64: 1>, scalar_prefetch = 0 : i64, scratch_operands = 0 : i64, tpu.core_type = #tpu.core_type<tc>, window_params = [{transform_indices = @transform_0, window_bounds = array<i64: 8, 1024>}, {pipeline_mode = #tpu.pipeline_mode<synchronous>, transform_indices = @transform_1, window_bounds = array<i64: 1024, 256>}, {pipeline_mode = #tpu.pipeline_mode<synchronous>, transform_indices = @transform_2, window_bounds = array<i64: 1, 256>}, {transform_indices = @transform_3, window_bounds = array<i64: 8, 256>}]} {
    %c0 = arith.constant 0 : index
    %c0_0 = arith.constant 0 : index
    %0 = vector.load %arg1[%c0, %c0_0] : memref<8x1024xbf16, #tpu.memory_space<vmem>>, vector<8x1024xbf16>
    %c0_1 = arith.constant 0 : index
    %c0_2 = arith.constant 0 : index
    %1 = vector.load %arg2[%c0_1, %c0_2] : memref<1024x256xbf16, #tpu.memory_space<vmem>>, vector<1024x256xbf16>
    %cst = arith.constant dense<0.000000e+00> : vector<8x256xf32>
    %2 = tpu.matmul %0, %1, %cst {dimension_numbers = #tpu.dot_dimension_numbers<[1], [0], [0], [1], [0, 0, 1, 1], [], []>} : vector<8x1024xbf16>, vector<1024x256xbf16>, vector<8x256xf32> -> vector<8x256xf32>
    %c0_3 = arith.constant 0 : index
    %c0_4 = arith.constant 0 : index
    %3 = vector.load %arg3[%c0_3, %c0_4] : memref<1x256xf32, #tpu.memory_space<vmem>>, vector<1x256xf32>
    %4 = vector.broadcast %3 : vector<1x256xf32> to vector<8x256xf32>
    %5 = arith.addf %2, %4 : vector<8x256xf32>
    %cst_5 = arith.constant 0.000000e+00 : f32
    %6 = vector.broadcast %cst_5 : f32 to vector<8x256xf32>
    %7 = arith.maximumf %5, %6 : vector<8x256xf32>
    %8 = arith.truncf %7 : vector<8x256xf32> to vector<8x256xbf16>
    %c0_6 = arith.constant 0 : index
    %c0_7 = arith.constant 0 : index
    %9 = vector.load %arg4[%c0_6, %c0_7] : memref<8x256xbf16, #tpu.memory_space<vmem>>, vector<8x256xbf16>
    tpu.vector_store %arg4[%c0_6, %c0_7], %8 {strides = array<i32>} : memref<8x256xbf16, #tpu.memory_space<vmem>>, vector<8x256xbf16>,
    return
  }
  func.func @transform_0(%arg0: i32) -> (i32, i32) {
    %c0_i32 = arith.constant 0 : i32
    %c0_i32_0 = arith.constant 0 : i32
    return %arg0, %c0_i32 : i32, i32
  }
  func.func @transform_1(%arg0: i32) -> (i32, i32) {
    %c0_i32 = arith.constant 0 : i32
    %c0_i32_0 = arith.constant 0 : i32
    %c0_i32_1 = arith.constant 0 : i32
    return %c0_i32, %c0_i32_0 : i32, i32
  }
  func.func @transform_2(%arg0: i32) -> (i32, i32) {
    %c0_i32 = arith.constant 0 : i32
    %c0_i32_0 = arith.constant 0 : i32
    %c0_i32_1 = arith.constant 0 : i32
    return %c0_i32, %c0_i32_0 : i32, i32
  }
  func.func @transform_3(%arg0: i32) -> (i32, i32) {
    %c0_i32 = arith.constant 0 : i32
    %c0_i32_0 = arith.constant 0 : i32
    return %arg0, %c0_i32 : i32, i32
  }
}

module attributes {stable_mosaic.version = 11 : i64} {
  func.func @_bottleneck_kernel(%arg0: i32, %arg1: memref<2x1024xbf16, #tpu.memory_space<vmem>>, %arg2: memref<2x128xf32, #tpu.memory_space<vmem>>, %arg3: memref<1024x256xbf16, #tpu.memory_space<vmem>>, %arg4: memref<1x256xf32, #tpu.memory_space<vmem>>, %arg5: memref<128x1024xbf16, #tpu.memory_space<vmem>>, %arg6: memref<1x1024xf32, #tpu.memory_space<vmem>>, %arg7: memref<1024x640xbf16, #tpu.memory_space<vmem>>, %arg8: memref<1x640xf32, #tpu.memory_space<vmem>>, %arg9: memref<2x128xf32, #tpu.memory_space<vmem>>, %arg10: memref<2x128xf32, #tpu.memory_space<vmem>>, %arg11: memref<2x128xf32, #tpu.memory_space<vmem>>, %arg12: memref<2x640xbf16, #tpu.memory_space<vmem>>, %arg13: memref<2x1024xbf16, #tpu.memory_space<vmem>>) attributes {dimension_semantics = [#tpu.dimension_semantics<arbitrary>], iteration_bounds = array<i64: 5>, scalar_prefetch = 0 : i64, scratch_operands = 1 : i64, tpu.core_type = #tpu.core_type<tc>, window_params = [{pipeline_mode = #tpu.pipeline_mode<synchronous>, transform_indices = @transform_0, window_bounds = array<i64: 2, 1024>}, {pipeline_mode = #tpu.pipeline_mode<synchronous>, transform_indices = @transform_1, window_bounds = array<i64: 2, 128>}, {pipeline_mode = #tpu.pipeline_mode<synchronous>, transform_indices = @transform_2, window_bounds = array<i64: 1024, 256>}, {pipeline_mode = #tpu.pipeline_mode<synchronous>, transform_indices = @transform_3, window_bounds = array<i64: 1, 256>}, {pipeline_mode = #tpu.pipeline_mode<synchronous>, transform_indices = @transform_4, window_bounds = array<i64: 128, 1024>}, {pipeline_mode = #tpu.pipeline_mode<synchronous>, transform_indices = @transform_5, window_bounds = array<i64: 1, 1024>}, {transform_indices = @transform_6, window_bounds = array<i64: 1024, 640>}, {transform_indices = @transform_7, window_bounds = array<i64: 1, 640>}, {pipeline_mode = #tpu.pipeline_mode<synchronous>, transform_indices = @transform_8, window_bounds = array<i64: 2, 128>}, {pipeline_mode = #tpu.pipeline_mode<synchronous>, transform_indices = @transform_9, window_bounds = array<i64: 2, 128>}, {pipeline_mode = #tpu.pipeline_mode<synchronous>, transform_indices = @transform_10, window_bounds = array<i64: 2, 128>}, {transform_indices = @transform_11, window_bounds = array<i64: 2, 640>}]} {
    %c0_i32 = arith.constant 0 : i32
    %0 = arith.cmpi eq, %arg0, %c0_i32 : i32
    %1 = arith.extui %0 : i1 to i32
    %c0_i32_0 = arith.constant 0 : i32
    %2 = arith.cmpi ne, %1, %c0_i32_0 : i32
    scf.if %2 {
      %c0_9 = arith.constant 0 : index
      %c0_10 = arith.constant 0 : index
      %13 = vector.load %arg1[%c0_9, %c0_10] : memref<2x1024xbf16, #tpu.memory_space<vmem>>, vector<2x1024xbf16>
      %c0_11 = arith.constant 0 : index
      %c0_12 = arith.constant 0 : index
      %14 = vector.load %arg3[%c0_11, %c0_12] : memref<1024x256xbf16, #tpu.memory_space<vmem>>, vector<1024x256xbf16>
      %cst_13 = arith.constant dense<0.000000e+00> : vector<2x256xf32>
      %15 = tpu.matmul %13, %14, %cst_13 {dimension_numbers = #tpu.dot_dimension_numbers<[1], [0], [0], [1], [0, 0, 1, 1], [], []>} : vector<2x1024xbf16>, vector<1024x256xbf16>, vector<2x256xf32> -> vector<2x256xf32>
      %c0_14 = arith.constant 0 : index
      %c0_15 = arith.constant 0 : index
      %16 = vector.load %arg4[%c0_14, %c0_15] : memref<1x256xf32, #tpu.memory_space<vmem>>, vector<1x256xf32>
      %17 = vector.broadcast %16 : vector<1x256xf32> to vector<2x256xf32>
      %18 = arith.addf %15, %17 : vector<2x256xf32>
      %19 = vector.extract_strided_slice %18 {offsets = [0, 0], sizes = [2, 128], strides = [1, 1]} : vector<2x256xf32> to vector<2x128xf32>
      %20 = vector.extract_strided_slice %18 {offsets = [0, 128], sizes = [2, 128], strides = [1, 1]} : vector<2x256xf32> to vector<2x128xf32>
      %cst_16 = arith.constant 5.000000e-01 : f32
      %21 = vector.broadcast %cst_16 : f32 to vector<2x128xf32>
      %22 = arith.mulf %21, %20 : vector<2x128xf32>
      %23 = math.exp %22 : vector<2x128xf32>
      %c0_17 = arith.constant 0 : index
      %c0_18 = arith.constant 0 : index
      %24 = vector.load %arg2[%c0_17, %c0_18] : memref<2x128xf32, #tpu.memory_space<vmem>>, vector<2x128xf32>
      %25 = arith.mulf %23, %24 : vector<2x128xf32>
      %26 = arith.addf %19, %25 : vector<2x128xf32>
      %c0_19 = arith.constant 0 : index
      %c0_20 = arith.constant 0 : index
      %27 = vector.load %arg9[%c0_19, %c0_20] : memref<2x128xf32, #tpu.memory_space<vmem>>, vector<2x128xf32>
      tpu.vector_store %arg9[%c0_19, %c0_20], %19 {strides = array<i32>} : memref<2x128xf32, #tpu.memory_space<vmem>>, vector<2x128xf32>,
      %c0_21 = arith.constant 0 : index
      %c0_22 = arith.constant 0 : index
      %28 = vector.load %arg10[%c0_21, %c0_22] : memref<2x128xf32, #tpu.memory_space<vmem>>, vector<2x128xf32>
      tpu.vector_store %arg10[%c0_21, %c0_22], %20 {strides = array<i32>} : memref<2x128xf32, #tpu.memory_space<vmem>>, vector<2x128xf32>,
      %c0_23 = arith.constant 0 : index
      %c0_24 = arith.constant 0 : index
      %29 = vector.load %arg11[%c0_23, %c0_24] : memref<2x128xf32, #tpu.memory_space<vmem>>, vector<2x128xf32>
      tpu.vector_store %arg11[%c0_23, %c0_24], %26 {strides = array<i32>} : memref<2x128xf32, #tpu.memory_space<vmem>>, vector<2x128xf32>,
      %30 = arith.truncf %26 : vector<2x128xf32> to vector<2x128xbf16>
      %c0_25 = arith.constant 0 : index
      %c0_26 = arith.constant 0 : index
      %31 = vector.load %arg5[%c0_25, %c0_26] : memref<128x1024xbf16, #tpu.memory_space<vmem>>, vector<128x1024xbf16>
      %cst_27 = arith.constant dense<0.000000e+00> : vector<2x1024xf32>
      %32 = tpu.matmul %30, %31, %cst_27 {dimension_numbers = #tpu.dot_dimension_numbers<[1], [0], [0], [1], [0, 0, 1, 1], [], []>} : vector<2x128xbf16>, vector<128x1024xbf16>, vector<2x1024xf32> -> vector<2x1024xf32>
      %c0_28 = arith.constant 0 : index
      %c0_29 = arith.constant 0 : index
      %33 = vector.load %arg6[%c0_28, %c0_29] : memref<1x1024xf32, #tpu.memory_space<vmem>>, vector<1x1024xf32>
      %34 = vector.broadcast %33 : vector<1x1024xf32> to vector<2x1024xf32>
      %35 = arith.addf %32, %34 : vector<2x1024xf32>
      %36 = arith.truncf %35 : vector<2x1024xf32> to vector<2x1024xbf16>
      %c0_30 = arith.constant 0 : index
      %c0_31 = arith.constant 0 : index
      %37 = vector.load %arg13[%c0_30, %c0_31] : memref<2x1024xbf16, #tpu.memory_space<vmem>>, vector<2x1024xbf16>
      tpu.vector_store %arg13[%c0_30, %c0_31], %36 {strides = array<i32>} : memref<2x1024xbf16, #tpu.memory_space<vmem>>, vector<2x1024xbf16>,
    } else {
    }
    %c0 = arith.constant 0 : index
    %c0_1 = arith.constant 0 : index
    %3 = vector.load %arg13[%c0, %c0_1] : memref<2x1024xbf16, #tpu.memory_space<vmem>>, vector<2x1024xbf16>
    %c0_2 = arith.constant 0 : index
    %c0_3 = arith.constant 0 : index
    %4 = vector.load %arg7[%c0_2, %c0_3] : memref<1024x640xbf16, #tpu.memory_space<vmem>>, vector<1024x640xbf16>
    %cst = arith.constant dense<0.000000e+00> : vector<2x640xf32>
    %5 = tpu.matmul %3, %4, %cst {dimension_numbers = #tpu.dot_dimension_numbers<[1], [0], [0], [1], [0, 0, 1, 1], [], []>} : vector<2x1024xbf16>, vector<1024x640xbf16>, vector<2x640xf32> -> vector<2x640xf32>
    %c0_4 = arith.constant 0 : index
    %c0_5 = arith.constant 0 : index
    %6 = vector.load %arg8[%c0_4, %c0_5] : memref<1x640xf32, #tpu.memory_space<vmem>>, vector<1x640xf32>
    %7 = vector.broadcast %6 : vector<1x640xf32> to vector<2x640xf32>
    %8 = arith.addf %5, %7 : vector<2x640xf32>
    %cst_6 = arith.constant 0.000000e+00 : f32
    %9 = vector.broadcast %cst_6 : f32 to vector<2x640xf32>
    %10 = arith.maximumf %8, %9 : vector<2x640xf32>
    %11 = arith.truncf %10 : vector<2x640xf32> to vector<2x640xbf16>
    %c0_7 = arith.constant 0 : index
    %c0_8 = arith.constant 0 : index
    %12 = vector.load %arg12[%c0_7, %c0_8] : memref<2x640xbf16, #tpu.memory_space<vmem>>, vector<2x640xbf16>
    tpu.vector_store %arg12[%c0_7, %c0_8], %11 {strides = array<i32>} : memref<2x640xbf16, #tpu.memory_space<vmem>>, vector<2x640xbf16>,
    return
  }
  func.func @transform_0(%arg0: i32) -> (i32, i32) {
    %c0_i32 = arith.constant 0 : i32
    %c0_i32_0 = arith.constant 0 : i32
    %c0_i32_1 = arith.constant 0 : i32
    return %c0_i32, %c0_i32_0 : i32, i32
  }
  func.func @transform_1(%arg0: i32) -> (i32, i32) {
    %c0_i32 = arith.constant 0 : i32
    %c0_i32_0 = arith.constant 0 : i32
    %c0_i32_1 = arith.constant 0 : i32
    return %c0_i32, %c0_i32_0 : i32, i32
  }
  func.func @transform_2(%arg0: i32) -> (i32, i32) {
    %c0_i32 = arith.constant 0 : i32
    %c0_i32_0 = arith.constant 0 : i32
    %c0_i32_1 = arith.constant 0 : i32
    return %c0_i32, %c0_i32_0 : i32, i32
  }
  func.func @transform_3(%arg0: i32) -> (i32, i32) {
    %c0_i32 = arith.constant 0 : i32
    %c0_i32_0 = arith.constant 0 : i32
    %c0_i32_1 = arith.constant 0 : i32
    return %c0_i32, %c0_i32_0 : i32, i32
  }
  func.func @transform_4(%arg0: i32) -> (i32, i32) {
    %c0_i32 = arith.constant 0 : i32
    %c0_i32_0 = arith.constant 0 : i32
    %c0_i32_1 = arith.constant 0 : i32
    return %c0_i32, %c0_i32_0 : i32, i32
  }
  func.func @transform_5(%arg0: i32) -> (i32, i32) {
    %c0_i32 = arith.constant 0 : i32
    %c0_i32_0 = arith.constant 0 : i32
    %c0_i32_1 = arith.constant 0 : i32
    return %c0_i32, %c0_i32_0 : i32, i32
  }
  func.func @transform_6(%arg0: i32) -> (i32, i32) {
    %c0_i32 = arith.constant 0 : i32
    %c0_i32_0 = arith.constant 0 : i32
    return %c0_i32, %arg0 : i32, i32
  }
  func.func @transform_7(%arg0: i32) -> (i32, i32) {
    %c0_i32 = arith.constant 0 : i32
    %c0_i32_0 = arith.constant 0 : i32
    return %c0_i32, %arg0 : i32, i32
  }
  func.func @transform_8(%arg0: i32) -> (i32, i32) {
    %c0_i32 = arith.constant 0 : i32
    %c0_i32_0 = arith.constant 0 : i32
    %c0_i32_1 = arith.constant 0 : i32
    return %c0_i32, %c0_i32_0 : i32, i32
  }
  func.func @transform_9(%arg0: i32) -> (i32, i32) {
    %c0_i32 = arith.constant 0 : i32
    %c0_i32_0 = arith.constant 0 : i32
    %c0_i32_1 = arith.constant 0 : i32
    return %c0_i32, %c0_i32_0 : i32, i32
  }
  func.func @transform_10(%arg0: i32) -> (i32, i32) {
    %c0_i32 = arith.constant 0 : i32
    %c0_i32_0 = arith.constant 0 : i32
    %c0_i32_1 = arith.constant 0 : i32
    return %c0_i32, %c0_i32_0 : i32, i32
  }
  func.func @transform_11(%arg0: i32) -> (i32, i32) {
    %c0_i32 = arith.constant 0 : i32
    %c0_i32_0 = arith.constant 0 : i32
    return %c0_i32, %arg0 : i32, i32
  }
}

module attributes {stable_mosaic.version = 11 : i64} {
  func.func @_mm_bias_act_kernel(%arg0: i32, %arg1: memref<98x1152xbf16, #tpu.memory_space<vmem>>, %arg2: memref<1152x128xbf16, #tpu.memory_space<vmem>>, %arg3: memref<1x128xf32, #tpu.memory_space<vmem>>, %arg4: memref<98x128xbf16, #tpu.memory_space<vmem>>) attributes {dimension_semantics = [#tpu.dimension_semantics<parallel>], iteration_bounds = array<i64: 1>, scalar_prefetch = 0 : i64, scratch_operands = 0 : i64, tpu.core_type = #tpu.core_type<tc>, window_params = [{transform_indices = @transform_0, window_bounds = array<i64: 98, 1152>}, {pipeline_mode = #tpu.pipeline_mode<synchronous>, transform_indices = @transform_1, window_bounds = array<i64: 1152, 128>}, {pipeline_mode = #tpu.pipeline_mode<synchronous>, transform_indices = @transform_2, window_bounds = array<i64: 1, 128>}, {transform_indices = @transform_3, window_bounds = array<i64: 98, 128>}]} {
    %c0 = arith.constant 0 : index
    %c0_0 = arith.constant 0 : index
    %0 = vector.load %arg1[%c0, %c0_0] : memref<98x1152xbf16, #tpu.memory_space<vmem>>, vector<98x1152xbf16>
    %c0_1 = arith.constant 0 : index
    %c0_2 = arith.constant 0 : index
    %1 = vector.load %arg2[%c0_1, %c0_2] : memref<1152x128xbf16, #tpu.memory_space<vmem>>, vector<1152x128xbf16>
    %cst = arith.constant dense<0.000000e+00> : vector<98x128xf32>
    %2 = tpu.matmul %0, %1, %cst {dimension_numbers = #tpu.dot_dimension_numbers<[1], [0], [0], [1], [0, 0, 1, 1], [], []>} : vector<98x1152xbf16>, vector<1152x128xbf16>, vector<98x128xf32> -> vector<98x128xf32>
    %c0_3 = arith.constant 0 : index
    %c0_4 = arith.constant 0 : index
    %3 = vector.load %arg3[%c0_3, %c0_4] : memref<1x128xf32, #tpu.memory_space<vmem>>, vector<1x128xf32>
    %4 = vector.broadcast %3 : vector<1x128xf32> to vector<98x128xf32>
    %5 = arith.addf %2, %4 : vector<98x128xf32>
    %cst_5 = arith.constant 0.000000e+00 : f32
    %6 = vector.broadcast %cst_5 : f32 to vector<98x128xf32>
    %7 = arith.maximumf %5, %6 : vector<98x128xf32>
    %8 = arith.truncf %7 : vector<98x128xf32> to vector<98x128xbf16>
    %c0_6 = arith.constant 0 : index
    %c0_7 = arith.constant 0 : index
    %9 = vector.load %arg4[%c0_6, %c0_7] : memref<98x128xbf16, #tpu.memory_space<vmem>>, vector<98x128xbf16>
    tpu.vector_store %arg4[%c0_6, %c0_7], %8 {strides = array<i32>} : memref<98x128xbf16, #tpu.memory_space<vmem>>, vector<98x128xbf16>,
    return
  }
  func.func @transform_0(%arg0: i32) -> (i32, i32) {
    %c0_i32 = arith.constant 0 : i32
    %c0_i32_0 = arith.constant 0 : i32
    return %arg0, %c0_i32 : i32, i32
  }
  func.func @transform_1(%arg0: i32) -> (i32, i32) {
    %c0_i32 = arith.constant 0 : i32
    %c0_i32_0 = arith.constant 0 : i32
    %c0_i32_1 = arith.constant 0 : i32
    return %c0_i32, %c0_i32_0 : i32, i32
  }
  func.func @transform_2(%arg0: i32) -> (i32, i32) {
    %c0_i32 = arith.constant 0 : i32
    %c0_i32_0 = arith.constant 0 : i32
    %c0_i32_1 = arith.constant 0 : i32
    return %c0_i32, %c0_i32_0 : i32, i32
  }
  func.func @transform_3(%arg0: i32) -> (i32, i32) {
    %c0_i32 = arith.constant 0 : i32
    %c0_i32_0 = arith.constant 0 : i32
    return %arg0, %c0_i32 : i32, i32
  }
}

module attributes {stable_mosaic.version = 11 : i64} {
  func.func @_mm_bias_act_kernel(%arg0: i32, %arg1: memref<512x288xbf16, #tpu.memory_space<vmem>>, %arg2: memref<288x128xbf16, #tpu.memory_space<vmem>>, %arg3: memref<1x128xf32, #tpu.memory_space<vmem>>, %arg4: memref<512x128xf32, #tpu.memory_space<vmem>>) attributes {dimension_semantics = [#tpu.dimension_semantics<parallel>], iteration_bounds = array<i64: 1>, scalar_prefetch = 0 : i64, scratch_operands = 0 : i64, tpu.core_type = #tpu.core_type<tc>, window_params = [{transform_indices = @transform_0, window_bounds = array<i64: 512, 288>}, {pipeline_mode = #tpu.pipeline_mode<synchronous>, transform_indices = @transform_1, window_bounds = array<i64: 288, 128>}, {pipeline_mode = #tpu.pipeline_mode<synchronous>, transform_indices = @transform_2, window_bounds = array<i64: 1, 128>}, {transform_indices = @transform_3, window_bounds = array<i64: 512, 128>}]} {
    %c0 = arith.constant 0 : index
    %c0_0 = arith.constant 0 : index
    %0 = vector.load %arg1[%c0, %c0_0] : memref<512x288xbf16, #tpu.memory_space<vmem>>, vector<512x288xbf16>
    %c0_1 = arith.constant 0 : index
    %c0_2 = arith.constant 0 : index
    %1 = vector.load %arg2[%c0_1, %c0_2] : memref<288x128xbf16, #tpu.memory_space<vmem>>, vector<288x128xbf16>
    %cst = arith.constant dense<0.000000e+00> : vector<512x128xf32>
    %2 = tpu.matmul %0, %1, %cst {dimension_numbers = #tpu.dot_dimension_numbers<[1], [0], [0], [1], [0, 0, 1, 1], [], []>} : vector<512x288xbf16>, vector<288x128xbf16>, vector<512x128xf32> -> vector<512x128xf32>
    %c0_3 = arith.constant 0 : index
    %c0_4 = arith.constant 0 : index
    %3 = vector.load %arg3[%c0_3, %c0_4] : memref<1x128xf32, #tpu.memory_space<vmem>>, vector<1x128xf32>
    %4 = vector.broadcast %3 : vector<1x128xf32> to vector<512x128xf32>
    %5 = arith.addf %2, %4 : vector<512x128xf32>
    %cst_5 = arith.constant 5.000000e-01 : f32
    %6 = vector.broadcast %cst_5 : f32 to vector<512x128xf32>
    %7 = arith.mulf %6, %5 : vector<512x128xf32>
    %8 = math.tanh %7 : vector<512x128xf32>
    %cst_6 = arith.constant 1.000000e+00 : f32
    %9 = vector.broadcast %cst_6 : f32 to vector<512x128xf32>
    %10 = arith.addf %8, %9 : vector<512x128xf32>
    %cst_7 = arith.constant 5.000000e-01 : f32
    %11 = vector.broadcast %cst_7 : f32 to vector<512x128xf32>
    %12 = arith.mulf %11, %10 : vector<512x128xf32>
    %c0_8 = arith.constant 0 : index
    %c0_9 = arith.constant 0 : index
    %13 = vector.load %arg4[%c0_8, %c0_9] : memref<512x128xf32, #tpu.memory_space<vmem>>, vector<512x128xf32>
    tpu.vector_store %arg4[%c0_8, %c0_9], %12 {strides = array<i32>} : memref<512x128xf32, #tpu.memory_space<vmem>>, vector<512x128xf32>,
    return
  }
  func.func @transform_0(%arg0: i32) -> (i32, i32) {
    %c0_i32 = arith.constant 0 : i32
    %c0_i32_0 = arith.constant 0 : i32
    return %arg0, %c0_i32 : i32, i32
  }
  func.func @transform_1(%arg0: i32) -> (i32, i32) {
    %c0_i32 = arith.constant 0 : i32
    %c0_i32_0 = arith.constant 0 : i32
    %c0_i32_1 = arith.constant 0 : i32
    return %c0_i32, %c0_i32_0 : i32, i32
  }
  func.func @transform_2(%arg0: i32) -> (i32, i32) {
    %c0_i32 = arith.constant 0 : i32
    %c0_i32_0 = arith.constant 0 : i32
    %c0_i32_1 = arith.constant 0 : i32
    return %c0_i32, %c0_i32_0 : i32, i32
  }
  func.func @transform_3(%arg0: i32) -> (i32, i32) {
    %c0_i32 = arith.constant 0 : i32
    %c0_i32_0 = arith.constant 0 : i32
    return %arg0, %c0_i32 : i32, i32
  }
}

</mosaic_0001>

<bundles_post_ra>
// kernel: vae_forward.6
= control target key start
LH: loop header
LB: loop body
LE: loop exit
PB: predicated region body
PF: predicated region fallthrough
CT: control target
= control target key end

     0   :  { %8 = vsyncpa [#allocation3], 0  ;;  %s1400_s0 = inlined_call_operand.vmem [shape: bf16[450,48], index: 0, kind: input, shape index: {}]   ;;  %s1401_s1 = inlined_call_operand.hbm [shape: bf16[48,128], index: 1, kind: input, shape index: {}]   ;;  %s1402_s2 = inlined_call_operand.hbm [shape: f32[1,128], index: 2, kind: input, shape index: {}]   ;;  %s1403_s3 = inlined_call_operand.vmem [shape: bf16[450,128], index: 3, kind: output, shape index: {}]  }
   0x1   :  { %s16_s14 = sshll.u32 %s1401_s1, 4  ;;  %s17_s14 = int_to_ptr.hbm [resolvable:$true] %s16_s14 }
   0x2   :  { %9 = vsyncpa [#allocation5], 0  ;;  %s1108_s15 = smov [#allocation2]   ;;  %s30_s19 = sshll.u32 %s1402_s2, 4  ;;  %s31_s19 = int_to_ptr.hbm [resolvable:$true] %s30_s19 }
   0x3   :  { %s18_s16 = sshll.u32 %s1108_s15, 4  ;;  %s1109_s20 = smov 64   ;;  %s19_s16 = int_to_ptr.vmem [resolvable:$true] %s18_s16 }
   0x4   :  { %s1110_s21 = smov 4   ;;  %s1111_s22 = smov [#allocation4]  }
   0x5   :  { %24 = dma.hbm_to_vmem [thread:$0]  %s17_s14, 384, %s19_s16, [#allocation3], %s1109_s20, %s1109_s20, %s1110_s21  }
   0x6   :  { %s32_s23 = sshll.u32 %s1111_s22, 4  ;;  %s33_s23 = int_to_ptr.vmem [resolvable:$true] %s32_s23 }
   0x7   :  { %35 = dma.hbm_to_vmem [thread:$0]  %s31_s19, 16, %s33_s23, [#allocation5]  }
   0x8   :  { %1104 = dma.done.wait [#allocation3], 384  }
   0x9   :  { %1105 = vsyncadd [#allocation3], 4294966912 }
   0xa   :  { %1106 = dma.done.wait [#allocation5], 16  }
   0xb   :  { %1107 = vsyncadd [#allocation5], 4294967280  ;;  %v874_v0 = vld [vmem:[#allocation2 + $0x10] sm:$0xff]  ;;  %v873_v1 = vld [vmem:[#allocation2 + $0x8] sm:$0xff]  ;;  %vm273_vm0 = vcmask 392192  }
   0xc   :  { %1042 = vmatpush.bf16.msra.mxu1 %v874_v0  ;;  %1043 = vmatpush.bf16.msra.mxu2 %v874_v0  ;;  %v872_v2 = vld [vmem:[#allocation2] sm:$0xff]  ;;  %v851_v3 = vld [vmem:[%s1400_s0 + $0x38] sm:$0xff]  ;;  %v845_v9 = vld [vmem:[%s1400_s0 + $0x8] sm:$0xff] }
   0xd   :  { %366 = vmatpush.bf16.msra.mxu0 %v874_v0  ;;  %1044 = vmatpush.bf16.msra.mxu3 %v874_v0  ;;  %v859_v4 = vld [vmem:[%s1400_s0 + $0x78] sm:$0xff]  ;;  %v844_v5 = vld [vmem:[%s1400_s0] sm:$0xff]  ;;  %v853_v11 = vld [vmem:[%s1400_s0 + $0x48] sm:$0xff] }
   0xe   :  { %v867_v6 = vld [vmem:[%s1400_s0 + $0xb8] sm:$0xff]  ;;  %v852_v7 = vld [vmem:[%s1400_s0 + $0x40] sm:$0xff]  ;;  %v861_v12 = vld [vmem:[%s1400_s0 + $0x88] sm:$0xff] }
   0xf   :  { %v860_v8 = vld [vmem:[%s1400_s0 + $0x80] sm:$0xff]  ;;  %v846_v13 = vld [vmem:[%s1400_s0 + $0x10] sm:$0xff]  ;;  %v869_v14 = vld [vmem:[%s1400_s0 + $0xc8] sm:$0xff] }
  0x10   :  { %1045 = vmatpush.bf16.msra.mxu1 %v873_v1  ;;  %1046 = vmatpush.bf16.msra.mxu2 %v873_v1  ;;  %v868_v10 = vld [vmem:[%s1400_s0 + $0xc0] sm:$0xff]  ;;  %v854_v15 = vld [vmem:[%s1400_s0 + $0x50] sm:$0xff]  ;;  %v847_v17 = vld [vmem:[%s1400_s0 + $0x18] sm:$0xff] }
  0x11   :  { %367 = vmatpush.bf16.msra.mxu0 %v873_v1  ;;  %1047 = vmatpush.bf16.msra.mxu3 %v873_v1  ;;  %v862_v16 = vld [vmem:[%s1400_s0 + $0x90] sm:$0xff]  ;;  %v855_v19 = vld [vmem:[%s1400_s0 + $0x58] sm:$0xff]  ;;  %v848_v21 = vld [vmem:[%s1400_s0 + $0x20] sm:$0xff] }
  0x12   :  { %v870_v18 = vld [vmem:[%s1400_s0 + $0xd0] sm:$0xff]  ;;  %v863_v20 = vld [vmem:[%s1400_s0 + $0x98] sm:$0xff]  ;;  %v101_v23 = vld [vmem:[%s1400_s0 + $0xe0] sm:$0x1] }
  0x13   :  { %v871_v22 = vld [vmem:[%s1400_s0 + $0xd8] sm:$0xff]  ;;  %v225_v24 = vunpack.c.l.b16 %v101_v23  ;;  %v856_v25 = vld [vmem:[%s1400_s0 + $0x60] sm:$0xff]  ;;  %v849_v27 = vld [vmem:[%s1400_s0 + $0x28] sm:$0xff] }
  0x14   :  { %1048 = vmatpush.bf16.msra.mxu1 %v872_v2  ;;  %1049 = vmatpush.bf16.msra.mxu2 %v872_v2  ;;  %v864_v26 = vld [vmem:[%s1400_s0 + $0xa0] sm:$0xff]  ;;  %v857_v29 = vld [vmem:[%s1400_s0 + $0x68] sm:$0xff]  ;;  %v850_v31 = vld [vmem:[%s1400_s0 + $0x30] sm:$0xff] }
  0x15   :  { %368 = vmatpush.bf16.msra.mxu0 %v872_v2  ;;  %1050 = vmatpush.bf16.msra.mxu3 %v872_v2  ;;  %v254_v28 = vpack.c.b16 %v225_v24, %v225_v24  ;;  %v865_v30 = vld [vmem:[%s1400_s0 + $0xa8] sm:$0xff]  ;;  %v858_v32 = vld [vmem:[%s1400_s0 + $0x70] sm:$0xff]  ;;  %v1254_v36 = vld [vmem:[#allocation4] ss:$0 sm:$0xff] }
  0x16   :  { %v866_v33 = vld [vmem:[%s1400_s0 + $0xb0] sm:$0xff] }
  0x17   :  { %822 = vmatmul.msk.bf16.vlgmr.msra.gmra.mxu1 %vm273_vm0, %v851_v3  ;;  %830 = vmatmul.msk.bf16.vlgmr.msra.gmra.mxu2 %vm273_vm0, %v859_v4 }
  0x18   :  { %815 = vmatmul.msk.bf16.vlgmr.msra.gmra.mxu0 %vm273_vm0, %v844_v5  ;;  %838 = vmatmul.msk.bf16.vlgmr.msra.gmra.mxu3 %vm273_vm0, %v867_v6 }
  0x27   :  { %823 = vmatmul.msk.bf16.gmra.mxu1 %vm273_vm0, %v852_v7  ;;  %831 = vmatmul.msk.bf16.gmra.mxu2 %vm273_vm0, %v860_v8 }
  0x28   :  { %816 = vmatmul.msk.bf16.gmra.mxu0 %vm273_vm0, %v845_v9  ;;  %839 = vmatmul.msk.bf16.gmra.mxu3 %vm273_vm0, %v868_v10 }
  0x37   :  { %824 = vmatmul.msk.bf16.gmra.mxu1 %vm273_vm0, %v853_v11  ;;  %832 = vmatmul.msk.bf16.gmra.mxu2 %vm273_vm0, %v861_v12 }
  0x38   :  { %817 = vmatmul.msk.bf16.gmra.mxu0 %vm273_vm0, %v846_v13  ;;  %840 = vmatmul.msk.bf16.gmra.mxu3 %vm273_vm0, %v869_v14 }
  0x47   :  { %825 = vmatmul.msk.bf16.gmra.mxu1 %vm273_vm0, %v854_v15  ;;  %833 = vmatmul.msk.bf16.gmra.mxu2 %vm273_vm0, %v862_v16 }
  0x48   :  { %818 = vmatmul.msk.bf16.gmra.mxu0 %vm273_vm0, %v847_v17  ;;  %841 = vmatmul.msk.bf16.gmra.mxu3 %vm273_vm0, %v870_v18 }
  0x57   :  { %826 = vmatmul.msk.bf16.gmra.mxu1 %vm273_vm0, %v855_v19  ;;  %834 = vmatmul.msk.bf16.gmra.mxu2 %vm273_vm0, %v863_v20 }
  0x58   :  { %819 = vmatmul.msk.bf16.gmra.mxu0 %vm273_vm0, %v848_v21  ;;  %842 = vmatmul.msk.bf16.gmra.mxu3 %vm273_vm0, %v871_v22 }
  0x67   :  { %827 = vmatmul.msk.bf16.gmra.mxu1 %vm273_vm0, %v856_v25  ;;  %835 = vmatmul.msk.bf16.gmra.mxu2 %vm273_vm0, %v864_v26 }
  0x68   :  { %820 = vmatmul.msk.bf16.gmra.mxu0 %vm273_vm0, %v849_v27  ;;  %843 = vmatmul.msk.bf16.gmra.mxu3 %vm273_vm0, %v254_v28 }
  0x77   :  { %828 = vmatmul.msk.bf16.gmra.mxu1 %vm273_vm0, %v857_v29  ;;  %836 = vmatmul.msk.bf16.gmra.mxu2 %vm273_vm0, %v865_v30 }
  0x78   :  { %821 = vmatmul.msk.bf16.gmra.mxu0 %vm273_vm0, %v850_v31 }
  0x87   :  { %829 = vmatmul.msk.bf16.gmra.mxu1 %vm273_vm0, %v858_v32  ;;  %837 = vmatmul.msk.bf16.gmra.mxu2 %vm273_vm0, %v866_v33 }
  0x94   :  { %v405_v34 = vpop.f32.mrf.mxu1 }
  0x95   :  { %v370_v35 = vpop.f32.mrf.mxu0  ;;  %v406_v39 = vadd.f32 %v1254_v36, %v405_v34 }
  0x96   :  { %v371_v38 = vadd.f32 %v1254_v36, %v370_v35 }
  0x97   :  { %v528_v46 = vmax.f32 %v406_v39, 0.0 }
  0x98   :  { %v514_v44 = vmax.f32 %v371_v38, 0.0 }
  0x9a   :  { %v445_v37 = vpop.f32.mrf.mxu2 }
  0x9b   :  { %v485_v40 = vpop.f32.mrf.mxu3  ;;  %v446_v50 = vadd.f32 %v1254_v36, %v445_v37 }
  0x9c   :  { %v407_v41 = vpop.f32.mrf.mxu1  ;;  %v486_v49 = vadd.f32 %v1254_v36, %v485_v40 }
  0x9d   :  { %v408_v42 = vadd.f32 %v1254_v36, %v407_v41  ;;  %v372_v43 = vpop.f32.mrf.mxu0  ;;  %v544_v59 = vmax.f32 %v446_v50, 0.0 }
  0x9e   :  { %v373_v45 = vadd.f32 %v1254_v36, %v372_v43  ;;  %v560_v57 = vmax.f32 %v486_v49, 0.0 }
  0x9f   :  { %v529_v47 = vmax.f32 %v408_v42, 0.0 }
  0xa0   :  { %v515_v48 = vmax.f32 %v373_v45, 0.0 }
  0xa1   :  { %v913_v51 = vpack.c.bf16 %v529_v47, %v528_v46 }
  0xa2   :  { %v447_v52 = vpop.f32.mrf.mxu2  ;;  %v878_v53 = vpack.c.bf16 %v515_v48, %v514_v44 }
  0xa3   :  { %1021 = vst [vmem:[%s1403_s3 + $0x38] sm:$0xff] %v913_v51   ;;  %v448_v54 = vadd.f32 %v1254_v36, %v447_v52  ;;  %v487_v55 = vpop.f32.mrf.mxu3 }
  0xa4   :  { %v410_v56 = vpop.f32.mrf.mxu1  ;;  %879 = vst [vmem:[%s1403_s3] sm:$0xff] %v878_v53   ;;  %v488_v58 = vadd.f32 %v1254_v36, %v487_v55 }
  0xa5   :  { %v545_v60 = vmax.f32 %v448_v54, 0.0  ;;  %v375_v61 = vpop.f32.mrf.mxu0  ;;  %v411_v3 = vadd.f32 %v1254_v36, %v410_v56 }
  0xa6   :  { %v561_v62 = vmax.f32 %v488_v58, 0.0  ;;  %v376_v2 = vadd.f32 %v1254_v36, %v375_v61 }
  0xa7   :  { %v953_v63 = vpack.c.bf16 %v545_v60, %v544_v59  ;;  %v530_v10 = vmax.f32 %v411_v3, 0.0 }
  0xa8   :  { %v993_v0 = vpack.c.bf16 %v561_v62, %v560_v57  ;;  %v516_v8 = vmax.f32 %v376_v2, 0.0 }
  0xa9   :  { %1029 = vst [vmem:[%s1403_s3 + $0x78] sm:$0xff] %v953_v63  }
  0xaa   :  { %v450_v1 = vpop.f32.mrf.mxu2  ;;  %1037 = vst [vmem:[%s1403_s3 + $0xb8] sm:$0xff] %v993_v0  }
  0xab   :  { %v490_v4 = vpop.f32.mrf.mxu3  ;;  %v451_v14 = vadd.f32 %v1254_v36, %v450_v1 }
  0xac   :  { %v412_v5 = vpop.f32.mrf.mxu1  ;;  %v491_v13 = vadd.f32 %v1254_v36, %v490_v4 }
  0xad   :  { %v413_v6 = vadd.f32 %v1254_v36, %v412_v5  ;;  %v377_v7 = vpop.f32.mrf.mxu0  ;;  %v546_v23 = vmax.f32 %v451_v14, 0.0 }
  0xae   :  { %v378_v9 = vadd.f32 %v1254_v36, %v377_v7  ;;  %v562_v21 = vmax.f32 %v491_v13, 0.0 }
  0xaf   :  { %v531_v11 = vmax.f32 %v413_v6, 0.0 }
  0xb0   :  { %v517_v12 = vmax.f32 %v378_v9, 0.0 }
  0xb1   :  { %v918_v15 = vpack.c.bf16 %v531_v11, %v530_v10 }
  0xb2   :  { %v452_v16 = vpop.f32.mrf.mxu2  ;;  %v883_v17 = vpack.c.bf16 %v517_v12, %v516_v8 }
  0xb3   :  { %1022 = vst [vmem:[%s1403_s3 + $0x40] sm:$0xff] %v918_v15   ;;  %v453_v18 = vadd.f32 %v1254_v36, %v452_v16  ;;  %v492_v19 = vpop.f32.mrf.mxu3 }
  0xb4   :  { %v415_v20 = vpop.f32.mrf.mxu1  ;;  %1015 = vst [vmem:[%s1403_s3 + $0x8] sm:$0xff] %v883_v17   ;;  %v493_v22 = vadd.f32 %v1254_v36, %v492_v19 }
  0xb5   :  { %v547_v24 = vmax.f32 %v453_v18, 0.0  ;;  %v380_v25 = vpop.f32.mrf.mxu0  ;;  %v416_v31 = vadd.f32 %v1254_v36, %v415_v20 }
  0xb6   :  { %v563_v26 = vmax.f32 %v493_v22, 0.0  ;;  %v381_v30 = vadd.f32 %v1254_v36, %v380_v25 }
  0xb7   :  { %v958_v27 = vpack.c.bf16 %v547_v24, %v546_v23  ;;  %v532_v39 = vmax.f32 %v416_v31, 0.0 }
  0xb8   :  { %v998_v28 = vpack.c.bf16 %v563_v26, %v562_v21  ;;  %v518_v37 = vmax.f32 %v381_v30, 0.0 }
  0xb9   :  { %1030 = vst [vmem:[%s1403_s3 + $0x80] sm:$0xff] %v958_v27  }
  0xba   :  { %v455_v29 = vpop.f32.mrf.mxu2  ;;  %1038 = vst [vmem:[%s1403_s3 + $0xc0] sm:$0xff] %v998_v28  }
  0xbb   :  { %v495_v32 = vpop.f32.mrf.mxu3  ;;  %v456_v43 = vadd.f32 %v1254_v36, %v455_v29 }
  0xbc   :  { %v417_v33 = vpop.f32.mrf.mxu1  ;;  %v496_v42 = vadd.f32 %v1254_v36, %v495_v32 }
  0xbd   :  { %v418_v34 = vadd.f32 %v1254_v36, %v417_v33  ;;  %v382_v35 = vpop.f32.mrf.mxu0  ;;  %v548_v52 = vmax.f32 %v456_v43, 0.0 }
  0xbe   :  { %v383_v38 = vadd.f32 %v1254_v36, %v382_v35  ;;  %v564_v50 = vmax.f32 %v496_v42, 0.0 }
  0xbf   :  { %v533_v40 = vmax.f32 %v418_v34, 0.0 }
  0xc0   :  { %v519_v41 = vmax.f32 %v383_v38, 0.0 }
  0xc1   :  { %v923_v44 = vpack.c.bf16 %v533_v40, %v532_v39 }
  0xc2   :  { %v457_v45 = vpop.f32.mrf.mxu2  ;;  %v888_v46 = vpack.c.bf16 %v519_v41, %v518_v37 }
  0xc3   :  { %1023 = vst [vmem:[%s1403_s3 + $0x48] sm:$0xff] %v923_v44   ;;  %v458_v47 = vadd.f32 %v1254_v36, %v457_v45  ;;  %v497_v48 = vpop.f32.mrf.mxu3 }
  0xc4   :  { %v420_v49 = vpop.f32.mrf.mxu1  ;;  %1016 = vst [vmem:[%s1403_s3 + $0x10] sm:$0xff] %v888_v46   ;;  %v498_v51 = vadd.f32 %v1254_v36, %v497_v48 }
  0xc5   :  { %v549_v53 = vmax.f32 %v458_v47, 0.0  ;;  %v385_v54 = vpop.f32.mrf.mxu0  ;;  %v421_v60 = vadd.f32 %v1254_v36, %v420_v49 }
  0xc6   :  { %v565_v55 = vmax.f32 %v498_v51, 0.0  ;;  %v386_v59 = vadd.f32 %v1254_v36, %v385_v54 }
  0xc7   :  { %v963_v56 = vpack.c.bf16 %v549_v53, %v548_v52  ;;  %v534_v3 = vmax.f32 %v421_v60, 0.0 }
  0xc8   :  { %v1003_v57 = vpack.c.bf16 %v565_v55, %v564_v50  ;;  %v520_v1 = vmax.f32 %v386_v59, 0.0 }
  0xc9   :  { %1031 = vst [vmem:[%s1403_s3 + $0x88] sm:$0xff] %v963_v56  }
  0xca   :  { %v460_v58 = vpop.f32.mrf.mxu2  ;;  %1039 = vst [vmem:[%s1403_s3 + $0xc8] sm:$0xff] %v1003_v57  }
  0xcb   :  { %v500_v61 = vpop.f32.mrf.mxu3  ;;  %v461_v7 = vadd.f32 %v1254_v36, %v460_v58 }
  0xcc   :  { %v422_v62 = vpop.f32.mrf.mxu1  ;;  %v501_v6 = vadd.f32 %v1254_v36, %v500_v61 }
  0xcd   :  { %v423_v63 = vadd.f32 %v1254_v36, %v422_v62  ;;  %v387_v0 = vpop.f32.mrf.mxu0  ;;  %v550_v16 = vmax.f32 %v461_v7, 0.0 }
  0xce   :  { %v388_v2 = vadd.f32 %v1254_v36, %v387_v0  ;;  %v566_v14 = vmax.f32 %v501_v6, 0.0 }
  0xcf   :  { %v535_v4 = vmax.f32 %v423_v63, 0.0 }
  0xd0   :  { %v521_v5 = vmax.f32 %v388_v2, 0.0 }
  0xd1   :  { %v928_v8 = vpack.c.bf16 %v535_v4, %v534_v3 }
  0xd2   :  { %v462_v9 = vpop.f32.mrf.mxu2  ;;  %v893_v10 = vpack.c.bf16 %v521_v5, %v520_v1 }
  0xd3   :  { %1024 = vst [vmem:[%s1403_s3 + $0x50] sm:$0xff] %v928_v8   ;;  %v463_v11 = vadd.f32 %v1254_v36, %v462_v9  ;;  %v502_v12 = vpop.f32.mrf.mxu3 }
  0xd4   :  { %v425_v13 = vpop.f32.mrf.mxu1  ;;  %1017 = vst [vmem:[%s1403_s3 + $0x18] sm:$0xff] %v893_v10   ;;  %v503_v15 = vadd.f32 %v1254_v36, %v502_v12 }
  0xd5   :  { %v551_v17 = vmax.f32 %v463_v11, 0.0  ;;  %v390_v18 = vpop.f32.mrf.mxu0  ;;  %v426_v24 = vadd.f32 %v1254_v36, %v425_v13 }
  0xd6   :  { %v567_v19 = vmax.f32 %v503_v15, 0.0  ;;  %v391_v23 = vadd.f32 %v1254_v36, %v390_v18 }
  0xd7   :  { %v968_v20 = vpack.c.bf16 %v551_v17, %v550_v16  ;;  %v536_v31 = vmax.f32 %v426_v24, 0.0 }
  0xd8   :  { %v1008_v21 = vpack.c.bf16 %v567_v19, %v566_v14  ;;  %v522_v29 = vmax.f32 %v391_v23, 0.0 }
  0xd9   :  { %1032 = vst [vmem:[%s1403_s3 + $0x90] sm:$0xff] %v968_v20  }
  0xda   :  { %v465_v22 = vpop.f32.mrf.mxu2  ;;  %1040 = vst [vmem:[%s1403_s3 + $0xd0] sm:$0xff] %v1008_v21  }
  0xdb   :  { %v505_v25 = vpop.f32.mrf.mxu3  ;;  %v466_v35 = vadd.f32 %v1254_v36, %v465_v22 }
  0xdc   :  { %v427_v26 = vpop.f32.mrf.mxu1  ;;  %v506_v34 = vadd.f32 %v1254_v36, %v505_v25 }
  0xdd   :  { %v428_v27 = vadd.f32 %v1254_v36, %v427_v26  ;;  %v392_v28 = vpop.f32.mrf.mxu0  ;;  %v552_v45 = vmax.f32 %v466_v35, 0.0 }
  0xde   :  { %v393_v30 = vadd.f32 %v1254_v36, %v392_v28  ;;  %v568_v43 = vmax.f32 %v506_v34, 0.0 }
  0xdf   :  { %v537_v32 = vmax.f32 %v428_v27, 0.0 }
  0xe0   :  { %v523_v33 = vmax.f32 %v393_v30, 0.0 }
  0xe1   :  { %v933_v37 = vpack.c.bf16 %v537_v32, %v536_v31 }
  0xe2   :  { %v467_v38 = vpop.f32.mrf.mxu2  ;;  %v898_v39 = vpack.c.bf16 %v523_v33, %v522_v29 }
  0xe3   :  { %1025 = vst [vmem:[%s1403_s3 + $0x58] sm:$0xff] %v933_v37   ;;  %v468_v40 = vadd.f32 %v1254_v36, %v467_v38  ;;  %v507_v41 = vpop.f32.mrf.mxu3 }
  0xe4   :  { %v430_v42 = vpop.f32.mrf.mxu1  ;;  %1018 = vst [vmem:[%s1403_s3 + $0x20] sm:$0xff] %v898_v39   ;;  %v508_v44 = vadd.f32 %v1254_v36, %v507_v41 }
  0xe5   :  { %v553_v46 = vmax.f32 %v468_v40, 0.0  ;;  %v395_v47 = vpop.f32.mrf.mxu0  ;;  %v431_v53 = vadd.f32 %v1254_v36, %v430_v42 }
  0xe6   :  { %v569_v48 = vmax.f32 %v508_v44, 0.0  ;;  %v396_v52 = vadd.f32 %v1254_v36, %v395_v47 }
  0xe7   :  { %v973_v49 = vpack.c.bf16 %v553_v46, %v552_v45  ;;  %v538_v62 = vmax.f32 %v431_v53, 0.0 }
  0xe8   :  { %v1013_v50 = vpack.c.bf16 %v569_v48, %v568_v43  ;;  %v524_v59 = vmax.f32 %v396_v52, 0.0 }
  0xe9   :  { %1033 = vst [vmem:[%s1403_s3 + $0x98] sm:$0xff] %v973_v49  }
  0xea   :  { %v470_v51 = vpop.f32.mrf.mxu2  ;;  %1041 = vst [vmem:[%s1403_s3 + $0xd8] sm:$0xff] %v1013_v50  }
  0xeb   :  { %v510_v54 = vpop.f32.mrf.mxu3  ;;  %v471_v2 = vadd.f32 %v1254_v36, %v470_v51 }
  0xec   :  { %v432_v55 = vpop.f32.mrf.mxu1  ;;  %v511_v56 = vadd.f32 %v1254_v36, %v510_v54 }
  0xed   :  { %v433_v57 = vadd.f32 %v1254_v36, %v432_v55  ;;  %v397_v58 = vpop.f32.mrf.mxu0  ;;  %v554_v9 = vmax.f32 %v471_v2, 0.0 }
  0xee   :  { %v398_v60 = vadd.f32 %v1254_v36, %v397_v58  ;;  %v570_v61 = vmax.f32 %v511_v56, 0.0 }
  0xef   :  { %v539_v63 = vmax.f32 %v433_v57, 0.0 }
  0xf0   :  { %v525_v0 = vmax.f32 %v398_v60, 0.0  ;;  %v627_v1 = vpack.c.bf16 %v570_v61, %v570_v61 }
  0xf1   :  { %v938_v3 = vpack.c.bf16 %v539_v63, %v538_v62 }
  0xf2   :  { %v472_v4 = vpop.f32.mrf.mxu2  ;;  %v903_v5 = vpack.c.bf16 %v525_v0, %v524_v59  ;;  %684 = vst [vmem:[%s1403_s3 + $0xe0] sm:$0x1] %v627_v1 }
  0xf3   :  { %1026 = vst [vmem:[%s1403_s3 + $0x60] sm:$0xff] %v938_v3   ;;  %v473_v6 = vadd.f32 %v1254_v36, %v472_v4  ;;  %v512_v7 = vpop.f32.mrf.mxu3 }
  0xf4   :  { %v435_v8 = vpop.f32.mrf.mxu1  ;;  %1019 = vst [vmem:[%s1403_s3 + $0x28] sm:$0xff] %v903_v5  }
  0xf5   :  { %v555_v10 = vmax.f32 %v473_v6, 0.0  ;;  %v400_v11 = vpop.f32.mrf.mxu0  ;;  %v436_v15 = vadd.f32 %v1254_v36, %v435_v8 }
  0xf6   :  { %v401_v14 = vadd.f32 %v1254_v36, %v400_v11 }
  0xf7   :  { %v978_v12 = vpack.c.bf16 %v555_v10, %v554_v9  ;;  %v540_v21 = vmax.f32 %v436_v15, 0.0 }
  0xf8   :  { %v526_v19 = vmax.f32 %v401_v14, 0.0 }
  0xf9   :  { %1034 = vst [vmem:[%s1403_s3 + $0xa0] sm:$0xff] %v978_v12  }
  0xfa   :  { %v475_v13 = vpop.f32.mrf.mxu2 }
  0xfb   :  { %v476_v24 = vadd.f32 %v1254_v36, %v475_v13 }
  0xfc   :  { %v437_v16 = vpop.f32.mrf.mxu1 }
  0xfd   :  { %v438_v17 = vadd.f32 %v1254_v36, %v437_v16  ;;  %v402_v18 = vpop.f32.mrf.mxu0  ;;  %v556_v30 = vmax.f32 %v476_v24, 0.0 }
  0xfe   :  { %v403_v20 = vadd.f32 %v1254_v36, %v402_v18 }
  0xff   :  { %v541_v22 = vmax.f32 %v438_v17, 0.0 }
 0x100   :  { %v527_v23 = vmax.f32 %v403_v20, 0.0 }
 0x101   :  { %v943_v25 = vpack.c.bf16 %v541_v22, %v540_v21 }
 0x102   :  { %v477_v26 = vpop.f32.mrf.mxu2  ;;  %v908_v27 = vpack.c.bf16 %v527_v23, %v526_v19 }
 0x103   :  { %1027 = vst [vmem:[%s1403_s3 + $0x68] sm:$0xff] %v943_v25   ;;  %v478_v28 = vadd.f32 %v1254_v36, %v477_v26 }
 0x104   :  { %v440_v29 = vpop.f32.mrf.mxu1  ;;  %1020 = vst [vmem:[%s1403_s3 + $0x30] sm:$0xff] %v908_v27  }
 0x105   :  { %v557_v31 = vmax.f32 %v478_v28, 0.0  ;;  %v441_v34 = vadd.f32 %v1254_v36, %v440_v29 }
 0x107   :  { %v983_v32 = vpack.c.bf16 %v557_v31, %v556_v30  ;;  %v542_v38 = vmax.f32 %v441_v34, 0.0 }
 0x109   :  { %1035 = vst [vmem:[%s1403_s3 + $0xa8] sm:$0xff] %v983_v32  }
 0x10a   :  { %v480_v33 = vpop.f32.mrf.mxu2 }
 0x10b   :  { %v481_v40 = vadd.f32 %v1254_v36, %v480_v33 }
 0x10c   :  { %v442_v35 = vpop.f32.mrf.mxu1 }
 0x10d   :  { %v443_v37 = vadd.f32 %v1254_v36, %v442_v35  ;;  %v558_v44 = vmax.f32 %v481_v40, 0.0 }
 0x10f   :  { %v543_v39 = vmax.f32 %v443_v37, 0.0 }
 0x111   :  { %v948_v41 = vpack.c.bf16 %v543_v39, %v542_v38 }
 0x112   :  { %v482_v42 = vpop.f32.mrf.mxu2 }
 0x113   :  { %1028 = vst [vmem:[%s1403_s3 + $0x70] sm:$0xff] %v948_v41   ;;  %v483_v43 = vadd.f32 %v1254_v36, %v482_v42 }
 0x115   :  { %v559_v45 = vmax.f32 %v483_v43, 0.0 }
 0x117   :  { %v988_v46 = vpack.c.bf16 %v559_v45, %v558_v44 }
 0x119   :  { %1036 = vst [vmem:[%s1403_s3 + $0xb0] sm:$0xff] %v988_v46  }
 0x11a   :  { %689 = vsyncpa [#allocation3], 1 }
 0x11b   :  { %690 = vsyncpa [#allocation5], 1 }

// kernel: vae_forward.7
= control target key start
LH: loop header
LB: loop body
LE: loop exit
PB: predicated region body
PF: predicated region fallthrough
CT: control target
= control target key end

     0   :  { %s1060_s1 = inlined_call_operand.vmem [shape: bf16[512,128], index: 1, kind: input, shape index: {}]   ;;  %s1061_s2 = inlined_call_operand.vmem [shape: f32[1,128], index: 2, kind: input, shape index: {}]   ;;  %s1062_s0 = inlined_call_operand.vmem [shape: bf16[72,512], index: 0, kind: input, shape index: {}]   ;;  %s1063_s3 = inlined_call_operand.vmem [shape: bf16[72,128], index: 3, kind: output, shape index: {}]  }
   0x1   :  { %v764_v0 = vld [vmem:[%s1060_s1 + $0x38] sm:$0xff]  ;;  %v763_v4 = vld [vmem:[%s1060_s1 + $0x30] sm:$0xff]  ;;  %v762_v8 = vld [vmem:[%s1060_s1 + $0x28] sm:$0xff] }
   0x2   :  { %v772_v1 = vld [vmem:[%s1060_s1 + $0x78] sm:$0xff]  ;;  %386 = vmatpush.bf16.msra.mxu0 %v764_v0  ;;  %v771_v5 = vld [vmem:[%s1060_s1 + $0x70] sm:$0xff]  ;;  %v770_v9 = vld [vmem:[%s1060_s1 + $0x68] sm:$0xff] }
   0x3   :  { %v780_v2 = vld [vmem:[%s1060_s1 + $0xb8] sm:$0xff]  ;;  %419 = vmatpush.bf16.msra.mxu1 %v772_v1  ;;  %v779_v6 = vld [vmem:[%s1060_s1 + $0xb0] sm:$0xff]  ;;  %v778_v10 = vld [vmem:[%s1060_s1 + $0xa8] sm:$0xff] }
   0x4   :  { %v788_v3 = vld [vmem:[%s1060_s1 + $0xf8] sm:$0xff]  ;;  %452 = vmatpush.bf16.msra.mxu2 %v780_v2  ;;  %v787_v7 = vld [vmem:[%s1060_s1 + $0xf0] sm:$0xff]  ;;  %v786_v11 = vld [vmem:[%s1060_s1 + $0xe8] sm:$0xff] }
   0x5   :  { %485 = vmatpush.bf16.msra.mxu3 %v788_v3  ;;  %v761_v12 = vld [vmem:[%s1060_s1 + $0x20] sm:$0xff]  ;;  %v760_v16 = vld [vmem:[%s1060_s1 + $0x18] sm:$0xff]  ;;  %v759_v20 = vld [vmem:[%s1060_s1 + $0x10] sm:$0xff] }
   0x6   :  { %387 = vmatpush.bf16.msra.mxu0 %v763_v4  ;;  %v769_v13 = vld [vmem:[%s1060_s1 + $0x60] sm:$0xff]  ;;  %v768_v17 = vld [vmem:[%s1060_s1 + $0x58] sm:$0xff]  ;;  %v767_v21 = vld [vmem:[%s1060_s1 + $0x50] sm:$0xff] }
   0x7   :  { %420 = vmatpush.bf16.msra.mxu1 %v771_v5  ;;  %v777_v14 = vld [vmem:[%s1060_s1 + $0xa0] sm:$0xff]  ;;  %v776_v18 = vld [vmem:[%s1060_s1 + $0x98] sm:$0xff]  ;;  %v775_v22 = vld [vmem:[%s1060_s1 + $0x90] sm:$0xff] }
   0x8   :  { %453 = vmatpush.bf16.msra.mxu2 %v779_v6  ;;  %v785_v15 = vld [vmem:[%s1060_s1 + $0xe0] sm:$0xff]  ;;  %v784_v19 = vld [vmem:[%s1060_s1 + $0xd8] sm:$0xff]  ;;  %v783_v23 = vld [vmem:[%s1060_s1 + $0xd0] sm:$0xff] }
   0x9   :  { %486 = vmatpush.bf16.msra.mxu3 %v787_v7  ;;  %v758_v24 = vld [vmem:[%s1060_s1 + $0x8] sm:$0xff]  ;;  %v757_v28 = vld [vmem:[%s1060_s1] sm:$0xff]  ;;  %v743_v33 = vld [vmem:[%s1062_s0 + $0xc] sm:$0xf0] }
   0xa   :  { %388 = vmatpush.bf16.msra.mxu0 %v762_v8  ;;  %v766_v25 = vld [vmem:[%s1060_s1 + $0x48] sm:$0xff]  ;;  %v765_v29 = vld [vmem:[%s1060_s1 + $0x40] sm:$0xff]  ;;  %v553_v35 = vld [vmem:[%s1062_s0 + $0x10] sm:$0xf0] }
   0xb   :  { %421 = vmatpush.bf16.msra.mxu1 %v770_v9  ;;  %v774_v26 = vld [vmem:[%s1060_s1 + $0x88] sm:$0xff]  ;;  %v773_v30 = vld [vmem:[%s1060_s1 + $0x80] sm:$0xff]  ;;  %v744_v37 = vld [vmem:[%s1062_s0 + $0x14] sm:$0xf0] }
   0xc   :  { %454 = vmatpush.bf16.msra.mxu2 %v778_v10  ;;  %v782_v27 = vld [vmem:[%s1060_s1 + $0xc8] sm:$0xff]  ;;  %v781_v31 = vld [vmem:[%s1060_s1 + $0xc0] sm:$0xff]  ;;  %v561_v39 = vld [vmem:[%s1062_s0 + $0x18] sm:$0xf0] }
   0xd   :  { %487 = vmatpush.bf16.msra.mxu3 %v786_v11  ;;  %v551_v32 = vld [vmem:[%s1062_s0] sm:$0xf]  ;;  %v741_v34 = vld [vmem:[%s1062_s0 + $0x4] sm:$0xf]  ;;  %v559_v36 = vld [vmem:[%s1062_s0 + $0x8] sm:$0xf] }
   0xe   :  { %389 = vmatpush.bf16.msra.mxu0 %v761_v12  ;;  %v742_v38 = vld [vmem:[%s1062_s0 + $0xc] sm:$0xf]  ;;  %v552_v40 = vor.u32 %v743_v33, %v551_v32  ;;  %v556_v41 = vor.u32 %v741_v34, %v553_v35  ;;  %v560_v42 = vor.u32 %v744_v37, %v559_v36  ;;  %v567_v44 = vld [vmem:[%s1062_s0 + $0x20] sm:$0xf]  ;;  %v747_v45 = vld [vmem:[%s1062_s0 + $0x2c] sm:$0xf0] }
   0xf   :  { %422 = vmatpush.bf16.msra.mxu1 %v769_v13  ;;  %v564_v43 = vor.u32 %v742_v38, %v561_v39  ;;  %v745_v46 = vld [vmem:[%s1062_s0 + $0x24] sm:$0xf]  ;;  %v569_v47 = vld [vmem:[%s1062_s0 + $0x30] sm:$0xf0]  ;;  %v575_v48 = vld [vmem:[%s1062_s0 + $0x28] sm:$0xf]  ;;  %v568_v52 = vor.u32 %v747_v45, %v567_v44 }
  0x10   :  { %455 = vmatpush.bf16.msra.mxu2 %v777_v14  ;;  %v748_v49 = vld [vmem:[%s1062_s0 + $0x34] sm:$0xf0]  ;;  %v746_v50 = vld [vmem:[%s1062_s0 + $0x2c] sm:$0xf]  ;;  %v577_v51 = vld [vmem:[%s1062_s0 + $0x38] sm:$0xf0]  ;;  %v572_v53 = vor.u32 %v745_v46, %v569_v47 }
  0x11   :  { %488 = vmatpush.bf16.msra.mxu3 %v785_v15  ;;  %v576_v54 = vor.u32 %v748_v49, %v575_v48  ;;  %v580_v55 = vor.u32 %v746_v50, %v577_v51  ;;  %v583_v56 = vld [vmem:[%s1062_s0 + $0x40] sm:$0xf]  ;;  %v751_v57 = vld [vmem:[%s1062_s0 + $0x4c] sm:$0xf0]  ;;  %v749_v58 = vld [vmem:[%s1062_s0 + $0x44] sm:$0xf] }
  0x12   :  { %390 = vmatpush.bf16.msra.mxu0 %v760_v16  ;;  %v585_v59 = vld [vmem:[%s1062_s0 + $0x50] sm:$0xf0]  ;;  %v591_v60 = vld [vmem:[%s1062_s0 + $0x48] sm:$0xf]  ;;  %v752_v61 = vld [vmem:[%s1062_s0 + $0x54] sm:$0xf0]  ;;  %v584_v0 = vor.u32 %v751_v57, %v583_v56 }
  0x13   :  { %423 = vmatpush.bf16.msra.mxu1 %v768_v17  ;;  %v750_v62 = vld [vmem:[%s1062_s0 + $0x4c] sm:$0xf]  ;;  %v593_v63 = vld [vmem:[%s1062_s0 + $0x58] sm:$0xf0]  ;;  %v588_v1 = vor.u32 %v749_v58, %v585_v59  ;;  %v592_v2 = vor.u32 %v752_v61, %v591_v60  ;;  %v599_v4 = vld [vmem:[%s1062_s0 + $0x60] sm:$0xf] }
  0x14   :  { %456 = vmatpush.bf16.msra.mxu2 %v776_v18  ;;  %v596_v3 = vor.u32 %v750_v62, %v593_v63  ;;  %v755_v5 = vld [vmem:[%s1062_s0 + $0x6c] sm:$0xf0]  ;;  %v753_v6 = vld [vmem:[%s1062_s0 + $0x64] sm:$0xf]  ;;  %v601_v7 = vld [vmem:[%s1062_s0 + $0x70] sm:$0xf0] }
  0x15   :  { %489 = vmatpush.bf16.msra.mxu3 %v784_v19  ;;  %v607_v8 = vld [vmem:[%s1062_s0 + $0x68] sm:$0xf]  ;;  %v756_v9 = vld [vmem:[%s1062_s0 + $0x74] sm:$0xf0]  ;;  %v754_v10 = vld [vmem:[%s1062_s0 + $0x6c] sm:$0xf]  ;;  %v600_v12 = vor.u32 %v755_v5, %v599_v4  ;;  %v604_v13 = vor.u32 %v753_v6, %v601_v7 }
  0x16   :  { %391 = vmatpush.bf16.msra.mxu0 %v759_v20  ;;  %v609_v11 = vld [vmem:[%s1062_s0 + $0x78] sm:$0xf0]  ;;  %v608_v14 = vor.u32 %v756_v9, %v607_v8  ;;  %v30_v16 = vld [vmem:[%s1062_s0 + $0x80] sm:$0xff]  ;;  %v31_v17 = vld [vmem:[%s1062_s0 + $0x88] sm:$0xff] }
  0x17   :  { %424 = vmatpush.bf16.msra.mxu1 %v767_v21  ;;  %v612_v15 = vor.u32 %v754_v10, %v609_v11  ;;  %v150_v18 = vunpack.c.l.b16 %v30_v16  ;;  %v151_v19 = vunpack.c.h.b16 %v30_v16  ;;  %v152_v20 = vunpack.c.l.b16 %v31_v17 }
  0x18   :  { %457 = vmatpush.bf16.msra.mxu2 %v775_v22  ;;  %v153_v21 = vunpack.c.h.b16 %v31_v17 }
  0x19   :  { %490 = vmatpush.bf16.msra.mxu3 %v783_v23  ;;  %v170_v22 = vpack.c.b16 %v150_v18, %v150_v18  ;;  %v171_v23 = vpack.c.b16 %v151_v19, %v151_v19 }
  0x1a   :  { %392 = vmatpush.bf16.msra.mxu0 %v758_v24  ;;  %v172_v24 = vpack.c.b16 %v152_v20, %v152_v20 }
  0x1b   :  { %425 = vmatpush.bf16.msra.mxu1 %v766_v25  ;;  %v173_v25 = vpack.c.b16 %v153_v21, %v153_v21 }
  0x1c   :  { %458 = vmatpush.bf16.msra.mxu2 %v774_v26  ;;  %v1034_v26 = vld [vmem:[%s1061_s2] ss:$0 sm:$0xff] }
  0x1d   :  { %491 = vmatpush.bf16.msra.mxu3 %v782_v27 }
  0x1e   :  { %393 = vmatpush.bf16.msra.mxu0 %v757_v28 }
  0x1f   :  { %426 = vmatpush.bf16.msra.mxu1 %v765_v29 }
  0x20   :  { %459 = vmatpush.bf16.msra.mxu2 %v773_v30 }
  0x21   :  { %492 = vmatpush.bf16.msra.mxu3 %v781_v31  ;;  %394 = vmatmul.bf16.vlgmr.msra.gmra.mxu0 %v552_v40 }
  0x22   :  { %427 = vmatmul.bf16.vlgmr.msra.gmra.mxu1 %v556_v41 }
  0x23   :  { %460 = vmatmul.bf16.vlgmr.msra.gmra.mxu2 %v560_v42 }
  0x24   :  { %493 = vmatmul.bf16.vlgmr.msra.gmra.mxu3 %v564_v43 }
  0x31   :  { %399 = vmatmul.bf16.gmra.mxu0 %v568_v52 }
  0x32   :  { %432 = vmatmul.bf16.gmra.mxu1 %v572_v53 }
  0x33   :  { %465 = vmatmul.bf16.gmra.mxu2 %v576_v54 }
  0x34   :  { %498 = vmatmul.bf16.gmra.mxu3 %v580_v55 }
  0x41   :  { %404 = vmatmul.bf16.gmra.mxu0 %v584_v0 }
  0x42   :  { %437 = vmatmul.bf16.gmra.mxu1 %v588_v1 }
  0x43   :  { %470 = vmatmul.bf16.gmra.mxu2 %v592_v2 }
  0x44   :  { %503 = vmatmul.bf16.gmra.mxu3 %v596_v3 }
  0x51   :  { %409 = vmatmul.bf16.gmra.mxu0 %v600_v12 }
  0x52   :  { %442 = vmatmul.bf16.gmra.mxu1 %v604_v13 }
  0x53   :  { %475 = vmatmul.bf16.gmra.mxu2 %v608_v14 }
  0x54   :  { %508 = vmatmul.bf16.gmra.mxu3 %v612_v15 }
  0x61   :  { %414 = vmatmul.bf16.gmra.mxu0 %v170_v22 }
  0x62   :  { %447 = vmatmul.bf16.gmra.mxu1 %v171_v23 }
  0x63   :  { %480 = vmatmul.bf16.gmra.mxu2 %v172_v24 }
  0x64   :  { %513 = vmatmul.bf16.gmra.mxu3 %v173_v25 }
  0x9e   :  { %v395_v27 = vpop.f32.mrf.mxu0 }
  0x9f   :  { %v428_v28 = vpop.f32.mrf.mxu1  ;;  %v396_v29 = vadd.f32 %v1034_v26, %v395_v27 }
  0xa1   :  { %v429_v32 = vadd.f32 %v428_v28, %v396_v29 }
  0xa6   :  { %v461_v30 = vpop.f32.mrf.mxu2  ;;  %v397_v33 = vpop.f32.mrf.mxu0 }
  0xa7   :  { %v494_v31 = vpop.f32.mrf.mxu3  ;;  %v430_v34 = vpop.f32.mrf.mxu1  ;;  %v398_v35 = vadd.f32 %v1034_v26, %v397_v33  ;;  %v462_v36 = vadd.f32 %v461_v30, %v429_v32 }
  0xa9   :  { %v431_v37 = vadd.f32 %v430_v34, %v398_v35  ;;  %v495_v40 = vadd.f32 %v494_v31, %v462_v36 }
  0xab   :  { %v518_v45 = vmax.f32 %v495_v40, 0.0 }
  0xae   :  { %v463_v38 = vpop.f32.mrf.mxu2  ;;  %v400_v42 = vpop.f32.mrf.mxu0 }
  0xaf   :  { %v496_v39 = vpop.f32.mrf.mxu3  ;;  %v464_v41 = vadd.f32 %v463_v38, %v431_v37  ;;  %v433_v43 = vpop.f32.mrf.mxu1  ;;  %v401_v47 = vadd.f32 %v1034_v26, %v400_v42 }
  0xb1   :  { %v497_v44 = vadd.f32 %v496_v39, %v464_v41  ;;  %v434_v51 = vadd.f32 %v433_v43, %v401_v47 }
  0xb3   :  { %v519_v46 = vmax.f32 %v497_v44, 0.0 }
  0xb5   :  { %v792_v48 = vpack.c.bf16 %v519_v46, %v518_v45 }
  0xb6   :  { %v466_v49 = vpop.f32.mrf.mxu2  ;;  %v402_v52 = vpop.f32.mrf.mxu0 }
  0xb7   :  { %v499_v50 = vpop.f32.mrf.mxu3  ;;  %793 = vst [vmem:[%s1063_s3] sm:$0xff] %v792_v48   ;;  %v435_v53 = vpop.f32.mrf.mxu1  ;;  %v403_v54 = vadd.f32 %v1034_v26, %v402_v52  ;;  %v467_v55 = vadd.f32 %v466_v49, %v434_v51 }
  0xb9   :  { %v436_v56 = vadd.f32 %v435_v53, %v403_v54  ;;  %v500_v59 = vadd.f32 %v499_v50, %v467_v55 }
  0xbb   :  { %v520_v0 = vmax.f32 %v500_v59, 0.0 }
  0xbe   :  { %v468_v57 = vpop.f32.mrf.mxu2  ;;  %v405_v61 = vpop.f32.mrf.mxu0 }
  0xbf   :  { %v501_v58 = vpop.f32.mrf.mxu3  ;;  %v469_v60 = vadd.f32 %v468_v57, %v436_v56  ;;  %v438_v62 = vpop.f32.mrf.mxu1  ;;  %v406_v2 = vadd.f32 %v1034_v26, %v405_v61 }
  0xc1   :  { %v502_v63 = vadd.f32 %v501_v58, %v469_v60  ;;  %v439_v6 = vadd.f32 %v438_v62, %v406_v2 }
  0xc3   :  { %v521_v1 = vmax.f32 %v502_v63, 0.0 }
  0xc5   :  { %v797_v3 = vpack.c.bf16 %v521_v1, %v520_v0 }
  0xc6   :  { %v471_v4 = vpop.f32.mrf.mxu2  ;;  %v407_v7 = vpop.f32.mrf.mxu0 }
  0xc7   :  { %v504_v5 = vpop.f32.mrf.mxu3  ;;  %809 = vst [vmem:[%s1063_s3 + $0x8] sm:$0xff] %v797_v3   ;;  %v440_v8 = vpop.f32.mrf.mxu1  ;;  %v408_v9 = vadd.f32 %v1034_v26, %v407_v7  ;;  %v472_v10 = vadd.f32 %v471_v4, %v439_v6 }
  0xc9   :  { %v441_v11 = vadd.f32 %v440_v8, %v408_v9  ;;  %v505_v14 = vadd.f32 %v504_v5, %v472_v10 }
  0xcb   :  { %v522_v19 = vmax.f32 %v505_v14, 0.0 }
  0xce   :  { %v473_v12 = vpop.f32.mrf.mxu2  ;;  %v410_v16 = vpop.f32.mrf.mxu0 }
  0xcf   :  { %v506_v13 = vpop.f32.mrf.mxu3  ;;  %v474_v15 = vadd.f32 %v473_v12, %v441_v11  ;;  %v443_v17 = vpop.f32.mrf.mxu1  ;;  %v411_v21 = vadd.f32 %v1034_v26, %v410_v16 }
  0xd1   :  { %v507_v18 = vadd.f32 %v506_v13, %v474_v15  ;;  %v444_v25 = vadd.f32 %v443_v17, %v411_v21 }
  0xd3   :  { %v523_v20 = vmax.f32 %v507_v18, 0.0 }
  0xd5   :  { %v802_v22 = vpack.c.bf16 %v523_v20, %v522_v19 }
  0xd6   :  { %v476_v23 = vpop.f32.mrf.mxu2  ;;  %v412_v27 = vpop.f32.mrf.mxu0 }
  0xd7   :  { %v509_v24 = vpop.f32.mrf.mxu3  ;;  %810 = vst [vmem:[%s1063_s3 + $0x10] sm:$0xff] %v802_v22   ;;  %v445_v28 = vpop.f32.mrf.mxu1  ;;  %v413_v29 = vadd.f32 %v1034_v26, %v412_v27  ;;  %v477_v30 = vadd.f32 %v476_v23, %v444_v25 }
  0xd9   :  { %v446_v31 = vadd.f32 %v445_v28, %v413_v29  ;;  %v510_v34 = vadd.f32 %v509_v24, %v477_v30 }
  0xdb   :  { %v524_v40 = vmax.f32 %v510_v34, 0.0 }
  0xde   :  { %v478_v32 = vpop.f32.mrf.mxu2  ;;  %v415_v36 = vpop.f32.mrf.mxu0 }
  0xdf   :  { %v511_v33 = vpop.f32.mrf.mxu3  ;;  %v479_v35 = vadd.f32 %v478_v32, %v446_v31  ;;  %v448_v37 = vpop.f32.mrf.mxu1  ;;  %v416_v38 = vadd.f32 %v1034_v26, %v415_v36 }
  0xe1   :  { %v512_v39 = vadd.f32 %v511_v33, %v479_v35  ;;  %v449_v42 = vadd.f32 %v448_v37, %v416_v38 }
  0xe3   :  { %v525_v41 = vmax.f32 %v512_v39, 0.0 }
  0xe5   :  { %v807_v43 = vpack.c.bf16 %v525_v41, %v524_v40 }
  0xe6   :  { %v481_v44 = vpop.f32.mrf.mxu2  ;;  %v417_v47 = vpop.f32.mrf.mxu0 }
  0xe7   :  { %v514_v45 = vpop.f32.mrf.mxu3  ;;  %811 = vst [vmem:[%s1063_s3 + $0x18] sm:$0xff] %v807_v43   ;;  %v482_v46 = vadd.f32 %v481_v44, %v449_v42  ;;  %v450_v48 = vpop.f32.mrf.mxu1 }
  0xe9   :  { %v515_v49 = vadd.f32 %v514_v45, %v482_v46 }
  0xeb   :  { %v526_v50 = vmax.f32 %v515_v49, 0.0 }
  0xed   :  { %v535_v51 = vpack.c.bf16 %v526_v50, %v526_v50 }
  0xee   :  { %v483_v52 = vpop.f32.mrf.mxu2 }
  0xef   :  { %v516_v53 = vpop.f32.mrf.mxu3  ;;  %544 = vst [vmem:[%s1063_s3 + $0x20] sm:$0xf] %v535_v51 }

// kernel: vae_forward.8
= control target key start
LH: loop header
LB: loop body
LE: loop exit
PB: predicated region body
PF: predicated region fallthrough
CT: control target
= control target key end

     0   :  { %s2514_s1 = inlined_call_operand.vmem [shape: bf16[1024,256], index: 1, kind: input, shape index: {}]   ;;  %s2515_s0 = inlined_call_operand.vmem [shape: bf16[8,1024], index: 0, kind: input, shape index: {}]   ;;  %s2516_s2 = inlined_call_operand.vmem [shape: f32[1,256], index: 2, kind: input, shape index: {}]   ;;  %s2517_s3 = inlined_call_operand.vmem [shape: bf16[8,256], index: 3, kind: output, shape index: {}]  }
   0x1   :  { %v1094_v0 = vld [vmem:[%s2514_s1 + $0x70] sm:$0xf]  ;;  %v1563_v1 = vld [vmem:[%s2514_s1 + $0x74] sm:$0xf0]  ;;  %v1086_v11 = vld [vmem:[%s2514_s1 + $0x60] sm:$0xf] }
   0x2   :  { %v1158_v2 = vld [vmem:[%s2514_s1 + $0xf0] sm:$0xf]  ;;  %v1095_v3 = vor.u32 %v1563_v1, %v1094_v0  ;;  %v1579_v4 = vld [vmem:[%s2514_s1 + $0xf4] sm:$0xf0]  ;;  %v1561_v13 = vld [vmem:[%s2514_s1 + $0x64] sm:$0xf0] }
   0x3   :  { %v1222_v5 = vld [vmem:[%s2514_s1 + $0x170] sm:$0xf]  ;;  %v1595_v6 = vld [vmem:[%s2514_s1 + $0x174] sm:$0xf0]  ;;  %v1159_v7 = vor.u32 %v1579_v4, %v1158_v2  ;;  %v1150_v14 = vld [vmem:[%s2514_s1 + $0xe0] sm:$0xf]  ;;  %v1087_v16 = vor.u32 %v1561_v13, %v1086_v11 }
   0x4   :  { %v1223_v8 = vor.u32 %v1595_v6, %v1222_v5  ;;  %v1286_v9 = vld [vmem:[%s2514_s1 + $0x1f0] sm:$0xf]  ;;  %v1611_v10 = vld [vmem:[%s2514_s1 + $0x1f4] sm:$0xf0]  ;;  %820 = vmatpush.bf16.msra.mxu0 %v1095_v3  ;;  %v1577_v15 = vld [vmem:[%s2514_s1 + $0xe4] sm:$0xf0] }
   0x5   :  { %v1287_v12 = vor.u32 %v1611_v10, %v1286_v9  ;;  %833 = vmatpush.bf16.msra.mxu1 %v1159_v7  ;;  %v1151_v17 = vor.u32 %v1577_v15, %v1150_v14  ;;  %v1214_v18 = vld [vmem:[%s2514_s1 + $0x160] sm:$0xf]  ;;  %v1593_v19 = vld [vmem:[%s2514_s1 + $0x164] sm:$0xf0]  ;;  %v1078_v23 = vld [vmem:[%s2514_s1 + $0x50] sm:$0xf] }
   0x6   :  { %846 = vmatpush.bf16.msra.mxu2 %v1223_v8  ;;  %v1278_v20 = vld [vmem:[%s2514_s1 + $0x1e0] sm:$0xf]  ;;  %v1215_v21 = vor.u32 %v1593_v19, %v1214_v18  ;;  %v1609_v22 = vld [vmem:[%s2514_s1 + $0x1e4] sm:$0xf0]  ;;  %v1559_v24 = vld [vmem:[%s2514_s1 + $0x54] sm:$0xf0] }
   0x7   :  { %859 = vmatpush.bf16.msra.mxu3 %v1287_v12  ;;  %v1279_v25 = vor.u32 %v1609_v22, %v1278_v20  ;;  %v1142_v26 = vld [vmem:[%s2514_s1 + $0xd0] sm:$0xf]  ;;  %v1575_v27 = vld [vmem:[%s2514_s1 + $0xd4] sm:$0xf0]  ;;  %v1079_v29 = vor.u32 %v1559_v24, %v1078_v23  ;;  %v1070_v35 = vld [vmem:[%s2514_s1 + $0x40] sm:$0xf] }
   0x8   :  { %v1206_v28 = vld [vmem:[%s2514_s1 + $0x150] sm:$0xf]  ;;  %821 = vmatpush.bf16.msra.mxu0 %v1087_v16  ;;  %v1591_v30 = vld [vmem:[%s2514_s1 + $0x154] sm:$0xf0]  ;;  %v1143_v33 = vor.u32 %v1575_v27, %v1142_v26  ;;  %v1557_v36 = vld [vmem:[%s2514_s1 + $0x44] sm:$0xf0] }
   0x9   :  { %v1270_v31 = vld [vmem:[%s2514_s1 + $0x1d0] sm:$0xf]  ;;  %v1607_v32 = vld [vmem:[%s2514_s1 + $0x1d4] sm:$0xf0]  ;;  %834 = vmatpush.bf16.msra.mxu1 %v1151_v17  ;;  %v1207_v34 = vor.u32 %v1591_v30, %v1206_v28  ;;  %v1134_v37 = vld [vmem:[%s2514_s1 + $0xc0] sm:$0xf]  ;;  %v1071_v44 = vor.u32 %v1557_v36, %v1070_v35 }
   0xa   :  { %847 = vmatpush.bf16.msra.mxu2 %v1215_v21  ;;  %v1271_v38 = vor.u32 %v1607_v32, %v1270_v31  ;;  %v1573_v39 = vld [vmem:[%s2514_s1 + $0xc4] sm:$0xf0]  ;;  %v1198_v40 = vld [vmem:[%s2514_s1 + $0x140] sm:$0xf]  ;;  %v1062_v47 = vld [vmem:[%s2514_s1 + $0x30] sm:$0xf] }
   0xb   :  { %860 = vmatpush.bf16.msra.mxu3 %v1279_v25  ;;  %v1589_v41 = vld [vmem:[%s2514_s1 + $0x144] sm:$0xf0]  ;;  %v1262_v42 = vld [vmem:[%s2514_s1 + $0x1c0] sm:$0xf]  ;;  %v1135_v45 = vor.u32 %v1573_v39, %v1134_v37  ;;  %v1555_v48 = vld [vmem:[%s2514_s1 + $0x34] sm:$0xf0] }
   0xc   :  { %v1605_v43 = vld [vmem:[%s2514_s1 + $0x1c4] sm:$0xf0]  ;;  %822 = vmatpush.bf16.msra.mxu0 %v1079_v29  ;;  %v1199_v46 = vor.u32 %v1589_v41, %v1198_v40  ;;  %v1126_v49 = vld [vmem:[%s2514_s1 + $0xb0] sm:$0xf]  ;;  %v1571_v51 = vld [vmem:[%s2514_s1 + $0xb4] sm:$0xf0]  ;;  %v1063_v56 = vor.u32 %v1555_v48, %v1062_v47 }
   0xd   :  { %835 = vmatpush.bf16.msra.mxu1 %v1143_v33  ;;  %v1263_v50 = vor.u32 %v1605_v43, %v1262_v42  ;;  %v1190_v52 = vld [vmem:[%s2514_s1 + $0x130] sm:$0xf]  ;;  %v1587_v53 = vld [vmem:[%s2514_s1 + $0x134] sm:$0xf0]  ;;  %v1127_v57 = vor.u32 %v1571_v51, %v1126_v49  ;;  %v1054_v59 = vld [vmem:[%s2514_s1 + $0x20] sm:$0xf] }
   0xe   :  { %848 = vmatpush.bf16.msra.mxu2 %v1207_v34  ;;  %v1254_v54 = vld [vmem:[%s2514_s1 + $0x1b0] sm:$0xf]  ;;  %v1603_v55 = vld [vmem:[%s2514_s1 + $0x1b4] sm:$0xf0]  ;;  %v1191_v58 = vor.u32 %v1587_v53, %v1190_v52  ;;  %v1553_v60 = vld [vmem:[%s2514_s1 + $0x24] sm:$0xf0] }
   0xf   :  { %861 = vmatpush.bf16.msra.mxu3 %v1271_v38  ;;  %v1118_v61 = vld [vmem:[%s2514_s1 + $0xa0] sm:$0xf]  ;;  %v1255_v62 = vor.u32 %v1603_v55, %v1254_v54  ;;  %v1569_v63 = vld [vmem:[%s2514_s1 + $0xa4] sm:$0xf0]  ;;  %v1055_v4 = vor.u32 %v1553_v60, %v1054_v59  ;;  %v1046_v7 = vld [vmem:[%s2514_s1 + $0x10] sm:$0xf] }
  0x10   :  { %823 = vmatpush.bf16.msra.mxu0 %v1071_v44  ;;  %v1182_v0 = vld [vmem:[%s2514_s1 + $0x120] sm:$0xf]  ;;  %v1585_v1 = vld [vmem:[%s2514_s1 + $0x124] sm:$0xf0]  ;;  %v1119_v5 = vor.u32 %v1569_v63, %v1118_v61  ;;  %v1551_v8 = vld [vmem:[%s2514_s1 + $0x14] sm:$0xf0] }
  0x11   :  { %836 = vmatpush.bf16.msra.mxu1 %v1135_v45  ;;  %v1246_v2 = vld [vmem:[%s2514_s1 + $0x1a0] sm:$0xf]  ;;  %v1601_v3 = vld [vmem:[%s2514_s1 + $0x1a4] sm:$0xf0]  ;;  %v1183_v6 = vor.u32 %v1585_v1, %v1182_v0  ;;  %v1110_v9 = vld [vmem:[%s2514_s1 + $0x90] sm:$0xf]  ;;  %v1047_v16 = vor.u32 %v1551_v8, %v1046_v7 }
  0x12   :  { %849 = vmatpush.bf16.msra.mxu2 %v1199_v46  ;;  %v1247_v10 = vor.u32 %v1601_v3, %v1246_v2  ;;  %v1567_v11 = vld [vmem:[%s2514_s1 + $0x94] sm:$0xf0]  ;;  %v1174_v12 = vld [vmem:[%s2514_s1 + $0x110] sm:$0xf]  ;;  %v1038_v17 = vld [vmem:[%s2514_s1] sm:$0xf] }
  0x13   :  { %862 = vmatpush.bf16.msra.mxu3 %v1263_v50  ;;  %v1583_v13 = vld [vmem:[%s2514_s1 + $0x114] sm:$0xf0]  ;;  %v1238_v14 = vld [vmem:[%s2514_s1 + $0x190] sm:$0xf]  ;;  %v1549_v18 = vld [vmem:[%s2514_s1 + $0x4] sm:$0xf0]  ;;  %v1111_v19 = vor.u32 %v1567_v11, %v1110_v9 }
  0x14   :  { %824 = vmatpush.bf16.msra.mxu0 %v1063_v56  ;;  %v1599_v15 = vld [vmem:[%s2514_s1 + $0x194] sm:$0xf0]  ;;  %v1175_v20 = vor.u32 %v1583_v13, %v1174_v12  ;;  %v1102_v21 = vld [vmem:[%s2514_s1 + $0x80] sm:$0xf]  ;;  %v1565_v22 = vld [vmem:[%s2514_s1 + $0x84] sm:$0xf0]  ;;  %v1039_v31 = vor.u32 %v1549_v18, %v1038_v17 }
  0x15   :  { %837 = vmatpush.bf16.msra.mxu1 %v1127_v57  ;;  %v1166_v23 = vld [vmem:[%s2514_s1 + $0x100] sm:$0xf]  ;;  %v1239_v24 = vor.u32 %v1599_v15, %v1238_v14  ;;  %v1581_v25 = vld [vmem:[%s2514_s1 + $0x104] sm:$0xf0]  ;;  %v1350_v28 = vld [vmem:[%s2514_s1 + $0x270] sm:$0xf]  ;;  %v1103_v35 = vor.u32 %v1565_v22, %v1102_v21 }
  0x16   :  { %850 = vmatpush.bf16.msra.mxu2 %v1191_v58  ;;  %v1230_v26 = vld [vmem:[%s2514_s1 + $0x180] sm:$0xf]  ;;  %v1597_v27 = vld [vmem:[%s2514_s1 + $0x184] sm:$0xf0]  ;;  %v1627_v29 = vld [vmem:[%s2514_s1 + $0x274] sm:$0xf0]  ;;  %v1167_v36 = vor.u32 %v1581_v25, %v1166_v23 }
  0x17   :  { %863 = vmatpush.bf16.msra.mxu3 %v1255_v62  ;;  %v1414_v30 = vld [vmem:[%s2514_s1 + $0x2f0] sm:$0xf]  ;;  %v1643_v32 = vld [vmem:[%s2514_s1 + $0x2f4] sm:$0xf0]  ;;  %v1231_v39 = vor.u32 %v1597_v27, %v1230_v26  ;;  %v1351_v40 = vor.u32 %v1627_v29, %v1350_v28  ;;  %v1342_v43 = vld [vmem:[%s2514_s1 + $0x260] sm:$0xf] }
  0x18   :  { %825 = vmatpush.bf16.msra.mxu0 %v1055_v4  ;;  %v1478_v33 = vld [vmem:[%s2514_s1 + $0x370] sm:$0xf]  ;;  %v1659_v34 = vld [vmem:[%s2514_s1 + $0x374] sm:$0xf0]  ;;  %v1415_v41 = vor.u32 %v1643_v32, %v1414_v30  ;;  %v1625_v44 = vld [vmem:[%s2514_s1 + $0x264] sm:$0xf0] }
  0x19   :  { %838 = vmatpush.bf16.msra.mxu1 %v1119_v5  ;;  %v1542_v37 = vld [vmem:[%s2514_s1 + $0x3f0] sm:$0xf]  ;;  %v1675_v38 = vld [vmem:[%s2514_s1 + $0x3f4] sm:$0xf0]  ;;  %v1479_v42 = vor.u32 %v1659_v34, %v1478_v33  ;;  %v1406_v45 = vld [vmem:[%s2514_s1 + $0x2e0] sm:$0xf]  ;;  %v1343_v52 = vor.u32 %v1625_v44, %v1342_v43 }
  0x1a   :  { %851 = vmatpush.bf16.msra.mxu2 %v1183_v6  ;;  %v1543_v46 = vor.u32 %v1675_v38, %v1542_v37  ;;  %v1641_v47 = vld [vmem:[%s2514_s1 + $0x2e4] sm:$0xf0]  ;;  %v1470_v48 = vld [vmem:[%s2514_s1 + $0x360] sm:$0xf]  ;;  %v1334_v53 = vld [vmem:[%s2514_s1 + $0x250] sm:$0xf] }
  0x1b   :  { %864 = vmatpush.bf16.msra.mxu3 %v1247_v10  ;;  %v1657_v49 = vld [vmem:[%s2514_s1 + $0x364] sm:$0xf0]  ;;  %v1534_v50 = vld [vmem:[%s2514_s1 + $0x3e0] sm:$0xf]  ;;  %v1407_v54 = vor.u32 %v1641_v47, %v1406_v45  ;;  %v1623_v56 = vld [vmem:[%s2514_s1 + $0x254] sm:$0xf0] }
  0x1c   :  { %826 = vmatpush.bf16.msra.mxu0 %v1047_v16  ;;  %v1673_v51 = vld [vmem:[%s2514_s1 + $0x3e4] sm:$0xf0]  ;;  %v1471_v55 = vor.u32 %v1657_v49, %v1470_v48  ;;  %v1398_v57 = vld [vmem:[%s2514_s1 + $0x2d0] sm:$0xf]  ;;  %v1639_v60 = vld [vmem:[%s2514_s1 + $0x2d4] sm:$0xf0]  ;;  %v1335_v3 = vor.u32 %v1623_v56, %v1334_v53 }
  0x1d   :  { %839 = vmatpush.bf16.msra.mxu1 %v1111_v19  ;;  %v15_v58 = vld [vmem:[%s2515_s0 + $0x8] sm:$0xff]  ;;  %v1535_v59 = vor.u32 %v1673_v51, %v1534_v50  ;;  %v1462_v61 = vld [vmem:[%s2514_s1 + $0x350] sm:$0xf]  ;;  %v1655_v62 = vld [vmem:[%s2514_s1 + $0x354] sm:$0xf0]  ;;  %v1399_v7 = vor.u32 %v1639_v60, %v1398_v57 }
  0x1e   :  { %852 = vmatpush.bf16.msra.mxu2 %v1175_v20  ;;  %v158_v63 = vunpack.c.l.b16 %v15_v58  ;;  %v159_v0 = vunpack.c.h.b16 %v15_v58  ;;  %v1526_v1 = vld [vmem:[%s2514_s1 + $0x3d0] sm:$0xf]  ;;  %v1671_v2 = vld [vmem:[%s2514_s1 + $0x3d4] sm:$0xf0]  ;;  %v14_v5 = vld [vmem:[%s2515_s0] sm:$0xff]  ;;  %v1463_v8 = vor.u32 %v1655_v62, %v1462_v61 }
  0x1f   :  { %865 = vmatpush.bf16.msra.mxu3 %v1239_v24  ;;  %v1326_v9 = vld [vmem:[%s2514_s1 + $0x240] sm:$0xf]  ;;  %v1621_v10 = vld [vmem:[%s2514_s1 + $0x244] sm:$0xf0]  ;;  %v156_v12 = vunpack.c.l.b16 %v14_v5  ;;  %v157_v13 = vunpack.c.h.b16 %v14_v5  ;;  %v1527_v14 = vor.u32 %v1671_v2, %v1526_v1  ;;  %v1318_v25 = vld [vmem:[%s2514_s1 + $0x230] sm:$0xf] }
  0x20   :  { %827 = vmatpush.bf16.msra.mxu0 %v1039_v31  ;;  %v1963_v4 = vpack.c.b16 %v158_v63, %v158_v63  ;;  %v1968_v6 = vpack.c.b16 %v159_v0, %v159_v0  ;;  %v1390_v11 = vld [vmem:[%s2514_s1 + $0x2c0] sm:$0xf]  ;;  %v1637_v15 = vld [vmem:[%s2514_s1 + $0x2c4] sm:$0xf0]  ;;  %v1327_v22 = vor.u32 %v1621_v10, %v1326_v9  ;;  %v1619_v26 = vld [vmem:[%s2514_s1 + $0x234] sm:$0xf0] }
  0x21   :  { %840 = vmatpush.bf16.msra.mxu1 %v1103_v35  ;;  %v1454_v16 = vld [vmem:[%s2514_s1 + $0x340] sm:$0xf]  ;;  %v1653_v17 = vld [vmem:[%s2514_s1 + $0x344] sm:$0xf0]  ;;  %v1995_v20 = vpack.c.b16 %v156_v12, %v156_v12  ;;  %v1998_v21 = vpack.c.b16 %v157_v13, %v157_v13  ;;  %v1391_v23 = vor.u32 %v1637_v15, %v1390_v11  ;;  %v1382_v27 = vld [vmem:[%s2514_s1 + $0x2b0] sm:$0xf]  ;;  %v1319_v34 = vor.u32 %v1619_v26, %v1318_v25 }
  0x22   :  { %853 = vmatpush.bf16.msra.mxu2 %v1167_v36  ;;  %v1518_v18 = vld [vmem:[%s2514_s1 + $0x3c0] sm:$0xf]  ;;  %v1669_v19 = vld [vmem:[%s2514_s1 + $0x3c4] sm:$0xf0]  ;;  %v1455_v24 = vor.u32 %v1653_v17, %v1454_v16  ;;  %v1635_v29 = vld [vmem:[%s2514_s1 + $0x2b4] sm:$0xf0] }
  0x23   :  { %866 = vmatpush.bf16.msra.mxu3 %v1231_v39  ;;  %v1519_v28 = vor.u32 %v1669_v19, %v1518_v18  ;;  %v1446_v30 = vld [vmem:[%s2514_s1 + $0x330] sm:$0xf]  ;;  %v1651_v31 = vld [vmem:[%s2514_s1 + $0x334] sm:$0xf0]  ;;  %828 = vmatmul.bf16.vlgmr.msra.gmra.mxu0 %v1995_v20  ;;  %v1383_v35 = vor.u32 %v1635_v29, %v1382_v27  ;;  %v1310_v37 = vld [vmem:[%s2514_s1 + $0x220] sm:$0xf] }
  0x24   :  { %872 = vmatpush.bf16.msrb.mxu0 %v1351_v40  ;;  %v1510_v32 = vld [vmem:[%s2514_s1 + $0x3b0] sm:$0xf]  ;;  %v1667_v33 = vld [vmem:[%s2514_s1 + $0x3b4] sm:$0xf0]  ;;  %841 = vmatmul.bf16.vlgmr.msra.gmra.mxu1 %v1998_v21  ;;  %v1447_v36 = vor.u32 %v1651_v31, %v1446_v30  ;;  %v1617_v38 = vld [vmem:[%s2514_s1 + $0x224] sm:$0xf0] }
  0x25   :  { %885 = vmatpush.bf16.msrb.mxu1 %v1415_v41  ;;  %854 = vmatmul.bf16.vlgmr.msra.gmra.mxu2 %v1963_v4  ;;  %v1374_v39 = vld [vmem:[%s2514_s1 + $0x2a0] sm:$0xf]  ;;  %v1511_v40 = vor.u32 %v1667_v33, %v1510_v32  ;;  %v1633_v41 = vld [vmem:[%s2514_s1 + $0x2a4] sm:$0xf0]  ;;  %v1302_v49 = vld [vmem:[%s2514_s1 + $0x210] sm:$0xf] }
  0x26   :  { %898 = vmatpush.bf16.msrb.mxu2 %v1479_v42  ;;  %867 = vmatmul.bf16.vlgmr.msra.gmra.mxu3 %v1968_v6  ;;  %v1438_v42 = vld [vmem:[%s2514_s1 + $0x320] sm:$0xf]  ;;  %v1649_v43 = vld [vmem:[%s2514_s1 + $0x324] sm:$0xf0]  ;;  %v1375_v47 = vor.u32 %v1633_v41, %v1374_v39  ;;  %v1615_v50 = vld [vmem:[%s2514_s1 + $0x214] sm:$0xf0] }
  0x27   :  { %911 = vmatpush.bf16.msrb.mxu3 %v1543_v46  ;;  %v1502_v44 = vld [vmem:[%s2514_s1 + $0x3a0] sm:$0xf]  ;;  %v1665_v45 = vld [vmem:[%s2514_s1 + $0x3a4] sm:$0xf0]  ;;  %v1311_v46 = vor.u32 %v1617_v38, %v1310_v37  ;;  %v1439_v48 = vor.u32 %v1649_v43, %v1438_v42  ;;  %v1366_v51 = vld [vmem:[%s2514_s1 + $0x290] sm:$0xf] }
  0x28   :  { %873 = vmatpush.bf16.msrb.mxu0 %v1343_v52  ;;  %v1503_v52 = vor.u32 %v1665_v45, %v1502_v44  ;;  %v1631_v53 = vld [vmem:[%s2514_s1 + $0x294] sm:$0xf0]  ;;  %v1494_v56 = vld [vmem:[%s2514_s1 + $0x390] sm:$0xf]  ;;  %v1294_v58 = vld [vmem:[%s2514_s1 + $0x200] sm:$0xf] }
  0x29   :  { %886 = vmatpush.bf16.msrb.mxu1 %v1407_v54  ;;  %v1430_v54 = vld [vmem:[%s2514_s1 + $0x310] sm:$0xf]  ;;  %v1663_v57 = vld [vmem:[%s2514_s1 + $0x394] sm:$0xf0]  ;;  %v1613_v60 = vld [vmem:[%s2514_s1 + $0x204] sm:$0xf0]  ;;  %v1367_v63 = vor.u32 %v1631_v53, %v1366_v51 }
  0x2a   :  { %899 = vmatpush.bf16.msrb.mxu2 %v1471_v55  ;;  %v1647_v55 = vld [vmem:[%s2514_s1 + $0x314] sm:$0xf0]  ;;  %v1358_v61 = vld [vmem:[%s2514_s1 + $0x280] sm:$0xf]  ;;  %v1629_v62 = vld [vmem:[%s2514_s1 + $0x284] sm:$0xf0]  ;;  %v1495_v5 = vor.u32 %v1663_v57, %v1494_v56  ;;  %v1295_v13 = vor.u32 %v1613_v60, %v1294_v58 }
  0x2b   :  { %912 = vmatpush.bf16.msrb.mxu3 %v1535_v59  ;;  %v1303_v59 = vor.u32 %v1615_v50, %v1302_v49  ;;  %v1431_v0 = vor.u32 %v1647_v55, %v1430_v54  ;;  %v1422_v1 = vld [vmem:[%s2514_s1 + $0x300] sm:$0xf]  ;;  %v1645_v2 = vld [vmem:[%s2514_s1 + $0x304] sm:$0xf0]  ;;  %v16_v9 = vld [vmem:[%s2515_s0 + $0x10] sm:$0xff]  ;;  %v1359_v18 = vor.u32 %v1629_v62, %v1358_v61 }
  0x2c   :  { %874 = vmatpush.bf16.msrb.mxu0 %v1335_v3  ;;  %v17_v3 = vld [vmem:[%s2515_s0 + $0x18] sm:$0xff]  ;;  %v1562_v10 = vld [vmem:[%s2514_s1 + $0x74] sm:$0xf]  ;;  %v1423_v19 = vor.u32 %v1645_v2, %v1422_v1  ;;  %v1560_v31 = vld [vmem:[%s2514_s1 + $0x64] sm:$0xf] }
  0x2d   :  { %887 = vmatpush.bf16.msrb.mxu1 %v1399_v7  ;;  %v1486_v7 = vld [vmem:[%s2514_s1 + $0x380] sm:$0xf]  ;;  %v1096_v11 = vld [vmem:[%s2514_s1 + $0x78] sm:$0xf0]  ;;  %v1578_v12 = vld [vmem:[%s2514_s1 + $0xf4] sm:$0xf]  ;;  %v162_v17 = vunpack.c.l.b16 %v17_v3  ;;  %v163_v25 = vunpack.c.h.b16 %v17_v3 }
  0x2e   :  { %900 = vmatpush.bf16.msrb.mxu2 %v1463_v8  ;;  %v1661_v8 = vld [vmem:[%s2514_s1 + $0x384] sm:$0xf0]  ;;  %v1594_v15 = vld [vmem:[%s2514_s1 + $0x174] sm:$0xf]  ;;  %v1224_v16 = vld [vmem:[%s2514_s1 + $0x178] sm:$0xf0]  ;;  %v1099_v27 = vor.u32 %v1562_v10, %v1096_v11 }
  0x2f   :  { %913 = vmatpush.bf16.msrb.mxu3 %v1527_v14  ;;  %v1160_v14 = vld [vmem:[%s2514_s1 + $0xf8] sm:$0xf0]  ;;  %v1487_v26 = vor.u32 %v1661_v8, %v1486_v7  ;;  %v1227_v30 = vor.u32 %v1594_v15, %v1224_v16  ;;  %v1088_v32 = vld [vmem:[%s2514_s1 + $0x68] sm:$0xf0]  ;;  %v1576_v33 = vld [vmem:[%s2514_s1 + $0xe4] sm:$0xf]  ;;  %v2146_v38 = vpack.c.b16 %v162_v17, %v162_v17  ;;  %v2156_v42 = vpack.c.b16 %v163_v25, %v163_v25 }
  0x30   :  { %875 = vmatpush.bf16.msrb.mxu0 %v1327_v22  ;;  %v1610_v22 = vld [vmem:[%s2514_s1 + $0x1f4] sm:$0xf]  ;;  %v1163_v29 = vor.u32 %v1578_v12, %v1160_v14  ;;  %v1216_v37 = vld [vmem:[%s2514_s1 + $0x168] sm:$0xf0]  ;;  %v1608_v39 = vld [vmem:[%s2514_s1 + $0x1e4] sm:$0xf]  ;;  %v1091_v43 = vor.u32 %v1560_v31, %v1088_v32 }
  0x31   :  { %888 = vmatpush.bf16.msrb.mxu1 %v1391_v23  ;;  %v1288_v23 = vld [vmem:[%s2514_s1 + $0x1f8] sm:$0xf0]  ;;  %v1574_v49 = vld [vmem:[%s2514_s1 + $0xd4] sm:$0xf]  ;;  %v1072_v60 = vld [vmem:[%s2514_s1 + $0x48] sm:$0xf0] }
  0x32   :  { %901 = vmatpush.bf16.msrb.mxu2 %v1455_v24  ;;  %v160_v24 = vunpack.c.l.b16 %v16_v9  ;;  %v1144_v51 = vld [vmem:[%s2514_s1 + $0xd8] sm:$0xf0]  ;;  %v1606_v54 = vld [vmem:[%s2514_s1 + $0x1d4] sm:$0xf]  ;;  %v1572_v61 = vld [vmem:[%s2514_s1 + $0xc4] sm:$0xf] }
  0x33   :  { %914 = vmatpush.bf16.msrb.mxu3 %v1519_v28  ;;  %v161_v28 = vunpack.c.h.b16 %v16_v9  ;;  %v1208_v53 = vld [vmem:[%s2514_s1 + $0x158] sm:$0xf0]  ;;  %v1147_v57 = vor.u32 %v1574_v49, %v1144_v51  ;;  %v1200_v1 = vld [vmem:[%s2514_s1 + $0x148] sm:$0xf0]  ;;  %v1604_v2 = vld [vmem:[%s2514_s1 + $0x1c4] sm:$0xf] }
  0x34   :  { %876 = vmatpush.bf16.msrb.mxu0 %v1319_v34  ;;  %v1291_v34 = vor.u32 %v1610_v22, %v1288_v23  ;;  %v2154_v41 = vpack.c.b16 %v160_v24, %v160_v24  ;;  %v1272_v55 = vld [vmem:[%s2514_s1 + $0x1d8] sm:$0xf0]  ;;  %v1264_v3 = vld [vmem:[%s2514_s1 + $0x1c8] sm:$0xf0]  ;;  %v1554_v9 = vld [vmem:[%s2514_s1 + $0x34] sm:$0xf] }
  0x35   :  { %889 = vmatpush.bf16.msrb.mxu1 %v1383_v35  ;;  %v1152_v35 = vld [vmem:[%s2514_s1 + $0xe8] sm:$0xf0]  ;;  %v2158_v44 = vpack.c.b16 %v161_v28, %v161_v28  ;;  %v1275_v62 = vor.u32 %v1606_v54, %v1272_v55  ;;  %v1064_v10 = vld [vmem:[%s2514_s1 + $0x38] sm:$0xf0]  ;;  %v1570_v11 = vld [vmem:[%s2514_s1 + $0xb4] sm:$0xf]  ;;  %v1267_v12 = vor.u32 %v1604_v2, %v1264_v3 }
  0x36   :  { %902 = vmatpush.bf16.msrb.mxu2 %v1447_v36  ;;  %v1592_v36 = vld [vmem:[%s2514_s1 + $0x164] sm:$0xf]  ;;  %v1155_v45 = vor.u32 %v1576_v33, %v1152_v35  ;;  %v1586_v14 = vld [vmem:[%s2514_s1 + $0x134] sm:$0xf]  ;;  %v1192_v15 = vld [vmem:[%s2514_s1 + $0x138] sm:$0xf0] }
  0x37   :  { %915 = vmatpush.bf16.msrb.mxu3 %v1511_v40  ;;  %v1280_v40 = vld [vmem:[%s2514_s1 + $0x1e8] sm:$0xf0]  ;;  %v1602_v16 = vld [vmem:[%s2514_s1 + $0x1b4] sm:$0xf]  ;;  %v1256_v17 = vld [vmem:[%s2514_s1 + $0x1b8] sm:$0xf0]  ;;  %v1195_v22 = vor.u32 %v1586_v14, %v1192_v15 }
  0x38   :  { %877 = vmatpush.bf16.msrb.mxu0 %v1311_v46  ;;  %v1219_v46 = vor.u32 %v1592_v36, %v1216_v37  ;;  %v1283_v50 = vor.u32 %v1608_v39, %v1280_v40  ;;  %v1552_v23 = vld [vmem:[%s2514_s1 + $0x24] sm:$0xf]  ;;  %v1056_v24 = vld [vmem:[%s2514_s1 + $0x28] sm:$0xf0]  ;;  %v1550_v35 = vld [vmem:[%s2514_s1 + $0x14] sm:$0xf] }
  0x39   :  { %890 = vmatpush.bf16.msrb.mxu1 %v1375_v47  ;;  %v1558_v47 = vld [vmem:[%s2514_s1 + $0x54] sm:$0xf]  ;;  %v1568_v25 = vld [vmem:[%s2514_s1 + $0xa4] sm:$0xf]  ;;  %v1248_v31 = vld [vmem:[%s2514_s1 + $0x1a8] sm:$0xf0]  ;;  %v1059_v32 = vor.u32 %v1552_v23, %v1056_v24 }
  0x3a   :  { %903 = vmatpush.bf16.msrb.mxu2 %v1439_v48  ;;  %v1080_v48 = vld [vmem:[%s2514_s1 + $0x58] sm:$0xf0]  ;;  %v1584_v28 = vld [vmem:[%s2514_s1 + $0x124] sm:$0xf]  ;;  %v1566_v37 = vld [vmem:[%s2514_s1 + $0x94] sm:$0xf] }
  0x3b   :  { %916 = vmatpush.bf16.msrb.mxu3 %v1503_v52  ;;  %v1590_v52 = vld [vmem:[%s2514_s1 + $0x154] sm:$0xf]  ;;  %v1083_v56 = vor.u32 %v1558_v47, %v1080_v48  ;;  %v1048_v36 = vld [vmem:[%s2514_s1 + $0x18] sm:$0xf0]  ;;  %v1548_v49 = vld [vmem:[%s2514_s1 + $0x4] sm:$0xf] }
  0x3c   :  { %878 = vmatpush.bf16.msrb.mxu0 %v1303_v59  ;;  %v1211_v58 = vor.u32 %v1590_v52, %v1208_v53  ;;  %v1556_v59 = vld [vmem:[%s2514_s1 + $0x44] sm:$0xf]  ;;  %v1112_v40 = vld [vmem:[%s2514_s1 + $0x98] sm:$0xf0]  ;;  %v1051_v48 = vor.u32 %v1550_v35, %v1048_v36  ;;  %v1104_v54 = vld [vmem:[%s2514_s1 + $0x88] sm:$0xf0] }
  0x3d   :  { %891 = vmatpush.bf16.msrb.mxu1 %v1367_v63  ;;  %v1136_v63 = vld [vmem:[%s2514_s1 + $0xc8] sm:$0xf0]  ;;  %v1240_v47 = vld [vmem:[%s2514_s1 + $0x198] sm:$0xf0]  ;;  %v1115_v51 = vor.u32 %v1566_v37, %v1112_v40  ;;  %v1564_v53 = vld [vmem:[%s2514_s1 + $0x84] sm:$0xf] }
  0x3e   :  { %904 = vmatpush.bf16.msrb.mxu2 %v1431_v0  ;;  %v1588_v0 = vld [vmem:[%s2514_s1 + $0x144] sm:$0xf]  ;;  %v1139_v7 = vor.u32 %v1572_v61, %v1136_v63  ;;  %v1352_v61 = vld [vmem:[%s2514_s1 + $0x278] sm:$0xf0]  ;;  %v1107_v3 = vor.u32 %v1564_v53, %v1104_v54  ;;  %v1344_v14 = vld [vmem:[%s2514_s1 + $0x268] sm:$0xf0] }
  0x3f   :  { %917 = vmatpush.bf16.msrb.mxu3 %v1495_v5  ;;  %v1075_v5 = vor.u32 %v1556_v59, %v1072_v60  ;;  %v1203_v8 = vor.u32 %v1588_v0, %v1200_v1  ;;  %v1580_v55 = vld [vmem:[%s2514_s1 + $0x104] sm:$0xf]  ;;  %v1232_v59 = vld [vmem:[%s2514_s1 + $0x188] sm:$0xf0]  ;;  %v1626_v60 = vld [vmem:[%s2514_s1 + $0x274] sm:$0xf] }
  0x40   :  { %879 = vmatpush.bf16.msrb.mxu0 %v1295_v13  ;;  %v1128_v13 = vld [vmem:[%s2514_s1 + $0xb8] sm:$0xf0]  ;;  %v1658_v1 = vld [vmem:[%s2514_s1 + $0x374] sm:$0xf]  ;;  %v1640_v15 = vld [vmem:[%s2514_s1 + $0x2e4] sm:$0xf] }
  0x41   :  { %892 = vmatpush.bf16.msrb.mxu1 %v1359_v18  ;;  %v1067_v18 = vor.u32 %v1554_v9, %v1064_v10  ;;  %v1416_v0 = vld [vmem:[%s2514_s1 + $0x2f8] sm:$0xf0]  ;;  %v1355_v10 = vor.u32 %v1626_v60, %v1352_v61  ;;  %v1536_v23 = vld [vmem:[%s2514_s1 + $0x3e8] sm:$0xf0]  ;;  %v1634_v53 = vld [vmem:[%s2514_s1 + $0x2b4] sm:$0xf] }
  0x42   :  { %905 = vmatpush.bf16.msrb.mxu2 %v1423_v19  ;;  %v1131_v19 = vor.u32 %v1570_v11, %v1128_v13  ;;  %v1480_v2 = vld [vmem:[%s2514_s1 + $0x378] sm:$0xf0]  ;;  %v1624_v13 = vld [vmem:[%s2514_s1 + $0x264] sm:$0xf] }
  0x43   :  { %918 = vmatpush.bf16.msrb.mxu3 %v1487_v26  ;;  %880 = vmatmul.bf16.vlgmr.msrb.gmra.mxu0 %v2154_v41  ;;  %v1259_v26 = vor.u32 %v1602_v16, %v1256_v17  ;;  %v1408_v17 = vld [vmem:[%s2514_s1 + $0x2e8] sm:$0xf0]  ;;  %v1347_v24 = vor.u32 %v1624_v13, %v1344_v14  ;;  %v1614_v13 = vld [vmem:[%s2514_s1 + $0x214] sm:$0xf]  ;;  %v1304_v14 = vld [vmem:[%s2514_s1 + $0x218] sm:$0xf0] }
  0x44   :  { %924 = vmatpush.bf16.msra.mxu0 %v1099_v27  ;;  %893 = vmatmul.bf16.vlgmr.msrb.gmra.mxu1 %v2158_v44  ;;  %v1120_v27 = vld [vmem:[%s2514_s1 + $0xa8] sm:$0xf0] }
  0x45   :  { %937 = vmatpush.bf16.msra.mxu1 %v1163_v29  ;;  %906 = vmatmul.bf16.vlgmr.msrb.gmra.mxu2 %v2146_v38  ;;  %v1184_v29 = vld [vmem:[%s2514_s1 + $0x128] sm:$0xf0]  ;;  %v1123_v33 = vor.u32 %v1568_v25, %v1120_v27  ;;  %v1411_v25 = vor.u32 %v1640_v15, %v1408_v17  ;;  %v1622_v27 = vld [vmem:[%s2514_s1 + $0x254] sm:$0xf]  ;;  %v1368_v17 = vld [vmem:[%s2514_s1 + $0x298] sm:$0xf0] }
  0x46   :  { %950 = vmatpush.bf16.msra.mxu2 %v1227_v30  ;;  %919 = vmatmul.bf16.vlgmr.msrb.gmra.mxu3 %v2156_v42  ;;  %v1600_v30 = vld [vmem:[%s2514_s1 + $0x1a4] sm:$0xf]  ;;  %v1630_v15 = vld [vmem:[%s2514_s1 + $0x294] sm:$0xf] }
  0x47   :  { %963 = vmatpush.bf16.msra.mxu3 %v1291_v34  ;;  %v1187_v34 = vor.u32 %v1584_v28, %v1184_v29  ;;  %v1251_v39 = vor.u32 %v1600_v30, %v1248_v31  ;;  %v1336_v28 = vld [vmem:[%s2514_s1 + $0x258] sm:$0xf0]  ;;  %v1638_v29 = vld [vmem:[%s2514_s1 + $0x2d4] sm:$0xf] }
  0x48   :  { %925 = vmatpush.bf16.msra.mxu0 %v1091_v43  ;;  %v1582_v43 = vld [vmem:[%s2514_s1 + $0x114] sm:$0xf]  ;;  %v1400_v31 = vld [vmem:[%s2514_s1 + $0x2d8] sm:$0xf0]  ;;  %v1339_v35 = vor.u32 %v1622_v27, %v1336_v28  ;;  %v1612_v27 = vld [vmem:[%s2514_s1 + $0x204] sm:$0xf] }
  0x49   :  { %938 = vmatpush.bf16.msra.mxu1 %v1155_v45  ;;  %v1176_v45 = vld [vmem:[%s2514_s1 + $0x118] sm:$0xf0]  ;;  %v1403_v36 = vor.u32 %v1638_v29, %v1400_v31  ;;  %v1296_v28 = vld [vmem:[%s2514_s1 + $0x208] sm:$0xf0]  ;;  %v1628_v29 = vld [vmem:[%s2514_s1 + $0x284] sm:$0xf] }
  0x4a   :  { %951 = vmatpush.bf16.msra.mxu2 %v1219_v46  ;;  %v1598_v46 = vld [vmem:[%s2514_s1 + $0x194] sm:$0xf]  ;;  %v1179_v52 = vor.u32 %v1582_v43, %v1176_v45  ;;  %v1652_v43 = vld [vmem:[%s2514_s1 + $0x344] sm:$0xf]  ;;  %v1456_v45 = vld [vmem:[%s2514_s1 + $0x348] sm:$0xf0] }
  0x4b   :  { %964 = vmatpush.bf16.msra.mxu3 %v1283_v50  ;;  %v1040_v50 = vld [vmem:[%s2514_s1 + $0x8] sm:$0xf0] }
  0x4c   :  { %926 = vmatpush.bf16.msra.mxu0 %v1083_v56  ;;  %v1243_v56 = vor.u32 %v1598_v46, %v1240_v47  ;;  %v1043_v63 = vor.u32 %v1548_v49, %v1040_v50  ;;  %v1668_v46 = vld [vmem:[%s2514_s1 + $0x3c4] sm:$0xf]  ;;  %v1520_v47 = vld [vmem:[%s2514_s1 + $0x3c8] sm:$0xf0]  ;;  %v1459_v50 = vor.u32 %v1652_v43, %v1456_v45 }
  0x4d   :  { %939 = vmatpush.bf16.msra.mxu1 %v1147_v57  ;;  %v1168_v57 = vld [vmem:[%s2514_s1 + $0x108] sm:$0xf0]  ;;  %v1523_v54 = vor.u32 %v1668_v46, %v1520_v47 }
  0x4e   :  { %952 = vmatpush.bf16.msra.mxu2 %v1211_v58  ;;  %v1596_v58 = vld [vmem:[%s2514_s1 + $0x184] sm:$0xf]  ;;  %v1360_v31 = vld [vmem:[%s2514_s1 + $0x288] sm:$0xf0] }
  0x4f   :  { %965 = vmatpush.bf16.msra.mxu3 %v1275_v62  ;;  %v1642_v62 = vld [vmem:[%s2514_s1 + $0x2f4] sm:$0xf]  ;;  %v1235_v9 = vor.u32 %v1596_v58, %v1232_v59  ;;  %v1512_v59 = vld [vmem:[%s2514_s1 + $0x3b8] sm:$0xf0] }
  0x50   :  { %927 = vmatpush.bf16.msra.mxu0 %v1075_v5  ;;  %v1171_v5 = vor.u32 %v1580_v55, %v1168_v57  ;;  %v1419_v11 = vor.u32 %v1642_v62, %v1416_v0  ;;  %v1384_v55 = vld [vmem:[%s2514_s1 + $0x2b8] sm:$0xf0]  ;;  %v1666_v58 = vld [vmem:[%s2514_s1 + $0x3b4] sm:$0xf]  ;;  %v1312_v0 = vld [vmem:[%s2514_s1 + $0x228] sm:$0xf0] }
  0x51   :  { %940 = vmatpush.bf16.msra.mxu1 %v1139_v7  ;;  %v1674_v7 = vld [vmem:[%s2514_s1 + $0x3f4] sm:$0xf]  ;;  %v1448_v57 = vld [vmem:[%s2514_s1 + $0x338] sm:$0xf0]  ;;  %v1387_v61 = vor.u32 %v1634_v53, %v1384_v55 }
  0x52   :  { %953 = vmatpush.bf16.msra.mxu2 %v1203_v8  ;;  %v1544_v8 = vld [vmem:[%s2514_s1 + $0x3f8] sm:$0xf0] }
  0x53   :  { %966 = vmatpush.bf16.msra.mxu3 %v1267_v12  ;;  %v1483_v12 = vor.u32 %v1658_v1, %v1480_v2  ;;  %v1547_v16 = vor.u32 %v1674_v7, %v1544_v8  ;;  %v1632_v1 = vld [vmem:[%s2514_s1 + $0x2a4] sm:$0xf]  ;;  %v1515_v2 = vor.u32 %v1666_v58, %v1512_v59  ;;  %v1440_v7 = vld [vmem:[%s2514_s1 + $0x328] sm:$0xf0] }
  0x54   :  { %928 = vmatpush.bf16.msra.mxu0 %v1067_v18  ;;  %v1656_v18 = vld [vmem:[%s2514_s1 + $0x364] sm:$0xf] }
  0x55   :  { %941 = vmatpush.bf16.msra.mxu1 %v1131_v19  ;;  %v1472_v19 = vld [vmem:[%s2514_s1 + $0x368] sm:$0xf0]  ;;  %v1664_v8 = vld [vmem:[%s2514_s1 + $0x3a4] sm:$0xf] }
  0x56   :  { %954 = vmatpush.bf16.msra.mxu2 %v1195_v22  ;;  %v1672_v22 = vld [vmem:[%s2514_s1 + $0x3e4] sm:$0xf] }
  0x57   :  { %967 = vmatpush.bf16.msra.mxu3 %v1259_v26  ;;  %v1475_v26 = vor.u32 %v1656_v18, %v1472_v19  ;;  %v1539_v30 = vor.u32 %v1672_v22, %v1536_v23  ;;  %v1646_v18 = vld [vmem:[%s2514_s1 + $0x314] sm:$0xf]  ;;  %v1432_v19 = vld [vmem:[%s2514_s1 + $0x318] sm:$0xf0] }
  0x58   :  { %929 = vmatpush.bf16.msra.mxu0 %v1059_v32  ;;  %v1654_v32 = vld [vmem:[%s2514_s1 + $0x354] sm:$0xf]  ;;  %v1496_v23 = vld [vmem:[%s2514_s1 + $0x398] sm:$0xf0] }
  0x59   :  { %942 = vmatpush.bf16.msra.mxu1 %v1123_v33  ;;  %v1464_v33 = vld [vmem:[%s2514_s1 + $0x358] sm:$0xf0]  ;;  %v1662_v22 = vld [vmem:[%s2514_s1 + $0x394] sm:$0xf] }
  0x5a   :  { %955 = vmatpush.bf16.msra.mxu2 %v1187_v34  ;;  %v1670_v34 = vld [vmem:[%s2514_s1 + $0x3d4] sm:$0xf]  ;;  %v1467_v37 = vor.u32 %v1654_v32, %v1464_v33  ;;  %v1644_v32 = vld [vmem:[%s2514_s1 + $0x304] sm:$0xf]  ;;  %v1424_v33 = vld [vmem:[%s2514_s1 + $0x308] sm:$0xf0] }
  0x5b   :  { %968 = vmatpush.bf16.msra.mxu3 %v1251_v39  ;;  %v1328_v39 = vld [vmem:[%s2514_s1 + $0x248] sm:$0xf0] }
  0x5c   :  { %930 = vmatpush.bf16.msra.mxu0 %v1051_v48 }
  0x5d   :  { %943 = vmatpush.bf16.msra.mxu1 %v1115_v51  ;;  %v1618_v51 = vld [vmem:[%s2514_s1 + $0x234] sm:$0xf] }
  0x5e   :  { %956 = vmatpush.bf16.msra.mxu2 %v1179_v52  ;;  %v1320_v52 = vld [vmem:[%s2514_s1 + $0x238] sm:$0xf0] }
  0x5f   :  { %969 = vmatpush.bf16.msra.mxu3 %v1243_v56  ;;  %v1650_v56 = vld [vmem:[%s2514_s1 + $0x334] sm:$0xf]  ;;  %v1323_v60 = vor.u32 %v1618_v51, %v1320_v52 }
  0x60   :  { %931 = vmatpush.bf16.msra.mxu0 %v1043_v63  ;;  %v1451_v62 = vor.u32 %v1650_v56, %v1448_v57  ;;  %v1616_v63 = vld [vmem:[%s2514_s1 + $0x224] sm:$0xf] }
  0x61   :  { %944 = vmatpush.bf16.msra.mxu1 %v1107_v3  ;;  %v1376_v3 = vld [vmem:[%s2514_s1 + $0x2a8] sm:$0xf0] }
  0x62   :  { %957 = vmatpush.bf16.msra.mxu2 %v1171_v5  ;;  %v1648_v5 = vld [vmem:[%s2514_s1 + $0x324] sm:$0xf] }
  0x63   :  { %970 = vmatpush.bf16.msra.mxu3 %v1235_v9  ;;  %932 = vmatmul.bf16.vlgmr.msra.gmra.mxu0 %v1995_v20  ;;  %v1636_v20 = vld [vmem:[%s2514_s1 + $0x2c4] sm:$0xf]  ;;  %v1504_v9 = vld [vmem:[%s2514_s1 + $0x3a8] sm:$0xf0] }
  0x64   :  { %976 = vmatpush.bf16.msrb.mxu0 %v1355_v10  ;;  %945 = vmatmul.bf16.vlgmr.msra.gmra.mxu1 %v1998_v21  ;;  %v1392_v21 = vld [vmem:[%s2514_s1 + $0x2c8] sm:$0xf0]  ;;  %v1315_v10 = vor.u32 %v1616_v63, %v1312_v0 }
  0x65   :  { %989 = vmatpush.bf16.msrb.mxu1 %v1419_v11  ;;  %958 = vmatmul.bf16.vlgmr.msra.gmra.mxu2 %v1963_v4  ;;  %v1528_v4 = vld [vmem:[%s2514_s1 + $0x3d8] sm:$0xf0]  ;;  %v1395_v49 = vor.u32 %v1636_v20, %v1392_v21  ;;  %v1379_v11 = vor.u32 %v1632_v1, %v1376_v3 }
  0x66   :  { %1002 = vmatpush.bf16.msrb.mxu2 %v1483_v12  ;;  %971 = vmatmul.bf16.vlgmr.msra.gmra.mxu3 %v1968_v6  ;;  %v1620_v6 = vld [vmem:[%s2514_s1 + $0x244] sm:$0xf]  ;;  %v1531_v40 = vor.u32 %v1670_v34, %v1528_v4  ;;  %v1443_v12 = vor.u32 %v1648_v5, %v1440_v7  ;;  %v1488_v4 = vld [vmem:[%s2514_s1 + $0x388] sm:$0xf0] }
  0x67   :  { %1015 = vmatpush.bf16.msrb.mxu3 %v1547_v16  ;;  %v1331_v48 = vor.u32 %v1620_v6, %v1328_v39  ;;  %v1507_v16 = vor.u32 %v1664_v8, %v1504_v9  ;;  %v1660_v34 = vld [vmem:[%s2514_s1 + $0x384] sm:$0xf]  ;;  %v146_v39 = vld [vmem:[%s2516_s2] sm:$0x3] }
  0x68   :  { %977 = vmatpush.bf16.msrb.mxu0 %v1347_v24  ;;  %v1307_v24 = vor.u32 %v1614_v13, %v1304_v14  ;;  %v1491_v6 = vor.u32 %v1660_v34, %v1488_v4  ;;  %v148_v20 = vperm.slane %v146_v39, 0  ;;  %v149_v0 = vperm.slane %v146_v39, 1 }
  0x69   :  { %990 = vmatpush.bf16.msrb.mxu1 %v1411_v25  ;;  %v1371_v25 = vor.u32 %v1630_v15, %v1368_v17 }
  0x6a   :  { %1003 = vmatpush.bf16.msrb.mxu2 %v1475_v26  ;;  %v1435_v26 = vor.u32 %v1646_v18, %v1432_v19 }
  0x6b   :  { %1016 = vmatpush.bf16.msrb.mxu3 %v1539_v30  ;;  %v1499_v30 = vor.u32 %v1662_v22, %v1496_v23 }
  0x6c   :  { %978 = vmatpush.bf16.msrb.mxu0 %v1339_v35  ;;  %v1299_v35 = vor.u32 %v1612_v27, %v1296_v28 }
  0x6d   :  { %991 = vmatpush.bf16.msrb.mxu1 %v1403_v36  ;;  %v1363_v36 = vor.u32 %v1628_v29, %v1360_v31 }
  0x6e   :  { %1004 = vmatpush.bf16.msrb.mxu2 %v1467_v37  ;;  %v1427_v37 = vor.u32 %v1644_v32, %v1424_v33 }
  0x6f   :  { %1017 = vmatpush.bf16.msrb.mxu3 %v1531_v40 }
  0x70   :  { %979 = vmatpush.bf16.msrb.mxu0 %v1331_v48 }
  0x71   :  { %992 = vmatpush.bf16.msrb.mxu1 %v1395_v49 }
  0x72   :  { %1005 = vmatpush.bf16.msrb.mxu2 %v1459_v50 }
  0x73   :  { %1018 = vmatpush.bf16.msrb.mxu3 %v1523_v54 }
  0x74   :  { %980 = vmatpush.bf16.msrb.mxu0 %v1323_v60 }
  0x75   :  { %993 = vmatpush.bf16.msrb.mxu1 %v1387_v61 }
  0x76   :  { %1006 = vmatpush.bf16.msrb.mxu2 %v1451_v62 }
  0x77   :  { %1019 = vmatpush.bf16.msrb.mxu3 %v1515_v2 }
  0x78   :  { %981 = vmatpush.bf16.msrb.mxu0 %v1315_v10 }
  0x79   :  { %994 = vmatpush.bf16.msrb.mxu1 %v1379_v11 }
  0x7a   :  { %1007 = vmatpush.bf16.msrb.mxu2 %v1443_v12 }
  0x7b   :  { %1020 = vmatpush.bf16.msrb.mxu3 %v1507_v16 }
  0x7c   :  { %982 = vmatpush.bf16.msrb.mxu0 %v1307_v24 }
  0x7d   :  { %995 = vmatpush.bf16.msrb.mxu1 %v1371_v25 }
  0x7e   :  { %1008 = vmatpush.bf16.msrb.mxu2 %v1435_v26 }
  0x7f   :  { %1021 = vmatpush.bf16.msrb.mxu3 %v1499_v30 }
  0x80   :  { %983 = vmatpush.bf16.msrb.mxu0 %v1299_v35 }
  0x81   :  { %996 = vmatpush.bf16.msrb.mxu1 %v1363_v36 }
  0x82   :  { %1009 = vmatpush.bf16.msrb.mxu2 %v1427_v37 }
  0x83   :  { %1022 = vmatpush.bf16.msrb.mxu3 %v1491_v6  ;;  %984 = vmatmul.bf16.vlgmr.msrb.gmra.mxu0 %v2154_v41 }
  0x84   :  { %997 = vmatmul.bf16.vlgmr.msrb.gmra.mxu1 %v2158_v44 }
  0x85   :  { %1010 = vmatmul.bf16.vlgmr.msrb.gmra.mxu2 %v2146_v38 }
  0x86   :  { %1023 = vmatmul.bf16.vlgmr.msrb.gmra.mxu3 %v2156_v42 }
  0xa0   :  { %v829_v40 = vpop.f32.mrf.mxu0 }
  0xa1   :  { %v830_v21 = vadd.f32 %v829_v40, %v148_v20  ;;  %v842_v43 = vpop.f32.mrf.mxu1 }
  0xa3   :  { %v843_v46 = vadd.f32 %v842_v43, %v830_v21 }
  0xa8   :  { %v855_v45 = vpop.f32.mrf.mxu2  ;;  %v831_v41 = vpop.f32.mrf.mxu0 }
  0xa9   :  { %v868_v47 = vpop.f32.mrf.mxu3  ;;  %v856_v48 = vadd.f32 %v855_v45, %v843_v46  ;;  %v844_v50 = vpop.f32.mrf.mxu1 }
  0xab   :  { %v869_v49 = vadd.f32 %v868_v47, %v856_v48 }
  0xb0   :  { %v857_v44 = vpop.f32.mrf.mxu2 }
  0xb1   :  { %v870_v51 = vpop.f32.mrf.mxu3 }
  0xc0   :  { %v881_v38 = vpop.f32.mrf.mxu0 }
  0xc1   :  { %v894_v52 = vpop.f32.mrf.mxu1  ;;  %v882_v7 = vadd.f32 %v881_v38, %v869_v49 }
  0xc3   :  { %v895_v9 = vadd.f32 %v894_v52, %v882_v7 }
  0xc8   :  { %v907_v42 = vpop.f32.mrf.mxu2  ;;  %v883_v54 = vpop.f32.mrf.mxu0 }
  0xc9   :  { %v920_v53 = vpop.f32.mrf.mxu3  ;;  %v896_v55 = vpop.f32.mrf.mxu1  ;;  %v908_v14 = vadd.f32 %v907_v42, %v895_v9 }
  0xcb   :  { %v921_v17 = vadd.f32 %v920_v53, %v908_v14 }
  0xcd   :  { %v1028_v25 = vmax.f32 %v921_v17, 0.0 }
  0xd0   :  { %v909_v56 = vpop.f32.mrf.mxu2 }
  0xd1   :  { %v922_v57 = vpop.f32.mrf.mxu3 }
  0xe0   :  { %v933_v58 = vpop.f32.mrf.mxu0 }
  0xe1   :  { %v946_v59 = vpop.f32.mrf.mxu1  ;;  %v934_v3 = vadd.f32 %v933_v58, %v149_v0 }
  0xe3   :  { %v947_v5 = vadd.f32 %v946_v59, %v934_v3 }
  0xe8   :  { %v959_v60 = vpop.f32.mrf.mxu2  ;;  %v935_v62 = vpop.f32.mrf.mxu0 }
  0xe9   :  { %v972_v61 = vpop.f32.mrf.mxu3  ;;  %v948_v63 = vpop.f32.mrf.mxu1  ;;  %v960_v8 = vadd.f32 %v959_v60, %v947_v5 }
  0xeb   :  { %v973_v10 = vadd.f32 %v972_v61, %v960_v8 }
  0xf0   :  { %v961_v1 = vpop.f32.mrf.mxu2 }
  0xf1   :  { %v974_v2 = vpop.f32.mrf.mxu3 }
 0x100   :  { %v985_v11 = vpop.f32.mrf.mxu0 }
 0x101   :  { %v998_v12 = vpop.f32.mrf.mxu1  ;;  %v986_v13 = vadd.f32 %v985_v11, %v973_v10 }
 0x103   :  { %v999_v15 = vadd.f32 %v998_v12, %v986_v13 }
 0x108   :  { %v1011_v16 = vpop.f32.mrf.mxu2  ;;  %v987_v22 = vpop.f32.mrf.mxu0 }
 0x109   :  { %v1012_v18 = vadd.f32 %v1011_v16, %v999_v15  ;;  %v1024_v19 = vpop.f32.mrf.mxu3  ;;  %v1000_v23 = vpop.f32.mrf.mxu1 }
 0x10b   :  { %v1025_v24 = vadd.f32 %v1024_v19, %v1012_v18 }
 0x10d   :  { %v1029_v26 = vmax.f32 %v1025_v24, 0.0 }
 0x10f   :  { %v1030_v27 = vpack.c.bf16 %v1029_v26, %v1028_v25 }
 0x110   :  { %v1013_v28 = vpop.f32.mrf.mxu2 }
 0x111   :  { %1031 = vst [vmem:[%s2517_s3] sm:$0xff] %v1030_v27  ;;  %v1026_v29 = vpop.f32.mrf.mxu3 }

// kernel: vae_forward.10
= control target key start
LH: loop header
LB: loop body
LE: loop exit
PB: predicated region body
PF: predicated region fallthrough
CT: control target
= control target key end

     0   :  { %s2775_s1 = inlined_call_operand.vmem [shape: bf16[1152,128], index: 1, kind: input, shape index: {}]   ;;  %s2776_s2 = inlined_call_operand.vmem [shape: f32[1,128], index: 2, kind: input, shape index: {}]   ;;  %s2777_s0 = inlined_call_operand.vmem [shape: bf16[98,1152], index: 0, kind: input, shape index: {}]   ;;  %s2778_s3 = inlined_call_operand.vmem [shape: bf16[98,128], index: 3, kind: output, shape index: {}]  }
   0x1   :  { %v1962_v0 = vld [vmem:[%s2775_s1 + $0x38] sm:$0xff]  ;;  %v1961_v1 = vld [vmem:[%s2775_s1 + $0x30] sm:$0xff]  ;;  %v1960_v2 = vld [vmem:[%s2775_s1 + $0x28] sm:$0xff] }
   0x2   :  { %2062 = vmatpush.bf16.msra.mxu1 %v1962_v0  ;;  %2063 = vmatpush.bf16.msra.mxu2 %v1962_v0  ;;  %v1959_v3 = vld [vmem:[%s2775_s1 + $0x20] sm:$0xff]  ;;  %v1958_v4 = vld [vmem:[%s2775_s1 + $0x18] sm:$0xff]  ;;  %v1957_v5 = vld [vmem:[%s2775_s1 + $0x10] sm:$0xff] }
   0x3   :  { %2064 = vmatpush.bf16.msra.mxu3 %v1962_v0  ;;  %967 = vmatpush.bf16.msra.mxu0 %v1962_v0  ;;  %v1956_v6 = vld [vmem:[%s2775_s1 + $0x8] sm:$0xff]  ;;  %v2131_v7 = vld [vmem:[%s2777_s0 + $0x1b0] sm:$0x11]  ;;  %v1955_v8 = vld [vmem:[%s2775_s1] sm:$0xff] }
   0x4   :  { %v1471_v9 = vld [vmem:[%s2777_s0 + $0x90] sm:$0xf]  ;;  %v1923_v10 = vld [vmem:[%s2777_s0 + $0xb0] sm:$0xf0]  ;;  %v1543_v11 = vld [vmem:[%s2777_s0 + $0x120] sm:$0xf]  ;;  %v400_v15 = vunpack.c.l.b16 %v2131_v7 }
   0x5   :  { %v1941_v12 = vld [vmem:[%s2777_s0 + $0x140] sm:$0xf0]  ;;  %v1399_v13 = vld [vmem:[%s2777_s0] sm:$0xf]  ;;  %v1986_v16 = vld [vmem:[%s2775_s1 + $0xf8] sm:$0xff]  ;;  %v1472_v18 = vor.u32 %v1923_v10, %v1471_v9 }
   0x6   :  { %2065 = vmatpush.bf16.msra.mxu1 %v1961_v1  ;;  %2066 = vmatpush.bf16.msra.mxu2 %v1961_v1  ;;  %v1905_v14 = vld [vmem:[%s2777_s0 + $0x20] sm:$0xf0]  ;;  %v1978_v17 = vld [vmem:[%s2775_s1 + $0xb8] sm:$0xff]  ;;  %v1544_v19 = vor.u32 %v1941_v12, %v1543_v11  ;;  %v463_v23 = vpack.c.b16 %v400_v15, %v400_v15  ;;  %v1985_v24 = vld [vmem:[%s2775_s1 + $0xf0] sm:$0xff] }
   0x7   :  { %2067 = vmatpush.bf16.msra.mxu3 %v1961_v1  ;;  %968 = vmatpush.bf16.msra.mxu0 %v1961_v1  ;;  %v1400_v20 = vor.u32 %v1905_v14, %v1399_v13  ;;  %v1970_v21 = vld [vmem:[%s2775_s1 + $0x78] sm:$0xff]  ;;  %v1977_v25 = vld [vmem:[%s2775_s1 + $0xb0] sm:$0xff]  ;;  %v1984_v28 = vld [vmem:[%s2775_s1 + $0xe8] sm:$0xff] }
   0x8   :  { %v1994_v22 = vld [vmem:[%s2775_s1 + $0x138] sm:$0xff]  ;;  %v1969_v26 = vld [vmem:[%s2775_s1 + $0x70] sm:$0xff]  ;;  %v1976_v29 = vld [vmem:[%s2775_s1 + $0xa8] sm:$0xff] }
   0x9   :  { %v1993_v27 = vld [vmem:[%s2775_s1 + $0x130] sm:$0xff]  ;;  %v1968_v30 = vld [vmem:[%s2775_s1 + $0x68] sm:$0xff]  ;;  %v1983_v32 = vld [vmem:[%s2775_s1 + $0xe0] sm:$0xff] }
   0xa   :  { %2068 = vmatpush.bf16.msra.mxu1 %v1960_v2  ;;  %2069 = vmatpush.bf16.msra.mxu2 %v1960_v2  ;;  %v1992_v31 = vld [vmem:[%s2775_s1 + $0x128] sm:$0xff]  ;;  %v1975_v33 = vld [vmem:[%s2775_s1 + $0xa0] sm:$0xff]  ;;  %v1507_v35 = vld [vmem:[%s2777_s0 + $0xd8] sm:$0xf] }
   0xb   :  { %2070 = vmatpush.bf16.msra.mxu3 %v1960_v2  ;;  %969 = vmatpush.bf16.msra.mxu0 %v1960_v2  ;;  %v1967_v34 = vld [vmem:[%s2775_s1 + $0x60] sm:$0xff]  ;;  %v1932_v36 = vld [vmem:[%s2777_s0 + $0xf8] sm:$0xf0]  ;;  %v1579_v37 = vld [vmem:[%s2777_s0 + $0x168] sm:$0xf] }
   0xc   :  { %v1950_v38 = vld [vmem:[%s2777_s0 + $0x188] sm:$0xf0]  ;;  %v1991_v39 = vld [vmem:[%s2775_s1 + $0x120] sm:$0xff]  ;;  %v1435_v40 = vld [vmem:[%s2777_s0 + $0x48] sm:$0xf]  ;;  %v1508_v44 = vor.u32 %v1932_v36, %v1507_v35 }
   0xd   :  { %v1914_v41 = vld [vmem:[%s2777_s0 + $0x68] sm:$0xf0]  ;;  %v1982_v42 = vld [vmem:[%s2775_s1 + $0xd8] sm:$0xff]  ;;  %v1580_v45 = vor.u32 %v1950_v38, %v1579_v37  ;;  %v1981_v49 = vld [vmem:[%s2775_s1 + $0xd0] sm:$0xff] }
   0xe   :  { %2071 = vmatpush.bf16.msra.mxu1 %v1959_v3  ;;  %2072 = vmatpush.bf16.msra.mxu2 %v1959_v3  ;;  %v1974_v43 = vld [vmem:[%s2775_s1 + $0x98] sm:$0xff]  ;;  %v1436_v46 = vor.u32 %v1914_v41, %v1435_v40  ;;  %v1973_v50 = vld [vmem:[%s2775_s1 + $0x90] sm:$0xff]  ;;  %v1980_v53 = vld [vmem:[%s2775_s1 + $0xc8] sm:$0xff] }
   0xf   :  { %2073 = vmatpush.bf16.msra.mxu3 %v1959_v3  ;;  %970 = vmatpush.bf16.msra.mxu0 %v1959_v3  ;;  %v1966_v47 = vld [vmem:[%s2775_s1 + $0x58] sm:$0xff]  ;;  %v1965_v51 = vld [vmem:[%s2775_s1 + $0x50] sm:$0xff]  ;;  %v1972_v54 = vld [vmem:[%s2775_s1 + $0x88] sm:$0xff] }
  0x10   :  { %v1990_v48 = vld [vmem:[%s2775_s1 + $0x118] sm:$0xff]  ;;  %v1989_v52 = vld [vmem:[%s2775_s1 + $0x110] sm:$0xff]  ;;  %v1964_v55 = vld [vmem:[%s2775_s1 + $0x48] sm:$0xff] }
  0x11   :  { %v1979_v56 = vld [vmem:[%s2775_s1 + $0xc0] sm:$0xff]  ;;  %v1988_v57 = vld [vmem:[%s2775_s1 + $0x108] sm:$0xff]  ;;  %v1409_v61 = vld [vmem:[%s2777_s0 + $0x2c] sm:$0xf0] }
  0x12   :  { %2074 = vmatpush.bf16.msra.mxu1 %v1958_v4  ;;  %2075 = vmatpush.bf16.msra.mxu2 %v1958_v4  ;;  %v1971_v58 = vld [vmem:[%s2775_s1 + $0x80] sm:$0xff]  ;;  %v1902_v60 = vld [vmem:[%s2777_s0 + $0xc] sm:$0xf]  ;;  %v2010_v63 = vld [vmem:[%s2775_s1 + $0x1b8] sm:$0xff] }
  0x13   :  { %2076 = vmatpush.bf16.msra.mxu3 %v1958_v4  ;;  %971 = vmatpush.bf16.msra.mxu0 %v1958_v4  ;;  %v1963_v59 = vld [vmem:[%s2775_s1 + $0x40] sm:$0xff]  ;;  %v2018_v0 = vld [vmem:[%s2775_s1 + $0x1f8] sm:$0xff]  ;;  %v1401_v1 = vld [vmem:[%s2777_s0 + $0x24] sm:$0xf0]  ;;  %v1412_v4 = vor.u32 %v1902_v60, %v1409_v61 }
  0x14   :  { %v1901_v62 = vld [vmem:[%s2777_s0 + $0x4] sm:$0xf]  ;;  %v1407_v2 = vld [vmem:[%s2777_s0 + $0x8] sm:$0xf]  ;;  %v1906_v3 = vld [vmem:[%s2777_s0 + $0x28] sm:$0xf0] }
  0x15   :  { %v2002_v9 = vld [vmem:[%s2775_s1 + $0x178] sm:$0xff]  ;;  %v1404_v11 = vor.u32 %v1901_v62, %v1401_v1  ;;  %v1408_v12 = vor.u32 %v1906_v3, %v1407_v2  ;;  %v2009_v14 = vld [vmem:[%s2775_s1 + $0x1b0] sm:$0xff]  ;;  %v1999_v36 = vld [vmem:[%s2775_s1 + $0x160] sm:$0xff] }
  0x16   :  { %2077 = vmatpush.bf16.msra.mxu1 %v1957_v5  ;;  %2078 = vmatpush.bf16.msra.mxu2 %v1957_v5  ;;  %v2026_v10 = vld [vmem:[%s2775_s1 + $0x238] sm:$0xff]  ;;  %v2017_v15 = vld [vmem:[%s2775_s1 + $0x1f0] sm:$0xff]  ;;  %v2023_v37 = vld [vmem:[%s2775_s1 + $0x220] sm:$0xff] }
  0x17   :  { %2079 = vmatpush.bf16.msra.mxu3 %v1957_v5  ;;  %972 = vmatpush.bf16.msra.mxu0 %v1957_v5  ;;  %v1987_v5 = vld [vmem:[%s2775_s1 + $0x100] sm:$0xff]  ;;  %v2006_v38 = vld [vmem:[%s2775_s1 + $0x198] sm:$0xff]  ;;  %v1934_v1 = vld [vmem:[%s2777_s0 + $0x108] sm:$0xf0] }
  0x18   :  { %v1998_v40 = vld [vmem:[%s2775_s1 + $0x158] sm:$0xff]  ;;  %v1509_v60 = vld [vmem:[%s2777_s0 + $0xfc] sm:$0xf0]  ;;  %v1933_v62 = vld [vmem:[%s2777_s0 + $0x100] sm:$0xf0] }
  0x19   :  { %v1920_v41 = vld [vmem:[%s2777_s0 + $0x9c] sm:$0xf]  ;;  %v1515_v61 = vld [vmem:[%s2777_s0 + $0xe0] sm:$0xf] }
  0x1a   :  { %2080 = vmatpush.bf16.msra.mxu1 %v1956_v6  ;;  %2081 = vmatpush.bf16.msra.mxu2 %v1956_v6  ;;  %v1516_v3 = vor.u32 %v1933_v62, %v1515_v61  ;;  %v1423_v61 = vld [vmem:[%s2777_s0 + $0x18] sm:$0xf]  ;;  %v1908_v62 = vld [vmem:[%s2777_s0 + $0x38] sm:$0xf0] }
  0x1b   :  { %2082 = vmatpush.bf16.msra.mxu3 %v1956_v6  ;;  %973 = vmatpush.bf16.msra.mxu0 %v1956_v6  ;;  %v1415_v6 = vld [vmem:[%s2777_s0 + $0x10] sm:$0xf] }
  0x1e   :  { %2083 = vmatpush.bf16.msra.mxu1 %v1955_v8  ;;  %2084 = vmatpush.bf16.msra.mxu2 %v1955_v8 }
  0x1f   :  { %2085 = vmatpush.bf16.msra.mxu3 %v1955_v8  ;;  %974 = vmatpush.bf16.msra.mxu0 %v1955_v8  ;;  %v1907_v8 = vld [vmem:[%s2777_s0 + $0x30] sm:$0xf0] }
  0x20   :  { %v1416_v13 = vor.u32 %v1907_v8, %v1415_v6  ;;  %v2004_v6 = vld [vmem:[%s2775_s1 + $0x188] sm:$0xff] }
  0x21   :  { %985 = vmatmul.bf16.vlgmr.msra.gmra.mxu1 %v1472_v18  ;;  %995 = vmatmul.bf16.vlgmr.msra.gmra.mxu2 %v1544_v19  ;;  %v2008_v18 = vld [vmem:[%s2775_s1 + $0x1a8] sm:$0xff] }
  0x22   :  { %1053 = vmatpush.bf16.msrb.mxu2 %v1978_v17  ;;  %975 = vmatmul.bf16.vlgmr.msra.gmra.mxu0 %v1400_v20  ;;  %v2025_v17 = vld [vmem:[%s2775_s1 + $0x230] sm:$0xff]  ;;  %v2016_v19 = vld [vmem:[%s2775_s1 + $0x1e8] sm:$0xff] }
  0x23   :  { %1096 = vmatpush.bf16.msrb.mxu3 %v1986_v16  ;;  %1010 = vmatpush.bf16.msrb.mxu1 %v1970_v21  ;;  %v2001_v16 = vld [vmem:[%s2775_s1 + $0x170] sm:$0xff]  ;;  %v2000_v20 = vld [vmem:[%s2775_s1 + $0x168] sm:$0xff] }
  0x24   :  { %1139 = vmatpush.bf16.msrb.mxu0 %v1994_v22  ;;  %1005 = vmatmul.bf16.vlgmr.msra.gmra.mxu3 %v463_v23  ;;  %v2024_v21 = vld [vmem:[%s2775_s1 + $0x228] sm:$0xff]  ;;  %v2007_v22 = vld [vmem:[%s2775_s1 + $0x1a0] sm:$0xff] }
  0x25   :  { %v2015_v23 = vld [vmem:[%s2775_s1 + $0x1e0] sm:$0xff]  ;;  %v2012_v8 = vld [vmem:[%s2775_s1 + $0x1c8] sm:$0xff] }
  0x26   :  { %1054 = vmatpush.bf16.msrb.mxu2 %v1977_v25  ;;  %v1445_v25 = vld [vmem:[%s2777_s0 + $0x74] sm:$0xf0] }
  0x27   :  { %1097 = vmatpush.bf16.msrb.mxu3 %v1985_v24  ;;  %1011 = vmatpush.bf16.msrb.mxu1 %v1969_v26  ;;  %v1911_v24 = vld [vmem:[%s2777_s0 + $0x54] sm:$0xf]  ;;  %v1910_v26 = vld [vmem:[%s2777_s0 + $0x4c] sm:$0xf] }
  0x28   :  { %1140 = vmatpush.bf16.msrb.mxu0 %v1993_v27  ;;  %v1437_v27 = vld [vmem:[%s2777_s0 + $0x6c] sm:$0xf0] }
  0x2a   :  { %1055 = vmatpush.bf16.msrb.mxu2 %v1976_v29  ;;  %v1915_v29 = vld [vmem:[%s2777_s0 + $0x70] sm:$0xf0] }
  0x2b   :  { %1098 = vmatpush.bf16.msrb.mxu3 %v1984_v28  ;;  %1012 = vmatpush.bf16.msrb.mxu1 %v1968_v30  ;;  %v1443_v28 = vld [vmem:[%s2777_s0 + $0x50] sm:$0xf]  ;;  %v1448_v30 = vor.u32 %v1911_v24, %v1445_v25  ;;  %v2011_v24 = vld [vmem:[%s2775_s1 + $0x1c0] sm:$0xff]  ;;  %v1947_v25 = vld [vmem:[%s2777_s0 + $0x174] sm:$0xf] }
  0x2c   :  { %1141 = vmatpush.bf16.msrb.mxu0 %v1992_v31  ;;  %v1451_v31 = vld [vmem:[%s2777_s0 + $0x58] sm:$0xf] }
  0x2e   :  { %1056 = vmatpush.bf16.msrb.mxu2 %v1975_v33  ;;  %v1440_v33 = vor.u32 %v1910_v26, %v1437_v27  ;;  %v1589_v26 = vld [vmem:[%s2777_s0 + $0x194] sm:$0xf0]  ;;  %v1995_v27 = vld [vmem:[%s2775_s1 + $0x140] sm:$0xff] }
  0x2f   :  { %1099 = vmatpush.bf16.msrb.mxu3 %v1983_v32  ;;  %1013 = vmatpush.bf16.msrb.mxu1 %v1967_v34  ;;  %v1916_v32 = vld [vmem:[%s2777_s0 + $0x78] sm:$0xf0]  ;;  %v1444_v34 = vor.u32 %v1915_v29, %v1443_v28  ;;  %v1946_v28 = vld [vmem:[%s2777_s0 + $0x16c] sm:$0xf]  ;;  %v1581_v29 = vld [vmem:[%s2777_s0 + $0x18c] sm:$0xf0] }
  0x30   :  { %1142 = vmatpush.bf16.msrb.mxu0 %v1991_v39  ;;  %v1452_v35 = vor.u32 %v1916_v32, %v1451_v31  ;;  %v2014_v39 = vld [vmem:[%s2775_s1 + $0x1d8] sm:$0xff]  ;;  %v1951_v31 = vld [vmem:[%s2777_s0 + $0x190] sm:$0xf0]  ;;  %v1592_v32 = vor.u32 %v1947_v25, %v1589_v26 }
  0x31   :  { %990 = vmatmul.bf16.gmra.mxu1 %v1508_v44  ;;  %1000 = vmatmul.bf16.gmra.mxu2 %v1580_v45  ;;  %v1473_v44 = vld [vmem:[%s2777_s0 + $0xb4] sm:$0xf0] }
  0x32   :  { %1057 = vmatpush.bf16.msrb.mxu2 %v1974_v43  ;;  %980 = vmatmul.bf16.gmra.mxu0 %v1436_v46  ;;  %v1919_v43 = vld [vmem:[%s2777_s0 + $0x94] sm:$0xf]  ;;  %v1479_v45 = vld [vmem:[%s2777_s0 + $0x98] sm:$0xf]  ;;  %v1924_v46 = vld [vmem:[%s2777_s0 + $0xb8] sm:$0xf0] }
  0x33   :  { %1100 = vmatpush.bf16.msrb.mxu3 %v1982_v42  ;;  %1014 = vmatpush.bf16.msrb.mxu1 %v1966_v47  ;;  %v1481_v42 = vld [vmem:[%s2777_s0 + $0xbc] sm:$0xf0] }
  0x34   :  { %1143 = vmatpush.bf16.msrb.mxu0 %v1990_v48  ;;  %v1484_v47 = vor.u32 %v1920_v41, %v1481_v42  ;;  %v1487_v48 = vld [vmem:[%s2777_s0 + $0xa0] sm:$0xf]  ;;  %v401_v42 = vunpack.c.h.b16 %v2131_v7 }
  0x35   :  { %v2515_v41 = vld [vmem:[%s2777_s0 + $0x1c0] sm:$0x11] }
  0x36   :  { %1058 = vmatpush.bf16.msrb.mxu2 %v1973_v50  ;;  %v1476_v50 = vor.u32 %v1919_v43, %v1473_v44  ;;  %v404_v44 = vunpack.c.l.b16 %v2515_v41 }
  0x37   :  { %1101 = vmatpush.bf16.msrb.mxu3 %v1981_v49  ;;  %1015 = vmatpush.bf16.msrb.mxu1 %v1965_v51  ;;  %v1925_v49 = vld [vmem:[%s2777_s0 + $0xc0] sm:$0xf0]  ;;  %v1480_v51 = vor.u32 %v1924_v46, %v1479_v45  ;;  %v464_v46 = vpack.c.b16 %v401_v42, %v401_v42  ;;  %v1922_v42 = vld [vmem:[%s2777_s0 + $0xac] sm:$0xf] }
  0x38   :  { %1144 = vmatpush.bf16.msrb.mxu0 %v1989_v52  ;;  %v1488_v52 = vor.u32 %v1925_v49, %v1487_v48  ;;  %v467_v49 = vpack.c.b16 %v404_v44, %v404_v44  ;;  %v1921_v44 = vld [vmem:[%s2777_s0 + $0xa4] sm:$0xf] }
  0x3a   :  { %1059 = vmatpush.bf16.msrb.mxu2 %v1972_v54  ;;  %v2005_v54 = vld [vmem:[%s2775_s1 + $0x190] sm:$0xff] }
  0x3b   :  { %1102 = vmatpush.bf16.msrb.mxu3 %v1980_v53  ;;  %1016 = vmatpush.bf16.msrb.mxu1 %v1964_v55  ;;  %v2022_v53 = vld [vmem:[%s2775_s1 + $0x218] sm:$0xff]  ;;  %v2013_v55 = vld [vmem:[%s2775_s1 + $0x1d0] sm:$0xff] }
  0x3c   :  { %1145 = vmatpush.bf16.msrb.mxu0 %v1988_v57  ;;  %v1929_v57 = vld [vmem:[%s2777_s0 + $0xe4] sm:$0xf] }
  0x3e   :  { %1060 = vmatpush.bf16.msrb.mxu2 %v1971_v58  ;;  %v1517_v58 = vld [vmem:[%s2777_s0 + $0x104] sm:$0xf0] }
  0x3f   :  { %1103 = vmatpush.bf16.msrb.mxu3 %v1979_v56  ;;  %1017 = vmatpush.bf16.msrb.mxu1 %v1963_v59  ;;  %v1997_v56 = vld [vmem:[%s2775_s1 + $0x150] sm:$0xff]  ;;  %v1928_v59 = vld [vmem:[%s2777_s0 + $0xdc] sm:$0xf] }
  0x40   :  { %1146 = vmatpush.bf16.msrb.mxu0 %v1987_v5  ;;  %v1512_v2 = vor.u32 %v1928_v59, %v1509_v60  ;;  %v2021_v5 = vld [vmem:[%s2775_s1 + $0x210] sm:$0xff]  ;;  %v1417_v60 = vld [vmem:[%s2777_s0 + $0x34] sm:$0xf0] }
  0x41   :  { %1061 = vmatmul.bf16.vlgmr.msrb.gmra.mxu2 %v1408_v12  ;;  %v1937_v12 = vld [vmem:[%s2777_s0 + $0x124] sm:$0xf]  ;;  %v1903_v59 = vld [vmem:[%s2777_s0 + $0x14] sm:$0xf] }
  0x42   :  { %1225 = vmatpush.bf16.msra.mxu2 %v2010_v63  ;;  %1104 = vmatmul.bf16.vlgmr.msrb.gmra.mxu3 %v1412_v4  ;;  %v1520_v63 = vor.u32 %v1929_v57, %v1517_v58  ;;  %v1904_v57 = vld [vmem:[%s2777_s0 + $0x1c] sm:$0xf]  ;;  %v1425_v58 = vld [vmem:[%s2777_s0 + $0x3c] sm:$0xf0] }
  0x43   :  { %1268 = vmatpush.bf16.msra.mxu3 %v2018_v0  ;;  %1182 = vmatpush.bf16.msra.mxu1 %v2002_v9  ;;  %v1523_v0 = vld [vmem:[%s2777_s0 + $0xe8] sm:$0xf] }
  0x44   :  { %1311 = vmatpush.bf16.msra.mxu0 %v2026_v10  ;;  %1018 = vmatmul.bf16.vlgmr.msrb.gmra.mxu1 %v1404_v11  ;;  %v1524_v4 = vor.u32 %v1934_v1, %v1523_v0  ;;  %v1996_v9 = vld [vmem:[%s2775_s1 + $0x148] sm:$0xff]  ;;  %v1553_v11 = vld [vmem:[%s2777_s0 + $0x14c] sm:$0xf0]  ;;  %v1431_v0 = vld [vmem:[%s2777_s0 + $0x20] sm:$0xf] }
  0x45   :  { %1147 = vmatmul.bf16.vlgmr.msrb.gmra.mxu0 %v1416_v13  ;;  %v1938_v10 = vld [vmem:[%s2777_s0 + $0x12c] sm:$0xf]  ;;  %v1545_v13 = vld [vmem:[%s2777_s0 + $0x144] sm:$0xf0]  ;;  %v1909_v1 = vld [vmem:[%s2777_s0 + $0x40] sm:$0xf0] }
  0x46   :  { %1226 = vmatpush.bf16.msra.mxu2 %v2009_v14  ;;  %v1551_v14 = vld [vmem:[%s2777_s0 + $0x128] sm:$0xf] }
  0x47   :  { %1269 = vmatpush.bf16.msra.mxu3 %v2017_v15  ;;  %1183 = vmatpush.bf16.msra.mxu1 %v2001_v16  ;;  %v1942_v15 = vld [vmem:[%s2777_s0 + $0x148] sm:$0xf0]  ;;  %v1556_v16 = vor.u32 %v1938_v10, %v1553_v11 }
  0x48   :  { %1312 = vmatpush.bf16.msra.mxu0 %v2025_v17  ;;  %v1559_v17 = vld [vmem:[%s2777_s0 + $0x130] sm:$0xf] }
  0x4a   :  { %1227 = vmatpush.bf16.msra.mxu2 %v2008_v18  ;;  %v1943_v18 = vld [vmem:[%s2777_s0 + $0x150] sm:$0xf0] }
  0x4b   :  { %1270 = vmatpush.bf16.msra.mxu3 %v2016_v19  ;;  %1184 = vmatpush.bf16.msra.mxu1 %v2000_v20  ;;  %v1548_v19 = vor.u32 %v1937_v12, %v1545_v13  ;;  %v1552_v20 = vor.u32 %v1942_v15, %v1551_v14  ;;  %v1913_v15 = vld [vmem:[%s2777_s0 + $0x64] sm:$0xf] }
  0x4c   :  { %1313 = vmatpush.bf16.msra.mxu0 %v2024_v21  ;;  %v1560_v21 = vor.u32 %v1943_v18, %v1559_v17  ;;  %v1912_v17 = vld [vmem:[%s2777_s0 + $0x5c] sm:$0xf]  ;;  %v1453_v18 = vld [vmem:[%s2777_s0 + $0x7c] sm:$0xf0] }
  0x4e   :  { %1228 = vmatpush.bf16.msra.mxu2 %v2007_v22  ;;  %v2020_v22 = vld [vmem:[%s2775_s1 + $0x208] sm:$0xff] }
  0x4f   :  { %1271 = vmatpush.bf16.msra.mxu3 %v2015_v23  ;;  %1185 = vmatpush.bf16.msra.mxu1 %v1999_v36  ;;  %v2003_v23 = vld [vmem:[%s2775_s1 + $0x180] sm:$0xff] }
  0x50   :  { %1314 = vmatpush.bf16.msra.mxu0 %v2023_v37  ;;  %v2019_v37 = vld [vmem:[%s2775_s1 + $0x200] sm:$0xff] }
  0x51   :  { %1066 = vmatmul.bf16.gmra.mxu2 %v1444_v34  ;;  %v1952_v34 = vld [vmem:[%s2777_s0 + $0x198] sm:$0xf0] }
  0x52   :  { %1109 = vmatmul.bf16.gmra.mxu3 %v1448_v30  ;;  %1229 = vmatpush.bf16.msra.mxu2 %v2006_v38  ;;  %v1587_v30 = vld [vmem:[%s2777_s0 + $0x170] sm:$0xf] }
  0x53   :  { %1272 = vmatpush.bf16.msra.mxu3 %v2014_v39  ;;  %1186 = vmatpush.bf16.msra.mxu1 %v1998_v40  ;;  %v1588_v36 = vor.u32 %v1951_v31, %v1587_v30  ;;  %v75_v39 = vld [vmem:[%s2777_s0 + $0x1b8] sm:$0x11] }
  0x54   :  { %1023 = vmatmul.bf16.gmra.mxu1 %v1440_v33  ;;  %1315 = vmatpush.bf16.msra.mxu0 %v2022_v53  ;;  %v1595_v33 = vld [vmem:[%s2777_s0 + $0x178] sm:$0xf]  ;;  %v403_v40 = vunpack.c.h.b16 %v75_v39  ;;  %v402_v43 = vunpack.c.l.b16 %v75_v39 }
  0x55   :  { %1152 = vmatmul.bf16.gmra.mxu0 %v1452_v35  ;;  %v1584_v35 = vor.u32 %v1946_v28, %v1581_v29  ;;  %v1596_v38 = vor.u32 %v1952_v34, %v1595_v33 }
  0x56   :  { %1230 = vmatpush.bf16.msra.mxu2 %v2005_v54  ;;  %v466_v45 = vpack.c.b16 %v403_v40, %v403_v40 }
  0x57   :  { %1273 = vmatpush.bf16.msra.mxu3 %v2013_v55  ;;  %1187 = vmatpush.bf16.msra.mxu1 %v1997_v56 }
  0x58   :  { %1316 = vmatpush.bf16.msra.mxu0 %v2021_v5  ;;  %v1424_v5 = vor.u32 %v1908_v62, %v1423_v61 }
  0x5a   :  { %1231 = vmatpush.bf16.msra.mxu2 %v2004_v6 }
  0x5b   :  { %1274 = vmatpush.bf16.msra.mxu3 %v2012_v8  ;;  %1188 = vmatpush.bf16.msra.mxu1 %v1996_v9  ;;  %v1432_v8 = vor.u32 %v1909_v1, %v1431_v0 }
  0x5c   :  { %1317 = vmatpush.bf16.msra.mxu0 %v2020_v22  ;;  %v1467_v22 = vld [vmem:[%s2777_s0 + $0x68] sm:$0xf] }
  0x5e   :  { %1232 = vmatpush.bf16.msra.mxu2 %v2003_v23  ;;  %v1918_v23 = vld [vmem:[%s2777_s0 + $0x88] sm:$0xf0] }
  0x5f   :  { %1275 = vmatpush.bf16.msra.mxu3 %v2011_v24  ;;  %1189 = vmatpush.bf16.msra.mxu1 %v1995_v27  ;;  %v1456_v27 = vor.u32 %v1912_v17, %v1453_v18  ;;  %v1468_v30 = vor.u32 %v1918_v23, %v1467_v22  ;;  %v1931_v18 = vld [vmem:[%s2777_s0 + $0xf4] sm:$0xf]  ;;  %v1525_v22 = vld [vmem:[%s2777_s0 + $0x10c] sm:$0xf0] }
  0x60   :  { %1318 = vmatpush.bf16.msra.mxu0 %v2019_v37  ;;  %v1531_v23 = vld [vmem:[%s2777_s0 + $0xf0] sm:$0xf] }
  0x61   :  { %1071 = vmatmul.bf16.gmra.mxu2 %v1480_v51  ;;  %v2524_v51 = vld [vmem:[%s2776_s2] ss:$0 sm:$0xff] }
  0x62   :  { %1114 = vmatmul.bf16.gmra.mxu3 %v1484_v47  ;;  %v465_v47 = vpack.c.b16 %v402_v43, %v402_v43  ;;  %v1497_v43 = vld [vmem:[%s2777_s0 + $0xcc] sm:$0xf0] }
  0x64   :  { %1028 = vmatmul.bf16.gmra.mxu1 %v1476_v50 }
  0x65   :  { %1157 = vmatmul.bf16.gmra.mxu0 %v1488_v52 }
  0x71   :  { %1076 = vmatmul.bf16.gmra.mxu2 %v1516_v3 }
  0x72   :  { %1119 = vmatmul.bf16.gmra.mxu3 %v1520_v63  ;;  %v1428_v63 = vor.u32 %v1904_v57, %v1425_v58 }
  0x74   :  { %1033 = vmatmul.bf16.gmra.mxu1 %v1512_v2 }
  0x75   :  { %1162 = vmatmul.bf16.gmra.mxu0 %v1524_v4  ;;  %v1420_v4 = vor.u32 %v1903_v59, %v1417_v60 }
  0x81   :  { %1081 = vmatmul.bf16.gmra.mxu2 %v1552_v20  ;;  %v1917_v20 = vld [vmem:[%s2777_s0 + $0x80] sm:$0xf0] }
  0x82   :  { %1124 = vmatmul.bf16.gmra.mxu3 %v1556_v16  ;;  %v1461_v16 = vld [vmem:[%s2777_s0 + $0x84] sm:$0xf0] }
  0x84   :  { %1038 = vmatmul.bf16.gmra.mxu1 %v1548_v19  ;;  %v1459_v19 = vld [vmem:[%s2777_s0 + $0x60] sm:$0xf] }
  0x85   :  { %1167 = vmatmul.bf16.gmra.mxu0 %v1560_v21  ;;  %v1464_v21 = vor.u32 %v1913_v15, %v1461_v16  ;;  %v1460_v28 = vor.u32 %v1917_v20, %v1459_v19  ;;  %v1533_v19 = vld [vmem:[%s2777_s0 + $0x114] sm:$0xf0]  ;;  %v1930_v20 = vld [vmem:[%s2777_s0 + $0xec] sm:$0xf] }
  0x91   :  { %1086 = vmatmul.bf16.gmra.mxu2 %v1588_v36 }
  0x92   :  { %1129 = vmatmul.bf16.gmra.mxu3 %v1592_v32 }
  0x94   :  { %1043 = vmatmul.bf16.gmra.mxu1 %v1584_v35 }
  0x95   :  { %1172 = vmatmul.bf16.gmra.mxu0 %v1596_v38 }
  0x9e   :  { %v2519_v48 = vpop.f32.mrf.mxu1 }
  0x9f   :  { %v976_v50 = vpop.f32.mrf.mxu0 }
  0xa0   :  { %v977_v25 = vadd.f32 %v2524_v51, %v976_v50  ;;  %v1926_v50 = vld [vmem:[%s2777_s0 + $0xc8] sm:$0xf0] }
  0xa1   :  { %1091 = vmatmul.bf16.gmra.mxu2 %v465_v47  ;;  %v1489_v47 = vld [vmem:[%s2777_s0 + $0xc4] sm:$0xf0] }
  0xa2   :  { %1134 = vmatmul.bf16.gmra.mxu3 %v466_v45  ;;  %v1492_v60 = vor.u32 %v1921_v44, %v1489_v47 }
  0xa4   :  { %1048 = vmatmul.bf16.gmra.mxu1 %v464_v46  ;;  %v996_v7 = vpop.f32.mrf.mxu2 }
  0xa5   :  { %1177 = vmatmul.bf16.gmra.mxu0 %v467_v49  ;;  %v2527_v52 = vadd.f32 %v2524_v51, %v996_v7  ;;  %v1495_v49 = vld [vmem:[%s2777_s0 + $0xa8] sm:$0xf]  ;;  %v1500_v7 = vor.u32 %v1922_v42, %v1497_v43 }
  0xa6   :  { %v2529_v53 = vpop.f32.mrf.mxu1  ;;  %v1496_v61 = vor.u32 %v1926_v50, %v1495_v49  ;;  %v1940_v50 = vld [vmem:[%s2777_s0 + $0x13c] sm:$0xf] }
  0xa7   :  { %v1006_v54 = vpop.f32.mrf.mxu3  ;;  %v978_v55 = vpop.f32.mrf.mxu0  ;;  %v989_v43 = vadd.f32 %v2524_v51, %v2529_v53 }
  0xa8   :  { %v2532_v56 = vadd.f32 %v2524_v51, %v1006_v54  ;;  %v979_v35 = vadd.f32 %v2524_v51, %v978_v55  ;;  %v1503_v54 = vld [vmem:[%s2777_s0 + $0xb0] sm:$0xf]  ;;  %v1927_v55 = vld [vmem:[%s2777_s0 + $0xd0] sm:$0xf0] }
  0xac   :  { %v998_v2 = vpop.f32.mrf.mxu2 }
  0xad   :  { %v2559_v3 = vadd.f32 %v2524_v51, %v998_v2 }
  0xae   :  { %v2561_v6 = vpop.f32.mrf.mxu1 }
  0xaf   :  { %v1008_v9 = vpop.f32.mrf.mxu3  ;;  %v981_v10 = vpop.f32.mrf.mxu0 }
  0xb0   :  { %v982_v58 = vadd.f32 %v2524_v51, %v981_v10 }
  0xb1   :  { %1233 = vmatmul.bf16.vlgmr.msra.gmra.mxu2 %v1424_v5 }
  0xb2   :  { %1276 = vmatmul.bf16.vlgmr.msra.gmra.mxu3 %v1428_v63  ;;  %v1504_v63 = vor.u32 %v1927_v55, %v1503_v54  ;;  %v1939_v54 = vld [vmem:[%s2777_s0 + $0x134] sm:$0xf] }
  0xb4   :  { %1190 = vmatmul.bf16.vlgmr.msra.gmra.mxu1 %v1420_v4  ;;  %v1001_v11 = vpop.f32.mrf.mxu2 }
  0xb5   :  { %1319 = vmatmul.bf16.vlgmr.msra.gmra.mxu0 %v1432_v8  ;;  %v2564_v12 = vadd.f32 %v2524_v51, %v1001_v11 }
  0xb6   :  { %v2566_v13 = vpop.f32.mrf.mxu1 }
  0xb7   :  { %v983_v14 = vpop.f32.mrf.mxu0 }
  0xb8   :  { %v984_v9 = vadd.f32 %v2524_v51, %v983_v14 }
  0xbc   :  { %v1003_v24 = vpop.f32.mrf.mxu2 }
  0xbd   :  { %v2594_v26 = vadd.f32 %v2524_v51, %v1003_v24  ;;  %v1935_v24 = vld [vmem:[%s2777_s0 + $0x110] sm:$0xf0] }
  0xc1   :  { %v1019_v29 = vpop.f32.mrf.mxu1  ;;  %1238 = vmatmul.bf16.gmra.mxu2 %v1460_v28  ;;  %v1936_v28 = vld [vmem:[%s2777_s0 + $0x118] sm:$0xf0] }
  0xc2   :  { %v1020_v31 = vadd.f32 %v1019_v29, %v977_v25  ;;  %1281 = vmatmul.bf16.gmra.mxu3 %v1464_v21  ;;  %v1148_v32 = vpop.f32.mrf.mxu0  ;;  %v1536_v25 = vor.u32 %v1931_v18, %v1533_v19  ;;  %v994_v19 = vadd.f32 %v2524_v51, %v2566_v13  ;;  %v1597_v13 = vld [vmem:[%s2777_s0 + $0x19c] sm:$0xf0] }
  0xc4   :  { %1195 = vmatmul.bf16.gmra.mxu1 %v1456_v27  ;;  %v1062_v34 = vpop.f32.mrf.mxu2  ;;  %v1539_v27 = vld [vmem:[%s2777_s0 + $0xf8] sm:$0xf] }
  0xc5   :  { %v1105_v33 = vpop.f32.mrf.mxu3  ;;  %1324 = vmatmul.bf16.gmra.mxu0 %v1468_v30  ;;  %v1063_v36 = vadd.f32 %v1062_v34, %v1020_v31  ;;  %v987_v30 = vadd.f32 %v2524_v51, %v2519_v48 }
  0xc7   :  { %v1106_v38 = vadd.f32 %v1105_v33, %v1063_v36  ;;  %v1532_v33 = vor.u32 %v1935_v24, %v1531_v23  ;;  %v1949_v24 = vld [vmem:[%s2777_s0 + $0x184] sm:$0xf] }
  0xc9   :  { %v1021_v37 = vpop.f32.mrf.mxu1  ;;  %v2606_v45 = vadd.f32 %v1148_v32, %v1106_v38  ;;  %v1528_v32 = vor.u32 %v1930_v20, %v1525_v22 }
  0xca   :  { %v1022_v39 = vadd.f32 %v1021_v37, %v979_v35  ;;  %v1150_v40 = vpop.f32.mrf.mxu0  ;;  %v1540_v35 = vor.u32 %v1936_v28, %v1539_v27  ;;  %v1948_v27 = vld [vmem:[%s2777_s0 + $0x17c] sm:$0xf] }
  0xcc   :  { %v1064_v57 = vpop.f32.mrf.mxu2 }
  0xcd   :  { %v1107_v46 = vpop.f32.mrf.mxu3  ;;  %v1065_v59 = vadd.f32 %v1064_v57, %v1022_v39  ;;  %v1561_v57 = vld [vmem:[%s2777_s0 + $0x154] sm:$0xf0] }
  0xcf   :  { %v1108_v0 = vadd.f32 %v1107_v46, %v1065_v59  ;;  %v1944_v59 = vld [vmem:[%s2777_s0 + $0x158] sm:$0xf0] }
  0xd1   :  { %v1024_v62 = vpop.f32.mrf.mxu1  ;;  %1243 = vmatmul.bf16.gmra.mxu2 %v1496_v61  ;;  %v2624_v4 = vadd.f32 %v1150_v40, %v1108_v0  ;;  %v1575_v61 = vld [vmem:[%s2777_s0 + $0x140] sm:$0xf]  ;;  %v992_v0 = vadd.f32 %v2524_v51, %v2561_v6 }
  0xd2   :  { %v1025_v1 = vadd.f32 %v1024_v62, %v982_v58  ;;  %1286 = vmatmul.bf16.gmra.mxu3 %v1500_v7  ;;  %v1153_v2 = vpop.f32.mrf.mxu0  ;;  %v1569_v7 = vld [vmem:[%s2777_s0 + $0x15c] sm:$0xf0]  ;;  %v1567_v58 = vld [vmem:[%s2777_s0 + $0x138] sm:$0xf]  ;;  %v1945_v62 = vld [vmem:[%s2777_s0 + $0x160] sm:$0xf0] }
  0xd4   :  { %1200 = vmatmul.bf16.gmra.mxu1 %v1492_v60  ;;  %v1067_v8 = vpop.f32.mrf.mxu2  ;;  %v1572_v60 = vor.u32 %v1940_v50, %v1569_v7 }
  0xd5   :  { %v1110_v5 = vpop.f32.mrf.mxu3  ;;  %1329 = vmatmul.bf16.gmra.mxu0 %v1504_v63  ;;  %v1068_v11 = vadd.f32 %v1067_v8, %v1025_v1 }
  0xd7   :  { %v1111_v15 = vadd.f32 %v1110_v5, %v1068_v11  ;;  %v1568_v5 = vor.u32 %v1944_v59, %v1567_v58  ;;  %v78_v58 = vld [vmem:[%s2777_s0 + $0x1d0] sm:$0x1]  ;;  %v405_v59 = vunpack.c.h.b16 %v2515_v41 }
  0xd9   :  { %v1026_v10 = vpop.f32.mrf.mxu1  ;;  %v2636_v21 = vadd.f32 %v1153_v2, %v1111_v15  ;;  %v1564_v2 = vor.u32 %v1939_v54, %v1561_v57 }
  0xda   :  { %v1027_v16 = vadd.f32 %v1026_v10, %v984_v9  ;;  %v1155_v17 = vpop.f32.mrf.mxu0  ;;  %v1576_v9 = vor.u32 %v1945_v62, %v1575_v61 }
  0xdc   :  { %v1069_v29 = vpop.f32.mrf.mxu2 }
  0xdd   :  { %v1112_v14 = vpop.f32.mrf.mxu3  ;;  %v1070_v31 = vadd.f32 %v1069_v29, %v1027_v16  ;;  %v1603_v29 = vld [vmem:[%s2777_s0 + $0x180] sm:$0xf] }
  0xdf   :  { %v1113_v36 = vadd.f32 %v1112_v14, %v1070_v31 }
  0xe1   :  { %v1029_v34 = vpop.f32.mrf.mxu1  ;;  %1248 = vmatmul.bf16.gmra.mxu2 %v1532_v33  ;;  %v2655_v39 = vadd.f32 %v1155_v17, %v1113_v36  ;;  %v1954_v33 = vld [vmem:[%s2777_s0 + $0x1a8] sm:$0xf0]  ;;  %v1600_v36 = vor.u32 %v1948_v27, %v1597_v13 }
  0xe2   :  { %v1030_v37 = vadd.f32 %v1029_v34, %v987_v30  ;;  %1291 = vmatmul.bf16.gmra.mxu3 %v1536_v25  ;;  %v1158_v38 = vpop.f32.mrf.mxu0  ;;  %v1605_v25 = vld [vmem:[%s2777_s0 + $0x1a4] sm:$0xf0]  ;;  %v1953_v30 = vld [vmem:[%s2777_s0 + $0x1a0] sm:$0xf0] }
  0xe3   :  { %v1608_v31 = vor.u32 %v1949_v24, %v1605_v25 }
  0xe4   :  { %1205 = vmatmul.bf16.gmra.mxu1 %v1528_v32  ;;  %v1072_v42 = vpop.f32.mrf.mxu2  ;;  %v1611_v32 = vld [vmem:[%s2777_s0 + $0x188] sm:$0xf] }
  0xe5   :  { %v1115_v40 = vpop.f32.mrf.mxu3  ;;  %1334 = vmatmul.bf16.gmra.mxu0 %v1540_v35  ;;  %v1073_v48 = vadd.f32 %v1072_v42, %v1030_v37  ;;  %v1604_v37 = vor.u32 %v1953_v30, %v1603_v29 }
  0xe7   :  { %v1116_v46 = vadd.f32 %v1115_v40, %v1073_v48  ;;  %v1612_v40 = vor.u32 %v1954_v33, %v1611_v32 }
  0xe9   :  { %v1031_v44 = vpop.f32.mrf.mxu1  ;;  %v2668_v55 = vadd.f32 %v1158_v38, %v1116_v46 }
  0xea   :  { %v1032_v47 = vadd.f32 %v1031_v44, %v989_v43  ;;  %v1160_v49 = vpop.f32.mrf.mxu0 }
  0xec   :  { %v1074_v63 = vpop.f32.mrf.mxu2 }
  0xed   :  { %v1117_v53 = vpop.f32.mrf.mxu3  ;;  %v1075_v1 = vadd.f32 %v1074_v63, %v1032_v47  ;;  %v408_v63 = vunpack.c.l.b16 %v78_v58 }
  0xef   :  { %v1118_v11 = vadd.f32 %v1117_v53, %v1075_v1 }
  0xf1   :  { %v1034_v8 = vpop.f32.mrf.mxu1  ;;  %1253 = vmatmul.bf16.gmra.mxu2 %v1568_v5  ;;  %v2687_v16 = vadd.f32 %v1160_v49, %v1118_v11  ;;  %v77_v49 = vld [vmem:[%s2777_s0 + $0x1c8] sm:$0x11]  ;;  %v468_v5 = vpack.c.b16 %v405_v59, %v405_v59 }
  0xf2   :  { %v1035_v10 = vadd.f32 %v1034_v8, %v992_v0  ;;  %1296 = vmatmul.bf16.gmra.mxu3 %v1572_v60  ;;  %v1163_v15 = vpop.f32.mrf.mxu0  ;;  %v406_v60 = vunpack.c.l.b16 %v77_v49 }
  0xf4   :  { %1210 = vmatmul.bf16.gmra.mxu1 %v1564_v2  ;;  %v1077_v18 = vpop.f32.mrf.mxu2  ;;  %v469_v8 = vpack.c.b16 %v406_v60, %v406_v60 }
  0xf5   :  { %v1120_v17 = vpop.f32.mrf.mxu3  ;;  %1339 = vmatmul.bf16.gmra.mxu0 %v1576_v9  ;;  %v1078_v6 = vadd.f32 %v1077_v18, %v1035_v10 }
  0xf7   :  { %v1121_v14 = vadd.f32 %v1120_v17, %v1078_v6 }
  0xf9   :  { %v1036_v20 = vpop.f32.mrf.mxu1  ;;  %v2700_v28 = vadd.f32 %v1163_v15, %v1121_v14 }
  0xfa   :  { %v1037_v22 = vadd.f32 %v1036_v20, %v994_v19  ;;  %v1165_v23 = vpop.f32.mrf.mxu0 }
  0xfc   :  { %v1079_v34 = vpop.f32.mrf.mxu2 }
  0xfd   :  { %v1122_v51 = vpop.f32.mrf.mxu3  ;;  %v1080_v35 = vadd.f32 %v1079_v34, %v1037_v22 }
  0xff   :  { %v1123_v42 = vadd.f32 %v1122_v51, %v1080_v35 }
 0x101   :  { %v1039_v38 = vpop.f32.mrf.mxu1  ;;  %1258 = vmatmul.bf16.gmra.mxu2 %v1604_v37  ;;  %v2718_v44 = vadd.f32 %v1165_v23, %v1123_v42 }
 0x102   :  { %v1040_v43 = vadd.f32 %v1039_v38, %v2527_v52  ;;  %1301 = vmatmul.bf16.gmra.mxu3 %v1608_v31  ;;  %v1168_v48 = vpop.f32.mrf.mxu0  ;;  %v407_v52 = vunpack.c.h.b16 %v77_v49 }
 0x104   :  { %1215 = vmatmul.bf16.gmra.mxu1 %v1600_v36  ;;  %v1082_v47 = vpop.f32.mrf.mxu2  ;;  %v470_v0 = vpack.c.b16 %v407_v52, %v407_v52 }
 0x105   :  { %v1125_v46 = vpop.f32.mrf.mxu3  ;;  %1344 = vmatmul.bf16.gmra.mxu0 %v1612_v40  ;;  %v1083_v50 = vadd.f32 %v1082_v47, %v1040_v43 }
 0x107   :  { %v1126_v54 = vadd.f32 %v1125_v46, %v1083_v50 }
 0x109   :  { %v1041_v7 = vpop.f32.mrf.mxu1  ;;  %v2728_v61 = vadd.f32 %v1168_v48, %v1126_v54 }
 0x10a   :  { %v1042_v53 = vadd.f32 %v1041_v7, %v2559_v3  ;;  %v1170_v57 = vpop.f32.mrf.mxu0  ;;  %v471_v3 = vpack.c.b16 %v408_v63, %v408_v63 }
 0x10c   :  { %v1084_v1 = vpop.f32.mrf.mxu2 }
 0x10d   :  { %v1127_v62 = vpop.f32.mrf.mxu3  ;;  %v1085_v2 = vadd.f32 %v1084_v1, %v1042_v53 }
 0x10f   :  { %v1128_v11 = vadd.f32 %v1127_v62, %v1085_v2 }
 0x111   :  { %v1044_v9 = vpop.f32.mrf.mxu1  ;;  %1263 = vmatmul.bf16.gmra.mxu2 %v469_v8  ;;  %v2731_v41 = vadd.f32 %v1170_v57, %v1128_v11 }
 0x112   :  { %v1045_v10 = vadd.f32 %v1044_v9, %v2564_v12  ;;  %1306 = vmatmul.bf16.gmra.mxu3 %v470_v0  ;;  %v1173_v15 = vpop.f32.mrf.mxu0 }
 0x114   :  { %1220 = vmatmul.bf16.gmra.mxu1 %v468_v5  ;;  %v1087_v18 = vpop.f32.mrf.mxu2 }
 0x115   :  { %v1130_v17 = vpop.f32.mrf.mxu3  ;;  %1349 = vmatmul.bf16.gmra.mxu0 %v471_v3  ;;  %v1088_v19 = vadd.f32 %v1087_v18, %v1045_v10 }
 0x117   :  { %v1131_v20 = vadd.f32 %v1130_v17, %v1088_v19 }
 0x119   :  { %v1046_v6 = vpop.f32.mrf.mxu1  ;;  %v2734_v23 = vadd.f32 %v1173_v15, %v1131_v20 }
 0x11a   :  { %v1047_v14 = vadd.f32 %v1046_v6, %v2594_v26  ;;  %v1175_v22 = vpop.f32.mrf.mxu0 }
 0x11c   :  { %v1089_v25 = vpop.f32.mrf.mxu2 }
 0x11d   :  { %v1132_v24 = vpop.f32.mrf.mxu3  ;;  %v1090_v12 = vadd.f32 %v1089_v25, %v1047_v14 }
 0x11f   :  { %v1133_v51 = vadd.f32 %v1132_v24, %v1090_v12 }
 0x121   :  { %v1049_v27 = vpop.f32.mrf.mxu1  ;;  %v2737_v30 = vadd.f32 %v1175_v22, %v1133_v51 }
 0x122   :  { %v1050_v13 = vadd.f32 %v1049_v27, %v2532_v56  ;;  %v1178_v29 = vpop.f32.mrf.mxu0 }
 0x124   :  { %v1092_v32 = vpop.f32.mrf.mxu2 }
 0x125   :  { %v1135_v31 = vpop.f32.mrf.mxu3  ;;  %v1093_v33 = vadd.f32 %v1092_v32, %v1050_v13 }
 0x127   :  { %v1136_v35 = vadd.f32 %v1135_v31, %v1093_v33 }
 0x129   :  { %v1051_v34 = vpop.f32.mrf.mxu1  ;;  %v2739_v26 = vadd.f32 %v1178_v29, %v1136_v35 }
 0x12a   :  { %v1180_v36 = vpop.f32.mrf.mxu0 }
 0x12c   :  { %v1094_v38 = vpop.f32.mrf.mxu2 }
 0x12d   :  { %v1137_v37 = vpop.f32.mrf.mxu3 }
 0x131   :  { %v1191_v40 = vpop.f32.mrf.mxu1 }
 0x132   :  { %v1320_v42 = vpop.f32.mrf.mxu0  ;;  %v1192_v46 = vadd.f32 %v1191_v40, %v2606_v45 }
 0x134   :  { %v1234_v48 = vpop.f32.mrf.mxu2 }
 0x135   :  { %v1277_v43 = vpop.f32.mrf.mxu3  ;;  %v1235_v47 = vadd.f32 %v1234_v48, %v1192_v46 }
 0x137   :  { %v1278_v7 = vadd.f32 %v1277_v43, %v1235_v47 }
 0x139   :  { %v1193_v56 = vpop.f32.mrf.mxu1  ;;  %v1321_v58 = vadd.f32 %v1320_v42, %v1278_v7 }
 0x13a   :  { %v1322_v49 = vpop.f32.mrf.mxu0  ;;  %v1194_v54 = vadd.f32 %v1193_v56, %v2624_v4 }
 0x13b   :  { %v1354_v0 = vmax.f32 %v1321_v58, 0.0 }
 0x13c   :  { %v1236_v53 = vpop.f32.mrf.mxu2 }
 0x13d   :  { %v1279_v50 = vpop.f32.mrf.mxu3  ;;  %v1237_v57 = vadd.f32 %v1236_v53, %v1194_v54 }
 0x13f   :  { %v1280_v59 = vadd.f32 %v1279_v50, %v1237_v57 }
 0x141   :  { %v1196_v52 = vpop.f32.mrf.mxu1  ;;  %v1323_v62 = vadd.f32 %v1322_v49, %v1280_v59 }
 0x142   :  { %v1325_v60 = vpop.f32.mrf.mxu0  ;;  %v1197_v45 = vadd.f32 %v1196_v52, %v2636_v21 }
 0x143   :  { %v1355_v1 = vmax.f32 %v1323_v62, 0.0 }
 0x144   :  { %v1239_v2 = vpop.f32.mrf.mxu2 }
 0x145   :  { %v1282_v63 = vpop.f32.mrf.mxu3  ;;  %v2030_v5 = vpack.c.bf16 %v1355_v1, %v1354_v0  ;;  %v1240_v4 = vadd.f32 %v1239_v2, %v1197_v45 }
 0x147   :  { %2031 = vst [vmem:[%s2778_s3] sm:$0xff] %v2030_v5   ;;  %v1283_v11 = vadd.f32 %v1282_v63, %v1240_v4 }
 0x149   :  { %v1198_v8 = vpop.f32.mrf.mxu1  ;;  %v1326_v19 = vadd.f32 %v1325_v60, %v1283_v11 }
 0x14a   :  { %v1327_v9 = vpop.f32.mrf.mxu0  ;;  %v1199_v10 = vadd.f32 %v1198_v8, %v2655_v39 }
 0x14b   :  { %v1356_v21 = vmax.f32 %v1326_v19, 0.0 }
 0x14c   :  { %v1241_v15 = vpop.f32.mrf.mxu2 }
 0x14d   :  { %v1284_v3 = vpop.f32.mrf.mxu3  ;;  %v1242_v17 = vadd.f32 %v1241_v15, %v1199_v10 }
 0x14f   :  { %v1285_v6 = vadd.f32 %v1284_v3, %v1242_v17 }
 0x151   :  { %v1201_v18 = vpop.f32.mrf.mxu1  ;;  %v1328_v14 = vadd.f32 %v1327_v9, %v1285_v6 }
 0x152   :  { %v1330_v20 = vpop.f32.mrf.mxu0  ;;  %v1202_v27 = vadd.f32 %v1201_v18, %v2668_v55 }
 0x153   :  { %v1357_v24 = vmax.f32 %v1328_v14, 0.0 }
 0x154   :  { %v1244_v25 = vpop.f32.mrf.mxu2 }
 0x155   :  { %v1287_v22 = vpop.f32.mrf.mxu3  ;;  %v2035_v12 = vpack.c.bf16 %v1357_v24, %v1356_v21  ;;  %v1245_v39 = vadd.f32 %v1244_v25, %v1202_v27 }
 0x157   :  { %2057 = vst [vmem:[%s2778_s3 + $0x8] sm:$0xff] %v2035_v12   ;;  %v1288_v31 = vadd.f32 %v1287_v22, %v1245_v39 }
 0x159   :  { %v1203_v51 = vpop.f32.mrf.mxu1  ;;  %v1331_v36 = vadd.f32 %v1330_v20, %v1288_v31 }
 0x15a   :  { %v1332_v13 = vpop.f32.mrf.mxu0  ;;  %v1204_v32 = vadd.f32 %v1203_v51, %v2687_v16 }
 0x15b   :  { %v1358_v55 = vmax.f32 %v1331_v36, 0.0 }
 0x15c   :  { %v1246_v33 = vpop.f32.mrf.mxu2 }
 0x15d   :  { %v1289_v29 = vpop.f32.mrf.mxu3  ;;  %v1247_v34 = vadd.f32 %v1246_v33, %v1204_v32 }
 0x15f   :  { %v1290_v37 = vadd.f32 %v1289_v29, %v1247_v34 }
 0x161   :  { %v1206_v35 = vpop.f32.mrf.mxu1  ;;  %v1333_v40 = vadd.f32 %v1332_v13, %v1290_v37 }
 0x162   :  { %v1335_v38 = vpop.f32.mrf.mxu0  ;;  %v1207_v56 = vadd.f32 %v1206_v35, %v2700_v28 }
 0x163   :  { %v1359_v43 = vmax.f32 %v1333_v40, 0.0 }
 0x164   :  { %v1249_v48 = vpop.f32.mrf.mxu2 }
 0x165   :  { %v1292_v42 = vpop.f32.mrf.mxu3  ;;  %v2040_v46 = vpack.c.bf16 %v1359_v43, %v1358_v55  ;;  %v1250_v16 = vadd.f32 %v1249_v48, %v1207_v56 }
 0x167   :  { %2058 = vst [vmem:[%s2778_s3 + $0x10] sm:$0xff] %v2040_v46   ;;  %v1293_v7 = vadd.f32 %v1292_v42, %v1250_v16 }
 0x169   :  { %v1208_v47 = vpop.f32.mrf.mxu1  ;;  %v1336_v58 = vadd.f32 %v1335_v38, %v1293_v7 }
 0x16a   :  { %v1337_v49 = vpop.f32.mrf.mxu0  ;;  %v1209_v54 = vadd.f32 %v1208_v47, %v2718_v44 }
 0x16b   :  { %v1360_v28 = vmax.f32 %v1336_v58, 0.0 }
 0x16c   :  { %v1251_v53 = vpop.f32.mrf.mxu2 }
 0x16d   :  { %v1294_v50 = vpop.f32.mrf.mxu3  ;;  %v1252_v57 = vadd.f32 %v1251_v53, %v1209_v54 }
 0x16f   :  { %v1295_v59 = vadd.f32 %v1294_v50, %v1252_v57 }
 0x171   :  { %v1211_v52 = vpop.f32.mrf.mxu1  ;;  %v1338_v62 = vadd.f32 %v1337_v49, %v1295_v59 }
 0x172   :  { %v1340_v60 = vpop.f32.mrf.mxu0  ;;  %v1212_v5 = vadd.f32 %v1211_v52, %v2728_v61 }
 0x173   :  { %v1361_v0 = vmax.f32 %v1338_v62, 0.0 }
 0x174   :  { %v1254_v1 = vpop.f32.mrf.mxu2 }
 0x175   :  { %v1297_v63 = vpop.f32.mrf.mxu3  ;;  %v2045_v2 = vpack.c.bf16 %v1361_v0, %v1360_v28  ;;  %v1255_v44 = vadd.f32 %v1254_v1, %v1212_v5 }
 0x177   :  { %2059 = vst [vmem:[%s2778_s3 + $0x18] sm:$0xff] %v2045_v2   ;;  %v1298_v9 = vadd.f32 %v1297_v63, %v1255_v44 }
 0x179   :  { %v1213_v45 = vpop.f32.mrf.mxu1  ;;  %v1341_v17 = vadd.f32 %v1340_v60, %v1298_v9 }
 0x17a   :  { %v1342_v8 = vpop.f32.mrf.mxu0  ;;  %v1214_v3 = vadd.f32 %v1213_v45, %v2731_v41 }
 0x17b   :  { %v1362_v61 = vmax.f32 %v1341_v17, 0.0 }
 0x17c   :  { %v1256_v11 = vpop.f32.mrf.mxu2 }
 0x17d   :  { %v1299_v4 = vpop.f32.mrf.mxu3  ;;  %v1257_v10 = vadd.f32 %v1256_v11, %v1214_v3 }
 0x17f   :  { %v1300_v18 = vadd.f32 %v1299_v4, %v1257_v10 }
 0x181   :  { %v1216_v15 = vpop.f32.mrf.mxu1  ;;  %v1343_v6 = vadd.f32 %v1342_v8, %v1300_v18 }
 0x182   :  { %v1345_v19 = vpop.f32.mrf.mxu0  ;;  %v1217_v24 = vadd.f32 %v1216_v15, %v2734_v23 }
 0x183   :  { %v1363_v14 = vmax.f32 %v1343_v6, 0.0 }
 0x184   :  { %v1259_v22 = vpop.f32.mrf.mxu2 }
 0x185   :  { %v1302_v20 = vpop.f32.mrf.mxu3  ;;  %v2050_v21 = vpack.c.bf16 %v1363_v14, %v1362_v61  ;;  %v1260_v41 = vadd.f32 %v1259_v22, %v1217_v24 }
 0x187   :  { %2060 = vst [vmem:[%s2778_s3 + $0x20] sm:$0xff] %v2050_v21   ;;  %v1303_v51 = vadd.f32 %v1302_v20, %v1260_v41 }
 0x189   :  { %v1218_v25 = vpop.f32.mrf.mxu1  ;;  %v1346_v32 = vadd.f32 %v1345_v19, %v1303_v51 }
 0x18a   :  { %v1347_v12 = vpop.f32.mrf.mxu0  ;;  %v1219_v39 = vadd.f32 %v1218_v25, %v2737_v30 }
 0x18b   :  { %v1364_v23 = vmax.f32 %v1346_v32, 0.0 }
 0x18c   :  { %v1261_v13 = vpop.f32.mrf.mxu2 }
 0x18d   :  { %v1304_v27 = vpop.f32.mrf.mxu3  ;;  %v1262_v29 = vadd.f32 %v1261_v13, %v1219_v39 }
 0x18f   :  { %v1305_v33 = vadd.f32 %v1304_v27, %v1262_v29 }
 0x191   :  { %v1221_v31 = vpop.f32.mrf.mxu1  ;;  %v1348_v35 = vadd.f32 %v1347_v12, %v1305_v33 }
 0x192   :  { %v1350_v34 = vpop.f32.mrf.mxu0  ;;  %v1222_v38 = vadd.f32 %v1221_v31, %v2739_v26 }
 0x193   :  { %v1365_v37 = vmax.f32 %v1348_v35, 0.0 }
 0x194   :  { %v1264_v40 = vpop.f32.mrf.mxu2 }
 0x195   :  { %v1307_v36 = vpop.f32.mrf.mxu3  ;;  %v2055_v42 = vpack.c.bf16 %v1365_v37, %v1364_v23  ;;  %v1265_v55 = vadd.f32 %v1264_v40, %v1222_v38 }
 0x197   :  { %2061 = vst [vmem:[%s2778_s3 + $0x28] sm:$0xff] %v2055_v42   ;;  %v1308_v30 = vadd.f32 %v1307_v36, %v1265_v55 }
 0x199   :  { %v1223_v43 = vpop.f32.mrf.mxu1  ;;  %v1351_v46 = vadd.f32 %v1350_v34, %v1308_v30 }
 0x19a   :  { %v1352_v48 = vpop.f32.mrf.mxu0 }
 0x19b   :  { %v1366_v47 = vmax.f32 %v1351_v46, 0.0 }
 0x19c   :  { %v1266_v16 = vpop.f32.mrf.mxu2 }
 0x19d   :  { %v1309_v56 = vpop.f32.mrf.mxu3  ;;  %v1379_v49 = vpack.c.bf16 %v1366_v47, %v1366_v47 }
 0x19f   :  { %1392 = vst [vmem:[%s2778_s3 + $0x30] sm:$0x1] %v1379_v49 }

// kernel: vae_forward.9
= control target key start
LH: loop header
LB: loop body
LE: loop exit
PB: predicated region body
PF: predicated region fallthrough
CT: control target
= control target key end

     0   :  { %17 = vsyncpa [#allocation5], 0  ;;  %s11415_s0 = inlined_call_operand.vmem [shape: bf16[2,1024], index: 0, kind: input, shape index: {}]   ;;  %s11416_s1 = inlined_call_operand.vmem [shape: f32[2,128], index: 1, kind: input, shape index: {}]   ;;  %s11417_s2 = inlined_call_operand.vmem [shape: bf16[1024,256], index: 2, kind: input, shape index: {}]   ;;  %s11418_s3 = inlined_call_operand.vmem [shape: f32[1,256], index: 3, kind: input, shape index: {}]   ;;  %s11419_s4 = inlined_call_operand.vmem [shape: bf16[128,1024], index: 4, kind: input, shape index: {}]   ;;  %s11420_s5 = inlined_call_operand.vmem [shape: f32[1,1024], index: 5, kind: input, shape index: {}]   ;;  %s11421_s6 = inlined_call_operand.vmem [shape: bf16[1024,3200], index: 6, kind: input, shape index: {}]   ;;  %s11422_s7 = inlined_call_operand.vmem [shape: f32[1,3200], index: 7, kind: input, shape index: {}]   ;;  %s11423_s8 = inlined_call_operand.hbm [shape: f32[2,128], index: 8, kind: output, shape index: {0}]   ;;  %s11424_s9 = inlined_call_operand.hbm [shape: f32[2,128], index: 9, kind: output, shape index: {1}]   ;;  %s11425_s10 = inlined_call_operand.hbm [shape: f32[2,128], index: 10, kind: output, shape index: {2}]   ;;  %s11426_s11 = inlined_call_operand.vmem [shape: bf16[2,3200], index: 11, kind: output, shape index: {3}]  }
   0x1   :  { %18 = vsyncpa [#allocation7], 0  ;;  %s8604_s17 = smov 0   ;;  %s8606_s18 = smov 0  }
   0x2   :  { %s8608_s19 = smov 0  }
   0x3 LB: > { %s8620_s20 = sadd.s32 4294967295, %s8539_s19   ;;  %s8623_s21 = sadd.s32 1, %s8539_s19   ;;  %s8539_s19 = sphi %s8608_s19, %s11430_s19   ;;  %s8535_s18 = sphi %s8606_s18, %s11429_s18   ;;  %s8531_s17 = sphi %s8604_s17, %s11428_s17  }
   0x4   : > { %s154_s22 = ssub.s32 %s8539_s19, %s8623_s21  ;;  %s157_s23 = sadd.s32 1, %s8535_s18 }
   0x5   : > { %p155_p0 = scmp.eq.s32.totalorder %s154_s22, 0  ;;  %p164_p1 = scmp.ne.s32.totalorder %s8535_s18, %s8531_s17 }
   0x6   : > { %p165_p2 = scmp.eq.s32.totalorder %s8539_s19, 0  ;;  %p5534_p4 = scmp.ge.s32.totalorder %s8539_s19, 5 }
   0x7   : > { %s8632_s24 = scalar_select %p155_p0, %s8535_s18, %s157_s23  }
   0x8   : > { %p166_p3 = por %p165_p2, %p164_p1  ;;  %323 = sbr.rel (%p5534_p4) target bundleno = 402 (0x192), region = 40 }
   0xd   : > { %326 = sbr.rel (!%p166_p3) target bundleno = 402 (0x192), region = 44  ;;  %s328_s25 = sand.u32 (%p166_p3), 1, %s8535_s18  }
   0xe   : > { %s7850_s26 = smul.u32 (%p166_p3), 20, %s8539_s19 }
   0xf   : > { %s8363_s27 = smul.u32 (%p166_p3), 2560, %s328_s25 }
  0x10   : > { %s8640_s30 = scalar_lea.vmem (%p166_p3), %s11421_s6, %s7850_s26 }
  0x11   : > { %v348_v0 = vld [vmem:[%s8640_s30] sm:$0xff] (%p166_p3)  ;;  %v350_v1 = vld [vmem:[%s8640_s30 + $0x8] sm:$0xff] (%p166_p3)  ;;  %s8645_s12 = scalar_lea.vmem (%p166_p3), [#allocation3], %s8363_s27  ;;  %v358_v5 = vld [vmem:[%s8640_s30 + $0xd0] sm:$0xff] (%p166_p3) }
  0x12   : > { %v352_v2 = vld [vmem:[%s8640_s30 + $0x64] sm:$0xff]  ;;  %349 = vst [vmem:[%s8645_s12] sm:$0xff] %v348_v0  ;;  %v354_v3 = vld [vmem:[%s8640_s30 + $0x6c] sm:$0xff]  ;;  %v362_v7 = vld [vmem:[%s8640_s30 + $0x134] sm:$0xff] }
  0x13   : > { %351 = vst [vmem:[%s8645_s12 + $0x8] sm:$0xff] %v350_v1  ;;  %v356_v4 = vld [vmem:[%s8640_s30 + $0xc8] sm:$0xff]  ;;  %v364_v8 = vld [vmem:[%s8640_s30 + $0x190] sm:$0xff]  ;;  %v366_v9 = vld [vmem:[%s8640_s30 + $0x198] sm:$0xff] }
  0x14   : > { %353 = vst [vmem:[%s8645_s12 + $0x14] sm:$0xff] %v352_v2  ;;  %v360_v6 = vld [vmem:[%s8640_s30 + $0x12c] sm:$0xff]  ;;  %v368_v10 = vld [vmem:[%s8640_s30 + $0x1f4] sm:$0xff]  ;;  %v370_v11 = vld [vmem:[%s8640_s30 + $0x1fc] sm:$0xff] }
  0x15   : > { %355 = vst [vmem:[%s8645_s12 + $0x1c] sm:$0xff] %v354_v3  ;;  %v372_v12 = vld [vmem:[%s8640_s30 + $0x258] sm:$0xff]  ;;  %v374_v13 = vld [vmem:[%s8640_s30 + $0x260] sm:$0xff]  ;;  %v382_v17 = vld [vmem:[%s8640_s30 + $0x328] sm:$0xff] }
  0x16   : > { %357 = vst [vmem:[%s8645_s12 + $0x28] sm:$0xff] %v356_v4  ;;  %v376_v14 = vld [vmem:[%s8640_s30 + $0x2bc] sm:$0xff]  ;;  %v378_v15 = vld [vmem:[%s8640_s30 + $0x2c4] sm:$0xff]  ;;  %v386_v19 = vld [vmem:[%s8640_s30 + $0x38c] sm:$0xff] }
  0x17   : > { %359 = vst [vmem:[%s8645_s12 + $0x30] sm:$0xff] %v358_v5  ;;  %v380_v16 = vld [vmem:[%s8640_s30 + $0x320] sm:$0xff]  ;;  %v388_v20 = vld [vmem:[%s8640_s30 + $0x3e8] sm:$0xff]  ;;  %v390_v21 = vld [vmem:[%s8640_s30 + $0x3f0] sm:$0xff] }
  0x18   : > { %361 = vst [vmem:[%s8645_s12 + $0x3c] sm:$0xff] %v360_v6  ;;  %v384_v18 = vld [vmem:[%s8640_s30 + $0x384] sm:$0xff]  ;;  %v392_v22 = vld [vmem:[%s8640_s30 + $0x44c] sm:$0xff]  ;;  %v394_v23 = vld [vmem:[%s8640_s30 + $0x454] sm:$0xff] }
  0x19   : > { %363 = vst [vmem:[%s8645_s12 + $0x44] sm:$0xff] %v362_v7  ;;  %v396_v24 = vld [vmem:[%s8640_s30 + $0x4b0] sm:$0xff]  ;;  %v398_v25 = vld [vmem:[%s8640_s30 + $0x4b8] sm:$0xff]  ;;  %v406_v29 = vld [vmem:[%s8640_s30 + $0x580] sm:$0xff] }
  0x1a   : > { %365 = vst [vmem:[%s8645_s12 + $0x50] sm:$0xff] %v364_v8  ;;  %v400_v26 = vld [vmem:[%s8640_s30 + $0x514] sm:$0xff]  ;;  %v402_v27 = vld [vmem:[%s8640_s30 + $0x51c] sm:$0xff]  ;;  %v410_v31 = vld [vmem:[%s8640_s30 + $0x5e4] sm:$0xff] }
  0x1b   : > { %367 = vst [vmem:[%s8645_s12 + $0x58] sm:$0xff] %v366_v9  ;;  %v404_v28 = vld [vmem:[%s8640_s30 + $0x578] sm:$0xff]  ;;  %v412_v32 = vld [vmem:[%s8640_s30 + $0x640] sm:$0xff]  ;;  %v414_v33 = vld [vmem:[%s8640_s30 + $0x648] sm:$0xff] }
  0x1c   : > { %369 = vst [vmem:[%s8645_s12 + $0x64] sm:$0xff] %v368_v10  ;;  %v408_v30 = vld [vmem:[%s8640_s30 + $0x5dc] sm:$0xff]  ;;  %v416_v34 = vld [vmem:[%s8640_s30 + $0x6a4] sm:$0xff]  ;;  %v418_v35 = vld [vmem:[%s8640_s30 + $0x6ac] sm:$0xff] }
  0x1d   : > { %371 = vst [vmem:[%s8645_s12 + $0x6c] sm:$0xff] %v370_v11  ;;  %v420_v36 = vld [vmem:[%s8640_s30 + $0x708] sm:$0xff]  ;;  %v422_v37 = vld [vmem:[%s8640_s30 + $0x710] sm:$0xff]  ;;  %v430_v41 = vld [vmem:[%s8640_s30 + $0x7d8] sm:$0xff] }
  0x1e   : > { %373 = vst [vmem:[%s8645_s12 + $0x78] sm:$0xff] %v372_v12  ;;  %v424_v38 = vld [vmem:[%s8640_s30 + $0x76c] sm:$0xff]  ;;  %v426_v39 = vld [vmem:[%s8640_s30 + $0x774] sm:$0xff]  ;;  %v434_v43 = vld [vmem:[%s8640_s30 + $0x83c] sm:$0xff] }
  0x1f   : > { %375 = vst [vmem:[%s8645_s12 + $0x80] sm:$0xff] %v374_v13  ;;  %v428_v40 = vld [vmem:[%s8640_s30 + $0x7d0] sm:$0xff]  ;;  %v436_v44 = vld [vmem:[%s8640_s30 + $0x898] sm:$0xff]  ;;  %v438_v45 = vld [vmem:[%s8640_s30 + $0x8a0] sm:$0xff] }
  0x20   : > { %377 = vst [vmem:[%s8645_s12 + $0x8c] sm:$0xff] %v376_v14  ;;  %v432_v42 = vld [vmem:[%s8640_s30 + $0x834] sm:$0xff]  ;;  %v440_v46 = vld [vmem:[%s8640_s30 + $0x8fc] sm:$0xff]  ;;  %v442_v47 = vld [vmem:[%s8640_s30 + $0x904] sm:$0xff] }
  0x21   : > { %379 = vst [vmem:[%s8645_s12 + $0x94] sm:$0xff] %v378_v15  ;;  %v444_v48 = vld [vmem:[%s8640_s30 + $0x960] sm:$0xff]  ;;  %v446_v49 = vld [vmem:[%s8640_s30 + $0x968] sm:$0xff]  ;;  %v454_v53 = vld [vmem:[%s8640_s30 + $0xa30] sm:$0xff] }
  0x22   : > { %381 = vst [vmem:[%s8645_s12 + $0xa0] sm:$0xff] %v380_v16  ;;  %v448_v50 = vld [vmem:[%s8640_s30 + $0x9c4] sm:$0xff]  ;;  %v450_v51 = vld [vmem:[%s8640_s30 + $0x9cc] sm:$0xff]  ;;  %v458_v55 = vld [vmem:[%s8640_s30 + $0xa94] sm:$0xff] }
  0x23   : > { %383 = vst [vmem:[%s8645_s12 + $0xa8] sm:$0xff] %v382_v17  ;;  %v452_v52 = vld [vmem:[%s8640_s30 + $0xa28] sm:$0xff]  ;;  %v460_v56 = vld [vmem:[%s8640_s30 + $0xaf0] sm:$0xff]  ;;  %v462_v57 = vld [vmem:[%s8640_s30 + $0xaf8] sm:$0xff] }
  0x24   : > { %385 = vst [vmem:[%s8645_s12 + $0xb4] sm:$0xff] %v384_v18  ;;  %v456_v54 = vld [vmem:[%s8640_s30 + $0xa8c] sm:$0xff]  ;;  %v464_v58 = vld [vmem:[%s8640_s30 + $0xb54] sm:$0xff]  ;;  %v466_v59 = vld [vmem:[%s8640_s30 + $0xb5c] sm:$0xff] }
  0x25   : > { %387 = vst [vmem:[%s8645_s12 + $0xbc] sm:$0xff] %v386_v19  ;;  %v468_v60 = vld [vmem:[%s8640_s30 + $0xbb8] sm:$0xff]  ;;  %v470_v61 = vld [vmem:[%s8640_s30 + $0xbc0] sm:$0xff]  ;;  %v478_v1 = vld [vmem:[%s8640_s30 + $0xc88] sm:$0xff] }
  0x26   : > { %389 = vst [vmem:[%s8645_s12 + $0xc8] sm:$0xff] %v388_v20  ;;  %v472_v62 = vld [vmem:[%s8640_s30 + $0xc1c] sm:$0xff]  ;;  %v474_v63 = vld [vmem:[%s8640_s30 + $0xc24] sm:$0xff]  ;;  %v482_v3 = vld [vmem:[%s8640_s30 + $0xcec] sm:$0xff] }
  0x27   : > { %391 = vst [vmem:[%s8645_s12 + $0xd0] sm:$0xff] %v390_v21  ;;  %v476_v0 = vld [vmem:[%s8640_s30 + $0xc80] sm:$0xff]  ;;  %v484_v4 = vld [vmem:[%s8640_s30 + $0xd48] sm:$0xff]  ;;  %v486_v5 = vld [vmem:[%s8640_s30 + $0xd50] sm:$0xff] }
  0x28   : > { %393 = vst [vmem:[%s8645_s12 + $0xdc] sm:$0xff] %v392_v22  ;;  %v480_v2 = vld [vmem:[%s8640_s30 + $0xce4] sm:$0xff]  ;;  %v488_v6 = vld [vmem:[%s8640_s30 + $0xdac] sm:$0xff]  ;;  %v490_v7 = vld [vmem:[%s8640_s30 + $0xdb4] sm:$0xff] }
  0x29   : > { %395 = vst [vmem:[%s8645_s12 + $0xe4] sm:$0xff] %v394_v23  ;;  %v492_v8 = vld [vmem:[%s8640_s30 + $0xe10] sm:$0xff]  ;;  %v494_v9 = vld [vmem:[%s8640_s30 + $0xe18] sm:$0xff]  ;;  %v502_v13 = vld [vmem:[%s8640_s30 + $0xee0] sm:$0xff] }
  0x2a   : > { %397 = vst [vmem:[%s8645_s12 + $0xf0] sm:$0xff] %v396_v24  ;;  %v496_v10 = vld [vmem:[%s8640_s30 + $0xe74] sm:$0xff]  ;;  %v498_v11 = vld [vmem:[%s8640_s30 + $0xe7c] sm:$0xff]  ;;  %v506_v15 = vld [vmem:[%s8640_s30 + $0xf44] sm:$0xff] }
  0x2b   : > { %399 = vst [vmem:[%s8645_s12 + $0xf8] sm:$0xff] %v398_v25  ;;  %v500_v12 = vld [vmem:[%s8640_s30 + $0xed8] sm:$0xff]  ;;  %v508_v16 = vld [vmem:[%s8640_s30 + $0xfa0] sm:$0xff]  ;;  %v510_v17 = vld [vmem:[%s8640_s30 + $0xfa8] sm:$0xff] }
  0x2c   : > { %401 = vst [vmem:[%s8645_s12 + $0x104] sm:$0xff] %v400_v26  ;;  %v504_v14 = vld [vmem:[%s8640_s30 + $0xf3c] sm:$0xff]  ;;  %v512_v18 = vld [vmem:[%s8640_s30 + $0x1004] sm:$0xff]  ;;  %v514_v19 = vld [vmem:[%s8640_s30 + $0x100c] sm:$0xff] }
  0x2d   : > { %403 = vst [vmem:[%s8645_s12 + $0x10c] sm:$0xff] %v402_v27  ;;  %v516_v20 = vld [vmem:[%s8640_s30 + $0x1068] sm:$0xff]  ;;  %v518_v21 = vld [vmem:[%s8640_s30 + $0x1070] sm:$0xff]  ;;  %v526_v25 = vld [vmem:[%s8640_s30 + $0x1138] sm:$0xff] }
  0x2e   : > { %405 = vst [vmem:[%s8645_s12 + $0x118] sm:$0xff] %v404_v28  ;;  %v520_v22 = vld [vmem:[%s8640_s30 + $0x10cc] sm:$0xff]  ;;  %v522_v23 = vld [vmem:[%s8640_s30 + $0x10d4] sm:$0xff]  ;;  %v530_v27 = vld [vmem:[%s8640_s30 + $0x119c] sm:$0xff] }
  0x2f   : > { %407 = vst [vmem:[%s8645_s12 + $0x120] sm:$0xff] %v406_v29  ;;  %v524_v24 = vld [vmem:[%s8640_s30 + $0x1130] sm:$0xff]  ;;  %v532_v28 = vld [vmem:[%s8640_s30 + $0x11f8] sm:$0xff]  ;;  %v534_v29 = vld [vmem:[%s8640_s30 + $0x1200] sm:$0xff] }
  0x30   : > { %409 = vst [vmem:[%s8645_s12 + $0x12c] sm:$0xff] %v408_v30  ;;  %v528_v26 = vld [vmem:[%s8640_s30 + $0x1194] sm:$0xff]  ;;  %v536_v30 = vld [vmem:[%s8640_s30 + $0x125c] sm:$0xff] }
  0x31   : > { %411 = vst [vmem:[%s8645_s12 + $0x134] sm:$0xff] %v410_v31  ;;  %v538_v31 = vld [vmem:[%s8640_s30 + $0x1264] sm:$0xff] }
  0x32   : > { %413 = vst [vmem:[%s8645_s12 + $0x140] sm:$0xff] %v412_v32  ;;  %v540_v32 = vld [vmem:[%s8640_s30 + $0x12c0] sm:$0xff] }
  0x33   : > { %415 = vst [vmem:[%s8645_s12 + $0x148] sm:$0xff] %v414_v33  ;;  %v542_v33 = vld [vmem:[%s8640_s30 + $0x12c8] sm:$0xff] }
  0x34   : > { %417 = vst [vmem:[%s8645_s12 + $0x154] sm:$0xff] %v416_v34  ;;  %v544_v34 = vld [vmem:[%s8640_s30 + $0x1324] sm:$0xff] }
  0x35   : > { %419 = vst [vmem:[%s8645_s12 + $0x15c] sm:$0xff] %v418_v35  ;;  %v546_v35 = vld [vmem:[%s8640_s30 + $0x132c] sm:$0xff] }
  0x36   : > { %421 = vst [vmem:[%s8645_s12 + $0x168] sm:$0xff] %v420_v36  ;;  %v548_v36 = vld [vmem:[%s8640_s30 + $0x1388] sm:$0xff] }
  0x37   : > { %423 = vst [vmem:[%s8645_s12 + $0x170] sm:$0xff] %v422_v37  ;;  %v550_v37 = vld [vmem:[%s8640_s30 + $0x1390] sm:$0xff] }
  0x38   : > { %425 = vst [vmem:[%s8645_s12 + $0x17c] sm:$0xff] %v424_v38  ;;  %v552_v38 = vld [vmem:[%s8640_s30 + $0x13ec] sm:$0xff] }
  0x39   : > { %427 = vst [vmem:[%s8645_s12 + $0x184] sm:$0xff] %v426_v39  ;;  %v554_v39 = vld [vmem:[%s8640_s30 + $0x13f4] sm:$0xff] }
  0x3a   : > { %429 = vst [vmem:[%s8645_s12 + $0x190] sm:$0xff] %v428_v40  ;;  %v556_v40 = vld [vmem:[%s8640_s30 + $0x1450] sm:$0xff] }
  0x3b   : > { %431 = vst [vmem:[%s8645_s12 + $0x198] sm:$0xff] %v430_v41  ;;  %v558_v41 = vld [vmem:[%s8640_s30 + $0x1458] sm:$0xff] }
  0x3c   : > { %433 = vst [vmem:[%s8645_s12 + $0x1a4] sm:$0xff] %v432_v42  ;;  %v560_v42 = vld [vmem:[%s8640_s30 + $0x14b4] sm:$0xff] }
  0x3d   : > { %435 = vst [vmem:[%s8645_s12 + $0x1ac] sm:$0xff] %v434_v43  ;;  %v562_v43 = vld [vmem:[%s8640_s30 + $0x14bc] sm:$0xff] }
  0x3e   : > { %437 = vst [vmem:[%s8645_s12 + $0x1b8] sm:$0xff] %v436_v44  ;;  %v564_v44 = vld [vmem:[%s8640_s30 + $0x1518] sm:$0xff] }
  0x3f   : > { %439 = vst [vmem:[%s8645_s12 + $0x1c0] sm:$0xff] %v438_v45  ;;  %v566_v45 = vld [vmem:[%s8640_s30 + $0x1520] sm:$0xff] }
  0x40   : > { %441 = vst [vmem:[%s8645_s12 + $0x1cc] sm:$0xff] %v440_v46  ;;  %v568_v46 = vld [vmem:[%s8640_s30 + $0x157c] sm:$0xff] }
  0x41   : > { %443 = vst [vmem:[%s8645_s12 + $0x1d4] sm:$0xff] %v442_v47  ;;  %v570_v47 = vld [vmem:[%s8640_s30 + $0x1584] sm:$0xff] }
  0x42   : > { %445 = vst [vmem:[%s8645_s12 + $0x1e0] sm:$0xff] %v444_v48  ;;  %v572_v48 = vld [vmem:[%s8640_s30 + $0x15e0] sm:$0xff] }
  0x43   : > { %447 = vst [vmem:[%s8645_s12 + $0x1e8] sm:$0xff] %v446_v49  ;;  %v574_v49 = vld [vmem:[%s8640_s30 + $0x15e8] sm:$0xff] }
  0x44   : > { %449 = vst [vmem:[%s8645_s12 + $0x1f4] sm:$0xff] %v448_v50  ;;  %v576_v50 = vld [vmem:[%s8640_s30 + $0x1644] sm:$0xff] }
  0x45   : > { %451 = vst [vmem:[%s8645_s12 + $0x1fc] sm:$0xff] %v450_v51  ;;  %v578_v51 = vld [vmem:[%s8640_s30 + $0x164c] sm:$0xff] }
  0x46   : > { %453 = vst [vmem:[%s8645_s12 + $0x208] sm:$0xff] %v452_v52  ;;  %v580_v52 = vld [vmem:[%s8640_s30 + $0x16a8] sm:$0xff] }
  0x47   : > { %455 = vst [vmem:[%s8645_s12 + $0x210] sm:$0xff] %v454_v53  ;;  %v582_v53 = vld [vmem:[%s8640_s30 + $0x16b0] sm:$0xff] }
  0x48   : > { %457 = vst [vmem:[%s8645_s12 + $0x21c] sm:$0xff] %v456_v54  ;;  %v584_v54 = vld [vmem:[%s8640_s30 + $0x170c] sm:$0xff] }
  0x49   : > { %459 = vst [vmem:[%s8645_s12 + $0x224] sm:$0xff] %v458_v55  ;;  %v586_v55 = vld [vmem:[%s8640_s30 + $0x1714] sm:$0xff] }
  0x4a   : > { %461 = vst [vmem:[%s8645_s12 + $0x230] sm:$0xff] %v460_v56  ;;  %v588_v56 = vld [vmem:[%s8640_s30 + $0x1770] sm:$0xff] }
  0x4b   : > { %463 = vst [vmem:[%s8645_s12 + $0x238] sm:$0xff] %v462_v57  ;;  %v590_v57 = vld [vmem:[%s8640_s30 + $0x1778] sm:$0xff] }
  0x4c   : > { %465 = vst [vmem:[%s8645_s12 + $0x244] sm:$0xff] %v464_v58  ;;  %v592_v58 = vld [vmem:[%s8640_s30 + $0x17d4] sm:$0xff] }
  0x4d   : > { %467 = vst [vmem:[%s8645_s12 + $0x24c] sm:$0xff] %v466_v59  ;;  %v594_v59 = vld [vmem:[%s8640_s30 + $0x17dc] sm:$0xff] }
  0x4e   : > { %469 = vst [vmem:[%s8645_s12 + $0x258] sm:$0xff] %v468_v60  ;;  %v596_v60 = vld [vmem:[%s8640_s30 + $0x1838] sm:$0xff] }
  0x4f   : > { %471 = vst [vmem:[%s8645_s12 + $0x260] sm:$0xff] %v470_v61  ;;  %v598_v61 = vld [vmem:[%s8640_s30 + $0x1840] sm:$0xff] }
  0x50   : > { %473 = vst [vmem:[%s8645_s12 + $0x26c] sm:$0xff] %v472_v62  ;;  %v600_v62 = vld [vmem:[%s8640_s30 + $0x189c] sm:$0xff] }
  0x51   : > { %475 = vst [vmem:[%s8645_s12 + $0x274] sm:$0xff] %v474_v63  ;;  %v602_v63 = vld [vmem:[%s8640_s30 + $0x18a4] sm:$0xff] }
  0x52   : > { %477 = vst [vmem:[%s8645_s12 + $0x280] sm:$0xff] %v476_v0  ;;  %v604_v0 = vld [vmem:[%s8640_s30 + $0x1900] sm:$0xff] }
  0x53   : > { %479 = vst [vmem:[%s8645_s12 + $0x288] sm:$0xff] %v478_v1  ;;  %v606_v1 = vld [vmem:[%s8640_s30 + $0x1908] sm:$0xff] }
  0x54   : > { %481 = vst [vmem:[%s8645_s12 + $0x294] sm:$0xff] %v480_v2  ;;  %v608_v2 = vld [vmem:[%s8640_s30 + $0x1964] sm:$0xff] }
  0x55   : > { %483 = vst [vmem:[%s8645_s12 + $0x29c] sm:$0xff] %v482_v3  ;;  %v610_v3 = vld [vmem:[%s8640_s30 + $0x196c] sm:$0xff] }
  0x56   : > { %485 = vst [vmem:[%s8645_s12 + $0x2a8] sm:$0xff] %v484_v4  ;;  %v612_v4 = vld [vmem:[%s8640_s30 + $0x19c8] sm:$0xff] }
  0x57   : > { %487 = vst [vmem:[%s8645_s12 + $0x2b0] sm:$0xff] %v486_v5  ;;  %v614_v5 = vld [vmem:[%s8640_s30 + $0x19d0] sm:$0xff] }
  0x58   : > { %489 = vst [vmem:[%s8645_s12 + $0x2bc] sm:$0xff] %v488_v6  ;;  %v616_v6 = vld [vmem:[%s8640_s30 + $0x1a2c] sm:$0xff] }
  0x59   : > { %491 = vst [vmem:[%s8645_s12 + $0x2c4] sm:$0xff] %v490_v7  ;;  %v618_v7 = vld [vmem:[%s8640_s30 + $0x1a34] sm:$0xff] }
  0x5a   : > { %493 = vst [vmem:[%s8645_s12 + $0x2d0] sm:$0xff] %v492_v8  ;;  %v620_v8 = vld [vmem:[%s8640_s30 + $0x1a90] sm:$0xff] }
  0x5b   : > { %495 = vst [vmem:[%s8645_s12 + $0x2d8] sm:$0xff] %v494_v9  ;;  %v622_v9 = vld [vmem:[%s8640_s30 + $0x1a98] sm:$0xff] }
  0x5c   : > { %497 = vst [vmem:[%s8645_s12 + $0x2e4] sm:$0xff] %v496_v10  ;;  %v624_v10 = vld [vmem:[%s8640_s30 + $0x1af4] sm:$0xff] }
  0x5d   : > { %499 = vst [vmem:[%s8645_s12 + $0x2ec] sm:$0xff] %v498_v11  ;;  %v626_v11 = vld [vmem:[%s8640_s30 + $0x1afc] sm:$0xff] }
  0x5e   : > { %501 = vst [vmem:[%s8645_s12 + $0x2f8] sm:$0xff] %v500_v12  ;;  %v628_v12 = vld [vmem:[%s8640_s30 + $0x1b58] sm:$0xff] }
  0x5f   : > { %503 = vst [vmem:[%s8645_s12 + $0x300] sm:$0xff] %v502_v13  ;;  %v630_v13 = vld [vmem:[%s8640_s30 + $0x1b60] sm:$0xff] }
  0x60   : > { %505 = vst [vmem:[%s8645_s12 + $0x30c] sm:$0xff] %v504_v14  ;;  %v632_v14 = vld [vmem:[%s8640_s30 + $0x1bbc] sm:$0xff] }
  0x61   : > { %507 = vst [vmem:[%s8645_s12 + $0x314] sm:$0xff] %v506_v15  ;;  %v634_v15 = vld [vmem:[%s8640_s30 + $0x1bc4] sm:$0xff] }
  0x62   : > { %509 = vst [vmem:[%s8645_s12 + $0x320] sm:$0xff] %v508_v16  ;;  %v636_v16 = vld [vmem:[%s8640_s30 + $0x1c20] sm:$0xff] }
  0x63   : > { %511 = vst [vmem:[%s8645_s12 + $0x328] sm:$0xff] %v510_v17  ;;  %v638_v17 = vld [vmem:[%s8640_s30 + $0x1c28] sm:$0xff] }
  0x64   : > { %513 = vst [vmem:[%s8645_s12 + $0x334] sm:$0xff] %v512_v18  ;;  %v640_v18 = vld [vmem:[%s8640_s30 + $0x1c84] sm:$0xff] }
  0x65   : > { %515 = vst [vmem:[%s8645_s12 + $0x33c] sm:$0xff] %v514_v19  ;;  %v642_v19 = vld [vmem:[%s8640_s30 + $0x1c8c] sm:$0xff] }
  0x66   : > { %517 = vst [vmem:[%s8645_s12 + $0x348] sm:$0xff] %v516_v20  ;;  %v644_v20 = vld [vmem:[%s8640_s30 + $0x1ce8] sm:$0xff] }
  0x67   : > { %519 = vst [vmem:[%s8645_s12 + $0x350] sm:$0xff] %v518_v21  ;;  %v646_v21 = vld [vmem:[%s8640_s30 + $0x1cf0] sm:$0xff] }
  0x68   : > { %521 = vst [vmem:[%s8645_s12 + $0x35c] sm:$0xff] %v520_v22  ;;  %v648_v22 = vld [vmem:[%s8640_s30 + $0x1d4c] sm:$0xff] }
  0x69   : > { %523 = vst [vmem:[%s8645_s12 + $0x364] sm:$0xff] %v522_v23  ;;  %v650_v23 = vld [vmem:[%s8640_s30 + $0x1d54] sm:$0xff] }
  0x6a   : > { %525 = vst [vmem:[%s8645_s12 + $0x370] sm:$0xff] %v524_v24  ;;  %v652_v24 = vld [vmem:[%s8640_s30 + $0x1db0] sm:$0xff] }
  0x6b   : > { %527 = vst [vmem:[%s8645_s12 + $0x378] sm:$0xff] %v526_v25  ;;  %v654_v25 = vld [vmem:[%s8640_s30 + $0x1db8] sm:$0xff] }
  0x6c   : > { %529 = vst [vmem:[%s8645_s12 + $0x384] sm:$0xff] %v528_v26  ;;  %v656_v26 = vld [vmem:[%s8640_s30 + $0x1e14] sm:$0xff] }
  0x6d   : > { %531 = vst [vmem:[%s8645_s12 + $0x38c] sm:$0xff] %v530_v27  ;;  %v658_v27 = vld [vmem:[%s8640_s30 + $0x1e1c] sm:$0xff] }
  0x6e   : > { %533 = vst [vmem:[%s8645_s12 + $0x398] sm:$0xff] %v532_v28  ;;  %v660_v28 = vld [vmem:[%s8640_s30 + $0x1e78] sm:$0xff] }
  0x6f   : > { %535 = vst [vmem:[%s8645_s12 + $0x3a0] sm:$0xff] %v534_v29  ;;  %v662_v29 = vld [vmem:[%s8640_s30 + $0x1e80] sm:$0xff] }
  0x70   : > { %537 = vst [vmem:[%s8645_s12 + $0x3ac] sm:$0xff] %v536_v30  ;;  %v664_v30 = vld [vmem:[%s8640_s30 + $0x1edc] sm:$0xff] }
  0x71   : > { %539 = vst [vmem:[%s8645_s12 + $0x3b4] sm:$0xff] %v538_v31  ;;  %v666_v31 = vld [vmem:[%s8640_s30 + $0x1ee4] sm:$0xff] }
  0x72   : > { %541 = vst [vmem:[%s8645_s12 + $0x3c0] sm:$0xff] %v540_v32  ;;  %v668_v32 = vld [vmem:[%s8640_s30 + $0x1f40] sm:$0xff] }
  0x73   : > { %543 = vst [vmem:[%s8645_s12 + $0x3c8] sm:$0xff] %v542_v33  ;;  %v670_v33 = vld [vmem:[%s8640_s30 + $0x1f48] sm:$0xff] }
  0x74   : > { %545 = vst [vmem:[%s8645_s12 + $0x3d4] sm:$0xff] %v544_v34  ;;  %v672_v34 = vld [vmem:[%s8640_s30 + $0x1fa4] sm:$0xff] }
  0x75   : > { %547 = vst [vmem:[%s8645_s12 + $0x3dc] sm:$0xff] %v546_v35  ;;  %v674_v35 = vld [vmem:[%s8640_s30 + $0x1fac] sm:$0xff] }
  0x76   : > { %549 = vst [vmem:[%s8645_s12 + $0x3e8] sm:$0xff] %v548_v36  ;;  %v676_v36 = vld [vmem:[%s8640_s30 + $0x2008] sm:$0xff] }
  0x77   : > { %551 = vst [vmem:[%s8645_s12 + $0x3f0] sm:$0xff] %v550_v37  ;;  %v678_v37 = vld [vmem:[%s8640_s30 + $0x2010] sm:$0xff] }
  0x78   : > { %553 = vst [vmem:[%s8645_s12 + $0x3fc] sm:$0xff] %v552_v38  ;;  %v680_v38 = vld [vmem:[%s8640_s30 + $0x206c] sm:$0xff] }
  0x79   : > { %555 = vst [vmem:[%s8645_s12 + $0x404] sm:$0xff] %v554_v39  ;;  %v682_v39 = vld [vmem:[%s8640_s30 + $0x2074] sm:$0xff] }
  0x7a   : > { %557 = vst [vmem:[%s8645_s12 + $0x410] sm:$0xff] %v556_v40  ;;  %v684_v40 = vld [vmem:[%s8640_s30 + $0x20d0] sm:$0xff] }
  0x7b   : > { %559 = vst [vmem:[%s8645_s12 + $0x418] sm:$0xff] %v558_v41  ;;  %v686_v41 = vld [vmem:[%s8640_s30 + $0x20d8] sm:$0xff] }
  0x7c   : > { %561 = vst [vmem:[%s8645_s12 + $0x424] sm:$0xff] %v560_v42  ;;  %v688_v42 = vld [vmem:[%s8640_s30 + $0x2134] sm:$0xff] }
  0x7d   : > { %563 = vst [vmem:[%s8645_s12 + $0x42c] sm:$0xff] %v562_v43  ;;  %v690_v43 = vld [vmem:[%s8640_s30 + $0x213c] sm:$0xff] }
  0x7e   : > { %565 = vst [vmem:[%s8645_s12 + $0x438] sm:$0xff] %v564_v44  ;;  %v692_v44 = vld [vmem:[%s8640_s30 + $0x2198] sm:$0xff] }
  0x7f   : > { %567 = vst [vmem:[%s8645_s12 + $0x440] sm:$0xff] %v566_v45  ;;  %v694_v45 = vld [vmem:[%s8640_s30 + $0x21a0] sm:$0xff] }
  0x80   : > { %569 = vst [vmem:[%s8645_s12 + $0x44c] sm:$0xff] %v568_v46  ;;  %v696_v46 = vld [vmem:[%s8640_s30 + $0x21fc] sm:$0xff] }
  0x81   : > { %571 = vst [vmem:[%s8645_s12 + $0x454] sm:$0xff] %v570_v47  ;;  %v698_v47 = vld [vmem:[%s8640_s30 + $0x2204] sm:$0xff] }
  0x82   : > { %573 = vst [vmem:[%s8645_s12 + $0x460] sm:$0xff] %v572_v48  ;;  %v700_v48 = vld [vmem:[%s8640_s30 + $0x2260] sm:$0xff] }
  0x83   : > { %575 = vst [vmem:[%s8645_s12 + $0x468] sm:$0xff] %v574_v49  ;;  %v702_v49 = vld [vmem:[%s8640_s30 + $0x2268] sm:$0xff] }
  0x84   : > { %577 = vst [vmem:[%s8645_s12 + $0x474] sm:$0xff] %v576_v50  ;;  %v704_v50 = vld [vmem:[%s8640_s30 + $0x22c4] sm:$0xff] }
  0x85   : > { %579 = vst [vmem:[%s8645_s12 + $0x47c] sm:$0xff] %v578_v51  ;;  %v706_v51 = vld [vmem:[%s8640_s30 + $0x22cc] sm:$0xff] }
  0x86   : > { %581 = vst [vmem:[%s8645_s12 + $0x488] sm:$0xff] %v580_v52  ;;  %v708_v52 = vld [vmem:[%s8640_s30 + $0x2328] sm:$0xff] }
  0x87   : > { %583 = vst [vmem:[%s8645_s12 + $0x490] sm:$0xff] %v582_v53  ;;  %v710_v53 = vld [vmem:[%s8640_s30 + $0x2330] sm:$0xff] }
  0x88   : > { %585 = vst [vmem:[%s8645_s12 + $0x49c] sm:$0xff] %v584_v54  ;;  %v712_v54 = vld [vmem:[%s8640_s30 + $0x238c] sm:$0xff] }
  0x89   : > { %587 = vst [vmem:[%s8645_s12 + $0x4a4] sm:$0xff] %v586_v55  ;;  %v714_v55 = vld [vmem:[%s8640_s30 + $0x2394] sm:$0xff] }
  0x8a   : > { %589 = vst [vmem:[%s8645_s12 + $0x4b0] sm:$0xff] %v588_v56  ;;  %v716_v56 = vld [vmem:[%s8640_s30 + $0x23f0] sm:$0xff] }
  0x8b   : > { %591 = vst [vmem:[%s8645_s12 + $0x4b8] sm:$0xff] %v590_v57  ;;  %v718_v57 = vld [vmem:[%s8640_s30 + $0x23f8] sm:$0xff] }
  0x8c   : > { %593 = vst [vmem:[%s8645_s12 + $0x4c4] sm:$0xff] %v592_v58  ;;  %v720_v58 = vld [vmem:[%s8640_s30 + $0x2454] sm:$0xff] }
  0x8d   : > { %595 = vst [vmem:[%s8645_s12 + $0x4cc] sm:$0xff] %v594_v59  ;;  %v722_v59 = vld [vmem:[%s8640_s30 + $0x245c] sm:$0xff] }
  0x8e   : > { %597 = vst [vmem:[%s8645_s12 + $0x4d8] sm:$0xff] %v596_v60  ;;  %v724_v60 = vld [vmem:[%s8640_s30 + $0x24b8] sm:$0xff] }
  0x8f   : > { %599 = vst [vmem:[%s8645_s12 + $0x4e0] sm:$0xff] %v598_v61  ;;  %v726_v61 = vld [vmem:[%s8640_s30 + $0x24c0] sm:$0xff] }
  0x90   : > { %601 = vst [vmem:[%s8645_s12 + $0x4ec] sm:$0xff] %v600_v62  ;;  %v728_v62 = vld [vmem:[%s8640_s30 + $0x251c] sm:$0xff] }
  0x91   : > { %603 = vst [vmem:[%s8645_s12 + $0x4f4] sm:$0xff] %v602_v63  ;;  %v730_v63 = vld [vmem:[%s8640_s30 + $0x2524] sm:$0xff] }
  0x92   : > { %605 = vst [vmem:[%s8645_s12 + $0x500] sm:$0xff] %v604_v0  ;;  %v732_v0 = vld [vmem:[%s8640_s30 + $0x2580] sm:$0xff] }
  0x93   : > { %607 = vst [vmem:[%s8645_s12 + $0x508] sm:$0xff] %v606_v1  ;;  %v734_v1 = vld [vmem:[%s8640_s30 + $0x2588] sm:$0xff] }
  0x94   : > { %609 = vst [vmem:[%s8645_s12 + $0x514] sm:$0xff] %v608_v2  ;;  %v736_v2 = vld [vmem:[%s8640_s30 + $0x25e4] sm:$0xff] }
  0x95   : > { %611 = vst [vmem:[%s8645_s12 + $0x51c] sm:$0xff] %v610_v3  ;;  %v738_v3 = vld [vmem:[%s8640_s30 + $0x25ec] sm:$0xff] }
  0x96   : > { %613 = vst [vmem:[%s8645_s12 + $0x528] sm:$0xff] %v612_v4  ;;  %v740_v4 = vld [vmem:[%s8640_s30 + $0x2648] sm:$0xff] }
  0x97   : > { %615 = vst [vmem:[%s8645_s12 + $0x530] sm:$0xff] %v614_v5  ;;  %v742_v5 = vld [vmem:[%s8640_s30 + $0x2650] sm:$0xff] }
  0x98   : > { %617 = vst [vmem:[%s8645_s12 + $0x53c] sm:$0xff] %v616_v6  ;;  %v744_v6 = vld [vmem:[%s8640_s30 + $0x26ac] sm:$0xff] }
  0x99   : > { %619 = vst [vmem:[%s8645_s12 + $0x544] sm:$0xff] %v618_v7  ;;  %v746_v7 = vld [vmem:[%s8640_s30 + $0x26b4] sm:$0xff] }
  0x9a   : > { %621 = vst [vmem:[%s8645_s12 + $0x550] sm:$0xff] %v620_v8  ;;  %v748_v8 = vld [vmem:[%s8640_s30 + $0x2710] sm:$0xff] }
  0x9b   : > { %623 = vst [vmem:[%s8645_s12 + $0x558] sm:$0xff] %v622_v9  ;;  %v750_v9 = vld [vmem:[%s8640_s30 + $0x2718] sm:$0xff] }
  0x9c   : > { %625 = vst [vmem:[%s8645_s12 + $0x564] sm:$0xff] %v624_v10  ;;  %v752_v10 = vld [vmem:[%s8640_s30 + $0x2774] sm:$0xff] }
  0x9d   : > { %627 = vst [vmem:[%s8645_s12 + $0x56c] sm:$0xff] %v626_v11  ;;  %v754_v11 = vld [vmem:[%s8640_s30 + $0x277c] sm:$0xff] }
  0x9e   : > { %629 = vst [vmem:[%s8645_s12 + $0x578] sm:$0xff] %v628_v12  ;;  %v756_v12 = vld [vmem:[%s8640_s30 + $0x27d8] sm:$0xff] }
  0x9f   : > { %631 = vst [vmem:[%s8645_s12 + $0x580] sm:$0xff] %v630_v13  ;;  %v758_v13 = vld [vmem:[%s8640_s30 + $0x27e0] sm:$0xff] }
  0xa0   : > { %633 = vst [vmem:[%s8645_s12 + $0x58c] sm:$0xff] %v632_v14  ;;  %v760_v14 = vld [vmem:[%s8640_s30 + $0x283c] sm:$0xff] }
  0xa1   : > { %635 = vst [vmem:[%s8645_s12 + $0x594] sm:$0xff] %v634_v15  ;;  %v762_v15 = vld [vmem:[%s8640_s30 + $0x2844] sm:$0xff] }
  0xa2   : > { %637 = vst [vmem:[%s8645_s12 + $0x5a0] sm:$0xff] %v636_v16  ;;  %v764_v16 = vld [vmem:[%s8640_s30 + $0x28a0] sm:$0xff] }
  0xa3   : > { %639 = vst [vmem:[%s8645_s12 + $0x5a8] sm:$0xff] %v638_v17  ;;  %v766_v17 = vld [vmem:[%s8640_s30 + $0x28a8] sm:$0xff] }
  0xa4   : > { %641 = vst [vmem:[%s8645_s12 + $0x5b4] sm:$0xff] %v640_v18  ;;  %v768_v18 = vld [vmem:[%s8640_s30 + $0x2904] sm:$0xff] }
  0xa5   : > { %643 = vst [vmem:[%s8645_s12 + $0x5bc] sm:$0xff] %v642_v19  ;;  %v770_v19 = vld [vmem:[%s8640_s30 + $0x290c] sm:$0xff] }
  0xa6   : > { %645 = vst [vmem:[%s8645_s12 + $0x5c8] sm:$0xff] %v644_v20  ;;  %v772_v20 = vld [vmem:[%s8640_s30 + $0x2968] sm:$0xff] }
  0xa7   : > { %647 = vst [vmem:[%s8645_s12 + $0x5d0] sm:$0xff] %v646_v21  ;;  %v774_v21 = vld [vmem:[%s8640_s30 + $0x2970] sm:$0xff] }
  0xa8   : > { %649 = vst [vmem:[%s8645_s12 + $0x5dc] sm:$0xff] %v648_v22  ;;  %v776_v22 = vld [vmem:[%s8640_s30 + $0x29cc] sm:$0xff] }
  0xa9   : > { %651 = vst [vmem:[%s8645_s12 + $0x5e4] sm:$0xff] %v650_v23  ;;  %v778_v23 = vld [vmem:[%s8640_s30 + $0x29d4] sm:$0xff] }
  0xaa   : > { %653 = vst [vmem:[%s8645_s12 + $0x5f0] sm:$0xff] %v652_v24  ;;  %v780_v24 = vld [vmem:[%s8640_s30 + $0x2a30] sm:$0xff] }
  0xab   : > { %655 = vst [vmem:[%s8645_s12 + $0x5f8] sm:$0xff] %v654_v25  ;;  %v782_v25 = vld [vmem:[%s8640_s30 + $0x2a38] sm:$0xff] }
  0xac   : > { %657 = vst [vmem:[%s8645_s12 + $0x604] sm:$0xff] %v656_v26  ;;  %v784_v26 = vld [vmem:[%s8640_s30 + $0x2a94] sm:$0xff] }
  0xad   : > { %659 = vst [vmem:[%s8645_s12 + $0x60c] sm:$0xff] %v658_v27  ;;  %v786_v27 = vld [vmem:[%s8640_s30 + $0x2a9c] sm:$0xff] }
  0xae   : > { %661 = vst [vmem:[%s8645_s12 + $0x618] sm:$0xff] %v660_v28  ;;  %v788_v28 = vld [vmem:[%s8640_s30 + $0x2af8] sm:$0xff] }
  0xaf   : > { %663 = vst [vmem:[%s8645_s12 + $0x620] sm:$0xff] %v662_v29  ;;  %v790_v29 = vld [vmem:[%s8640_s30 + $0x2b00] sm:$0xff] }
  0xb0   : > { %665 = vst [vmem:[%s8645_s12 + $0x62c] sm:$0xff] %v664_v30  ;;  %v792_v30 = vld [vmem:[%s8640_s30 + $0x2b5c] sm:$0xff] }
  0xb1   : > { %667 = vst [vmem:[%s8645_s12 + $0x634] sm:$0xff] %v666_v31  ;;  %v794_v31 = vld [vmem:[%s8640_s30 + $0x2b64] sm:$0xff] }
  0xb2   : > { %669 = vst [vmem:[%s8645_s12 + $0x640] sm:$0xff] %v668_v32  ;;  %v796_v32 = vld [vmem:[%s8640_s30 + $0x2bc0] sm:$0xff] }
  0xb3   : > { %671 = vst [vmem:[%s8645_s12 + $0x648] sm:$0xff] %v670_v33  ;;  %v798_v33 = vld [vmem:[%s8640_s30 + $0x2bc8] sm:$0xff] }
  0xb4   : > { %673 = vst [vmem:[%s8645_s12 + $0x654] sm:$0xff] %v672_v34  ;;  %v800_v34 = vld [vmem:[%s8640_s30 + $0x2c24] sm:$0xff] }
  0xb5   : > { %675 = vst [vmem:[%s8645_s12 + $0x65c] sm:$0xff] %v674_v35  ;;  %v802_v35 = vld [vmem:[%s8640_s30 + $0x2c2c] sm:$0xff] }
  0xb6   : > { %677 = vst [vmem:[%s8645_s12 + $0x668] sm:$0xff] %v676_v36  ;;  %v804_v36 = vld [vmem:[%s8640_s30 + $0x2c88] sm:$0xff] }
  0xb7   : > { %679 = vst [vmem:[%s8645_s12 + $0x670] sm:$0xff] %v678_v37  ;;  %v806_v37 = vld [vmem:[%s8640_s30 + $0x2c90] sm:$0xff] }
  0xb8   : > { %681 = vst [vmem:[%s8645_s12 + $0x67c] sm:$0xff] %v680_v38  ;;  %v808_v38 = vld [vmem:[%s8640_s30 + $0x2cec] sm:$0xff] }
  0xb9   : > { %683 = vst [vmem:[%s8645_s12 + $0x684] sm:$0xff] %v682_v39  ;;  %v810_v39 = vld [vmem:[%s8640_s30 + $0x2cf4] sm:$0xff] }
  0xba   : > { %685 = vst [vmem:[%s8645_s12 + $0x690] sm:$0xff] %v684_v40  ;;  %v812_v40 = vld [vmem:[%s8640_s30 + $0x2d50] sm:$0xff] }
  0xbb   : > { %687 = vst [vmem:[%s8645_s12 + $0x698] sm:$0xff] %v686_v41  ;;  %v814_v41 = vld [vmem:[%s8640_s30 + $0x2d58] sm:$0xff] }
  0xbc   : > { %689 = vst [vmem:[%s8645_s12 + $0x6a4] sm:$0xff] %v688_v42  ;;  %v816_v42 = vld [vmem:[%s8640_s30 + $0x2db4] sm:$0xff] }
  0xbd   : > { %691 = vst [vmem:[%s8645_s12 + $0x6ac] sm:$0xff] %v690_v43  ;;  %v818_v43 = vld [vmem:[%s8640_s30 + $0x2dbc] sm:$0xff] }
  0xbe   : > { %693 = vst [vmem:[%s8645_s12 + $0x6b8] sm:$0xff] %v692_v44  ;;  %v820_v44 = vld [vmem:[%s8640_s30 + $0x2e18] sm:$0xff] }
  0xbf   : > { %695 = vst [vmem:[%s8645_s12 + $0x6c0] sm:$0xff] %v694_v45  ;;  %v822_v45 = vld [vmem:[%s8640_s30 + $0x2e20] sm:$0xff] }
  0xc0   : > { %697 = vst [vmem:[%s8645_s12 + $0x6cc] sm:$0xff] %v696_v46  ;;  %v824_v46 = vld [vmem:[%s8640_s30 + $0x2e7c] sm:$0xff] }
  0xc1   : > { %699 = vst [vmem:[%s8645_s12 + $0x6d4] sm:$0xff] %v698_v47  ;;  %v826_v47 = vld [vmem:[%s8640_s30 + $0x2e84] sm:$0xff] }
  0xc2   : > { %701 = vst [vmem:[%s8645_s12 + $0x6e0] sm:$0xff] %v700_v48  ;;  %v828_v48 = vld [vmem:[%s8640_s30 + $0x2ee0] sm:$0xff] }
  0xc3   : > { %703 = vst [vmem:[%s8645_s12 + $0x6e8] sm:$0xff] %v702_v49  ;;  %v830_v49 = vld [vmem:[%s8640_s30 + $0x2ee8] sm:$0xff] }
  0xc4   : > { %705 = vst [vmem:[%s8645_s12 + $0x6f4] sm:$0xff] %v704_v50  ;;  %v832_v50 = vld [vmem:[%s8640_s30 + $0x2f44] sm:$0xff] }
  0xc5   : > { %707 = vst [vmem:[%s8645_s12 + $0x6fc] sm:$0xff] %v706_v51  ;;  %v834_v51 = vld [vmem:[%s8640_s30 + $0x2f4c] sm:$0xff] }
  0xc6   : > { %709 = vst [vmem:[%s8645_s12 + $0x708] sm:$0xff] %v708_v52  ;;  %v836_v52 = vld [vmem:[%s8640_s30 + $0x2fa8] sm:$0xff] }
  0xc7   : > { %711 = vst [vmem:[%s8645_s12 + $0x710] sm:$0xff] %v710_v53  ;;  %v838_v53 = vld [vmem:[%s8640_s30 + $0x2fb0] sm:$0xff] }
  0xc8   : > { %713 = vst [vmem:[%s8645_s12 + $0x71c] sm:$0xff] %v712_v54  ;;  %v840_v54 = vld [vmem:[%s8640_s30 + $0x300c] sm:$0xff] }
  0xc9   : > { %715 = vst [vmem:[%s8645_s12 + $0x724] sm:$0xff] %v714_v55  ;;  %v842_v55 = vld [vmem:[%s8640_s30 + $0x3014] sm:$0xff] }
  0xca   : > { %717 = vst [vmem:[%s8645_s12 + $0x730] sm:$0xff] %v716_v56  ;;  %v844_v56 = vld [vmem:[%s8640_s30 + $0x3070] sm:$0xff] }
  0xcb   : > { %719 = vst [vmem:[%s8645_s12 + $0x738] sm:$0xff] %v718_v57  ;;  %v846_v57 = vld [vmem:[%s8640_s30 + $0x3078] sm:$0xff] }
  0xcc   : > { %721 = vst [vmem:[%s8645_s12 + $0x744] sm:$0xff] %v720_v58  ;;  %v848_v58 = vld [vmem:[%s8640_s30 + $0x30d4] sm:$0xff] }
  0xcd   : > { %723 = vst [vmem:[%s8645_s12 + $0x74c] sm:$0xff] %v722_v59  ;;  %v850_v59 = vld [vmem:[%s8640_s30 + $0x30dc] sm:$0xff] }
  0xce   : > { %725 = vst [vmem:[%s8645_s12 + $0x758] sm:$0xff] %v724_v60  ;;  %v852_v60 = vld [vmem:[%s8640_s30 + $0x3138] sm:$0xff] }
  0xcf   : > { %727 = vst [vmem:[%s8645_s12 + $0x760] sm:$0xff] %v726_v61  ;;  %v854_v61 = vld [vmem:[%s8640_s30 + $0x3140] sm:$0xff] }
  0xd0   : > { %729 = vst [vmem:[%s8645_s12 + $0x76c] sm:$0xff] %v728_v62  ;;  %v856_v62 = vld [vmem:[%s8640_s30 + $0x319c] sm:$0xff] }
  0xd1   : > { %731 = vst [vmem:[%s8645_s12 + $0x774] sm:$0xff] %v730_v63  ;;  %v858_v63 = vld [vmem:[%s8640_s30 + $0x31a4] sm:$0xff] }
  0xd2   : > { %733 = vst [vmem:[%s8645_s12 + $0x780] sm:$0xff] %v732_v0  ;;  %v5536_v0 = vld [vmem:[%s8640_s30 + $0x10] sm:$0xf] }
  0xd3   : > { %735 = vst [vmem:[%s8645_s12 + $0x788] sm:$0xff] %v734_v1  ;;  %v5538_v1 = vld [vmem:[%s8640_s30 + $0x74] sm:$0xf] }
  0xd4   : > { %737 = vst [vmem:[%s8645_s12 + $0x794] sm:$0xff] %v736_v2  ;;  %v5540_v2 = vld [vmem:[%s8640_s30 + $0xd8] sm:$0xf] }
  0xd5   : > { %739 = vst [vmem:[%s8645_s12 + $0x79c] sm:$0xff] %v738_v3  ;;  %v5542_v3 = vld [vmem:[%s8640_s30 + $0x13c] sm:$0xf] }
  0xd6   : > { %741 = vst [vmem:[%s8645_s12 + $0x7a8] sm:$0xff] %v740_v4  ;;  %v5544_v4 = vld [vmem:[%s8640_s30 + $0x1a0] sm:$0xf] }
  0xd7   : > { %743 = vst [vmem:[%s8645_s12 + $0x7b0] sm:$0xff] %v742_v5  ;;  %v5546_v5 = vld [vmem:[%s8640_s30 + $0x204] sm:$0xf] }
  0xd8   : > { %745 = vst [vmem:[%s8645_s12 + $0x7bc] sm:$0xff] %v744_v6  ;;  %v5548_v6 = vld [vmem:[%s8640_s30 + $0x268] sm:$0xf] }
  0xd9   : > { %747 = vst [vmem:[%s8645_s12 + $0x7c4] sm:$0xff] %v746_v7  ;;  %v5550_v7 = vld [vmem:[%s8640_s30 + $0x2cc] sm:$0xf] }
  0xda   : > { %749 = vst [vmem:[%s8645_s12 + $0x7d0] sm:$0xff] %v748_v8  ;;  %v5552_v8 = vld [vmem:[%s8640_s30 + $0x330] sm:$0xf] }
  0xdb   : > { %751 = vst [vmem:[%s8645_s12 + $0x7d8] sm:$0xff] %v750_v9  ;;  %v5554_v9 = vld [vmem:[%s8640_s30 + $0x394] sm:$0xf] }
  0xdc   : > { %753 = vst [vmem:[%s8645_s12 + $0x7e4] sm:$0xff] %v752_v10  ;;  %v5556_v10 = vld [vmem:[%s8640_s30 + $0x3f8] sm:$0xf] }
  0xdd   : > { %755 = vst [vmem:[%s8645_s12 + $0x7ec] sm:$0xff] %v754_v11  ;;  %v5558_v11 = vld [vmem:[%s8640_s30 + $0x45c] sm:$0xf] }
  0xde   : > { %757 = vst [vmem:[%s8645_s12 + $0x7f8] sm:$0xff] %v756_v12  ;;  %v5560_v12 = vld [vmem:[%s8640_s30 + $0x4c0] sm:$0xf] }
  0xdf   : > { %759 = vst [vmem:[%s8645_s12 + $0x800] sm:$0xff] %v758_v13  ;;  %v5562_v13 = vld [vmem:[%s8640_s30 + $0x524] sm:$0xf] }
  0xe0   : > { %761 = vst [vmem:[%s8645_s12 + $0x80c] sm:$0xff] %v760_v14  ;;  %v5564_v14 = vld [vmem:[%s8640_s30 + $0x588] sm:$0xf] }
  0xe1   : > { %763 = vst [vmem:[%s8645_s12 + $0x814] sm:$0xff] %v762_v15  ;;  %v5566_v15 = vld [vmem:[%s8640_s30 + $0x5ec] sm:$0xf] }
  0xe2   : > { %765 = vst [vmem:[%s8645_s12 + $0x820] sm:$0xff] %v764_v16  ;;  %v5568_v16 = vld [vmem:[%s8640_s30 + $0x650] sm:$0xf] }
  0xe3   : > { %767 = vst [vmem:[%s8645_s12 + $0x828] sm:$0xff] %v766_v17  ;;  %v5570_v17 = vld [vmem:[%s8640_s30 + $0x6b4] sm:$0xf] }
  0xe4   : > { %769 = vst [vmem:[%s8645_s12 + $0x834] sm:$0xff] %v768_v18  ;;  %v5572_v18 = vld [vmem:[%s8640_s30 + $0x718] sm:$0xf] }
  0xe5   : > { %771 = vst [vmem:[%s8645_s12 + $0x83c] sm:$0xff] %v770_v19  ;;  %v5574_v19 = vld [vmem:[%s8640_s30 + $0x77c] sm:$0xf] }
  0xe6   : > { %773 = vst [vmem:[%s8645_s12 + $0x848] sm:$0xff] %v772_v20  ;;  %v5576_v20 = vld [vmem:[%s8640_s30 + $0x7e0] sm:$0xf] }
  0xe7   : > { %775 = vst [vmem:[%s8645_s12 + $0x850] sm:$0xff] %v774_v21  ;;  %v5578_v21 = vld [vmem:[%s8640_s30 + $0x844] sm:$0xf] }
  0xe8   : > { %777 = vst [vmem:[%s8645_s12 + $0x85c] sm:$0xff] %v776_v22  ;;  %v5580_v22 = vld [vmem:[%s8640_s30 + $0x8a8] sm:$0xf] }
  0xe9   : > { %779 = vst [vmem:[%s8645_s12 + $0x864] sm:$0xff] %v778_v23  ;;  %v5582_v23 = vld [vmem:[%s8640_s30 + $0x90c] sm:$0xf] }
  0xea   : > { %781 = vst [vmem:[%s8645_s12 + $0x870] sm:$0xff] %v780_v24  ;;  %v5584_v24 = vld [vmem:[%s8640_s30 + $0x970] sm:$0xf] }
  0xeb   : > { %783 = vst [vmem:[%s8645_s12 + $0x878] sm:$0xff] %v782_v25  ;;  %v5586_v25 = vld [vmem:[%s8640_s30 + $0x9d4] sm:$0xf] }
  0xec   : > { %785 = vst [vmem:[%s8645_s12 + $0x884] sm:$0xff] %v784_v26  ;;  %v5588_v26 = vld [vmem:[%s8640_s30 + $0xa38] sm:$0xf] }
  0xed   : > { %787 = vst [vmem:[%s8645_s12 + $0x88c] sm:$0xff] %v786_v27  ;;  %v5590_v27 = vld [vmem:[%s8640_s30 + $0xa9c] sm:$0xf] }
  0xee   : > { %789 = vst [vmem:[%s8645_s12 + $0x898] sm:$0xff] %v788_v28  ;;  %v5592_v28 = vld [vmem:[%s8640_s30 + $0xb00] sm:$0xf] }
  0xef   : > { %791 = vst [vmem:[%s8645_s12 + $0x8a0] sm:$0xff] %v790_v29  ;;  %v5594_v29 = vld [vmem:[%s8640_s30 + $0xb64] sm:$0xf] }
  0xf0   : > { %793 = vst [vmem:[%s8645_s12 + $0x8ac] sm:$0xff] %v792_v30  ;;  %v5596_v30 = vld [vmem:[%s8640_s30 + $0xbc8] sm:$0xf] }
  0xf1   : > { %795 = vst [vmem:[%s8645_s12 + $0x8b4] sm:$0xff] %v794_v31  ;;  %v5598_v31 = vld [vmem:[%s8640_s30 + $0xc2c] sm:$0xf] }
  0xf2   : > { %797 = vst [vmem:[%s8645_s12 + $0x8c0] sm:$0xff] %v796_v32  ;;  %v5600_v32 = vld [vmem:[%s8640_s30 + $0xc90] sm:$0xf] }
  0xf3   : > { %799 = vst [vmem:[%s8645_s12 + $0x8c8] sm:$0xff] %v798_v33  ;;  %v5602_v33 = vld [vmem:[%s8640_s30 + $0xcf4] sm:$0xf] }
  0xf4   : > { %801 = vst [vmem:[%s8645_s12 + $0x8d4] sm:$0xff] %v800_v34  ;;  %v5604_v34 = vld [vmem:[%s8640_s30 + $0xd58] sm:$0xf] }
  0xf5   : > { %803 = vst [vmem:[%s8645_s12 + $0x8dc] sm:$0xff] %v802_v35  ;;  %v5606_v35 = vld [vmem:[%s8640_s30 + $0xdbc] sm:$0xf] }
  0xf6   : > { %805 = vst [vmem:[%s8645_s12 + $0x8e8] sm:$0xff] %v804_v36  ;;  %v5608_v36 = vld [vmem:[%s8640_s30 + $0xe20] sm:$0xf] }
  0xf7   : > { %807 = vst [vmem:[%s8645_s12 + $0x8f0] sm:$0xff] %v806_v37  ;;  %v5610_v37 = vld [vmem:[%s8640_s30 + $0xe84] sm:$0xf] }
  0xf8   : > { %809 = vst [vmem:[%s8645_s12 + $0x8fc] sm:$0xff] %v808_v38  ;;  %v5612_v38 = vld [vmem:[%s8640_s30 + $0xee8] sm:$0xf] }
  0xf9   : > { %811 = vst [vmem:[%s8645_s12 + $0x904] sm:$0xff] %v810_v39  ;;  %v5614_v39 = vld [vmem:[%s8640_s30 + $0xf4c] sm:$0xf] }
  0xfa   : > { %813 = vst [vmem:[%s8645_s12 + $0x910] sm:$0xff] %v812_v40  ;;  %v5616_v40 = vld [vmem:[%s8640_s30 + $0xfb0] sm:$0xf] }
  0xfb   : > { %815 = vst [vmem:[%s8645_s12 + $0x918] sm:$0xff] %v814_v41  ;;  %v5618_v41 = vld [vmem:[%s8640_s30 + $0x1014] sm:$0xf] }
  0xfc   : > { %817 = vst [vmem:[%s8645_s12 + $0x924] sm:$0xff] %v816_v42  ;;  %v5620_v42 = vld [vmem:[%s8640_s30 + $0x1078] sm:$0xf] }
  0xfd   : > { %819 = vst [vmem:[%s8645_s12 + $0x92c] sm:$0xff] %v818_v43  ;;  %v5622_v43 = vld [vmem:[%s8640_s30 + $0x10dc] sm:$0xf] }
  0xfe   : > { %821 = vst [vmem:[%s8645_s12 + $0x938] sm:$0xff] %v820_v44  ;;  %v5624_v44 = vld [vmem:[%s8640_s30 + $0x1140] sm:$0xf] }
  0xff   : > { %823 = vst [vmem:[%s8645_s12 + $0x940] sm:$0xff] %v822_v45  ;;  %v5626_v45 = vld [vmem:[%s8640_s30 + $0x11a4] sm:$0xf] }
 0x100   : > { %825 = vst [vmem:[%s8645_s12 + $0x94c] sm:$0xff] %v824_v46  ;;  %v5628_v46 = vld [vmem:[%s8640_s30 + $0x1208] sm:$0xf] }
 0x101   : > { %827 = vst [vmem:[%s8645_s12 + $0x954] sm:$0xff] %v826_v47  ;;  %v5630_v47 = vld [vmem:[%s8640_s30 + $0x126c] sm:$0xf] }
 0x102   : > { %829 = vst [vmem:[%s8645_s12 + $0x960] sm:$0xff] %v828_v48  ;;  %v5632_v48 = vld [vmem:[%s8640_s30 + $0x12d0] sm:$0xf] }
 0x103   : > { %831 = vst [vmem:[%s8645_s12 + $0x968] sm:$0xff] %v830_v49  ;;  %v5634_v49 = vld [vmem:[%s8640_s30 + $0x1334] sm:$0xf] }
 0x104   : > { %833 = vst [vmem:[%s8645_s12 + $0x974] sm:$0xff] %v832_v50  ;;  %v5636_v50 = vld [vmem:[%s8640_s30 + $0x1398] sm:$0xf] }
 0x105   : > { %835 = vst [vmem:[%s8645_s12 + $0x97c] sm:$0xff] %v834_v51  ;;  %v5638_v51 = vld [vmem:[%s8640_s30 + $0x13fc] sm:$0xf] }
 0x106   : > { %837 = vst [vmem:[%s8645_s12 + $0x988] sm:$0xff] %v836_v52  ;;  %v5640_v52 = vld [vmem:[%s8640_s30 + $0x1460] sm:$0xf] }
 0x107   : > { %839 = vst [vmem:[%s8645_s12 + $0x990] sm:$0xff] %v838_v53  ;;  %v5642_v53 = vld [vmem:[%s8640_s30 + $0x14c4] sm:$0xf] }
 0x108   : > { %841 = vst [vmem:[%s8645_s12 + $0x99c] sm:$0xff] %v840_v54  ;;  %v5644_v54 = vld [vmem:[%s8640_s30 + $0x1528] sm:$0xf] }
 0x109   : > { %843 = vst [vmem:[%s8645_s12 + $0x9a4] sm:$0xff] %v842_v55  ;;  %v5646_v55 = vld [vmem:[%s8640_s30 + $0x158c] sm:$0xf] }
 0x10a   : > { %845 = vst [vmem:[%s8645_s12 + $0x9b0] sm:$0xff] %v844_v56  ;;  %v5648_v56 = vld [vmem:[%s8640_s30 + $0x15f0] sm:$0xf] }
 0x10b   : > { %847 = vst [vmem:[%s8645_s12 + $0x9b8] sm:$0xff] %v846_v57  ;;  %v5650_v57 = vld [vmem:[%s8640_s30 + $0x1654] sm:$0xf] }
 0x10c   : > { %849 = vst [vmem:[%s8645_s12 + $0x9c4] sm:$0xff] %v848_v58  ;;  %v5652_v58 = vld [vmem:[%s8640_s30 + $0x16b8] sm:$0xf] }
 0x10d   : > { %851 = vst [vmem:[%s8645_s12 + $0x9cc] sm:$0xff] %v850_v59  ;;  %v5654_v59 = vld [vmem:[%s8640_s30 + $0x171c] sm:$0xf] }
 0x10e   : > { %853 = vst [vmem:[%s8645_s12 + $0x9d8] sm:$0xff] %v852_v60  ;;  %v5656_v60 = vld [vmem:[%s8640_s30 + $0x1780] sm:$0xf] }
 0x10f   : > { %855 = vst [vmem:[%s8645_s12 + $0x9e0] sm:$0xff] %v854_v61  ;;  %v5658_v61 = vld [vmem:[%s8640_s30 + $0x17e4] sm:$0xf] }
 0x110   : > { %857 = vst [vmem:[%s8645_s12 + $0x9ec] sm:$0xff] %v856_v62  ;;  %v5660_v62 = vld [vmem:[%s8640_s30 + $0x1848] sm:$0xf] }
 0x111   : > { %859 = vst [vmem:[%s8645_s12 + $0x9f4] sm:$0xff] %v858_v63  ;;  %v5662_v63 = vld [vmem:[%s8640_s30 + $0x18ac] sm:$0xf] }
 0x112   : > { %5537 = vst [vmem:[%s8645_s12 + $0x10] sm:$0xf] %v5536_v0  ;;  %v5664_v0 = vld [vmem:[%s8640_s30 + $0x1910] sm:$0xf] }
 0x113   : > { %5539 = vst [vmem:[%s8645_s12 + $0x24] sm:$0xf] %v5538_v1  ;;  %v5666_v1 = vld [vmem:[%s8640_s30 + $0x1974] sm:$0xf] }
 0x114   : > { %5541 = vst [vmem:[%s8645_s12 + $0x38] sm:$0xf] %v5540_v2  ;;  %v5668_v2 = vld [vmem:[%s8640_s30 + $0x19d8] sm:$0xf] }
 0x115   : > { %5543 = vst [vmem:[%s8645_s12 + $0x4c] sm:$0xf] %v5542_v3  ;;  %v5670_v3 = vld [vmem:[%s8640_s30 + $0x1a3c] sm:$0xf] }
 0x116   : > { %5545 = vst [vmem:[%s8645_s12 + $0x60] sm:$0xf] %v5544_v4  ;;  %v5672_v4 = vld [vmem:[%s8640_s30 + $0x1aa0] sm:$0xf] }
 0x117   : > { %5547 = vst [vmem:[%s8645_s12 + $0x74] sm:$0xf] %v5546_v5  ;;  %v5674_v5 = vld [vmem:[%s8640_s30 + $0x1b04] sm:$0xf] }
 0x118   : > { %5549 = vst [vmem:[%s8645_s12 + $0x88] sm:$0xf] %v5548_v6  ;;  %v5676_v6 = vld [vmem:[%s8640_s30 + $0x1b68] sm:$0xf] }
 0x119   : > { %5551 = vst [vmem:[%s8645_s12 + $0x9c] sm:$0xf] %v5550_v7  ;;  %v5678_v7 = vld [vmem:[%s8640_s30 + $0x1bcc] sm:$0xf] }
 0x11a   : > { %5553 = vst [vmem:[%s8645_s12 + $0xb0] sm:$0xf] %v5552_v8  ;;  %v5680_v8 = vld [vmem:[%s8640_s30 + $0x1c30] sm:$0xf] }
 0x11b   : > { %5555 = vst [vmem:[%s8645_s12 + $0xc4] sm:$0xf] %v5554_v9  ;;  %v5682_v9 = vld [vmem:[%s8640_s30 + $0x1c94] sm:$0xf] }
 0x11c   : > { %5557 = vst [vmem:[%s8645_s12 + $0xd8] sm:$0xf] %v5556_v10  ;;  %v5684_v10 = vld [vmem:[%s8640_s30 + $0x1cf8] sm:$0xf] }
 0x11d   : > { %5559 = vst [vmem:[%s8645_s12 + $0xec] sm:$0xf] %v5558_v11  ;;  %v5686_v11 = vld [vmem:[%s8640_s30 + $0x1d5c] sm:$0xf] }
 0x11e   : > { %5561 = vst [vmem:[%s8645_s12 + $0x100] sm:$0xf] %v5560_v12  ;;  %v5688_v12 = vld [vmem:[%s8640_s30 + $0x1dc0] sm:$0xf] }
 0x11f   : > { %5563 = vst [vmem:[%s8645_s12 + $0x114] sm:$0xf] %v5562_v13  ;;  %v5690_v13 = vld [vmem:[%s8640_s30 + $0x1e24] sm:$0xf] }
 0x120   : > { %5565 = vst [vmem:[%s8645_s12 + $0x128] sm:$0xf] %v5564_v14  ;;  %v5692_v14 = vld [vmem:[%s8640_s30 + $0x1e88] sm:$0xf] }
 0x121   : > { %5567 = vst [vmem:[%s8645_s12 + $0x13c] sm:$0xf] %v5566_v15  ;;  %v5694_v15 = vld [vmem:[%s8640_s30 + $0x1eec] sm:$0xf] }
 0x122   : > { %5569 = vst [vmem:[%s8645_s12 + $0x150] sm:$0xf] %v5568_v16  ;;  %v5696_v16 = vld [vmem:[%s8640_s30 + $0x1f50] sm:$0xf] }
 0x123   : > { %5571 = vst [vmem:[%s8645_s12 + $0x164] sm:$0xf] %v5570_v17  ;;  %v5698_v17 = vld [vmem:[%s8640_s30 + $0x1fb4] sm:$0xf] }
 0x124   : > { %5573 = vst [vmem:[%s8645_s12 + $0x178] sm:$0xf] %v5572_v18  ;;  %v5700_v18 = vld [vmem:[%s8640_s30 + $0x2018] sm:$0xf] }
 0x125   : > { %5575 = vst [vmem:[%s8645_s12 + $0x18c] sm:$0xf] %v5574_v19  ;;  %v5702_v19 = vld [vmem:[%s8640_s30 + $0x207c] sm:$0xf] }
 0x126   : > { %5577 = vst [vmem:[%s8645_s12 + $0x1a0] sm:$0xf] %v5576_v20  ;;  %v5704_v20 = vld [vmem:[%s8640_s30 + $0x20e0] sm:$0xf] }
 0x127   : > { %5579 = vst [vmem:[%s8645_s12 + $0x1b4] sm:$0xf] %v5578_v21  ;;  %v5706_v21 = vld [vmem:[%s8640_s30 + $0x2144] sm:$0xf] }
 0x128   : > { %5581 = vst [vmem:[%s8645_s12 + $0x1c8] sm:$0xf] %v5580_v22  ;;  %v5708_v22 = vld [vmem:[%s8640_s30 + $0x21a8] sm:$0xf] }
 0x129   : > { %5583 = vst [vmem:[%s8645_s12 + $0x1dc] sm:$0xf] %v5582_v23  ;;  %v5710_v23 = vld [vmem:[%s8640_s30 + $0x220c] sm:$0xf] }
 0x12a   : > { %5585 = vst [vmem:[%s8645_s12 + $0x1f0] sm:$0xf] %v5584_v24  ;;  %v5712_v24 = vld [vmem:[%s8640_s30 + $0x2270] sm:$0xf] }
 0x12b   : > { %5587 = vst [vmem:[%s8645_s12 + $0x204] sm:$0xf] %v5586_v25  ;;  %v5714_v25 = vld [vmem:[%s8640_s30 + $0x22d4] sm:$0xf] }
 0x12c   : > { %5589 = vst [vmem:[%s8645_s12 + $0x218] sm:$0xf] %v5588_v26  ;;  %v5716_v26 = vld [vmem:[%s8640_s30 + $0x2338] sm:$0xf] }
 0x12d   : > { %5591 = vst [vmem:[%s8645_s12 + $0x22c] sm:$0xf] %v5590_v27  ;;  %v5718_v27 = vld [vmem:[%s8640_s30 + $0x239c] sm:$0xf] }
 0x12e   : > { %5593 = vst [vmem:[%s8645_s12 + $0x240] sm:$0xf] %v5592_v28  ;;  %v5720_v28 = vld [vmem:[%s8640_s30 + $0x2400] sm:$0xf] }
 0x12f   : > { %5595 = vst [vmem:[%s8645_s12 + $0x254] sm:$0xf] %v5594_v29  ;;  %v5722_v29 = vld [vmem:[%s8640_s30 + $0x2464] sm:$0xf] }
 0x130   : > { %5597 = vst [vmem:[%s8645_s12 + $0x268] sm:$0xf] %v5596_v30  ;;  %v5724_v30 = vld [vmem:[%s8640_s30 + $0x24c8] sm:$0xf] }
 0x131   : > { %5599 = vst [vmem:[%s8645_s12 + $0x27c] sm:$0xf] %v5598_v31  ;;  %v5726_v31 = vld [vmem:[%s8640_s30 + $0x252c] sm:$0xf] }
 0x132   : > { %5601 = vst [vmem:[%s8645_s12 + $0x290] sm:$0xf] %v5600_v32  ;;  %v5728_v32 = vld [vmem:[%s8640_s30 + $0x2590] sm:$0xf] }
 0x133   : > { %5603 = vst [vmem:[%s8645_s12 + $0x2a4] sm:$0xf] %v5602_v33  ;;  %v5730_v33 = vld [vmem:[%s8640_s30 + $0x25f4] sm:$0xf] }
 0x134   : > { %5605 = vst [vmem:[%s8645_s12 + $0x2b8] sm:$0xf] %v5604_v34  ;;  %v5732_v34 = vld [vmem:[%s8640_s30 + $0x2658] sm:$0xf] }
 0x135   : > { %5607 = vst [vmem:[%s8645_s12 + $0x2cc] sm:$0xf] %v5606_v35  ;;  %v5734_v35 = vld [vmem:[%s8640_s30 + $0x26bc] sm:$0xf] }
 0x136   : > { %5609 = vst [vmem:[%s8645_s12 + $0x2e0] sm:$0xf] %v5608_v36  ;;  %v5736_v36 = vld [vmem:[%s8640_s30 + $0x2720] sm:$0xf] }
 0x137   : > { %5611 = vst [vmem:[%s8645_s12 + $0x2f4] sm:$0xf] %v5610_v37  ;;  %v5738_v37 = vld [vmem:[%s8640_s30 + $0x2784] sm:$0xf] }
 0x138   : > { %5613 = vst [vmem:[%s8645_s12 + $0x308] sm:$0xf] %v5612_v38  ;;  %v5740_v38 = vld [vmem:[%s8640_s30 + $0x27e8] sm:$0xf] }
 0x139   : > { %5615 = vst [vmem:[%s8645_s12 + $0x31c] sm:$0xf] %v5614_v39  ;;  %v5742_v39 = vld [vmem:[%s8640_s30 + $0x284c] sm:$0xf] }
 0x13a   : > { %5617 = vst [vmem:[%s8645_s12 + $0x330] sm:$0xf] %v5616_v40  ;;  %v5744_v40 = vld [vmem:[%s8640_s30 + $0x28b0] sm:$0xf] }
 0x13b   : > { %5619 = vst [vmem:[%s8645_s12 + $0x344] sm:$0xf] %v5618_v41  ;;  %v5746_v41 = vld [vmem:[%s8640_s30 + $0x2914] sm:$0xf] }
 0x13c   : > { %5621 = vst [vmem:[%s8645_s12 + $0x358] sm:$0xf] %v5620_v42  ;;  %v5748_v42 = vld [vmem:[%s8640_s30 + $0x2978] sm:$0xf] }
 0x13d   : > { %5623 = vst [vmem:[%s8645_s12 + $0x36c] sm:$0xf] %v5622_v43  ;;  %v5750_v43 = vld [vmem:[%s8640_s30 + $0x29dc] sm:$0xf] }
 0x13e   : > { %5625 = vst [vmem:[%s8645_s12 + $0x380] sm:$0xf] %v5624_v44  ;;  %v5752_v44 = vld [vmem:[%s8640_s30 + $0x2a40] sm:$0xf] }
 0x13f   : > { %5627 = vst [vmem:[%s8645_s12 + $0x394] sm:$0xf] %v5626_v45  ;;  %v5754_v45 = vld [vmem:[%s8640_s30 + $0x2aa4] sm:$0xf] }
 0x140   : > { %5629 = vst [vmem:[%s8645_s12 + $0x3a8] sm:$0xf] %v5628_v46  ;;  %v5756_v46 = vld [vmem:[%s8640_s30 + $0x2b08] sm:$0xf] }
 0x141   : > { %5631 = vst [vmem:[%s8645_s12 + $0x3bc] sm:$0xf] %v5630_v47  ;;  %v5758_v47 = vld [vmem:[%s8640_s30 + $0x2b6c] sm:$0xf] }
 0x142   : > { %5633 = vst [vmem:[%s8645_s12 + $0x3d0] sm:$0xf] %v5632_v48  ;;  %v5760_v48 = vld [vmem:[%s8640_s30 + $0x2bd0] sm:$0xf] }
 0x143   : > { %5635 = vst [vmem:[%s8645_s12 + $0x3e4] sm:$0xf] %v5634_v49  ;;  %v5762_v49 = vld [vmem:[%s8640_s30 + $0x2c34] sm:$0xf] }
 0x144   : > { %5637 = vst [vmem:[%s8645_s12 + $0x3f8] sm:$0xf] %v5636_v50  ;;  %v5764_v50 = vld [vmem:[%s8640_s30 + $0x2c98] sm:$0xf] }
 0x145   : > { %5639 = vst [vmem:[%s8645_s12 + $0x40c] sm:$0xf] %v5638_v51  ;;  %v5766_v51 = vld [vmem:[%s8640_s30 + $0x2cfc] sm:$0xf] }
 0x146   : > { %5641 = vst [vmem:[%s8645_s12 + $0x420] sm:$0xf] %v5640_v52  ;;  %v5768_v52 = vld [vmem:[%s8640_s30 + $0x2d60] sm:$0xf] }
 0x147   : > { %5643 = vst [vmem:[%s8645_s12 + $0x434] sm:$0xf] %v5642_v53  ;;  %v5770_v53 = vld [vmem:[%s8640_s30 + $0x2dc4] sm:$0xf] }
 0x148   : > { %5645 = vst [vmem:[%s8645_s12 + $0x448] sm:$0xf] %v5644_v54  ;;  %v5772_v54 = vld [vmem:[%s8640_s30 + $0x2e28] sm:$0xf] }
 0x149   : > { %5647 = vst [vmem:[%s8645_s12 + $0x45c] sm:$0xf] %v5646_v55  ;;  %v5774_v55 = vld [vmem:[%s8640_s30 + $0x2e8c] sm:$0xf] }
 0x14a   : > { %5649 = vst [vmem:[%s8645_s12 + $0x470] sm:$0xf] %v5648_v56  ;;  %v5776_v56 = vld [vmem:[%s8640_s30 + $0x2ef0] sm:$0xf] }
 0x14b   : > { %5651 = vst [vmem:[%s8645_s12 + $0x484] sm:$0xf] %v5650_v57  ;;  %v5778_v57 = vld [vmem:[%s8640_s30 + $0x2f54] sm:$0xf] }
 0x14c   : > { %5653 = vst [vmem:[%s8645_s12 + $0x498] sm:$0xf] %v5652_v58  ;;  %v5780_v58 = vld [vmem:[%s8640_s30 + $0x2fb8] sm:$0xf] }
 0x14d   : > { %5655 = vst [vmem:[%s8645_s12 + $0x4ac] sm:$0xf] %v5654_v59  ;;  %v5782_v59 = vld [vmem:[%s8640_s30 + $0x301c] sm:$0xf] }
 0x14e   : > { %5657 = vst [vmem:[%s8645_s12 + $0x4c0] sm:$0xf] %v5656_v60  ;;  %v5784_v60 = vld [vmem:[%s8640_s30 + $0x3080] sm:$0xf] }
 0x14f   : > { %5659 = vst [vmem:[%s8645_s12 + $0x4d4] sm:$0xf] %v5658_v61  ;;  %v5786_v61 = vld [vmem:[%s8640_s30 + $0x30e4] sm:$0xf] }
 0x150   : > { %5661 = vst [vmem:[%s8645_s12 + $0x4e8] sm:$0xf] %v5660_v62  ;;  %v5788_v62 = vld [vmem:[%s8640_s30 + $0x3148] sm:$0xf] }
 0x151   : > { %5663 = vst [vmem:[%s8645_s12 + $0x4fc] sm:$0xf] %v5662_v63  ;;  %v5790_v63 = vld [vmem:[%s8640_s30 + $0x31ac] sm:$0xf] }
 0x152   : > { %5665 = vst [vmem:[%s8645_s12 + $0x510] sm:$0xf] %v5664_v0 }
 0x153   : > { %5667 = vst [vmem:[%s8645_s12 + $0x524] sm:$0xf] %v5666_v1 }
 0x154   : > { %5669 = vst [vmem:[%s8645_s12 + $0x538] sm:$0xf] %v5668_v2 }
 0x155   : > { %5671 = vst [vmem:[%s8645_s12 + $0x54c] sm:$0xf] %v5670_v3 }
 0x156   : > { %5673 = vst [vmem:[%s8645_s12 + $0x560] sm:$0xf] %v5672_v4 }
 0x157   : > { %5675 = vst [vmem:[%s8645_s12 + $0x574] sm:$0xf] %v5674_v5 }
 0x158   : > { %5677 = vst [vmem:[%s8645_s12 + $0x588] sm:$0xf] %v5676_v6 }
 0x159   : > { %5679 = vst [vmem:[%s8645_s12 + $0x59c] sm:$0xf] %v5678_v7 }
 0x15a   : > { %5681 = vst [vmem:[%s8645_s12 + $0x5b0] sm:$0xf] %v5680_v8 }
 0x15b   : > { %5683 = vst [vmem:[%s8645_s12 + $0x5c4] sm:$0xf] %v5682_v9 }
 0x15c   : > { %5685 = vst [vmem:[%s8645_s12 + $0x5d8] sm:$0xf] %v5684_v10 }
 0x15d   : > { %5687 = vst [vmem:[%s8645_s12 + $0x5ec] sm:$0xf] %v5686_v11 }
 0x15e   : > { %5689 = vst [vmem:[%s8645_s12 + $0x600] sm:$0xf] %v5688_v12 }
 0x15f   : > { %5691 = vst [vmem:[%s8645_s12 + $0x614] sm:$0xf] %v5690_v13 }
 0x160   : > { %5693 = vst [vmem:[%s8645_s12 + $0x628] sm:$0xf] %v5692_v14 }
 0x161   : > { %5695 = vst [vmem:[%s8645_s12 + $0x63c] sm:$0xf] %v5694_v15 }
 0x162   : > { %5697 = vst [vmem:[%s8645_s12 + $0x650] sm:$0xf] %v5696_v16 }
 0x163   : > { %5699 = vst [vmem:[%s8645_s12 + $0x664] sm:$0xf] %v5698_v17 }
 0x164   : > { %5701 = vst [vmem:[%s8645_s12 + $0x678] sm:$0xf] %v5700_v18 }
 0x165   : > { %5703 = vst [vmem:[%s8645_s12 + $0x68c] sm:$0xf] %v5702_v19 }
 0x166   : > { %5705 = vst [vmem:[%s8645_s12 + $0x6a0] sm:$0xf] %v5704_v20 }
 0x167   : > { %5707 = vst [vmem:[%s8645_s12 + $0x6b4] sm:$0xf] %v5706_v21 }
 0x168   : > { %5709 = vst [vmem:[%s8645_s12 + $0x6c8] sm:$0xf] %v5708_v22 }
 0x169   : > { %5711 = vst [vmem:[%s8645_s12 + $0x6dc] sm:$0xf] %v5710_v23 }
 0x16a   : > { %5713 = vst [vmem:[%s8645_s12 + $0x6f0] sm:$0xf] %v5712_v24 }
 0x16b   : > { %5715 = vst [vmem:[%s8645_s12 + $0x704] sm:$0xf] %v5714_v25 }
 0x16c   : > { %5717 = vst [vmem:[%s8645_s12 + $0x718] sm:$0xf] %v5716_v26 }
 0x16d   : > { %5719 = vst [vmem:[%s8645_s12 + $0x72c] sm:$0xf] %v5718_v27 }
 0x16e   : > { %5721 = vst [vmem:[%s8645_s12 + $0x740] sm:$0xf] %v5720_v28 }
 0x16f   : > { %5723 = vst [vmem:[%s8645_s12 + $0x754] sm:$0xf] %v5722_v29 }
 0x170   : > { %5725 = vst [vmem:[%s8645_s12 + $0x768] sm:$0xf] %v5724_v30 }
 0x171   : > { %5727 = vst [vmem:[%s8645_s12 + $0x77c] sm:$0xf] %v5726_v31 }
 0x172   : > { %5729 = vst [vmem:[%s8645_s12 + $0x790] sm:$0xf] %v5728_v32 }
 0x173   : > { %5731 = vst [vmem:[%s8645_s12 + $0x7a4] sm:$0xf] %v5730_v33 }
 0x174   : > { %5733 = vst [vmem:[%s8645_s12 + $0x7b8] sm:$0xf] %v5732_v34 }
 0x175   : > { %5735 = vst [vmem:[%s8645_s12 + $0x7cc] sm:$0xf] %v5734_v35 }
 0x176   : > { %5737 = vst [vmem:[%s8645_s12 + $0x7e0] sm:$0xf] %v5736_v36 }
 0x177   : > { %5739 = vst [vmem:[%s8645_s12 + $0x7f4] sm:$0xf] %v5738_v37 }
 0x178   : > { %5741 = vst [vmem:[%s8645_s12 + $0x808] sm:$0xf] %v5740_v38 }
 0x179   : > { %5743 = vst [vmem:[%s8645_s12 + $0x81c] sm:$0xf] %v5742_v39 }
 0x17a   : > { %5745 = vst [vmem:[%s8645_s12 + $0x830] sm:$0xf] %v5744_v40 }
 0x17b   : > { %5747 = vst [vmem:[%s8645_s12 + $0x844] sm:$0xf] %v5746_v41 }
 0x17c   : > { %5749 = vst [vmem:[%s8645_s12 + $0x858] sm:$0xf] %v5748_v42 }
 0x17d   : > { %5751 = vst [vmem:[%s8645_s12 + $0x86c] sm:$0xf] %v5750_v43 }
 0x17e   : > { %5753 = vst [vmem:[%s8645_s12 + $0x880] sm:$0xf] %v5752_v44 }
 0x17f   : > { %5755 = vst [vmem:[%s8645_s12 + $0x894] sm:$0xf] %v5754_v45 }
 0x180   : > { %5757 = vst [vmem:[%s8645_s12 + $0x8a8] sm:$0xf] %v5756_v46 }
 0x181   : > { %5759 = vst [vmem:[%s8645_s12 + $0x8bc] sm:$0xf] %v5758_v47 }
 0x182   : > { %5761 = vst [vmem:[%s8645_s12 + $0x8d0] sm:$0xf] %v5760_v48 }
 0x183   : > { %5763 = vst [vmem:[%s8645_s12 + $0x8e4] sm:$0xf] %v5762_v49 }
 0x184   : > { %5765 = vst [vmem:[%s8645_s12 + $0x8f8] sm:$0xf] %v5764_v50 }
 0x185   : > { %5767 = vst [vmem:[%s8645_s12 + $0x90c] sm:$0xf] %v5766_v51 }
 0x186   : > { %5769 = vst [vmem:[%s8645_s12 + $0x920] sm:$0xf] %v5768_v52 }
 0x187   : > { %5771 = vst [vmem:[%s8645_s12 + $0x934] sm:$0xf] %v5770_v53 }
 0x188   : > { %5773 = vst [vmem:[%s8645_s12 + $0x948] sm:$0xf] %v5772_v54 }
 0x189   : > { %5775 = vst [vmem:[%s8645_s12 + $0x95c] sm:$0xf] %v5774_v55 }
 0x18a   : > { %5777 = vst [vmem:[%s8645_s12 + $0x970] sm:$0xf] %v5776_v56 }
 0x18b   : > { %5779 = vst [vmem:[%s8645_s12 + $0x984] sm:$0xf] %v5778_v57 }
 0x18c   : > { %5781 = vst [vmem:[%s8645_s12 + $0x998] sm:$0xf] %v5780_v58 }
 0x18d   : > { %5783 = vst [vmem:[%s8645_s12 + $0x9ac] sm:$0xf] %v5782_v59 }
 0x18e   : > { %5785 = vst [vmem:[%s8645_s12 + $0x9c0] sm:$0xf] %v5784_v60 }
 0x18f   : > { %5787 = vst [vmem:[%s8645_s12 + $0x9d4] sm:$0xf] %v5786_v61 }
 0x190   : > { %5789 = vst [vmem:[%s8645_s12 + $0x9e8] sm:$0xf] %v5788_v62 }
 0x191   : > { %5791 = vst [vmem:[%s8645_s12 + $0x9fc] sm:$0xf] %v5790_v63 }
 0x192 PF: > { %p5792_p5 = scmp.ge.s32.totalorder %s8539_s19, 1  ;;  %p1136_p6 = scmp.lt.s32.totalorder %s8539_s19, 6 }
 0x194   : > { %p1137_p7 = pnand %p5792_p5, %p1136_p6 }
 0x195   : > { %s1143_s13 = sand.u32 (!%p1137_p7), 1, %s8531_s17   ;;  %s1186_s14 = smul.u32 (!%p1137_p7), 5, %s8620_s20 }
 0x196   : > { %1140 = sbr.rel (%p1137_p7) target bundleno = 1334 (0x536), region = 74  ;;  %p5793_p9 = scmp.ne.s32.totalorder (!%p1137_p7), %s8620_s20, 0 }
 0x197   : > { %s8364_s15 = smul.u32 (!%p1137_p7), 2560, %s1143_s13  ;;  %p1187_p8 = scmp.lt.s32.totalorder (!%p1137_p7), %s1186_s14, 24 }
 0x199   : > { %s9428_s27 = scalar_lea.vmem (!%p1137_p7), [#allocation3], %s8364_s15 }
 0x19b   : > { %s11432_s14 = smov (!%p1187_p8, %s1186_s14), 24  ;;  %1199 = sbr.rel (%p5793_p9) target bundleno = 860 (0x35c), region = 82 }
 0x19c   : > { %s9422_s23 = scalar_lea.vmem %s11422_s7, %s11432_s14 }
 0x1a0   : > { %v5852_v0 = vld [vmem:[%s11417_s2 + $0x70] sm:$0xf]  ;;  %v7866_v1 = vld [vmem:[%s11417_s2 + $0x74] sm:$0xf0]  ;;  %v5844_v11 = vld [vmem:[%s11417_s2 + $0x60] sm:$0xf] }
 0x1a1   : > { %v5916_v2 = vld [vmem:[%s11417_s2 + $0xf0] sm:$0xf]  ;;  %v5853_v3 = vor.u32 %v7866_v1, %v5852_v0  ;;  %v7882_v4 = vld [vmem:[%s11417_s2 + $0xf4] sm:$0xf0]  ;;  %v7864_v13 = vld [vmem:[%s11417_s2 + $0x64] sm:$0xf0] }
 0x1a2   : > { %v5980_v5 = vld [vmem:[%s11417_s2 + $0x170] sm:$0xf]  ;;  %v7898_v6 = vld [vmem:[%s11417_s2 + $0x174] sm:$0xf0]  ;;  %v5917_v7 = vor.u32 %v7882_v4, %v5916_v2  ;;  %v5908_v14 = vld [vmem:[%s11417_s2 + $0xe0] sm:$0xf]  ;;  %v5845_v16 = vor.u32 %v7864_v13, %v5844_v11 }
 0x1a3   : > { %v5981_v8 = vor.u32 %v7898_v6, %v5980_v5  ;;  %v6044_v9 = vld [vmem:[%s11417_s2 + $0x1f0] sm:$0xf]  ;;  %v7914_v10 = vld [vmem:[%s11417_s2 + $0x1f4] sm:$0xf0]  ;;  %1993 = vmatpush.bf16.msra.mxu0 %v5853_v3  ;;  %v7880_v15 = vld [vmem:[%s11417_s2 + $0xe4] sm:$0xf0] }
 0x1a4   : > { %v6045_v12 = vor.u32 %v7914_v10, %v6044_v9  ;;  %2006 = vmatpush.bf16.msra.mxu1 %v5917_v7  ;;  %v5909_v17 = vor.u32 %v7880_v15, %v5908_v14  ;;  %v5972_v18 = vld [vmem:[%s11417_s2 + $0x160] sm:$0xf]  ;;  %v7896_v19 = vld [vmem:[%s11417_s2 + $0x164] sm:$0xf0]  ;;  %v5836_v23 = vld [vmem:[%s11417_s2 + $0x50] sm:$0xf] }
 0x1a5   : > { %2019 = vmatpush.bf16.msra.mxu2 %v5981_v8  ;;  %v6036_v20 = vld [vmem:[%s11417_s2 + $0x1e0] sm:$0xf]  ;;  %v5973_v21 = vor.u32 %v7896_v19, %v5972_v18  ;;  %v7912_v22 = vld [vmem:[%s11417_s2 + $0x1e4] sm:$0xf0]  ;;  %v7862_v24 = vld [vmem:[%s11417_s2 + $0x54] sm:$0xf0] }
 0x1a6   : > { %2032 = vmatpush.bf16.msra.mxu3 %v6045_v12  ;;  %v6037_v25 = vor.u32 %v7912_v22, %v6036_v20  ;;  %v5900_v26 = vld [vmem:[%s11417_s2 + $0xd0] sm:$0xf]  ;;  %v7878_v27 = vld [vmem:[%s11417_s2 + $0xd4] sm:$0xf0]  ;;  %v5837_v29 = vor.u32 %v7862_v24, %v5836_v23  ;;  %v5828_v35 = vld [vmem:[%s11417_s2 + $0x40] sm:$0xf] }
 0x1a7   : > { %v5964_v28 = vld [vmem:[%s11417_s2 + $0x150] sm:$0xf]  ;;  %1994 = vmatpush.bf16.msra.mxu0 %v5845_v16  ;;  %v7894_v30 = vld [vmem:[%s11417_s2 + $0x154] sm:$0xf0]  ;;  %v5901_v33 = vor.u32 %v7878_v27, %v5900_v26  ;;  %v7860_v36 = vld [vmem:[%s11417_s2 + $0x44] sm:$0xf0] }
 0x1a8   : > { %v6028_v31 = vld [vmem:[%s11417_s2 + $0x1d0] sm:$0xf]  ;;  %v7910_v32 = vld [vmem:[%s11417_s2 + $0x1d4] sm:$0xf0]  ;;  %2007 = vmatpush.bf16.msra.mxu1 %v5909_v17  ;;  %v5965_v34 = vor.u32 %v7894_v30, %v5964_v28  ;;  %v5892_v37 = vld [vmem:[%s11417_s2 + $0xc0] sm:$0xf]  ;;  %v5829_v44 = vor.u32 %v7860_v36, %v5828_v35 }
 0x1a9   : > { %2020 = vmatpush.bf16.msra.mxu2 %v5973_v21  ;;  %v6029_v38 = vor.u32 %v7910_v32, %v6028_v31  ;;  %v7876_v39 = vld [vmem:[%s11417_s2 + $0xc4] sm:$0xf0]  ;;  %v5956_v40 = vld [vmem:[%s11417_s2 + $0x140] sm:$0xf]  ;;  %v5820_v47 = vld [vmem:[%s11417_s2 + $0x30] sm:$0xf] }
 0x1aa   : > { %2033 = vmatpush.bf16.msra.mxu3 %v6037_v25  ;;  %v7892_v41 = vld [vmem:[%s11417_s2 + $0x144] sm:$0xf0]  ;;  %v6020_v42 = vld [vmem:[%s11417_s2 + $0x1c0] sm:$0xf]  ;;  %v5893_v45 = vor.u32 %v7876_v39, %v5892_v37  ;;  %v7858_v48 = vld [vmem:[%s11417_s2 + $0x34] sm:$0xf0] }
 0x1ab   : > { %v7908_v43 = vld [vmem:[%s11417_s2 + $0x1c4] sm:$0xf0]  ;;  %1995 = vmatpush.bf16.msra.mxu0 %v5837_v29  ;;  %v5957_v46 = vor.u32 %v7892_v41, %v5956_v40  ;;  %v5884_v49 = vld [vmem:[%s11417_s2 + $0xb0] sm:$0xf]  ;;  %v7874_v51 = vld [vmem:[%s11417_s2 + $0xb4] sm:$0xf0]  ;;  %v5821_v56 = vor.u32 %v7858_v48, %v5820_v47 }
 0x1ac   : > { %2008 = vmatpush.bf16.msra.mxu1 %v5901_v33  ;;  %v6021_v50 = vor.u32 %v7908_v43, %v6020_v42  ;;  %v5948_v52 = vld [vmem:[%s11417_s2 + $0x130] sm:$0xf]  ;;  %v7890_v53 = vld [vmem:[%s11417_s2 + $0x134] sm:$0xf0]  ;;  %v5885_v57 = vor.u32 %v7874_v51, %v5884_v49  ;;  %v5812_v59 = vld [vmem:[%s11417_s2 + $0x20] sm:$0xf] }
 0x1ad   : > { %2021 = vmatpush.bf16.msra.mxu2 %v5965_v34  ;;  %v6012_v54 = vld [vmem:[%s11417_s2 + $0x1b0] sm:$0xf]  ;;  %v7906_v55 = vld [vmem:[%s11417_s2 + $0x1b4] sm:$0xf0]  ;;  %v5949_v58 = vor.u32 %v7890_v53, %v5948_v52  ;;  %v7856_v60 = vld [vmem:[%s11417_s2 + $0x24] sm:$0xf0] }
 0x1ae   : > { %2034 = vmatpush.bf16.msra.mxu3 %v6029_v38  ;;  %v5876_v61 = vld [vmem:[%s11417_s2 + $0xa0] sm:$0xf]  ;;  %v6013_v62 = vor.u32 %v7906_v55, %v6012_v54  ;;  %v7872_v63 = vld [vmem:[%s11417_s2 + $0xa4] sm:$0xf0]  ;;  %v5813_v4 = vor.u32 %v7856_v60, %v5812_v59  ;;  %v5804_v7 = vld [vmem:[%s11417_s2 + $0x10] sm:$0xf] }
 0x1af   : > { %1996 = vmatpush.bf16.msra.mxu0 %v5829_v44  ;;  %v5940_v0 = vld [vmem:[%s11417_s2 + $0x120] sm:$0xf]  ;;  %v7888_v1 = vld [vmem:[%s11417_s2 + $0x124] sm:$0xf0]  ;;  %v5877_v5 = vor.u32 %v7872_v63, %v5876_v61  ;;  %v7854_v8 = vld [vmem:[%s11417_s2 + $0x14] sm:$0xf0] }
 0x1b0   : > { %2009 = vmatpush.bf16.msra.mxu1 %v5893_v45  ;;  %v6004_v2 = vld [vmem:[%s11417_s2 + $0x1a0] sm:$0xf]  ;;  %v7904_v3 = vld [vmem:[%s11417_s2 + $0x1a4] sm:$0xf0]  ;;  %v5941_v6 = vor.u32 %v7888_v1, %v5940_v0  ;;  %v5868_v9 = vld [vmem:[%s11417_s2 + $0x90] sm:$0xf]  ;;  %v5805_v16 = vor.u32 %v7854_v8, %v5804_v7 }
 0x1b1   : > { %2022 = vmatpush.bf16.msra.mxu2 %v5957_v46  ;;  %v6005_v10 = vor.u32 %v7904_v3, %v6004_v2  ;;  %v7870_v11 = vld [vmem:[%s11417_s2 + $0x94] sm:$0xf0]  ;;  %v5932_v12 = vld [vmem:[%s11417_s2 + $0x110] sm:$0xf]  ;;  %v5796_v17 = vld [vmem:[%s11417_s2] sm:$0xf] }
 0x1b2   : > { %2035 = vmatpush.bf16.msra.mxu3 %v6021_v50  ;;  %v7886_v13 = vld [vmem:[%s11417_s2 + $0x114] sm:$0xf0]  ;;  %v5996_v14 = vld [vmem:[%s11417_s2 + $0x190] sm:$0xf]  ;;  %v7852_v18 = vld [vmem:[%s11417_s2 + $0x4] sm:$0xf0]  ;;  %v5869_v19 = vor.u32 %v7870_v11, %v5868_v9 }
 0x1b3   : > { %1997 = vmatpush.bf16.msra.mxu0 %v5821_v56  ;;  %v7902_v15 = vld [vmem:[%s11417_s2 + $0x194] sm:$0xf0]  ;;  %v5933_v20 = vor.u32 %v7886_v13, %v5932_v12  ;;  %v5860_v21 = vld [vmem:[%s11417_s2 + $0x80] sm:$0xf]  ;;  %v7868_v22 = vld [vmem:[%s11417_s2 + $0x84] sm:$0xf0]  ;;  %v5797_v31 = vor.u32 %v7852_v18, %v5796_v17 }
 0x1b4   : > { %2010 = vmatpush.bf16.msra.mxu1 %v5885_v57  ;;  %v5924_v23 = vld [vmem:[%s11417_s2 + $0x100] sm:$0xf]  ;;  %v5997_v24 = vor.u32 %v7902_v15, %v5996_v14  ;;  %v7884_v25 = vld [vmem:[%s11417_s2 + $0x104] sm:$0xf0]  ;;  %v6108_v28 = vld [vmem:[%s11417_s2 + $0x270] sm:$0xf]  ;;  %v5861_v35 = vor.u32 %v7868_v22, %v5860_v21 }
 0x1b5   : > { %2023 = vmatpush.bf16.msra.mxu2 %v5949_v58  ;;  %v5988_v26 = vld [vmem:[%s11417_s2 + $0x180] sm:$0xf]  ;;  %v7900_v27 = vld [vmem:[%s11417_s2 + $0x184] sm:$0xf0]  ;;  %v7930_v29 = vld [vmem:[%s11417_s2 + $0x274] sm:$0xf0]  ;;  %v5925_v36 = vor.u32 %v7884_v25, %v5924_v23 }
 0x1b6   : > { %2036 = vmatpush.bf16.msra.mxu3 %v6013_v62  ;;  %v6172_v30 = vld [vmem:[%s11417_s2 + $0x2f0] sm:$0xf]  ;;  %v7946_v32 = vld [vmem:[%s11417_s2 + $0x2f4] sm:$0xf0]  ;;  %v5989_v39 = vor.u32 %v7900_v27, %v5988_v26  ;;  %v6109_v40 = vor.u32 %v7930_v29, %v6108_v28  ;;  %v6100_v43 = vld [vmem:[%s11417_s2 + $0x260] sm:$0xf] }
 0x1b7   : > { %1998 = vmatpush.bf16.msra.mxu0 %v5813_v4  ;;  %v6236_v33 = vld [vmem:[%s11417_s2 + $0x370] sm:$0xf]  ;;  %v7962_v34 = vld [vmem:[%s11417_s2 + $0x374] sm:$0xf0]  ;;  %v6173_v41 = vor.u32 %v7946_v32, %v6172_v30  ;;  %v7928_v44 = vld [vmem:[%s11417_s2 + $0x264] sm:$0xf0] }
 0x1b8   : > { %2011 = vmatpush.bf16.msra.mxu1 %v5877_v5  ;;  %v6300_v37 = vld [vmem:[%s11417_s2 + $0x3f0] sm:$0xf]  ;;  %v7978_v38 = vld [vmem:[%s11417_s2 + $0x3f4] sm:$0xf0]  ;;  %v6237_v42 = vor.u32 %v7962_v34, %v6236_v33  ;;  %v6164_v45 = vld [vmem:[%s11417_s2 + $0x2e0] sm:$0xf]  ;;  %v6101_v52 = vor.u32 %v7928_v44, %v6100_v43 }
 0x1b9   : > { %2024 = vmatpush.bf16.msra.mxu2 %v5941_v6  ;;  %v6301_v46 = vor.u32 %v7978_v38, %v6300_v37  ;;  %v7944_v47 = vld [vmem:[%s11417_s2 + $0x2e4] sm:$0xf0]  ;;  %v6228_v48 = vld [vmem:[%s11417_s2 + $0x360] sm:$0xf]  ;;  %v6092_v55 = vld [vmem:[%s11417_s2 + $0x250] sm:$0xf] }
 0x1ba   : > { %2037 = vmatpush.bf16.msra.mxu3 %v6005_v10  ;;  %v7960_v49 = vld [vmem:[%s11417_s2 + $0x364] sm:$0xf0]  ;;  %v6292_v50 = vld [vmem:[%s11417_s2 + $0x3e0] sm:$0xf]  ;;  %v6165_v53 = vor.u32 %v7944_v47, %v6164_v45  ;;  %v7926_v56 = vld [vmem:[%s11417_s2 + $0x254] sm:$0xf0] }
 0x1bb   : > { %1999 = vmatpush.bf16.msra.mxu0 %v5805_v16  ;;  %v7976_v51 = vld [vmem:[%s11417_s2 + $0x3e4] sm:$0xf0]  ;;  %v6229_v54 = vor.u32 %v7960_v49, %v6228_v48  ;;  %v6156_v57 = vld [vmem:[%s11417_s2 + $0x2d0] sm:$0xf]  ;;  %v7942_v59 = vld [vmem:[%s11417_s2 + $0x2d4] sm:$0xf0]  ;;  %v6093_v0 = vor.u32 %v7926_v56, %v6092_v55 }
 0x1bc   : > { %2012 = vmatpush.bf16.msra.mxu1 %v5869_v19  ;;  %v6293_v58 = vor.u32 %v7976_v51, %v6292_v50  ;;  %v6220_v60 = vld [vmem:[%s11417_s2 + $0x350] sm:$0xf]  ;;  %v7958_v61 = vld [vmem:[%s11417_s2 + $0x354] sm:$0xf0]  ;;  %v6084_v1 = vld [vmem:[%s11417_s2 + $0x240] sm:$0xf]  ;;  %v6157_v3 = vor.u32 %v7942_v59, %v6156_v57 }
 0x1bd   : > { %2025 = vmatpush.bf16.msra.mxu2 %v5933_v20  ;;  %v6284_v62 = vld [vmem:[%s11417_s2 + $0x3d0] sm:$0xf]  ;;  %v7974_v63 = vld [vmem:[%s11417_s2 + $0x3d4] sm:$0xf0]  ;;  %v1200_v2 = vld [vmem:[%s11415_s0] sm:$0xff]  ;;  %v6221_v4 = vor.u32 %v7958_v61, %v6220_v60  ;;  %vm2736_vm0 = vcmask 1042434  }
 0x1be   : > { %2038 = vmatpush.bf16.msra.mxu3 %v5997_v24  ;;  %v7924_v5 = vld [vmem:[%s11417_s2 + $0x244] sm:$0xf0]  ;;  %v6148_v6 = vld [vmem:[%s11417_s2 + $0x2c0] sm:$0xf]  ;;  %1336 = vst [vmem:[#allocation1] ss:$9 sm:$0xff] %v1200_v2  ;;  %v6285_v7 = vor.u32 %v7974_v63, %v6284_v62 }
 0x1bf   : > { %2000 = vmatpush.bf16.msra.mxu0 %v5797_v31  ;;  %v7940_v8 = vld [vmem:[%s11417_s2 + $0x2c4] sm:$0xf0]  ;;  %v6212_v9 = vld [vmem:[%s11417_s2 + $0x340] sm:$0xf]  ;;  %v6085_v13 = vor.u32 %v7924_v5, %v6084_v1  ;;  %v6076_v16 = vld [vmem:[%s11417_s2 + $0x230] sm:$0xf] }
 0x1c0   : > { %2013 = vmatpush.bf16.msra.mxu1 %v5861_v35  ;;  %v7956_v10 = vld [vmem:[%s11417_s2 + $0x344] sm:$0xf0]  ;;  %v6276_v11 = vld [vmem:[%s11417_s2 + $0x3c0] sm:$0xf]  ;;  %v6149_v14 = vor.u32 %v7940_v8, %v6148_v6  ;;  %v7922_v17 = vld [vmem:[%s11417_s2 + $0x234] sm:$0xf0] }
 0x1c1   : > { %2026 = vmatpush.bf16.msra.mxu2 %v5925_v36  ;;  %v7972_v12 = vld [vmem:[%s11417_s2 + $0x3c4] sm:$0xf0]  ;;  %v6213_v15 = vor.u32 %v7956_v10, %v6212_v9  ;;  %v6140_v18 = vld [vmem:[%s11417_s2 + $0x2b0] sm:$0xf]  ;;  %v7938_v20 = vld [vmem:[%s11417_s2 + $0x2b4] sm:$0xf0]  ;;  %v6077_v26 = vor.u32 %v7922_v17, %v6076_v16 }
 0x1c2   : > { %2039 = vmatpush.bf16.msra.mxu3 %v5989_v39  ;;  %v6277_v19 = vor.u32 %v7972_v12, %v6276_v11  ;;  %v6204_v21 = vld [vmem:[%s11417_s2 + $0x330] sm:$0xf]  ;;  %v7954_v22 = vld [vmem:[%s11417_s2 + $0x334] sm:$0xf0]  ;;  %v6068_v25 = vld [vmem:[%s11417_s2 + $0x220] sm:$0xf]  ;;  %v6141_v30 = vor.u32 %v7938_v20, %v6140_v18 }
 0x1c3   : > { %2045 = vmatpush.bf16.msrb.mxu0 %v6109_v40  ;;  %v6268_v23 = vld [vmem:[%s11417_s2 + $0x3b0] sm:$0xf]  ;;  %v7970_v24 = vld [vmem:[%s11417_s2 + $0x3b4] sm:$0xf0]  ;;  %v6205_v31 = vor.u32 %v7954_v22, %v6204_v21  ;;  %v7920_v32 = vld [vmem:[%s11417_s2 + $0x224] sm:$0xf0] }
 0x1c4   : > { %2058 = vmatpush.bf16.msrb.mxu1 %v6173_v41  ;;  %v6132_v33 = vld [vmem:[%s11417_s2 + $0x2a0] sm:$0xf]  ;;  %v6269_v35 = vor.u32 %v7970_v24, %v6268_v23  ;;  %v7936_v36 = vld [vmem:[%s11417_s2 + $0x2a4] sm:$0xf0]  ;;  %v6069_v41 = vor.u32 %v7920_v32, %v6068_v25  ;;  %v6060_v44 = vld [vmem:[%s11417_s2 + $0x210] sm:$0xf] }
 0x1c5   : > { %2071 = vmatpush.bf16.msrb.mxu2 %v6237_v42  ;;  %v9749_v27 = vld [vmem:[#allocation1 + $0x12] sm:$0xff]  ;;  %v9751_v28 = vld [vmem:[#allocation1] sm:$0xff]  ;;  %v9761_v34 = vld [vmem:[#allocation1 + $0x9] sm:$0xff]  ;;  %v6133_v42 = vor.u32 %v7936_v36, %v6132_v33  ;;  %vm2732_vm1 = vcmask 1040384   ;;  %vm2740_vm2 = vcmask 1041408   ;;  %vm2742_vm3 = vcmask 1044484  }
 0x1c6   : > { %2084 = vmatpush.bf16.msrb.mxu3 %v6301_v46  ;;  %v9753_v29 = vld [vmem:[#allocation1 + $0x1b] sm:$0xff]  ;;  %v7952_v38 = vld [vmem:[%s11417_s2 + $0x324] sm:$0xf0]  ;;  %2027 = vmatmul.bf16.vlgmr.msra.gmra.mxu2 %v9749_v27  ;;  %v6124_v46 = vld [vmem:[%s11417_s2 + $0x290] sm:$0xf]  ;;  %vm2746_vm4 = vcmask 1046534  }
 0x1c7   : > { %2046 = vmatpush.bf16.msrb.mxu0 %v6101_v52  ;;  %v6196_v37 = vld [vmem:[%s11417_s2 + $0x320] sm:$0xf]  ;;  %v7968_v40 = vld [vmem:[%s11417_s2 + $0x3a4] sm:$0xf0]  ;;  %2040 = vmatmul.bf16.vlgmr.msra.gmra.mxu3 %v9753_v29  ;;  %v7918_v45 = vld [vmem:[%s11417_s2 + $0x214] sm:$0xf0] }
 0x1c8   : > { %2059 = vmatpush.bf16.msrb.mxu1 %v6165_v53  ;;  %v6260_v39 = vld [vmem:[%s11417_s2 + $0x3a0] sm:$0xf]  ;;  %2001 = vmatmul.bf16.vlgmr.msra.gmra.mxu0 %v9751_v28  ;;  %v6197_v43 = vor.u32 %v7952_v38, %v6196_v37  ;;  %v7934_v48 = vld [vmem:[%s11417_s2 + $0x294] sm:$0xf0]  ;;  %v6188_v49 = vld [vmem:[%s11417_s2 + $0x310] sm:$0xf]  ;;  %v6061_v53 = vor.u32 %v7918_v45, %v6060_v44 }
 0x1c9   : > { %2072 = vmatpush.bf16.msrb.mxu2 %v6229_v54  ;;  %2014 = vmatmul.bf16.vlgmr.msra.gmra.mxu1 %v9761_v34  ;;  %v6261_v47 = vor.u32 %v7968_v40, %v6260_v39  ;;  %v7950_v50 = vld [vmem:[%s11417_s2 + $0x314] sm:$0xf0]  ;;  %v6252_v51 = vld [vmem:[%s11417_s2 + $0x390] sm:$0xf]  ;;  %v6052_v54 = vld [vmem:[%s11417_s2 + $0x200] sm:$0xf]  ;;  %v6125_v56 = vor.u32 %v7934_v48, %v6124_v46 }
 0x1ca   : > { %2085 = vmatpush.bf16.msrb.mxu3 %v6293_v58  ;;  %v7966_v52 = vld [vmem:[%s11417_s2 + $0x394] sm:$0xf0]  ;;  %v7916_v55 = vld [vmem:[%s11417_s2 + $0x204] sm:$0xf0]  ;;  %v6189_v57 = vor.u32 %v7950_v50, %v6188_v49  ;;  %v6116_v58 = vld [vmem:[%s11417_s2 + $0x280] sm:$0xf] }
 0x1cb   : > { %2047 = vmatpush.bf16.msrb.mxu0 %v6093_v0  ;;  %v7932_v59 = vld [vmem:[%s11417_s2 + $0x284] sm:$0xf0]  ;;  %v6180_v60 = vld [vmem:[%s11417_s2 + $0x300] sm:$0xf]  ;;  %v6253_v61 = vor.u32 %v7966_v52, %v6252_v51  ;;  %v7865_v1 = vld [vmem:[%s11417_s2 + $0x74] sm:$0xf] }
 0x1cc   : > { %2060 = vmatpush.bf16.msrb.mxu1 %v6157_v3  ;;  %v7948_v62 = vld [vmem:[%s11417_s2 + $0x304] sm:$0xf0]  ;;  %v6244_v63 = vld [vmem:[%s11417_s2 + $0x380] sm:$0xf]  ;;  %v5854_v2 = vld [vmem:[%s11417_s2 + $0x78] sm:$0xf0]  ;;  %v6117_v8 = vor.u32 %v7932_v59, %v6116_v58 }
 0x1cd   : > { %2073 = vmatpush.bf16.msrb.mxu2 %v6221_v4  ;;  %v7964_v0 = vld [vmem:[%s11417_s2 + $0x384] sm:$0xf0]  ;;  %v7881_v3 = vld [vmem:[%s11417_s2 + $0xf4] sm:$0xf]  ;;  %v6053_v4 = vor.u32 %v7916_v55, %v6052_v54  ;;  %v5918_v5 = vld [vmem:[%s11417_s2 + $0xf8] sm:$0xf0]  ;;  %v6181_v9 = vor.u32 %v7948_v62, %v6180_v60 }
 0x1ce   : > { %2086 = vmatpush.bf16.msrb.mxu3 %v6285_v7  ;;  %v7897_v6 = vld [vmem:[%s11417_s2 + $0x174] sm:$0xf]  ;;  %v5982_v7 = vld [vmem:[%s11417_s2 + $0x178] sm:$0xf0]  ;;  %v6245_v12 = vor.u32 %v7964_v0, %v6244_v63  ;;  %v7863_v16 = vld [vmem:[%s11417_s2 + $0x64] sm:$0xf] }
 0x1cf   : > { %2048 = vmatpush.bf16.msrb.mxu0 %v6085_v13  ;;  %v7913_v10 = vld [vmem:[%s11417_s2 + $0x1f4] sm:$0xf]  ;;  %v6046_v11 = vld [vmem:[%s11417_s2 + $0x1f8] sm:$0xf0]  ;;  %v5857_v13 = vor.u32 %v7865_v1, %v5854_v2  ;;  %v5846_v17 = vld [vmem:[%s11417_s2 + $0x68] sm:$0xf0] }
 0x1d0   : > { %2061 = vmatpush.bf16.msrb.mxu1 %v6149_v14  ;;  %v5921_v14 = vor.u32 %v7881_v3, %v5918_v5  ;;  %v7879_v18 = vld [vmem:[%s11417_s2 + $0xe4] sm:$0xf]  ;;  %v5910_v20 = vld [vmem:[%s11417_s2 + $0xe8] sm:$0xf0]  ;;  %v9878_v25 = vld [vmem:[#allocation1 + $0x36] sm:$0xff]  ;;  %vm2750_vm5 = vcmask 1045508  }
 0x1d1   : > { %2074 = vmatpush.bf16.msrb.mxu2 %v6213_v15  ;;  %v5985_v15 = vor.u32 %v7897_v6, %v5982_v7  ;;  %v7895_v21 = vld [vmem:[%s11417_s2 + $0x164] sm:$0xf]  ;;  %v5974_v22 = vld [vmem:[%s11417_s2 + $0x168] sm:$0xf0]  ;;  %v5913_v33 = vor.u32 %v7879_v18, %v5910_v20  ;;  %v5838_v36 = vld [vmem:[%s11417_s2 + $0x58] sm:$0xf0] }
 0x1d2   : > { %2087 = vmatpush.bf16.msrb.mxu3 %v6277_v19  ;;  %v6049_v19 = vor.u32 %v7913_v10, %v6046_v11  ;;  %v7911_v23 = vld [vmem:[%s11417_s2 + $0x1e4] sm:$0xf]  ;;  %v6038_v24 = vld [vmem:[%s11417_s2 + $0x1e8] sm:$0xf0]  ;;  %v7877_v37 = vld [vmem:[%s11417_s2 + $0xd4] sm:$0xf] }
 0x1d3   : > { %2049 = vmatpush.bf16.msrb.mxu0 %v6077_v26  ;;  %v5849_v26 = vor.u32 %v7863_v16, %v5846_v17  ;;  %v9885_v32 = vld [vmem:[#allocation1 + $0x3f] sm:$0xff]  ;;  %v9893_v38 = vld [vmem:[#allocation1 + $0x2d] sm:$0xff]  ;;  %v6041_v39 = vor.u32 %v7911_v23, %v6038_v24  ;;  %vm2752_vm6 = vcmask 1043456  }
 0x1d4   : > { %2062 = vmatpush.bf16.msrb.mxu1 %v6141_v30  ;;  %v7861_v30 = vld [vmem:[%s11417_s2 + $0x54] sm:$0xf]  ;;  %v5902_v40 = vld [vmem:[%s11417_s2 + $0xd8] sm:$0xf0]  ;;  %v7859_v48 = vld [vmem:[%s11417_s2 + $0x44] sm:$0xf] }
 0x1d5   : > { %2075 = vmatpush.bf16.msrb.mxu2 %v6205_v31  ;;  %v9883_v31 = vld [vmem:[#allocation1 + $0x24] sm:$0xff]  ;;  %v6030_v44 = vld [vmem:[%s11417_s2 + $0x1d8] sm:$0xf0]  ;;  %v5841_v45 = vor.u32 %v7861_v30, %v5838_v36  ;;  %v5905_v46 = vor.u32 %v7877_v37, %v5902_v40  ;;  %v5830_v49 = vld [vmem:[%s11417_s2 + $0x48] sm:$0xf0] }
 0x1d6   : > { %2088 = vmatpush.bf16.msrb.mxu3 %v6269_v35  ;;  %v5977_v35 = vor.u32 %v7895_v21, %v5974_v22  ;;  %v7875_v50 = vld [vmem:[%s11417_s2 + $0xc4] sm:$0xf]  ;;  %v5894_v52 = vld [vmem:[%s11417_s2 + $0xc8] sm:$0xf0]  ;;  %v7857_v60 = vld [vmem:[%s11417_s2 + $0x34] sm:$0xf] }
 0x1d7   : > { %2050 = vmatpush.bf16.msrb.mxu0 %v6069_v41  ;;  %v7893_v41 = vld [vmem:[%s11417_s2 + $0x154] sm:$0xf]  ;;  %v5958_v54 = vld [vmem:[%s11417_s2 + $0x148] sm:$0xf0]  ;;  %v7907_v55 = vld [vmem:[%s11417_s2 + $0x1c4] sm:$0xf]  ;;  %v5897_v58 = vor.u32 %v7875_v50, %v5894_v52 }
 0x1d8   : > { %2063 = vmatpush.bf16.msrb.mxu1 %v6133_v42  ;;  %v5966_v42 = vld [vmem:[%s11417_s2 + $0x158] sm:$0xf0]  ;;  %v7873_v62 = vld [vmem:[%s11417_s2 + $0xb4] sm:$0xf]  ;;  %v7871_v10 = vld [vmem:[%s11417_s2 + $0xa4] sm:$0xf] }
 0x1d9   : > { %2076 = vmatpush.bf16.msrb.mxu2 %v6197_v43  ;;  %v7909_v43 = vld [vmem:[%s11417_s2 + $0x1d4] sm:$0xf]  ;;  %v5886_v0 = vld [vmem:[%s11417_s2 + $0xb8] sm:$0xf0]  ;;  %v6006_v16 = vld [vmem:[%s11417_s2 + $0x1a8] sm:$0xf0] }
 0x1da   : > { %2089 = vmatpush.bf16.msrb.mxu3 %v6261_v47  ;;  %v5969_v47 = vor.u32 %v7893_v41, %v5966_v42  ;;  %v6033_v51 = vor.u32 %v7909_v43, %v6030_v44  ;;  %v7889_v1 = vld [vmem:[%s11417_s2 + $0x134] sm:$0xf]  ;;  %v5950_v2 = vld [vmem:[%s11417_s2 + $0x138] sm:$0xf0]  ;;  %v5889_v6 = vor.u32 %v7873_v62, %v5886_v0  ;;  %v7851_v37 = vld [vmem:[%s11417_s2 + $0x4] sm:$0xf] }
 0x1db   : > { %2051 = vmatpush.bf16.msrb.mxu0 %v6061_v53  ;;  %v7891_v53 = vld [vmem:[%s11417_s2 + $0x144] sm:$0xf]  ;;  %v7905_v3 = vld [vmem:[%s11417_s2 + $0x1b4] sm:$0xf]  ;;  %v5953_v7 = vor.u32 %v7889_v1, %v5950_v2  ;;  %v5806_v21 = vld [vmem:[%s11417_s2 + $0x18] sm:$0xf0] }
 0x1dc   : > { %2064 = vmatpush.bf16.msrb.mxu1 %v6125_v56  ;;  %v6022_v56 = vld [vmem:[%s11417_s2 + $0x1c8] sm:$0xf0]  ;;  %v5961_v59 = vor.u32 %v7891_v53, %v5958_v54  ;;  %v7853_v20 = vld [vmem:[%s11417_s2 + $0x14] sm:$0xf]  ;;  %v5870_v24 = vld [vmem:[%s11417_s2 + $0x98] sm:$0xf0] }
 0x1dd   : > { %2077 = vmatpush.bf16.msrb.mxu2 %v6189_v57  ;;  %v5833_v57 = vor.u32 %v7859_v48, %v5830_v49  ;;  %v6025_v63 = vor.u32 %v7907_v55, %v6022_v56  ;;  %v7869_v22 = vld [vmem:[%s11417_s2 + $0x94] sm:$0xf]  ;;  %v5934_v30 = vld [vmem:[%s11417_s2 + $0x118] sm:$0xf0]  ;;  %v5809_v36 = vor.u32 %v7853_v20, %v5806_v21  ;;  %v7867_v42 = vld [vmem:[%s11417_s2 + $0x84] sm:$0xf] }
 0x1de   : > { %2090 = vmatpush.bf16.msrb.mxu3 %v6253_v61  ;;  %v5822_v61 = vld [vmem:[%s11417_s2 + $0x38] sm:$0xf0]  ;;  %v5873_v40 = vor.u32 %v7869_v22, %v5870_v24  ;;  %v5862_v43 = vld [vmem:[%s11417_s2 + $0x88] sm:$0xf0]  ;;  %v7883_v44 = vld [vmem:[%s11417_s2 + $0x104] sm:$0xf] }
 0x1df   : > { %2052 = vmatpush.bf16.msrb.mxu0 %v6053_v4  ;;  %v6014_v4 = vld [vmem:[%s11417_s2 + $0x1b8] sm:$0xf0]  ;;  %v5825_v5 = vor.u32 %v7857_v60, %v5822_v61  ;;  %v5990_v48 = vld [vmem:[%s11417_s2 + $0x188] sm:$0xf0]  ;;  %v7929_v49 = vld [vmem:[%s11417_s2 + $0x274] sm:$0xf]  ;;  %v5865_v56 = vor.u32 %v7867_v42, %v5862_v43 }
 0x1e0   : > { %2065 = vmatpush.bf16.msrb.mxu1 %v6117_v8  ;;  %v7855_v8 = vld [vmem:[%s11417_s2 + $0x24] sm:$0xf]  ;;  %v6017_v11 = vor.u32 %v7905_v3, %v6014_v4  ;;  %v6110_v50 = vld [vmem:[%s11417_s2 + $0x278] sm:$0xf0]  ;;  %v7961_v54 = vld [vmem:[%s11417_s2 + $0x374] sm:$0xf] }
 0x1e1   : > { %2078 = vmatpush.bf16.msrb.mxu2 %v6181_v9  ;;  %v5814_v9 = vld [vmem:[%s11417_s2 + $0x28] sm:$0xf0]  ;;  %v6174_v53 = vld [vmem:[%s11417_s2 + $0x2f8] sm:$0xf0]  ;;  %v6113_v61 = vor.u32 %v7929_v49, %v6110_v50  ;;  %v7927_v0 = vld [vmem:[%s11417_s2 + $0x264] sm:$0xf] }
 0x1e2   : > { %2091 = vmatpush.bf16.msrb.mxu3 %v6245_v12  ;;  %2053 = vmatmul.bf16.vlgmr.msrb.gmra.mxu0 %v9883_v31  ;;  %v5878_v12 = vld [vmem:[%s11417_s2 + $0xa8] sm:$0xf0]  ;;  %v5817_v17 = vor.u32 %v7855_v8, %v5814_v9  ;;  %v6238_v55 = vld [vmem:[%s11417_s2 + $0x378] sm:$0xf0]  ;;  %v7943_v2 = vld [vmem:[%s11417_s2 + $0x2e4] sm:$0xf] }
 0x1e3   : > { %2097 = vmatpush.bf16.msra.mxu0 %v5857_v13  ;;  %2066 = vmatmul.bf16.vlgmr.msrb.gmra.mxu1 %v9893_v38  ;;  %v7887_v13 = vld [vmem:[%s11417_s2 + $0x124] sm:$0xf]  ;;  %v5881_v18 = vor.u32 %v7871_v10, %v5878_v12  ;;  %v6102_v1 = vld [vmem:[%s11417_s2 + $0x268] sm:$0xf0]  ;;  %v7925_v12 = vld [vmem:[%s11417_s2 + $0x254] sm:$0xf] }
 0x1e4   : > { %2110 = vmatpush.bf16.msra.mxu1 %v5921_v14  ;;  %2079 = vmatmul.bf16.vlgmr.msrb.gmra.mxu2 %v9878_v25  ;;  %v5942_v14 = vld [vmem:[%s11417_s2 + $0x128] sm:$0xf0]  ;;  %v6105_v9 = vor.u32 %v7927_v0, %v6102_v1  ;;  %v7937_v42 = vld [vmem:[%s11417_s2 + $0x2b4] sm:$0xf]  ;;  %v6062_v1 = vld [vmem:[%s11417_s2 + $0x218] sm:$0xf0] }
 0x1e5   : > { %2123 = vmatpush.bf16.msra.mxu2 %v5985_v15  ;;  %2092 = vmatmul.bf16.vlgmr.msrb.gmra.mxu3 %v9885_v32  ;;  %v7903_v15 = vld [vmem:[%s11417_s2 + $0x1a4] sm:$0xf]  ;;  %v6166_v4 = vld [vmem:[%s11417_s2 + $0x2e8] sm:$0xf0]  ;;  %v7917_v0 = vld [vmem:[%s11417_s2 + $0x214] sm:$0xf] }
 0x1e6   : > { %2136 = vmatpush.bf16.msra.mxu3 %v6049_v19  ;;  %v5945_v19 = vor.u32 %v7887_v13, %v5942_v14  ;;  %v6009_v23 = vor.u32 %v7903_v15, %v6006_v16  ;;  %v6294_v8 = vld [vmem:[%s11417_s2 + $0x3e8] sm:$0xf0]  ;;  %v6169_v10 = vor.u32 %v7943_v2, %v6166_v4  ;;  %v6094_v13 = vld [vmem:[%s11417_s2 + $0x258] sm:$0xf0]  ;;  %v7941_v14 = vld [vmem:[%s11417_s2 + $0x2d4] sm:$0xf] }
 0x1e7   : > { %2098 = vmatpush.bf16.msra.mxu0 %v5849_v26  ;;  %v7885_v26 = vld [vmem:[%s11417_s2 + $0x114] sm:$0xf]  ;;  %v6158_v16 = vld [vmem:[%s11417_s2 + $0x2d8] sm:$0xf0]  ;;  %v6097_v20 = vor.u32 %v7925_v12, %v6094_v13  ;;  %v6086_v24 = vld [vmem:[%s11417_s2 + $0x248] sm:$0xf0] }
 0x1e8   : > { %2111 = vmatpush.bf16.msra.mxu1 %v5913_v33  ;;  %v7901_v33 = vld [vmem:[%s11417_s2 + $0x194] sm:$0xf]  ;;  %v5937_v41 = vor.u32 %v7885_v26, %v5934_v30  ;;  %v6161_v21 = vor.u32 %v7941_v14, %v6158_v16  ;;  %v7955_v26 = vld [vmem:[%s11417_s2 + $0x344] sm:$0xf]  ;;  %v6214_v30 = vld [vmem:[%s11417_s2 + $0x348] sm:$0xf0] }
 0x1e9   : > { %2124 = vmatpush.bf16.msra.mxu2 %v5977_v35  ;;  %v5998_v35 = vld [vmem:[%s11417_s2 + $0x198] sm:$0xf0]  ;;  %v7933_v2 = vld [vmem:[%s11417_s2 + $0x294] sm:$0xf]  ;;  %v7915_v12 = vld [vmem:[%s11417_s2 + $0x204] sm:$0xf] }
 0x1ea   : > { %2137 = vmatpush.bf16.msra.mxu3 %v6041_v39  ;;  %v5798_v39 = vld [vmem:[%s11417_s2 + $0x8] sm:$0xf0]  ;;  %v6126_v4 = vld [vmem:[%s11417_s2 + $0x298] sm:$0xf0]  ;;  %v7931_v14 = vld [vmem:[%s11417_s2 + $0x284] sm:$0xf] }
 0x1eb   : > { %2099 = vmatpush.bf16.msra.mxu0 %v5841_v45  ;;  %v6001_v45 = vor.u32 %v7901_v33, %v5998_v35  ;;  %v5801_v52 = vor.u32 %v7851_v37, %v5798_v39  ;;  %v7971_v33 = vld [vmem:[%s11417_s2 + $0x3c4] sm:$0xf]  ;;  %v6278_v35 = vld [vmem:[%s11417_s2 + $0x3c8] sm:$0xf0]  ;;  %v6217_v39 = vor.u32 %v7955_v26, %v6214_v30 }
 0x1ec   : > { %2112 = vmatpush.bf16.msra.mxu1 %v5905_v46  ;;  %v5926_v46 = vld [vmem:[%s11417_s2 + $0x108] sm:$0xf0]  ;;  %v6281_v43 = vor.u32 %v7971_v33, %v6278_v35 }
 0x1ed   : > { %2125 = vmatpush.bf16.msra.mxu2 %v5969_v47  ;;  %v7899_v47 = vld [vmem:[%s11417_s2 + $0x184] sm:$0xf]  ;;  %v6054_v13 = vld [vmem:[%s11417_s2 + $0x208] sm:$0xf0] }
 0x1ee   : > { %2138 = vmatpush.bf16.msra.mxu3 %v6033_v51  ;;  %v7945_v51 = vld [vmem:[%s11417_s2 + $0x2f4] sm:$0xf]  ;;  %v5993_v60 = vor.u32 %v7899_v47, %v5990_v48  ;;  %v6270_v48 = vld [vmem:[%s11417_s2 + $0x3b8] sm:$0xf0]  ;;  %v6118_v16 = vld [vmem:[%s11417_s2 + $0x288] sm:$0xf0] }
 0x1ef   : > { %2100 = vmatpush.bf16.msra.mxu0 %v5833_v57  ;;  %v5929_v57 = vor.u32 %v7883_v44, %v5926_v46  ;;  %v6177_v62 = vor.u32 %v7945_v51, %v6174_v53  ;;  %v6142_v44 = vld [vmem:[%s11417_s2 + $0x2b8] sm:$0xf0]  ;;  %v7969_v47 = vld [vmem:[%s11417_s2 + $0x3b4] sm:$0xf]  ;;  %v6070_v53 = vld [vmem:[%s11417_s2 + $0x228] sm:$0xf0] }
 0x1f0   : > { %2113 = vmatpush.bf16.msra.mxu1 %v5897_v58  ;;  %v7977_v58 = vld [vmem:[%s11417_s2 + $0x3f4] sm:$0xf]  ;;  %v6206_v46 = vld [vmem:[%s11417_s2 + $0x338] sm:$0xf0]  ;;  %v6145_v50 = vor.u32 %v7937_v42, %v6142_v44 }
 0x1f1   : > { %2126 = vmatpush.bf16.msra.mxu2 %v5961_v59  ;;  %v6302_v59 = vld [vmem:[%s11417_s2 + $0x3f8] sm:$0xf0] }
 0x1f2   : > { %2139 = vmatpush.bf16.msra.mxu3 %v6025_v63  ;;  %v6241_v63 = vor.u32 %v7961_v54, %v6238_v55  ;;  %v6305_v3 = vor.u32 %v7977_v58, %v6302_v59  ;;  %v7935_v54 = vld [vmem:[%s11417_s2 + $0x2a4] sm:$0xf]  ;;  %v6273_v55 = vor.u32 %v7969_v47, %v6270_v48  ;;  %v6198_v58 = vld [vmem:[%s11417_s2 + $0x328] sm:$0xf0]  ;;  %v8039_v47 = vld [vmem:[%s11419_s4 + $0x1dc] sm:$0xf0] }
 0x1f3   : > { %2101 = vmatpush.bf16.msra.mxu0 %v5825_v5  ;;  %v7959_v5 = vld [vmem:[%s11417_s2 + $0x364] sm:$0xf] }
 0x1f4   : > { %2114 = vmatpush.bf16.msra.mxu1 %v5889_v6  ;;  %v6230_v6 = vld [vmem:[%s11417_s2 + $0x368] sm:$0xf0]  ;;  %v7967_v59 = vld [vmem:[%s11417_s2 + $0x3a4] sm:$0xf] }
 0x1f5   : > { %2127 = vmatpush.bf16.msra.mxu2 %v5953_v7  ;;  %v7975_v7 = vld [vmem:[%s11417_s2 + $0x3e4] sm:$0xf] }
 0x1f6   : > { %2140 = vmatpush.bf16.msra.mxu3 %v6017_v11  ;;  %v6233_v11 = vor.u32 %v7959_v5, %v6230_v6  ;;  %v6297_v15 = vor.u32 %v7975_v7, %v6294_v8  ;;  %v7949_v5 = vld [vmem:[%s11417_s2 + $0x314] sm:$0xf]  ;;  %v6190_v6 = vld [vmem:[%s11417_s2 + $0x318] sm:$0xf0]  ;;  %v8035_v48 = vld [vmem:[%s11419_s4 + $0x1c4] sm:$0xf] }
 0x1f7   : > { %2102 = vmatpush.bf16.msra.mxu0 %v5817_v17  ;;  %v7957_v17 = vld [vmem:[%s11417_s2 + $0x354] sm:$0xf]  ;;  %v6254_v8 = vld [vmem:[%s11417_s2 + $0x398] sm:$0xf0] }
 0x1f8   : > { %2115 = vmatpush.bf16.msra.mxu1 %v5881_v18  ;;  %v6222_v18 = vld [vmem:[%s11417_s2 + $0x358] sm:$0xf0]  ;;  %v7965_v7 = vld [vmem:[%s11417_s2 + $0x394] sm:$0xf] }
 0x1f9   : > { %2128 = vmatpush.bf16.msra.mxu2 %v5945_v19  ;;  %v7973_v19 = vld [vmem:[%s11417_s2 + $0x3d4] sm:$0xf]  ;;  %v6225_v22 = vor.u32 %v7957_v17, %v6222_v18  ;;  %v7947_v17 = vld [vmem:[%s11417_s2 + $0x304] sm:$0xf]  ;;  %v6182_v18 = vld [vmem:[%s11417_s2 + $0x308] sm:$0xf0] }
 0x1fa   : > { %2141 = vmatpush.bf16.msra.mxu3 %v6009_v23  ;;  %v7923_v23 = vld [vmem:[%s11417_s2 + $0x244] sm:$0xf] }
 0x1fb   : > { %2103 = vmatpush.bf16.msra.mxu0 %v5809_v36  ;;  %v6089_v36 = vor.u32 %v7923_v23, %v6086_v24  ;;  %v10237_v24 = vld [vmem:[%s11418_s3] sm:$0x3] }
 0x1fc   : > { %2116 = vmatpush.bf16.msra.mxu1 %v5873_v40  ;;  %v7921_v40 = vld [vmem:[%s11417_s2 + $0x234] sm:$0xf] }
 0x1fd   : > { %2129 = vmatpush.bf16.msra.mxu2 %v5937_v41  ;;  %v6078_v41 = vld [vmem:[%s11417_s2 + $0x238] sm:$0xf0] }
 0x1fe   : > { %2142 = vmatpush.bf16.msra.mxu3 %v6001_v45  ;;  %v7953_v45 = vld [vmem:[%s11417_s2 + $0x334] sm:$0xf]  ;;  %v6081_v49 = vor.u32 %v7921_v40, %v6078_v41 }
 0x1ff   : > { %2104 = vmatpush.bf16.msra.mxu0 %v5801_v52  ;;  %v6209_v51 = vor.u32 %v7953_v45, %v6206_v46  ;;  %v7919_v52 = vld [vmem:[%s11417_s2 + $0x224] sm:$0xf]  ;;  %v6532_v46 = vld [vmem:[%s11419_s4 + $0x1c0] sm:$0xf] }
 0x200   : > { %2117 = vmatpush.bf16.msra.mxu1 %v5865_v56  ;;  %v6134_v56 = vld [vmem:[%s11417_s2 + $0x2a8] sm:$0xf0] }
 0x201   : > { %2130 = vmatpush.bf16.msra.mxu2 %v5929_v57  ;;  %v7951_v57 = vld [vmem:[%s11417_s2 + $0x324] sm:$0xf] }
 0x202   : > { %2143 = vmatpush.bf16.msra.mxu3 %v5993_v60  ;;  %2105 = vmatmul.bf16.vlgmr.msra.gmra.mxu0 %v9751_v28  ;;  %v7939_v28 = vld [vmem:[%s11417_s2 + $0x2c4] sm:$0xf]  ;;  %v6262_v60 = vld [vmem:[%s11417_s2 + $0x3a8] sm:$0xf0] }
 0x203   : > { %2149 = vmatpush.bf16.msrb.mxu0 %v6113_v61  ;;  %2118 = vmatmul.bf16.vlgmr.msra.gmra.mxu1 %v9761_v34  ;;  %v6150_v34 = vld [vmem:[%s11417_s2 + $0x2c8] sm:$0xf0]  ;;  %v6073_v61 = vor.u32 %v7919_v52, %v6070_v53  ;;  %v8040_v52 = vld [vmem:[%s11419_s4 + $0x1e4] sm:$0xf0] }
 0x204   : > { %2162 = vmatpush.bf16.msrb.mxu1 %v6177_v62  ;;  %2131 = vmatmul.bf16.vlgmr.msra.gmra.mxu2 %v9749_v27  ;;  %v6286_v27 = vld [vmem:[%s11417_s2 + $0x3d8] sm:$0xf0]  ;;  %v6153_v37 = vor.u32 %v7939_v28, %v6150_v34  ;;  %v6137_v62 = vor.u32 %v7935_v54, %v6134_v56  ;;  %v1331_v28 = vperm.slane %v10237_v24, 0 }
 0x205   : > { %2175 = vmatpush.bf16.msrb.mxu2 %v6241_v63  ;;  %2144 = vmatmul.bf16.vlgmr.msra.gmra.mxu3 %v9753_v29  ;;  %v6289_v29 = vor.u32 %v7973_v19, %v6286_v27  ;;  %v6201_v63 = vor.u32 %v7951_v57, %v6198_v58  ;;  %v7963_v19 = vld [vmem:[%s11417_s2 + $0x384] sm:$0xf]  ;;  %v6246_v27 = vld [vmem:[%s11417_s2 + $0x388] sm:$0xf0] }
 0x206   : > { %2188 = vmatpush.bf16.msrb.mxu3 %v6305_v3  ;;  %v6265_v3 = vor.u32 %v7967_v59, %v6262_v60  ;;  %v6249_v23 = vor.u32 %v7963_v19, %v6246_v27  ;;  %v8036_v57 = vld [vmem:[%s11419_s4 + $0x1cc] sm:$0xf]  ;;  %v6500_v59 = vld [vmem:[%s11419_s4 + $0x180] sm:$0xf] }
 0x207   : > { %2150 = vmatpush.bf16.msrb.mxu0 %v6105_v9  ;;  %v6065_v9 = vor.u32 %v7917_v0, %v6062_v1  ;;  %v6542_v58 = vld [vmem:[%s11419_s4 + $0x1e8] sm:$0xf0]  ;;  %v6502_v0 = vld [vmem:[%s11419_s4 + $0x1a0] sm:$0xf0] }
 0x208   : > { %2163 = vmatpush.bf16.msrb.mxu1 %v6169_v10  ;;  %v6129_v10 = vor.u32 %v7933_v2, %v6126_v4  ;;  %v8032_v4 = vld [vmem:[%s11419_s4 + $0x1a4] sm:$0xf0]  ;;  %v8020_v27 = vld [vmem:[%s11419_s4 + $0x14c] sm:$0xf] }
 0x209   : > { %2176 = vmatpush.bf16.msrb.mxu2 %v6233_v11  ;;  %v6193_v11 = vor.u32 %v7949_v5, %v6190_v6  ;;  %v8028_v6 = vld [vmem:[%s11419_s4 + $0x18c] sm:$0xf] }
 0x20a   : > { %2189 = vmatpush.bf16.msrb.mxu3 %v6297_v15  ;;  %v6257_v15 = vor.u32 %v7965_v7, %v6254_v8  ;;  %v6510_v7 = vld [vmem:[%s11419_s4 + $0x1a8] sm:$0xf0] }
 0x20b   : > { %2151 = vmatpush.bf16.msrb.mxu0 %v6097_v20  ;;  %v6057_v20 = vor.u32 %v7915_v12, %v6054_v13  ;;  %v6513_v8 = vor.u32 %v8028_v6, %v6510_v7 }
 0x20c   : > { %2164 = vmatpush.bf16.msrb.mxu1 %v6161_v21  ;;  %v6121_v21 = vor.u32 %v7931_v14, %v6118_v16  ;;  %v6470_v14 = vld [vmem:[%s11419_s4 + $0x160] sm:$0xf0]  ;;  %v8024_v16 = vld [vmem:[%s11419_s4 + $0x164] sm:$0xf0] }
 0x20d   : > { %2177 = vmatpush.bf16.msrb.mxu2 %v6225_v22  ;;  %v6185_v22 = vor.u32 %v7947_v17, %v6182_v18 }
 0x20e   : > { %2190 = vmatpush.bf16.msrb.mxu3 %v6289_v29 }
 0x20f   : > { %2152 = vmatpush.bf16.msrb.mxu0 %v6089_v36 }
 0x210   : > { %2165 = vmatpush.bf16.msrb.mxu1 %v6153_v37 }
 0x211   : > { %2178 = vmatpush.bf16.msrb.mxu2 %v6217_v39 }
 0x212   : > { %2191 = vmatpush.bf16.msrb.mxu3 %v6281_v43 }
 0x213   : > { %2153 = vmatpush.bf16.msrb.mxu0 %v6081_v49  ;;  %v6533_v49 = vor.u32 %v8039_v47, %v6532_v46  ;;  %v6414_v46 = vld [vmem:[%s11419_s4 + $0xe8] sm:$0xf0] }
 0x214   : > { %2166 = vmatpush.bf16.msrb.mxu1 %v6145_v50  ;;  %v6534_v50 = vld [vmem:[%s11419_s4 + $0x1e0] sm:$0xf0] }
 0x215   : > { %2179 = vmatpush.bf16.msrb.mxu2 %v6209_v51  ;;  %v6540_v51 = vld [vmem:[%s11419_s4 + $0x1c8] sm:$0xf] }
 0x216   : > { %2192 = vmatpush.bf16.msrb.mxu3 %v6273_v55  ;;  %v6537_v55 = vor.u32 %v8035_v48, %v6534_v50  ;;  %v6541_v56 = vor.u32 %v8040_v52, %v6540_v51  ;;  %v6372_v48 = vld [vmem:[%s11419_s4 + $0x80] sm:$0xf]  ;;  %v7995_v50 = vld [vmem:[%s11419_s4 + $0x84] sm:$0xf] }
 0x217   : > { %2154 = vmatpush.bf16.msrb.mxu0 %v6073_v61  ;;  %v6545_v61 = vor.u32 %v8036_v57, %v6542_v58 }
 0x218   : > { %2167 = vmatpush.bf16.msrb.mxu1 %v6137_v62  ;;  %v8031_v62 = vld [vmem:[%s11419_s4 + $0x19c] sm:$0xf0] }
 0x219   : > { %2180 = vmatpush.bf16.msrb.mxu2 %v6201_v63  ;;  %v8027_v63 = vld [vmem:[%s11419_s4 + $0x184] sm:$0xf]  ;;  %v6501_v1 = vor.u32 %v8031_v62, %v6500_v59 }
 0x21a   : > { %2193 = vmatpush.bf16.msrb.mxu3 %v6265_v3  ;;  %v6505_v2 = vor.u32 %v8027_v63, %v6502_v0  ;;  %v6508_v3 = vld [vmem:[%s11419_s4 + $0x188] sm:$0xf]  ;;  %v6340_v63 = vld [vmem:[%s11419_s4 + $0x40] sm:$0xf] }
 0x21b   : > { %2155 = vmatpush.bf16.msrb.mxu0 %v6065_v9  ;;  %v6509_v5 = vor.u32 %v8032_v4, %v6508_v3  ;;  %v6468_v9 = vld [vmem:[%s11419_s4 + $0x140] sm:$0xf]  ;;  %v6342_v3 = vld [vmem:[%s11419_s4 + $0x60] sm:$0xf0]  ;;  %v6348_v4 = vld [vmem:[%s11419_s4 + $0x48] sm:$0xf] }
 0x21c   : > { %2168 = vmatpush.bf16.msrb.mxu1 %v6129_v10  ;;  %v8023_v10 = vld [vmem:[%s11419_s4 + $0x15c] sm:$0xf0] }
 0x21d   : > { %2181 = vmatpush.bf16.msrb.mxu2 %v6193_v11  ;;  %v8019_v11 = vld [vmem:[%s11419_s4 + $0x144] sm:$0xf]  ;;  %v6469_v13 = vor.u32 %v8023_v10, %v6468_v9  ;;  %v7991_v0 = vld [vmem:[%s11419_s4 + $0x5c] sm:$0xf0]  ;;  %v7988_v9 = vld [vmem:[%s11419_s4 + $0x4c] sm:$0xf] }
 0x21e   : > { %2194 = vmatpush.bf16.msrb.mxu3 %v6257_v15  ;;  %v6476_v15 = vld [vmem:[%s11419_s4 + $0x148] sm:$0xf]  ;;  %v6473_v18 = vor.u32 %v8019_v11, %v6470_v14  ;;  %v6350_v10 = vld [vmem:[%s11419_s4 + $0x68] sm:$0xf0]  ;;  %v7983_v14 = vld [vmem:[%s11419_s4 + $0x1c] sm:$0xf0] }
 0x21f   : > { %2156 = vmatpush.bf16.msrb.mxu0 %v6057_v20  ;;  %v6477_v19 = vor.u32 %v8024_v16, %v6476_v15  ;;  %v6478_v20 = vld [vmem:[%s11419_s4 + $0x168] sm:$0xf0]  ;;  %v7979_v15 = vld [vmem:[%s11419_s4 + $0x4] sm:$0xf] }
 0x220   : > { %2169 = vmatpush.bf16.msrb.mxu1 %v6121_v21  ;;  %v6436_v21 = vld [vmem:[%s11419_s4 + $0x100] sm:$0xf] }
 0x221   : > { %2182 = vmatpush.bf16.msrb.mxu2 %v6185_v22  ;;  %v6481_v22 = vor.u32 %v8020_v27, %v6478_v20  ;;  %v7984_v27 = vld [vmem:[%s11419_s4 + $0x24] sm:$0xf0] }
 0x222   : > { %2195 = vmatpush.bf16.msrb.mxu3 %v6249_v23  ;;  %2157 = vmatmul.bf16.vlgmr.msrb.gmra.mxu0 %v9883_v31  ;;  %v8015_v23 = vld [vmem:[%s11419_s4 + $0x11c] sm:$0xf0] }
 0x223   : > { %2170 = vmatmul.bf16.vlgmr.msrb.gmra.mxu1 %v9893_v38  ;;  %2613 = vmatpush.bf16.msra.mxu0 %v6533_v49  ;;  %v7999_v49 = vld [vmem:[%s11419_s4 + $0x9c] sm:$0xf0] }
 0x224   : > { %2183 = vmatmul.bf16.vlgmr.msrb.gmra.mxu2 %v9878_v25  ;;  %2626 = vmatpush.bf16.msra.mxu1 %v6537_v55  ;;  %v6373_v52 = vor.u32 %v7999_v49, %v6372_v48  ;;  %v6380_v55 = vld [vmem:[%s11419_s4 + $0x88] sm:$0xf]  ;;  %v6524_v48 = vld [vmem:[%s11419_s4 + $0x198] sm:$0xf] }
 0x225   : > { %2196 = vmatmul.bf16.vlgmr.msrb.gmra.mxu3 %v9885_v32  ;;  %2639 = vmatpush.bf16.msra.mxu2 %v6541_v56  ;;  %v8000_v56 = vld [vmem:[%s11419_s4 + $0xa4] sm:$0xf0]  ;;  %v8034_v49 = vld [vmem:[%s11419_s4 + $0x1b4] sm:$0xf0] }
 0x226   : > { %2652 = vmatpush.bf16.msra.mxu3 %v6545_v61  ;;  %v6381_v59 = vor.u32 %v8000_v56, %v6380_v55  ;;  %v6382_v61 = vld [vmem:[%s11419_s4 + $0xa8] sm:$0xf0] }
 0x227   : > { %2614 = vmatpush.bf16.msra.mxu0 %v6501_v1  ;;  %v7987_v1 = vld [vmem:[%s11419_s4 + $0x44] sm:$0xf] }
 0x228   : > { %2627 = vmatpush.bf16.msra.mxu1 %v6505_v2  ;;  %v6341_v2 = vor.u32 %v7991_v0, %v6340_v63  ;;  %v6345_v7 = vor.u32 %v7987_v1, %v6342_v3  ;;  %v8026_v63 = vld [vmem:[%s11419_s4 + $0x174] sm:$0xf0]  ;;  %v6494_v3 = vld [vmem:[%s11419_s4 + $0x178] sm:$0xf0] }
 0x229   : > { %2640 = vmatpush.bf16.msra.mxu2 %v6509_v5  ;;  %v7992_v5 = vld [vmem:[%s11419_s4 + $0x64] sm:$0xf0] }
 0x22a   : > { %2653 = vmatpush.bf16.msra.mxu3 %v6513_v8  ;;  %v6349_v8 = vor.u32 %v7992_v5, %v6348_v4 }
 0x22b   : > { %2615 = vmatpush.bf16.msra.mxu0 %v6469_v13  ;;  %v6308_v13 = vld [vmem:[%s11419_s4] sm:$0xf] }
 0x22c   : > { %2628 = vmatpush.bf16.msra.mxu1 %v6473_v18  ;;  %v6310_v18 = vld [vmem:[%s11419_s4 + $0x20] sm:$0xf0] }
 0x22d   : > { %2641 = vmatpush.bf16.msra.mxu2 %v6477_v19  ;;  %v6316_v19 = vld [vmem:[%s11419_s4 + $0x8] sm:$0xf] }
 0x22e   : > { %2654 = vmatpush.bf16.msra.mxu3 %v6481_v22  ;;  %v6317_v22 = vor.u32 %v7984_v27, %v6316_v19  ;;  %v6420_v27 = vld [vmem:[%s11419_s4 + $0xd0] sm:$0xf] }
 0x245   : > { %v2002_v29 = vpop.f32.mrf.mxu0 }
 0x246   : > { %v2015_v34 = vpop.f32.mrf.mxu1  ;;  %v2003_v26 = vadd.f32 %v2002_v29, %v1331_v28  ;;  %v8011_v28 = vld [vmem:[%s11419_s4 + $0x104] sm:$0xf] }
 0x247   : > { %v6438_v29 = vld [vmem:[%s11419_s4 + $0x120] sm:$0xf0] }
 0x248   : > { %v2016_v35 = vadd.f32 %v2015_v34, %v2003_v26  ;;  %v6444_v34 = vld [vmem:[%s11419_s4 + $0x108] sm:$0xf] }
 0x249   : > { %v2028_v30 = vpop.f32.mrf.mxu2  ;;  %v8016_v26 = vld [vmem:[%s11419_s4 + $0x124] sm:$0xf0] }
 0x24a   : > { %v2041_v33 = vpop.f32.mrf.mxu3  ;;  %v2029_v38 = vadd.f32 %v2028_v30, %v2016_v35  ;;  %v8012_v30 = vld [vmem:[%s11419_s4 + $0x10c] sm:$0xf] }
 0x24b   : > { %v6446_v35 = vld [vmem:[%s11419_s4 + $0x128] sm:$0xf0] }
 0x24c   : > { %v2042_v39 = vadd.f32 %v2041_v33, %v2029_v38  ;;  %v6437_v33 = vor.u32 %v8015_v23, %v6436_v21  ;;  %v6449_v38 = vor.u32 %v8012_v30, %v6446_v35  ;;  %v6313_v21 = vor.u32 %v7979_v15, %v6310_v18  ;;  %v7980_v23 = vld [vmem:[%s11419_s4 + $0xc] sm:$0xf]  ;;  %v8037_v30 = vld [vmem:[%s11419_s4 + $0x1d4] sm:$0xf] }
 0x24d   : > { %v2004_v31 = vpop.f32.mrf.mxu0 }
 0x24e   : > { %v2017_v36 = vpop.f32.mrf.mxu1  ;;  %v6441_v31 = vor.u32 %v8011_v28, %v6438_v29  ;;  %2616 = vmatpush.bf16.msra.mxu0 %v6437_v33  ;;  %2655 = vmatpush.bf16.msra.mxu3 %v6449_v38  ;;  %v6318_v28 = vld [vmem:[%s11419_s4 + $0x28] sm:$0xf0]  ;;  %v6548_v29 = vld [vmem:[%s11419_s4 + $0x1d0] sm:$0xf]  ;;  %v6550_v33 = vld [vmem:[%s11419_s4 + $0x1f0] sm:$0xf0] }
 0x24f   : > { %v6445_v36 = vor.u32 %v8016_v26, %v6444_v34  ;;  %v6321_v34 = vor.u32 %v7980_v23, %v6318_v28  ;;  %v8041_v26 = vld [vmem:[%s11419_s4 + $0x1ec] sm:$0xf0]  ;;  %v8042_v38 = vld [vmem:[%s11419_s4 + $0x1f4] sm:$0xf0]  ;;  %v6422_v23 = vld [vmem:[%s11419_s4 + $0xf0] sm:$0xf0] }
 0x250   : > { %2629 = vmatpush.bf16.msra.mxu1 %v6441_v31  ;;  %v6549_v35 = vor.u32 %v8041_v26, %v6548_v29  ;;  %v6553_v31 = vor.u32 %v8037_v30, %v6550_v33  ;;  %v8010_v28 = vld [vmem:[%s11419_s4 + $0xf4] sm:$0xf0]  ;;  %v8006_v26 = vld [vmem:[%s11419_s4 + $0xdc] sm:$0xf]  ;;  %v6388_v33 = vld [vmem:[%s11419_s4 + $0x90] sm:$0xf] }
 0x251   : > { %v2030_v37 = vpop.f32.mrf.mxu2  ;;  %2642 = vmatpush.bf16.msra.mxu2 %v6445_v36  ;;  %v6556_v36 = vld [vmem:[%s11419_s4 + $0x1d8] sm:$0xf]  ;;  %v6430_v30 = vld [vmem:[%s11419_s4 + $0xf8] sm:$0xf0] }
 0x252   : > { %v2043_v25 = vpop.f32.mrf.mxu3  ;;  %v6404_v37 = vld [vmem:[%s11419_s4 + $0xc0] sm:$0xf] }
 0x253   : > { %v8007_v25 = vld [vmem:[%s11419_s4 + $0xdc] sm:$0xf0] }
 0x25f   : > { %v2054_v32 = vpop.f32.mrf.mxu0 }
 0x260   : > { %v2055_v40 = vadd.f32 %v2054_v32, %v2042_v39  ;;  %v2067_v41 = vpop.f32.mrf.mxu1  ;;  %v8003_v39 = vld [vmem:[%s11419_s4 + $0xc4] sm:$0xf]  ;;  %v6405_v32 = vor.u32 %v8007_v25, %v6404_v37  ;;  %v8038_v37 = vld [vmem:[%s11419_s4 + $0x1dc] sm:$0xf]  ;;  %v1332_v25 = vperm.slane %v10237_v24, 1 }
 0x261   : > { %v8029_v24 = vld [vmem:[%s11419_s4 + $0x194] sm:$0xf] }
 0x262   : > { %v2068_v42 = vadd.f32 %v2067_v41, %v2055_v40  ;;  %v6406_v40 = vld [vmem:[%s11419_s4 + $0xe0] sm:$0xf0]  ;;  %v6412_v41 = vld [vmem:[%s11419_s4 + $0xc8] sm:$0xf]  ;;  %2617 = vmatpush.bf16.msra.mxu0 %v6405_v32  ;;  %v6558_v32 = vld [vmem:[%s11419_s4 + $0x1f8] sm:$0xf0] }
 0x266   : > { %2618 = vmatpush.bf16.msra.mxu0 %v6373_v52  ;;  %v6525_v52 = vor.u32 %v8034_v49, %v6524_v48  ;;  %v6358_v48 = vld [vmem:[%s11419_s4 + $0x70] sm:$0xf0] }
 0x267   : > { %v2080_v43 = vpop.f32.mrf.mxu2  ;;  %v2056_v54 = vpop.f32.mrf.mxu0 }
 0x268   : > { %v2081_v44 = vadd.f32 %v2080_v43, %v2068_v42  ;;  %v2093_v45 = vpop.f32.mrf.mxu3  ;;  %v2069_v60 = vpop.f32.mrf.mxu1  ;;  %v8008_v42 = vld [vmem:[%s11419_s4 + $0xe4] sm:$0xf0]  ;;  %v6409_v43 = vor.u32 %v8003_v39, %v6406_v40  ;;  %v6374_v54 = vld [vmem:[%s11419_s4 + $0xa0] sm:$0xf0]  ;;  %v6557_v39 = vor.u32 %v8042_v38, %v6556_v36  ;;  %v6516_v40 = vld [vmem:[%s11419_s4 + $0x190] sm:$0xf] }
 0x269   : > { %v6377_v58 = vor.u32 %v7995_v50, %v6374_v54  ;;  %v7996_v60 = vld [vmem:[%s11419_s4 + $0x8c] sm:$0xf]  ;;  %v8030_v50 = vld [vmem:[%s11419_s4 + $0x19c] sm:$0xf]  ;;  %v7997_v36 = vld [vmem:[%s11419_s4 + $0x94] sm:$0xf] }
 0x26a   : > { %v10258_v53 = vadd.f32 %v2093_v45, %v2081_v44  ;;  %v6413_v44 = vor.u32 %v8008_v42, %v6412_v41  ;;  %v8004_v45 = vld [vmem:[%s11419_s4 + $0xcc] sm:$0xf]  ;;  %2630 = vmatpush.bf16.msra.mxu1 %v6409_v43  ;;  %v6385_v62 = vor.u32 %v7996_v60, %v6382_v61  ;;  %2619 = vmatpush.bf16.msra.mxu0 %v6341_v2  ;;  %v8033_v43 = vld [vmem:[%s11419_s4 + $0x1ac] sm:$0xf0]  ;;  %v6526_v54 = vld [vmem:[%s11419_s4 + $0x1b8] sm:$0xf0] }
 0x26b   : > { %v6417_v47 = vor.u32 %v8004_v45, %v6414_v46  ;;  %v6561_v42 = vor.u32 %v8038_v37, %v6558_v32  ;;  %v6517_v46 = vor.u32 %v8033_v43, %v6516_v40  ;;  %v6529_v56 = vor.u32 %v8030_v50, %v6526_v54  ;;  %v8021_v60 = vld [vmem:[%s11419_s4 + $0x154] sm:$0xf]  ;;  %v8022_v2 = vld [vmem:[%s11419_s4 + $0x15c] sm:$0xf]  ;;  %v8002_v32 = vld [vmem:[%s11419_s4 + $0xb4] sm:$0xf0] }
 0x26c   : > { %2207 = vst [vmem:[#allocation4] sm:$0x3] %v10258_v53  ;;  %2643 = vmatpush.bf16.msra.mxu2 %v6413_v44  ;;  %v6518_v44 = vld [vmem:[%s11419_s4 + $0x1b0] sm:$0xf0]  ;;  %v6497_v4 = vor.u32 %v8022_v2, %v6494_v3  ;;  %v7998_v40 = vld [vmem:[%s11419_s4 + $0x9c] sm:$0xf] }
 0x26d   : > { %2656 = vmatpush.bf16.msra.mxu3 %v6417_v47  ;;  %v6521_v47 = vor.u32 %v8029_v24, %v6518_v44  ;;  %v6390_v38 = vld [vmem:[%s11419_s4 + $0xb0] sm:$0xf0]  ;;  %v6356_v24 = vld [vmem:[%s11419_s4 + $0x50] sm:$0xf]  ;;  %v6364_v50 = vld [vmem:[%s11419_s4 + $0x58] sm:$0xf] }
 0x26e   : > { %2631 = vmatpush.bf16.msra.mxu1 %v6377_v58  ;;  %v6484_v58 = vld [vmem:[%s11419_s4 + $0x150] sm:$0xf]  ;;  %v6393_v43 = vor.u32 %v7997_v36, %v6390_v38  ;;  %v7990_v54 = vld [vmem:[%s11419_s4 + $0x5c] sm:$0xf]  ;;  %v6332_v2 = vld [vmem:[%s11419_s4 + $0x18] sm:$0xf] }
 0x26f   : > { %v2082_v12 = vpop.f32.mrf.mxu2  ;;  %v7986_v3 = vld [vmem:[%s11419_s4 + $0x34] sm:$0xf0] }
 0x270   : > { %v2095_v17 = vpop.f32.mrf.mxu3  ;;  %2644 = vmatpush.bf16.msra.mxu2 %v6381_v59  ;;  %v6353_v12 = vor.u32 %v7988_v9, %v6350_v10  ;;  %v8025_v59 = vld [vmem:[%s11419_s4 + $0x16c] sm:$0xf0]  ;;  %v8013_v9 = vld [vmem:[%s11419_s4 + $0x114] sm:$0xf] }
 0x271   : > { %2657 = vmatpush.bf16.msra.mxu3 %v6385_v62  ;;  %v6309_v17 = vor.u32 %v7983_v14, %v6308_v13  ;;  %v6485_v61 = vor.u32 %v8025_v59, %v6484_v58  ;;  %v6492_v62 = vld [vmem:[%s11419_s4 + $0x158] sm:$0xf]  ;;  %v6324_v59 = vld [vmem:[%s11419_s4 + $0x10] sm:$0xf] }
 0x272   : > { %2632 = vmatpush.bf16.msra.mxu1 %v6345_v7  ;;  %v6493_v1 = vor.u32 %v8026_v63, %v6492_v62  ;;  %v6452_v7 = vld [vmem:[%s11419_s4 + $0x110] sm:$0xf]  ;;  %v8018_v13 = vld [vmem:[%s11419_s4 + $0x134] sm:$0xf0]  ;;  %v7981_v62 = vld [vmem:[%s11419_s4 + $0x14] sm:$0xf] }
 0x273   : > { %2620 = vmatpush.bf16.msra.mxu0 %v6309_v17  ;;  %v6462_v17 = vld [vmem:[%s11419_s4 + $0x138] sm:$0xf0]  ;;  %v6326_v63 = vld [vmem:[%s11419_s4 + $0x30] sm:$0xf0] }
 0x274   : > { %2645 = vmatpush.bf16.msra.mxu2 %v6349_v8  ;;  %v8017_v8 = vld [vmem:[%s11419_s4 + $0x12c] sm:$0xf0] }
 0x275   : > { %2658 = vmatpush.bf16.msra.mxu3 %v6353_v12  ;;  %v6453_v10 = vor.u32 %v8017_v8, %v6452_v7  ;;  %v6454_v12 = vld [vmem:[%s11419_s4 + $0x130] sm:$0xf0]  ;;  %v7982_v8 = vld [vmem:[%s11419_s4 + $0x1c] sm:$0xf] }
 0x276   : > { %2633 = vmatpush.bf16.msra.mxu1 %v6313_v21  ;;  %v6457_v14 = vor.u32 %v8013_v9, %v6454_v12  ;;  %v8005_v21 = vld [vmem:[%s11419_s4 + $0xd4] sm:$0xf]  ;;  %v6334_v9 = vld [vmem:[%s11419_s4 + $0x38] sm:$0xf0] }
 0x277   : > { %2665 = vmatpush.bf16.msrb.mxu0 %v6549_v35  ;;  %v6425_v29 = vor.u32 %v8005_v21, %v6422_v23  ;;  %v6433_v35 = vor.u32 %v8006_v26, %v6430_v30 }
 0x278   : > { %2646 = vmatpush.bf16.msra.mxu2 %v6317_v22 }
 0x279   : > { %2659 = vmatpush.bf16.msra.mxu3 %v6321_v34 }
 0x27a   : > { %2678 = vmatpush.bf16.msrb.mxu1 %v6553_v31  ;;  %v8001_v31 = vld [vmem:[%s11419_s4 + $0xac] sm:$0xf0] }
 0x27b   : > { %2666 = vmatpush.bf16.msrb.mxu0 %v6517_v46  ;;  %v7993_v46 = vld [vmem:[%s11419_s4 + $0x6c] sm:$0xf0] }
 0x27c   : > { %2691 = vmatpush.bf16.msrb.mxu2 %v6557_v39  ;;  %v6396_v39 = vld [vmem:[%s11419_s4 + $0x98] sm:$0xf] }
 0x27d   : > { %2704 = vmatpush.bf16.msrb.mxu3 %v6561_v42  ;;  %v6389_v42 = vor.u32 %v8001_v31, %v6388_v33 }
 0x27e   : > { %2679 = vmatpush.bf16.msrb.mxu1 %v6521_v47  ;;  %v7989_v47 = vld [vmem:[%s11419_s4 + $0x54] sm:$0xf] }
 0x27f   : > { %v10372_v51 = vpop.f32.mrf.mxu0  ;;  %2667 = vmatpush.bf16.msrb.mxu0 %v6485_v61  ;;  %v6361_v58 = vor.u32 %v7989_v47, %v6358_v48 }
 0x280   : > { %v10383_v57 = vpop.f32.mrf.mxu1  ;;  %v2107_v55 = vadd.f32 %v10372_v51, %v1332_v25  ;;  %v6486_v51 = vld [vmem:[%s11419_s4 + $0x170] sm:$0xf0]  ;;  %2692 = vmatpush.bf16.msrb.mxu2 %v6525_v52  ;;  %v7994_v52 = vld [vmem:[%s11419_s4 + $0x74] sm:$0xf0] }
 0x281   : > { %v6489_v0 = vor.u32 %v8021_v60, %v6486_v51  ;;  %2705 = vmatpush.bf16.msrb.mxu3 %v6529_v56  ;;  %v6357_v56 = vor.u32 %v7993_v46, %v6356_v24  ;;  %v6365_v61 = vor.u32 %v7994_v52, %v6364_v50  ;;  %v7985_v51 = vld [vmem:[%s11419_s4 + $0x2c] sm:$0xf0] }
 0x282   : > { %v2120_v5 = vadd.f32 %v10383_v57, %v2107_v55  ;;  %v6460_v57 = vld [vmem:[%s11419_s4 + $0x118] sm:$0xf]  ;;  %v6366_v55 = vld [vmem:[%s11419_s4 + $0x78] sm:$0xf0]  ;;  %v6325_v12 = vor.u32 %v7985_v51, %v6324_v59 }
 0x283   : > { %2680 = vmatpush.bf16.msrb.mxu1 %v6489_v0  ;;  %v6461_v15 = vor.u32 %v8018_v13, %v6460_v57  ;;  %2668 = vmatpush.bf16.msrb.mxu0 %v6453_v10  ;;  %v6329_v57 = vor.u32 %v7981_v62, %v6326_v63 }
 0x284   : > { %2693 = vmatpush.bf16.msrb.mxu2 %v6493_v1  ;;  %v6369_v1 = vor.u32 %v7990_v54, %v6366_v55 }
 0x285   : > { %2706 = vmatpush.bf16.msrb.mxu3 %v6497_v4 }
 0x287   : > { %v10409_v6 = vpop.f32.mrf.mxu2  ;;  %v2108_v16 = vpop.f32.mrf.mxu0  ;;  %2681 = vmatpush.bf16.msrb.mxu1 %v6457_v14  ;;  %v6333_v14 = vor.u32 %v7986_v3, %v6332_v2 }
 0x288   : > { %v10417_v11 = vpop.f32.mrf.mxu3  ;;  %v2121_v20 = vpop.f32.mrf.mxu1  ;;  %v8014_v16 = vld [vmem:[%s11419_s4 + $0x11c] sm:$0xf]  ;;  %v2133_v19 = vadd.f32 %v10409_v6, %v2120_v5  ;;  %v6428_v6 = vld [vmem:[%s11419_s4 + $0xd8] sm:$0xf]  ;;  %2694 = vmatpush.bf16.msrb.mxu2 %v6461_v15  ;;  %v6337_v15 = vor.u32 %v7982_v8, %v6334_v9 }
 0x289   : > { %v6465_v18 = vor.u32 %v8014_v16, %v6462_v17  ;;  %v8009_v20 = vld [vmem:[%s11419_s4 + $0xec] sm:$0xf0]  ;;  %v6429_v34 = vor.u32 %v8010_v28, %v6428_v6 }
 0x28a   : > { %v6421_v22 = vor.u32 %v8009_v20, %v6420_v27  ;;  %v2146_v37 = vadd.f32 %v10417_v11, %v2133_v19  ;;  %v6398_v11 = vld [vmem:[%s11419_s4 + $0xb8] sm:$0xf0]  ;;  %v2204_v27 = vld [vmem:[%s11416_s1] sm:$0x3] }
 0x28b   : > { %2707 = vmatpush.bf16.msrb.mxu3 %v6465_v18  ;;  %2682 = vmatpush.bf16.msrb.mxu1 %v6425_v29  ;;  %v6401_v49 = vor.u32 %v7998_v40, %v6398_v11 }
 0x28c   : > { %2669 = vmatpush.bf16.msrb.mxu0 %v6421_v22  ;;  %2695 = vmatpush.bf16.msrb.mxu2 %v6429_v34 }
 0x28f   : > { %v2134_v41 = vpop.f32.mrf.mxu2  ;;  %2708 = vmatpush.bf16.msrb.mxu3 %v6433_v35  ;;  %2683 = vmatpush.bf16.msrb.mxu1 %v6393_v43 }
 0x290   : > { %v2147_v45 = vpop.f32.mrf.mxu3  ;;  %2670 = vmatpush.bf16.msrb.mxu0 %v6389_v42 }
 0x291   : > { %v6397_v45 = vor.u32 %v8002_v32, %v6396_v39 }
 0x293   : > { %2696 = vmatpush.bf16.msrb.mxu2 %v6397_v45  ;;  %2709 = vmatpush.bf16.msrb.mxu3 %v6401_v49 }
 0x294   : > { %2671 = vmatpush.bf16.msrb.mxu0 %v6357_v56  ;;  %2684 = vmatpush.bf16.msrb.mxu1 %v6361_v58 }
 0x297   : > { %2697 = vmatpush.bf16.msrb.mxu2 %v6365_v61  ;;  %2710 = vmatpush.bf16.msrb.mxu3 %v6369_v1 }
 0x298   : > { %2672 = vmatpush.bf16.msrb.mxu0 %v6325_v12  ;;  %2685 = vmatpush.bf16.msrb.mxu1 %v6329_v57 }
 0x29b   : > { %2698 = vmatpush.bf16.msrb.mxu2 %v6333_v14  ;;  %2711 = vmatpush.bf16.msrb.mxu3 %v6337_v15 }
 0x29f   : > { %v2158_v25 = vpop.f32.mrf.mxu0 }
 0x2a0   : > { %v2171_v41 = vpop.f32.mrf.mxu1  ;;  %v2159_v44 = vadd.f32 %v2158_v25, %v2146_v37 }
 0x2a2   : > { %v2172_v60 = vadd.f32 %v2171_v41, %v2159_v44 }
 0x2a7   : > { %v2184_v0 = vpop.f32.mrf.mxu2  ;;  %v2160_v7 = vpop.f32.mrf.mxu0 }
 0x2a8   : > { %v2185_v4 = vadd.f32 %v2184_v0, %v2172_v60  ;;  %v2197_v5 = vpop.f32.mrf.mxu3  ;;  %v2173_v10 = vpop.f32.mrf.mxu1 }
 0x2aa   : > { %v2198_v13 = vadd.f32 %v2197_v5, %v2185_v4 }
 0x2ac   : > { %v2201_v16 = vmul.f32 0.5, %v2198_v13  ;;  %2208 = vst [vmem:[#allocation6] sm:$0x3] %v2198_v13 }
 0x2ae   : > { %v2202_v17 = vmul.f32 1.442695, %v2201_v16 }
 0x2af   : > { %v2186_v18 = vpop.f32.mrf.mxu2 }
 0x2b0   : > { %8410 = vpow2.f32 %v2202_v17  ;;  %v2199_v19 = vpop.f32.mrf.mxu3 }
 0x2b6   : > { %v8411_v20 = vpop.eup %8410 }
 0x2b7   : > { %v2205_v21 = vmul.f32 %v8411_v20, %v2204_v27 }
 0x2b9   : > { %v2206_v22 = vadd.f32 %v2205_v21, %v10258_v53  ;;  %v2275_v53 = vld [vmem:[%s11420_s5] sm:$0xff] }
 0x2ba   : > { %v2279_v33 = vperm.slane %v2275_v53, 2  ;;  %v2280_v35 = vperm.slane %v2275_v53, 3  ;;  %v2277_v31 = vperm.slane %v2275_v53, 0  ;;  %v2278_v36 = vperm.slane %v2275_v53, 1 }
 0x2bb   : > { %2209 = vst [vmem:[#allocation8] sm:$0x3] %v2206_v22  ;;  %v2210_v23 = vpack.c.bf16 %v2206_v22, %v2206_v22  ;;  %v2281_v38 = vperm.slane %v2275_v53, 4  ;;  %v2282_v37 = vperm.slane %v2275_v53, 5  ;;  %v2283_v46 = vperm.slane %v2275_v53, 6 }
 0x2bc   : > { %v2284_v47 = vperm.slane %v2275_v53, 7 }
 0x2bd   : > { %2621 = vmatmul.bf16.vlgmr.msra.gmra.mxu0 %v2210_v23  ;;  %2634 = vmatmul.bf16.vlgmr.msra.gmra.mxu1 %v2210_v23 }
 0x2be   : > { %2647 = vmatmul.bf16.vlgmr.msra.gmra.mxu2 %v2210_v23  ;;  %2660 = vmatmul.bf16.vlgmr.msra.gmra.mxu3 %v2210_v23 }
 0x2cd   : > { %2673 = vmatmul.bf16.vlgmr.msrb.gmra.mxu0 %v2210_v23  ;;  %2686 = vmatmul.bf16.vlgmr.msrb.gmra.mxu1 %v2210_v23 }
 0x2ce   : > { %2699 = vmatmul.bf16.vlgmr.msrb.gmra.mxu2 %v2210_v23  ;;  %2712 = vmatmul.bf16.vlgmr.msrb.gmra.mxu3 %v2210_v23 }
 0x33a   : > { %v2622_v6 = vpop.f32.mrf.mxu0  ;;  %v2635_v28 = vpop.f32.mrf.mxu1 }
 0x33b   : > { %v2623_v43 = vadd.f32 %v2622_v6, %v2277_v31  ;;  %v2636_v11 = vadd.f32 %v2635_v28, %v2278_v36 }
 0x33d   : > { %v2717_v48 = vpack.c.bf16 %v2636_v11, %v2623_v43 }
 0x33f   : > { %v2725_v61 = vrot.slane %v2717_v48, 3 }
 0x341   : > { %v2648_v29 = vpop.f32.mrf.mxu2  ;;  %v2661_v34 = vpop.f32.mrf.mxu3  ;;  %v2735_v3 = vsel %vm2732_vm1, %v2717_v48, %v2725_v61 }
 0x342   : > { %v2624_v26 = vpop.f32.mrf.mxu0  ;;  %v2637_v30 = vpop.f32.mrf.mxu1  ;;  %v2649_v32 = vadd.f32 %v2648_v29, %v2279_v33  ;;  %v2662_v40 = vadd.f32 %v2661_v34, %v2280_v35 }
 0x344   : > { %v2718_v45 = vpack.c.bf16 %v2662_v40, %v2649_v32 }
 0x346   : > { %v2726_v54 = vrot.slane %v2718_v45, 6  ;;  %v2727_v55 = vrot.slane %v2718_v45, 1 }
 0x348   : > { %v2739_v0 = vsel %vm2736_vm0, %v2726_v54, %v2727_v55 }
 0x349   : > { %v2650_v25 = vpop.f32.mrf.mxu2  ;;  %v2663_v39 = vpop.f32.mrf.mxu3  ;;  %v2741_v7 = vsel %vm2740_vm2, %v2735_v3, %v2739_v0 }
 0x34a   : > { %v2674_v41 = vpop.f32.mrf.mxu0  ;;  %v2687_v42 = vpop.f32.mrf.mxu1 }
 0x34b   : > { %v2675_v24 = vadd.f32 %v2674_v41, %v2281_v38  ;;  %v2688_v44 = vadd.f32 %v2687_v42, %v2282_v37 }
 0x34d   : > { %v2719_v49 = vpack.c.bf16 %v2688_v44, %v2675_v24 }
 0x34f   : > { %v2728_v51 = vrot.slane %v2719_v49, 4  ;;  %v2729_v62 = vrot.slane %v2719_v49, 7 }
 0x351   : > { %v2700_v50 = vpop.f32.mrf.mxu2  ;;  %v2713_v52 = vpop.f32.mrf.mxu3  ;;  %v2745_v4 = vsel %vm2742_vm3, %v2728_v51, %v2729_v62 }
 0x352   : > { %v2701_v56 = vadd.f32 %v2700_v50, %v2283_v46  ;;  %v2714_v58 = vadd.f32 %v2713_v52, %v2284_v47  ;;  %v2676_v59 = vpop.f32.mrf.mxu0  ;;  %v2689_v60 = vpop.f32.mrf.mxu1 }
 0x354   : > { %v2720_v63 = vpack.c.bf16 %v2714_v58, %v2701_v56 }
 0x356   : > { %v2730_v1 = vrot.slane %v2720_v63, 2  ;;  %v2731_v2 = vrot.slane %v2720_v63, 5 }
 0x358   : > { %v2749_v5 = vsel %vm2746_vm4, %v2730_v1, %v2731_v2 }
 0x359   : > { %v2751_v8 = vsel %vm2750_vm5, %v2745_v4, %v2749_v5  ;;  %v2702_v9 = vpop.f32.mrf.mxu2  ;;  %v2715_v10 = vpop.f32.mrf.mxu3 }
 0x35a   : > { %v2753_v12 = vsel %vm2752_vm6, %v2741_v7, %v2751_v8 }
 0x35b   : > { %2755 = vst [vmem:[#allocation2] sm:$0xff] %v2753_v12 }
 0x35c PF: > { %v6704_v57 = vld [vmem:[%s9428_s27 + $0x118] sm:$0xf]  ;;  %v8080_v13 = vld [vmem:[%s9428_s27 + $0x128] sm:$0xf0]  ;;  %v6684_v22 = vld [vmem:[%s9428_s27 + $0xf0] sm:$0xf]  ;;  %s11427_s22 = scalar_lea.vmem %s11426_s11, %s11432_s14 }
 0x35d   : > { %v6864_v14 = vld [vmem:[%s9428_s27 + $0x258] sm:$0xf]  ;;  %v6705_v15 = vor.u32 %v8080_v13, %v6704_v57  ;;  %v8120_v16 = vld [vmem:[%s9428_s27 + $0x268] sm:$0xf0]  ;;  %v8075_v6 = vld [vmem:[%s9428_s27 + $0x100] sm:$0xf0] }
 0x35e   : > { %v7024_v17 = vld [vmem:[%s9428_s27 + $0x398] sm:$0xf]  ;;  %v8160_v18 = vld [vmem:[%s9428_s27 + $0x3a8] sm:$0xf0]  ;;  %v6865_v19 = vor.u32 %v8120_v16, %v6864_v14  ;;  %v6844_v28 = vld [vmem:[%s9428_s27 + $0x230] sm:$0xf]  ;;  %v6685_v34 = vor.u32 %v8075_v6, %v6684_v22 }
 0x35f   : > { %v7025_v27 = vor.u32 %v8160_v18, %v7024_v17  ;;  %v7184_v20 = vld [vmem:[%s9428_s27 + $0x4d8] sm:$0xf]  ;;  %v8200_v21 = vld [vmem:[%s9428_s27 + $0x4e8] sm:$0xf0]  ;;  %4835 = vmatpush.bf16.msra.mxu0 %v6705_v15  ;;  %v8115_v29 = vld [vmem:[%s9428_s27 + $0x240] sm:$0xf0] }
 0x360   : > { %v7185_v23 = vor.u32 %v8200_v21, %v7184_v20  ;;  %4848 = vmatpush.bf16.msra.mxu1 %v6865_v19  ;;  %v6845_v26 = vor.u32 %v8115_v29, %v6844_v28  ;;  %v7004_v30 = vld [vmem:[%s9428_s27 + $0x370] sm:$0xf]  ;;  %v8155_v53 = vld [vmem:[%s9428_s27 + $0x380] sm:$0xf0]  ;;  %v6664_v36 = vld [vmem:[%s9428_s27 + $0xc8] sm:$0xf] }
 0x361   : > { %4861 = vmatpush.bf16.msra.mxu2 %v7025_v27  ;;  %v7164_v33 = vld [vmem:[%s9428_s27 + $0x4b0] sm:$0xf]  ;;  %v7005_v35 = vor.u32 %v8155_v53, %v7004_v30  ;;  %v8195_v31 = vld [vmem:[%s9428_s27 + $0x4c0] sm:$0xf0]  ;;  %v8070_v38 = vld [vmem:[%s9428_s27 + $0xd8] sm:$0xf0] }
 0x362   : > { %4874 = vmatpush.bf16.msra.mxu3 %v7185_v23  ;;  %v7165_v37 = vor.u32 %v8195_v31, %v7164_v33  ;;  %v6824_v25 = vld [vmem:[%s9428_s27 + $0x208] sm:$0xf]  ;;  %v8110_v39 = vld [vmem:[%s9428_s27 + $0x218] sm:$0xf0]  ;;  %v6665_v40 = vor.u32 %v8070_v38, %v6664_v36  ;;  %v6644_v44 = vld [vmem:[%s9428_s27 + $0xa0] sm:$0xf] }
 0x363   : > { %v6984_v32 = vld [vmem:[%s9428_s27 + $0x348] sm:$0xf]  ;;  %4836 = vmatpush.bf16.msra.mxu0 %v6685_v34  ;;  %v8150_v41 = vld [vmem:[%s9428_s27 + $0x358] sm:$0xf0]  ;;  %v6825_v11 = vor.u32 %v8110_v39, %v6824_v25  ;;  %v8065_v45 = vld [vmem:[%s9428_s27 + $0xb0] sm:$0xf0] }
 0x364   : > { %v7144_v42 = vld [vmem:[%s9428_s27 + $0x488] sm:$0xf]  ;;  %v8190_v43 = vld [vmem:[%s9428_s27 + $0x498] sm:$0xf0]  ;;  %4849 = vmatpush.bf16.msra.mxu1 %v6845_v26  ;;  %v6985_v24 = vor.u32 %v8150_v41, %v6984_v32  ;;  %v6804_v46 = vld [vmem:[%s9428_s27 + $0x1e0] sm:$0xf]  ;;  %v6645_v55 = vor.u32 %v8065_v45, %v6644_v44 }
 0x365   : > { %4862 = vmatpush.bf16.msra.mxu2 %v7005_v35  ;;  %v7145_v47 = vor.u32 %v8190_v43, %v7144_v42  ;;  %v8105_v48 = vld [vmem:[%s9428_s27 + $0x1f0] sm:$0xf0]  ;;  %v6964_v49 = vld [vmem:[%s9428_s27 + $0x320] sm:$0xf]  ;;  %v6624_v59 = vld [vmem:[%s9428_s27 + $0x78] sm:$0xf] }
 0x366   : > { %4875 = vmatpush.bf16.msra.mxu3 %v7165_v37  ;;  %v8145_v50 = vld [vmem:[%s9428_s27 + $0x330] sm:$0xf0]  ;;  %v7124_v52 = vld [vmem:[%s9428_s27 + $0x460] sm:$0xf]  ;;  %v6805_v56 = vor.u32 %v8105_v48, %v6804_v46  ;;  %v8060_v60 = vld [vmem:[%s9428_s27 + $0x88] sm:$0xf0] }
 0x367   : > { %v8185_v54 = vld [vmem:[%s9428_s27 + $0x470] sm:$0xf0]  ;;  %4837 = vmatpush.bf16.msra.mxu0 %v6665_v40  ;;  %v6965_v58 = vor.u32 %v8145_v50, %v6964_v49  ;;  %v6784_v61 = vld [vmem:[%s9428_s27 + $0x1b8] sm:$0xf]  ;;  %v8100_v62 = vld [vmem:[%s9428_s27 + $0x1c8] sm:$0xf0]  ;;  %v6625_v3 = vor.u32 %v8060_v60, %v6624_v59 }
 0x368   : > { %4850 = vmatpush.bf16.msra.mxu1 %v6825_v11  ;;  %v7125_v51 = vor.u32 %v8185_v54, %v7124_v52  ;;  %v6944_v63 = vld [vmem:[%s9428_s27 + $0x2f8] sm:$0xf]  ;;  %v8140_v0 = vld [vmem:[%s9428_s27 + $0x308] sm:$0xf0]  ;;  %v6785_v4 = vor.u32 %v8100_v62, %v6784_v61  ;;  %v6604_v7 = vld [vmem:[%s9428_s27 + $0x50] sm:$0xf] }
 0x369   : > { %4863 = vmatpush.bf16.msra.mxu2 %v6985_v24  ;;  %v7104_v1 = vld [vmem:[%s9428_s27 + $0x438] sm:$0xf]  ;;  %v8180_v2 = vld [vmem:[%s9428_s27 + $0x448] sm:$0xf0]  ;;  %v6945_v5 = vor.u32 %v8140_v0, %v6944_v63  ;;  %v8055_v8 = vld [vmem:[%s9428_s27 + $0x60] sm:$0xf0] }
 0x36a   : > { %4876 = vmatpush.bf16.msra.mxu3 %v7145_v47  ;;  %v6764_v9 = vld [vmem:[%s9428_s27 + $0x190] sm:$0xf]  ;;  %v7105_v10 = vor.u32 %v8180_v2, %v7104_v1  ;;  %v8095_v12 = vld [vmem:[%s9428_s27 + $0x1a0] sm:$0xf0]  ;;  %v6605_v16 = vor.u32 %v8055_v8, %v6604_v7  ;;  %v6584_v19 = vld [vmem:[%s9428_s27 + $0x28] sm:$0xf] }
 0x36b   : > { %4838 = vmatpush.bf16.msra.mxu0 %v6645_v55  ;;  %v6924_v57 = vld [vmem:[%s9428_s27 + $0x2d0] sm:$0xf]  ;;  %v8135_v13 = vld [vmem:[%s9428_s27 + $0x2e0] sm:$0xf0]  ;;  %v6765_v17 = vor.u32 %v8095_v12, %v6764_v9  ;;  %v8050_v27 = vld [vmem:[%s9428_s27 + $0x38] sm:$0xf0] }
 0x36c   : > { %4851 = vmatpush.bf16.msra.mxu1 %v6805_v56  ;;  %v7084_v14 = vld [vmem:[%s9428_s27 + $0x410] sm:$0xf]  ;;  %v8175_v15 = vld [vmem:[%s9428_s27 + $0x420] sm:$0xf0]  ;;  %v6925_v18 = vor.u32 %v8135_v13, %v6924_v57  ;;  %v6744_v20 = vld [vmem:[%s9428_s27 + $0x168] sm:$0xf]  ;;  %v6585_v34 = vor.u32 %v8050_v27, %v6584_v19 }
 0x36d   : > { %4864 = vmatpush.bf16.msra.mxu2 %v6965_v58  ;;  %v7085_v21 = vor.u32 %v8175_v15, %v7084_v14  ;;  %v8090_v22 = vld [vmem:[%s9428_s27 + $0x178] sm:$0xf0]  ;;  %v6904_v23 = vld [vmem:[%s9428_s27 + $0x2a8] sm:$0xf]  ;;  %v6564_v26 = vld [vmem:[%s9428_s27] sm:$0xf] }
 0x36e   : > { %4877 = vmatpush.bf16.msra.mxu3 %v7125_v51  ;;  %v8130_v6 = vld [vmem:[%s9428_s27 + $0x2b8] sm:$0xf0]  ;;  %v7064_v28 = vld [vmem:[%s9428_s27 + $0x3e8] sm:$0xf]  ;;  %v8045_v30 = vld [vmem:[%s9428_s27 + $0x10] sm:$0xf0]  ;;  %v6745_v53 = vor.u32 %v8090_v22, %v6744_v20 }
 0x36f   : > { %4839 = vmatpush.bf16.msra.mxu0 %v6625_v3  ;;  %v8170_v29 = vld [vmem:[%s9428_s27 + $0x3f8] sm:$0xf0]  ;;  %v6905_v33 = vor.u32 %v8130_v6, %v6904_v23  ;;  %v6724_v35 = vld [vmem:[%s9428_s27 + $0x140] sm:$0xf]  ;;  %v8085_v31 = vld [vmem:[%s9428_s27 + $0x150] sm:$0xf0]  ;;  %v6565_v42 = vor.u32 %v8045_v30, %v6564_v26 }
 0x370   : > { %4852 = vmatpush.bf16.msra.mxu1 %v6785_v4  ;;  %v6884_v36 = vld [vmem:[%s9428_s27 + $0x280] sm:$0xf]  ;;  %v7065_v38 = vor.u32 %v8170_v29, %v7064_v28  ;;  %v8125_v37 = vld [vmem:[%s9428_s27 + $0x290] sm:$0xf0]  ;;  %v7344_v32 = vld [vmem:[%s9428_s27 + $0x618] sm:$0xf]  ;;  %v6725_v44 = vor.u32 %v8085_v31, %v6724_v35 }
 0x371   : > { %4865 = vmatpush.bf16.msra.mxu2 %v6945_v5  ;;  %v7044_v25 = vld [vmem:[%s9428_s27 + $0x3c0] sm:$0xf]  ;;  %v8165_v39 = vld [vmem:[%s9428_s27 + $0x3d0] sm:$0xf0]  ;;  %v8240_v40 = vld [vmem:[%s9428_s27 + $0x628] sm:$0xf0]  ;;  %v6885_v45 = vor.u32 %v8125_v37, %v6884_v36 }
 0x372   : > { %4878 = vmatpush.bf16.msra.mxu3 %v7105_v10  ;;  %v7504_v41 = vld [vmem:[%s9428_s27 + $0x758] sm:$0xf]  ;;  %v8280_v43 = vld [vmem:[%s9428_s27 + $0x768] sm:$0xf0]  ;;  %v7045_v48 = vor.u32 %v8165_v39, %v7044_v25  ;;  %v7345_v49 = vor.u32 %v8240_v40, %v7344_v32  ;;  %v7324_v54 = vld [vmem:[%s9428_s27 + $0x5f0] sm:$0xf] }
 0x373   : > { %4840 = vmatpush.bf16.msra.mxu0 %v6605_v16  ;;  %v7664_v11 = vld [vmem:[%s9428_s27 + $0x898] sm:$0xf]  ;;  %v8320_v24 = vld [vmem:[%s9428_s27 + $0x8a8] sm:$0xf0]  ;;  %v7505_v50 = vor.u32 %v8280_v43, %v7504_v41  ;;  %v8235_v55 = vld [vmem:[%s9428_s27 + $0x600] sm:$0xf0] }
 0x374   : > { %4853 = vmatpush.bf16.msra.mxu1 %v6765_v17  ;;  %v7824_v46 = vld [vmem:[%s9428_s27 + $0x9d8] sm:$0xf]  ;;  %v8360_v47 = vld [vmem:[%s9428_s27 + $0x9e8] sm:$0xf0]  ;;  %v7665_v52 = vor.u32 %v8320_v24, %v7664_v11  ;;  %v7484_v56 = vld [vmem:[%s9428_s27 + $0x730] sm:$0xf]  ;;  %v7325_v63 = vor.u32 %v8235_v55, %v7324_v54 }
 0x375   : > { %4866 = vmatpush.bf16.msra.mxu2 %v6925_v18  ;;  %v7825_v58 = vor.u32 %v8360_v47, %v7824_v46  ;;  %v8275_v59 = vld [vmem:[%s9428_s27 + $0x740] sm:$0xf0]  ;;  %v7644_v60 = vld [vmem:[%s9428_s27 + $0x870] sm:$0xf]  ;;  %v7304_v2 = vld [vmem:[%s9428_s27 + $0x5c8] sm:$0xf] }
 0x376   : > { %4879 = vmatpush.bf16.msra.mxu3 %v7085_v21  ;;  %v8315_v61 = vld [vmem:[%s9428_s27 + $0x880] sm:$0xf0]  ;;  %v7804_v51 = vld [vmem:[%s9428_s27 + $0x9b0] sm:$0xf]  ;;  %v7485_v0 = vor.u32 %v8275_v59, %v7484_v56  ;;  %v8230_v3 = vld [vmem:[%s9428_s27 + $0x5d8] sm:$0xf0] }
 0x377   : > { %4841 = vmatpush.bf16.msra.mxu0 %v6585_v34  ;;  %v8355_v62 = vld [vmem:[%s9428_s27 + $0x9c0] sm:$0xf0]  ;;  %v7645_v1 = vor.u32 %v8315_v61, %v7644_v60  ;;  %v7464_v4 = vld [vmem:[%s9428_s27 + $0x708] sm:$0xf]  ;;  %v8270_v7 = vld [vmem:[%s9428_s27 + $0x718] sm:$0xf0]  ;;  %v7305_v57 = vor.u32 %v8230_v3, %v7304_v2 }
 0x378   : > { %4854 = vmatpush.bf16.msra.mxu1 %v6745_v53  ;;  %v7805_v5 = vor.u32 %v8355_v62, %v7804_v51  ;;  %v7624_v8 = vld [vmem:[%s9428_s27 + $0x848] sm:$0xf]  ;;  %v8310_v9 = vld [vmem:[%s9428_s27 + $0x858] sm:$0xf0]  ;;  %v7284_v13 = vld [vmem:[%s9428_s27 + $0x5a0] sm:$0xf]  ;;  %v7465_v15 = vor.u32 %v8270_v7, %v7464_v4 }
 0x379   : > { %4867 = vmatpush.bf16.msra.mxu2 %v6905_v33  ;;  %v7784_v10 = vld [vmem:[%s9428_s27 + $0x988] sm:$0xf]  ;;  %v8350_v12 = vld [vmem:[%s9428_s27 + $0x998] sm:$0xf0]  ;;  %v7625_v16 = vor.u32 %v8310_v9, %v7624_v8  ;;  %v8225_v17 = vld [vmem:[%s9428_s27 + $0x5b0] sm:$0xf0] }
 0x37a   : > { %4880 = vmatpush.bf16.msra.mxu3 %v7065_v38  ;;  %v2756_v14 = vld [vmem:[#allocation2] sm:$0xff]  ;;  %v7444_v18 = vld [vmem:[%s9428_s27 + $0x6e0] sm:$0xf]  ;;  %v7785_v19 = vor.u32 %v8350_v12, %v7784_v10  ;;  %v8265_v27 = vld [vmem:[%s9428_s27 + $0x6f0] sm:$0xf0]  ;;  %v7285_v6 = vor.u32 %v8225_v17, %v7284_v13  ;;  %p8377_p10 = scmp.eq.s32.totalorder %s8620_s20, 4 }
 0x37b   : > { %4842 = vmatpush.bf16.msra.mxu0 %v6565_v42  ;;  %3154 = vst [vmem:[#allocation1] ss:$9 sm:$0xff] %v2756_v14  ;;  %v7604_v20 = vld [vmem:[%s9428_s27 + $0x820] sm:$0xf]  ;;  %v8305_v21 = vld [vmem:[%s9428_s27 + $0x830] sm:$0xf0]  ;;  %v7445_v28 = vor.u32 %v8265_v27, %v7444_v18 }
 0x37c   : > { %4855 = vmatpush.bf16.msra.mxu1 %v6725_v44  ;;  %v7764_v22 = vld [vmem:[%s9428_s27 + $0x960] sm:$0xf]  ;;  %v8345_v23 = vld [vmem:[%s9428_s27 + $0x970] sm:$0xf0]  ;;  %v7605_v29 = vor.u32 %v8305_v21, %v7604_v20  ;;  %v7264_v34 = vld [vmem:[%s9428_s27 + $0x578] sm:$0xf] }
 0x37d   : > { %4868 = vmatpush.bf16.msra.mxu2 %v6885_v45  ;;  %v8220_v26 = vld [vmem:[%s9428_s27 + $0x588] sm:$0xf0]  ;;  %v7424_v30 = vld [vmem:[%s9428_s27 + $0x6b8] sm:$0xf]  ;;  %v7765_v53 = vor.u32 %v8345_v23, %v7764_v22  ;;  %v7244_v37 = vld [vmem:[%s9428_s27 + $0x550] sm:$0xf] }
 0x37e   : > { %4881 = vmatpush.bf16.msra.mxu3 %v7045_v48  ;;  %v8260_v33 = vld [vmem:[%s9428_s27 + $0x6c8] sm:$0xf0]  ;;  %v7584_v35 = vld [vmem:[%s9428_s27 + $0x7f8] sm:$0xf]  ;;  %v7265_v25 = vor.u32 %v8220_v26, %v7264_v34  ;;  %v8215_v43 = vld [vmem:[%s9428_s27 + $0x560] sm:$0xf0] }
 0x37f   : > { %4887 = vmatpush.bf16.msrb.mxu0 %v7345_v49  ;;  %v8300_v31 = vld [vmem:[%s9428_s27 + $0x808] sm:$0xf0]  ;;  %v7744_v36 = vld [vmem:[%s9428_s27 + $0x938] sm:$0xf]  ;;  %v7425_v41 = vor.u32 %v8260_v33, %v7424_v30  ;;  %v7404_v11 = vld [vmem:[%s9428_s27 + $0x690] sm:$0xf] }
 0x380   : > { %4900 = vmatpush.bf16.msrb.mxu1 %v7505_v50  ;;  %v8340_v38 = vld [vmem:[%s9428_s27 + $0x948] sm:$0xf0]  ;;  %v7585_v42 = vor.u32 %v8300_v31, %v7584_v35  ;;  %v8255_v45 = vld [vmem:[%s9428_s27 + $0x6a0] sm:$0xf0]  ;;  %v7564_v46 = vld [vmem:[%s9428_s27 + $0x7d0] sm:$0xf]  ;;  %v7245_v50 = vor.u32 %v8215_v43, %v7244_v37 }
 0x381   : > { %4913 = vmatpush.bf16.msrb.mxu2 %v7665_v52  ;;  %v7745_v44 = vor.u32 %v8340_v38, %v7744_v36  ;;  %v8295_v47 = vld [vmem:[%s9428_s27 + $0x7e0] sm:$0xf0]  ;;  %v7724_v48 = vld [vmem:[%s9428_s27 + $0x910] sm:$0xf]  ;;  %v7405_v52 = vor.u32 %v8255_v45, %v7404_v11  ;;  %v7224_v55 = vld [vmem:[%s9428_s27 + $0x528] sm:$0xf] }
 0x382   : > { %4926 = vmatpush.bf16.msrb.mxu3 %v7825_v58  ;;  %v10752_v39 = vld [vmem:[#allocation1 + $0x12] sm:$0xff]  ;;  %v10754_v32 = vld [vmem:[#allocation1] sm:$0xff]  ;;  %v10760_v24 = vld [vmem:[#allocation1 + $0x9] sm:$0xff]  ;;  %v7565_v54 = vor.u32 %v8295_v47, %v7564_v46  ;;  %s5413_s15 = sshll.u32 %s11424_s9, 4  ;;  %s8542_s25 = smov [#allocation4]   ;;  %vm5371_vm7 = vcmask 1040384   ;;  %s5414_s15 = int_to_ptr.hbm [resolvable:$true] %s5413_s15 }
 0x383   : > { %4888 = vmatpush.bf16.msrb.mxu0 %v7325_v63  ;;  %v10756_v40 = vld [vmem:[#allocation1 + $0x1b] sm:$0xff]  ;;  %4869 = vmatmul.bf16.vlgmr.msra.gmra.mxu2 %v10752_v39  ;;  %v8335_v49 = vld [vmem:[%s9428_s27 + $0x920] sm:$0xf0]  ;;  %v8210_v56 = vld [vmem:[%s9428_s27 + $0x538] sm:$0xf0]  ;;  %s5399_s26 = sshll.u32 %s8542_s25, 4  ;;  %s5400_s26 = int_to_ptr.vmem [resolvable:$true] %s5399_s26 }
 0x384   : > { %4901 = vmatpush.bf16.msrb.mxu1 %v7485_v0  ;;  %4843 = vmatmul.bf16.vlgmr.msra.gmra.mxu0 %v10754_v32  ;;  %v7384_v58 = vld [vmem:[%s9428_s27 + $0x668] sm:$0xf]  ;;  %v7725_v59 = vor.u32 %v8335_v49, %v7724_v48  ;;  %v8250_v60 = vld [vmem:[%s9428_s27 + $0x678] sm:$0xf0]  ;;  %v7225_v0 = vor.u32 %v8210_v56, %v7224_v55  ;;  %v8205_v2 = vld [vmem:[%s9428_s27 + $0x510] sm:$0xf0] }
 0x385   : > { %4914 = vmatpush.bf16.msrb.mxu2 %v7645_v1  ;;  %4882 = vmatmul.bf16.vlgmr.msra.gmra.mxu3 %v10756_v40  ;;  %v7544_v61 = vld [vmem:[%s9428_s27 + $0x7a8] sm:$0xf]  ;;  %v8290_v51 = vld [vmem:[%s9428_s27 + $0x7b8] sm:$0xf0]  ;;  %v7204_v1 = vld [vmem:[%s9428_s27 + $0x500] sm:$0xf]  ;;  %v7385_v3 = vor.u32 %v8250_v60, %v7384_v58 }
 0x386   : > { %4927 = vmatpush.bf16.msrb.mxu3 %v7805_v5  ;;  %4856 = vmatmul.bf16.vlgmr.msra.gmra.mxu1 %v10760_v24  ;;  %v7704_v62 = vld [vmem:[%s9428_s27 + $0x8e8] sm:$0xf]  ;;  %v8330_v63 = vld [vmem:[%s9428_s27 + $0x8f8] sm:$0xf0]  ;;  %v7545_v4 = vor.u32 %v8290_v51, %v7544_v61  ;;  %v7364_v5 = vld [vmem:[%s9428_s27 + $0x640] sm:$0xf] }
 0x387   : > { %4889 = vmatpush.bf16.msrb.mxu0 %v7305_v57  ;;  %v8245_v7 = vld [vmem:[%s9428_s27 + $0x650] sm:$0xf0]  ;;  %v7524_v8 = vld [vmem:[%s9428_s27 + $0x780] sm:$0xf]  ;;  %v7705_v9 = vor.u32 %v8330_v63, %v7704_v62  ;;  %v8078_v13 = vld [vmem:[%s9428_s27 + $0x11c] sm:$0xf] }
 0x388   : > { %4902 = vmatpush.bf16.msrb.mxu1 %v7465_v15  ;;  %v8285_v10 = vld [vmem:[%s9428_s27 + $0x790] sm:$0xf0]  ;;  %v7684_v12 = vld [vmem:[%s9428_s27 + $0x8c0] sm:$0xf]  ;;  %v6706_v14 = vld [vmem:[%s9428_s27 + $0x12c] sm:$0xf0]  ;;  %v7365_v27 = vor.u32 %v8245_v7, %v7364_v5 }
 0x389   : > { %4915 = vmatpush.bf16.msrb.mxu2 %v7625_v16  ;;  %v8325_v57 = vld [vmem:[%s9428_s27 + $0x8d0] sm:$0xf0]  ;;  %v8118_v15 = vld [vmem:[%s9428_s27 + $0x25c] sm:$0xf]  ;;  %v7205_v16 = vor.u32 %v8205_v2, %v7204_v1  ;;  %v6866_v17 = vld [vmem:[%s9428_s27 + $0x26c] sm:$0xf0]  ;;  %v7525_v20 = vor.u32 %v8285_v10, %v7524_v8 }
 0x38a   : > { %4928 = vmatpush.bf16.msrb.mxu3 %v7785_v19  ;;  %v8158_v18 = vld [vmem:[%s9428_s27 + $0x39c] sm:$0xf]  ;;  %v7026_v19 = vld [vmem:[%s9428_s27 + $0x3ac] sm:$0xf0]  ;;  %v7685_v23 = vor.u32 %v8325_v57, %v7684_v12  ;;  %v8073_v34 = vld [vmem:[%s9428_s27 + $0xf4] sm:$0xf] }
 0x38b   : > { %4890 = vmatpush.bf16.msrb.mxu0 %v7285_v6  ;;  %v8198_v21 = vld [vmem:[%s9428_s27 + $0x4dc] sm:$0xf]  ;;  %v7186_v22 = vld [vmem:[%s9428_s27 + $0x4ec] sm:$0xf0]  ;;  %v6709_v6 = vor.u32 %v8078_v13, %v6706_v14  ;;  %v6686_v26 = vld [vmem:[%s9428_s27 + $0x104] sm:$0xf0] }
 0x38c   : > { %4903 = vmatpush.bf16.msrb.mxu1 %v7445_v28  ;;  %v6869_v28 = vor.u32 %v8118_v15, %v6866_v17  ;;  %v8113_v30 = vld [vmem:[%s9428_s27 + $0x234] sm:$0xf]  ;;  %v6846_v33 = vld [vmem:[%s9428_s27 + $0x244] sm:$0xf0]  ;;  %v6666_v45 = vld [vmem:[%s9428_s27 + $0xdc] sm:$0xf0] }
 0x38d   : > { %4916 = vmatpush.bf16.msrb.mxu2 %v7605_v29  ;;  %v7029_v29 = vor.u32 %v8158_v18, %v7026_v19  ;;  %v8153_v35 = vld [vmem:[%s9428_s27 + $0x374] sm:$0xf]  ;;  %v7006_v31 = vld [vmem:[%s9428_s27 + $0x384] sm:$0xf0]  ;;  %v6849_v11 = vor.u32 %v8113_v30, %v6846_v33  ;;  %v8108_v46 = vld [vmem:[%s9428_s27 + $0x20c] sm:$0xf] }
 0x38e   : > { %4929 = vmatpush.bf16.msrb.mxu3 %v7765_v53  ;;  %v7189_v53 = vor.u32 %v8198_v21, %v7186_v22  ;;  %v8193_v36 = vld [vmem:[%s9428_s27 + $0x4b4] sm:$0xf]  ;;  %v7166_v38 = vld [vmem:[%s9428_s27 + $0x4c4] sm:$0xf0]  ;;  %v10812_v47 = vld [vmem:[#allocation1 + $0x2d] sm:$0xff]  ;;  %s5401_s29 = sshll.u32 %s11423_s8, 4  ;;  %s5402_s29 = int_to_ptr.hbm [resolvable:$true] %s5401_s29 }
 0x38f   : > { %4891 = vmatpush.bf16.msrb.mxu0 %v7265_v25  ;;  %v10803_v37 = vld [vmem:[#allocation1 + $0x36] sm:$0xff]  ;;  %v6689_v25 = vor.u32 %v8073_v34, %v6686_v26  ;;  %v10808_v43 = vld [vmem:[#allocation1 + $0x3f] sm:$0xff]  ;;  %v7169_v48 = vor.u32 %v8193_v36, %v7166_v38  ;;  %v6826_v49 = vld [vmem:[%s9428_s27 + $0x21c] sm:$0xf0]  ;;  %8366 = dma.vmem_to_hbm [thread:$0]  (%p8377_p10), %s5400_s26, 32, %s5402_s29, [#allocation5]  }
 0x390   : > { %4904 = vmatpush.bf16.msrb.mxu1 %v7425_v41  ;;  %v8068_v41 = vld [vmem:[%s9428_s27 + $0xcc] sm:$0xf]  ;;  %v7146_v55 = vld [vmem:[%s9428_s27 + $0x49c] sm:$0xf0]  ;;  %v6829_v58 = vor.u32 %v8108_v46, %v6826_v49  ;;  %v8063_v60 = vld [vmem:[%s9428_s27 + $0xa4] sm:$0xf] }
 0x391   : > { %4917 = vmatpush.bf16.msrb.mxu2 %v7585_v42  ;;  %v10806_v42 = vld [vmem:[#allocation1 + $0x24] sm:$0xff]  ;;  %v6669_v56 = vor.u32 %v8068_v41, %v6666_v45  ;;  %v8103_v51 = vld [vmem:[%s9428_s27 + $0x1e4] sm:$0xf]  ;;  %v8058_v8 = vld [vmem:[%s9428_s27 + $0x7c] sm:$0xf]  ;;  %s5425_s13 = sshll.u32 %s11425_s10, 4  ;;  %s5426_s13 = int_to_ptr.hbm [resolvable:$true] %s5425_s13 }
 0x392   : > { %4930 = vmatpush.bf16.msrb.mxu3 %v7745_v44  ;;  %v7009_v44 = vor.u32 %v8153_v35, %v7006_v31  ;;  %v6646_v61 = vld [vmem:[%s9428_s27 + $0xb4] sm:$0xf0]  ;;  %v8183_v2 = vld [vmem:[%s9428_s27 + $0x464] sm:$0xf]  ;;  %v8098_v10 = vld [vmem:[%s9428_s27 + $0x1bc] sm:$0xf] }
 0x393   : > { %4892 = vmatpush.bf16.msrb.mxu0 %v7245_v50  ;;  %v8148_v50 = vld [vmem:[%s9428_s27 + $0x34c] sm:$0xf]  ;;  %v6806_v63 = vld [vmem:[%s9428_s27 + $0x1f4] sm:$0xf0]  ;;  %v6786_v57 = vld [vmem:[%s9428_s27 + $0x1cc] sm:$0xf0] }
 0x394   : > { %4905 = vmatpush.bf16.msrb.mxu1 %v7405_v52  ;;  %v6986_v52 = vld [vmem:[%s9428_s27 + $0x35c] sm:$0xf0]  ;;  %v6966_v1 = vld [vmem:[%s9428_s27 + $0x334] sm:$0xf0]  ;;  %v6809_v5 = vor.u32 %v8103_v51, %v6806_v63  ;;  %v8138_v13 = vld [vmem:[%s9428_s27 + $0x2fc] sm:$0xf]  ;;  %v6789_v18 = vor.u32 %v8098_v10, %v6786_v57 }
 0x395   : > { %4918 = vmatpush.bf16.msrb.mxu2 %v7565_v54  ;;  %v8188_v54 = vld [vmem:[%s9428_s27 + $0x48c] sm:$0xf]  ;;  %v6946_v14 = vld [vmem:[%s9428_s27 + $0x30c] sm:$0xf0]  ;;  %v8178_v15 = vld [vmem:[%s9428_s27 + $0x43c] sm:$0xf] }
 0x396   : > { %4931 = vmatpush.bf16.msrb.mxu3 %v7725_v59  ;;  %v6989_v59 = vor.u32 %v8148_v50, %v6986_v52  ;;  %v7149_v62 = vor.u32 %v8188_v54, %v7146_v55  ;;  %v6949_v19 = vor.u32 %v8138_v13, %v6946_v14  ;;  %v8093_v21 = vld [vmem:[%s9428_s27 + $0x194] sm:$0xf]  ;;  %v7086_v34 = vld [vmem:[%s9428_s27 + $0x424] sm:$0xf0]  ;;  %v8048_v33 = vld [vmem:[%s9428_s27 + $0x2c] sm:$0xf] }
 0x397   : > { %4893 = vmatpush.bf16.msrb.mxu0 %v7225_v0  ;;  %v8143_v0 = vld [vmem:[%s9428_s27 + $0x324] sm:$0xf]  ;;  %v6586_v35 = vld [vmem:[%s9428_s27 + $0x3c] sm:$0xf0]  ;;  %v8088_v31 = vld [vmem:[%s9428_s27 + $0x16c] sm:$0xf] }
 0x398   : > { %4906 = vmatpush.bf16.msrb.mxu1 %v7385_v3  ;;  %v7126_v3 = vld [vmem:[%s9428_s27 + $0x474] sm:$0xf0]  ;;  %v6969_v7 = vor.u32 %v8143_v0, %v6966_v1  ;;  %v6746_v38 = vld [vmem:[%s9428_s27 + $0x17c] sm:$0xf0]  ;;  %v6589_v45 = vor.u32 %v8048_v33, %v6586_v35  ;;  %v8043_v46 = vld [vmem:[%s9428_s27 + $0x4] sm:$0xf] }
 0x399   : > { %4919 = vmatpush.bf16.msrb.mxu2 %v7545_v4  ;;  %v6649_v4 = vor.u32 %v8063_v60, %v6646_v61  ;;  %v7129_v12 = vor.u32 %v8183_v2, %v7126_v3  ;;  %v6906_v41 = vld [vmem:[%s9428_s27 + $0x2bc] sm:$0xf0]  ;;  %v6749_v49 = vor.u32 %v8088_v31, %v6746_v38  ;;  %v8083_v52 = vld [vmem:[%s9428_s27 + $0x144] sm:$0xf]  ;;  %v6726_v54 = vld [vmem:[%s9428_s27 + $0x154] sm:$0xf0] }
 0x39a   : > { %4932 = vmatpush.bf16.msrb.mxu3 %v7705_v9  ;;  %v6626_v9 = vld [vmem:[%s9428_s27 + $0x8c] sm:$0xf0]  ;;  %v8123_v55 = vld [vmem:[%s9428_s27 + $0x284] sm:$0xf]  ;;  %v7046_v60 = vld [vmem:[%s9428_s27 + $0x3d4] sm:$0xf0]  ;;  %v6729_v3 = vor.u32 %v8083_v52, %v6726_v54 }
 0x39b   : > { %4894 = vmatpush.bf16.msrb.mxu0 %v7205_v16  ;;  %v7106_v16 = vld [vmem:[%s9428_s27 + $0x44c] sm:$0xf0]  ;;  %v6629_v17 = vor.u32 %v8058_v8, %v6626_v9  ;;  %v8238_v61 = vld [vmem:[%s9428_s27 + $0x61c] sm:$0xf]  ;;  %v8233_v57 = vld [vmem:[%s9428_s27 + $0x5f4] sm:$0xf] }
 0x39c   : > { %4907 = vmatpush.bf16.msrb.mxu1 %v7365_v27  ;;  %v8053_v27 = vld [vmem:[%s9428_s27 + $0x54] sm:$0xf]  ;;  %v7109_v22 = vor.u32 %v8178_v15, %v7106_v16  ;;  %v7346_v51 = vld [vmem:[%s9428_s27 + $0x62c] sm:$0xf0]  ;;  %v8318_v1 = vld [vmem:[%s9428_s27 + $0x89c] sm:$0xf] }
 0x39d   : > { %4920 = vmatpush.bf16.msrb.mxu2 %v7525_v20  ;;  %v6606_v20 = vld [vmem:[%s9428_s27 + $0x64] sm:$0xf0]  ;;  %v7506_v0 = vld [vmem:[%s9428_s27 + $0x76c] sm:$0xf0]  ;;  %v7349_v9 = vor.u32 %v8238_v61, %v7346_v51  ;;  %v8273_v14 = vld [vmem:[%s9428_s27 + $0x734] sm:$0xf] }
 0x39e   : > { %4933 = vmatpush.bf16.msrb.mxu3 %v7685_v23  ;;  %4895 = vmatmul.bf16.vlgmr.msrb.gmra.mxu0 %v10806_v42  ;;  %v6766_v23 = vld [vmem:[%s9428_s27 + $0x1a4] sm:$0xf0]  ;;  %v6609_v26 = vor.u32 %v8053_v27, %v6606_v20  ;;  %v7666_v2 = vld [vmem:[%s9428_s27 + $0x8ac] sm:$0xf0]  ;;  %v7786_v33 = vld [vmem:[%s9428_s27 + $0x99c] sm:$0xf0] }
 0x39f   : > { %4939 = vmatpush.bf16.msra.mxu0 %v6709_v6  ;;  %4908 = vmatmul.bf16.vlgmr.msrb.gmra.mxu1 %v10812_v47  ;;  %v8133_v6 = vld [vmem:[%s9428_s27 + $0x2d4] sm:$0xf]  ;;  %v6769_v30 = vor.u32 %v8093_v21, %v6766_v23  ;;  %v7326_v13 = vld [vmem:[%s9428_s27 + $0x604] sm:$0xf0]  ;;  %v8228_v23 = vld [vmem:[%s9428_s27 + $0x5cc] sm:$0xf] }
 0x3a0   : > { %4952 = vmatpush.bf16.msra.mxu1 %v6869_v28  ;;  %4921 = vmatmul.bf16.vlgmr.msrb.gmra.mxu2 %v10803_v37  ;;  %v6926_v28 = vld [vmem:[%s9428_s27 + $0x2e4] sm:$0xf0]  ;;  %v7329_v20 = vor.u32 %v8233_v57, %v7326_v13  ;;  %v8223_v38 = vld [vmem:[%s9428_s27 + $0x5a4] sm:$0xf]  ;;  %v8298_v61 = vld [vmem:[%s9428_s27 + $0x7fc] sm:$0xf] }
 0x3a1   : > { %4965 = vmatpush.bf16.msra.mxu2 %v7029_v29  ;;  %4934 = vmatmul.bf16.vlgmr.msrb.gmra.mxu3 %v10808_v43  ;;  %v8173_v29 = vld [vmem:[%s9428_s27 + $0x414] sm:$0xf]  ;;  %v7486_v16 = vld [vmem:[%s9428_s27 + $0x744] sm:$0xf0]  ;;  %v7586_v51 = vld [vmem:[%s9428_s27 + $0x80c] sm:$0xf0] }
 0x3a2   : > { %4978 = vmatpush.bf16.msra.mxu3 %v7189_v53  ;;  %v6929_v53 = vor.u32 %v8133_v6, %v6926_v28  ;;  %v7089_v36 = vor.u32 %v8173_v29, %v7086_v34  ;;  %v7806_v27 = vld [vmem:[%s9428_s27 + $0x9c4] sm:$0xf0]  ;;  %v7489_v21 = vor.u32 %v8273_v14, %v7486_v16  ;;  %v7306_v6 = vld [vmem:[%s9428_s27 + $0x5dc] sm:$0xf0]  ;;  %v8268_v28 = vld [vmem:[%s9428_s27 + $0x70c] sm:$0xf] }
 0x3a3   : > { %4940 = vmatpush.bf16.msra.mxu0 %v6689_v25  ;;  %v8128_v25 = vld [vmem:[%s9428_s27 + $0x2ac] sm:$0xf]  ;;  %v7466_v34 = vld [vmem:[%s9428_s27 + $0x71c] sm:$0xf0]  ;;  %v7309_v35 = vor.u32 %v8228_v23, %v7306_v6  ;;  %v7726_v57 = vld [vmem:[%s9428_s27 + $0x924] sm:$0xf0] }
 0x3a4   : > { %4953 = vmatpush.bf16.msra.mxu1 %v6849_v11  ;;  %v8168_v11 = vld [vmem:[%s9428_s27 + $0x3ec] sm:$0xf]  ;;  %v6909_v50 = vor.u32 %v8128_v25, %v6906_v41  ;;  %v7469_v31 = vor.u32 %v8268_v28, %v7466_v34  ;;  %v7286_v25 = vld [vmem:[%s9428_s27 + $0x5b4] sm:$0xf0]  ;;  %v8263_v41 = vld [vmem:[%s9428_s27 + $0x6e4] sm:$0xf] }
 0x3a5   : > { %4966 = vmatpush.bf16.msra.mxu2 %v7009_v44  ;;  %v7066_v44 = vld [vmem:[%s9428_s27 + $0x3fc] sm:$0xf0]  ;;  %v8208_v16 = vld [vmem:[%s9428_s27 + $0x52c] sm:$0xf]  ;;  %v8203_v28 = vld [vmem:[%s9428_s27 + $0x504] sm:$0xf] }
 0x3a6   : > { %4979 = vmatpush.bf16.msra.mxu3 %v7169_v48  ;;  %v6566_v48 = vld [vmem:[%s9428_s27 + $0x14] sm:$0xf0]  ;;  %v7706_v23 = vld [vmem:[%s9428_s27 + $0x8fc] sm:$0xf0]  ;;  %s8543_s16 = smov [#allocation8]   ;;  %vm5375_vm8 = vcmask 1041408  }
 0x3a7   : > { %4941 = vmatpush.bf16.msra.mxu0 %v6669_v56  ;;  %v7069_v56 = vor.u32 %v8168_v11, %v7066_v44  ;;  %v6569_v63 = vor.u32 %v8043_v46, %v6566_v48  ;;  %v7446_v44 = vld [vmem:[%s9428_s27 + $0x6f4] sm:$0xf0]  ;;  %v8343_v48 = vld [vmem:[%s9428_s27 + $0x964] sm:$0xf]  ;;  %vm5378_vm9 = vcmask 1043459   ;;  %vm5382_vm10 = vcmask 1044483  }
 0x3a8   : > { %4954 = vmatpush.bf16.msra.mxu1 %v6829_v58  ;;  %v6886_v58 = vld [vmem:[%s9428_s27 + $0x294] sm:$0xf0]  ;;  %v7449_v52 = vor.u32 %v8263_v41, %v7446_v44  ;;  %v8081_v41 = vld [vmem:[%s9428_s27 + $0x130] sm:$0xf0]  ;;  %vm5385_vm11 = vcmask 1042432  }
 0x3a9   : > { %4967 = vmatpush.bf16.msra.mxu2 %v6989_v59  ;;  %v8163_v59 = vld [vmem:[%s9428_s27 + $0x3c4] sm:$0xf]  ;;  %v7606_v46 = vld [vmem:[%s9428_s27 + $0x834] sm:$0xf0] }
 0x3aa   : > { %4980 = vmatpush.bf16.msra.mxu3 %v7149_v62  ;;  %v8278_v62 = vld [vmem:[%s9428_s27 + $0x75c] sm:$0xf]  ;;  %v7049_v8 = vor.u32 %v8163_v59, %v7046_v60  ;;  %v7426_v60 = vld [vmem:[%s9428_s27 + $0x6cc] sm:$0xf0] }
 0x3ab   : > { %4942 = vmatpush.bf16.msra.mxu0 %v6649_v4  ;;  %v6889_v4 = vor.u32 %v8123_v55, %v6886_v58  ;;  %v7509_v10 = vor.u32 %v8278_v62, %v7506_v0  ;;  %v8218_v55 = vld [vmem:[%s9428_s27 + $0x57c] sm:$0xf] }
 0x3ac   : > { %4955 = vmatpush.bf16.msra.mxu1 %v6809_v5  ;;  %v8358_v5 = vld [vmem:[%s9428_s27 + $0x9dc] sm:$0xf] }
 0x3ad   : > { %4968 = vmatpush.bf16.msra.mxu2 %v6969_v7  ;;  %v7826_v7 = vld [vmem:[%s9428_s27 + $0x9ec] sm:$0xf0]  ;;  %v8258_v58 = vld [vmem:[%s9428_s27 + $0x6bc] sm:$0xf] }
 0x3ae   : > { %4981 = vmatpush.bf16.msra.mxu3 %v7129_v12  ;;  %v7669_v12 = vor.u32 %v8318_v1, %v7666_v2  ;;  %v7829_v15 = vor.u32 %v8358_v5, %v7826_v7  ;;  %v8338_v62 = vld [vmem:[%s9428_s27 + $0x93c] sm:$0xf]  ;;  %v7429_v1 = vor.u32 %v8258_v58, %v7426_v60  ;;  %v7589_v2 = vor.u32 %v8298_v61, %v7586_v51  ;;  %v8253_v5 = vld [vmem:[%s9428_s27 + $0x694] sm:$0xf]  ;;  %v6692_v60 = vld [vmem:[%s9428_s27 + $0xf8] sm:$0xf] }
 0x3af   : > { %4943 = vmatpush.bf16.msra.mxu0 %v6629_v17  ;;  %v8313_v17 = vld [vmem:[%s9428_s27 + $0x874] sm:$0xf]  ;;  %v8076_v61 = vld [vmem:[%s9428_s27 + $0x108] sm:$0xf0]  ;;  %v6852_v51 = vld [vmem:[%s9428_s27 + $0x238] sm:$0xf] }
 0x3b0   : > { %4956 = vmatpush.bf16.msra.mxu1 %v6789_v18  ;;  %v7646_v18 = vld [vmem:[%s9428_s27 + $0x884] sm:$0xf0] }
 0x3b1   : > { %4969 = vmatpush.bf16.msra.mxu2 %v6949_v19  ;;  %v8353_v19 = vld [vmem:[%s9428_s27 + $0x9b4] sm:$0xf] }
 0x3b2   : > { %4982 = vmatpush.bf16.msra.mxu3 %v7109_v22  ;;  %v7649_v22 = vor.u32 %v8313_v17, %v7646_v18  ;;  %v7809_v29 = vor.u32 %v8353_v19, %v7806_v27  ;;  %v7226_v17 = vld [vmem:[%s9428_s27 + $0x53c] sm:$0xf0]  ;;  %v8248_v18 = vld [vmem:[%s9428_s27 + $0x66c] sm:$0xf] }
 0x3b3   : > { %4944 = vmatpush.bf16.msra.mxu0 %v6609_v26  ;;  %v8308_v26 = vld [vmem:[%s9428_s27 + $0x84c] sm:$0xf]  ;;  %v7386_v27 = vld [vmem:[%s9428_s27 + $0x67c] sm:$0xf0]  ;;  %v7229_v6 = vor.u32 %v8208_v16, %v7226_v17  ;;  %v8191_v16 = vld [vmem:[%s9428_s27 + $0x4a0] sm:$0xf0] }
 0x3b4   : > { %4957 = vmatpush.bf16.msra.mxu1 %v6769_v30  ;;  %v7626_v30 = vld [vmem:[%s9428_s27 + $0x85c] sm:$0xf0]  ;;  %v7389_v34 = vor.u32 %v8248_v18, %v7386_v27  ;;  %v6812_v27 = vld [vmem:[%s9428_s27 + $0x1e8] sm:$0xf] }
 0x3b5   : > { %4970 = vmatpush.bf16.msra.mxu2 %v6929_v53  ;;  %v8348_v53 = vld [vmem:[%s9428_s27 + $0x98c] sm:$0xf] }
 0x3b6   : > { %4983 = vmatpush.bf16.msra.mxu3 %v7089_v36  ;;  %v7629_v36 = vor.u32 %v8308_v26, %v7626_v30  ;;  %v7789_v11 = vor.u32 %v8348_v53, %v7786_v33  ;;  %v8243_v30 = vld [vmem:[%s9428_s27 + $0x644] sm:$0xf]  ;;  %v7366_v53 = vld [vmem:[%s9428_s27 + $0x654] sm:$0xf0] }
 0x3b7   : > { %4945 = vmatpush.bf16.msra.mxu0 %v6589_v45  ;;  %v8303_v45 = vld [vmem:[%s9428_s27 + $0x824] sm:$0xf] }
 0x3b8   : > { %4958 = vmatpush.bf16.msra.mxu1 %v6749_v49  ;;  %v7766_v49 = vld [vmem:[%s9428_s27 + $0x974] sm:$0xf0]  ;;  %v7609_v54 = vor.u32 %v8303_v45, %v7606_v46  ;;  %v8283_v33 = vld [vmem:[%s9428_s27 + $0x784] sm:$0xf]  ;;  %v8121_v45 = vld [vmem:[%s9428_s27 + $0x270] sm:$0xf0] }
 0x3b9   : > { %4971 = vmatpush.bf16.msra.mxu2 %v6909_v50  ;;  %v7289_v50 = vor.u32 %v8223_v38, %v7286_v25  ;;  %v7769_v59 = vor.u32 %v8343_v48, %v7766_v49  ;;  %v7686_v38 = vld [vmem:[%s9428_s27 + $0x8d4] sm:$0xf0]  ;;  %v6712_v25 = vld [vmem:[%s9428_s27 + $0x120] sm:$0xf]  ;;  %v8161_v48 = vld [vmem:[%s9428_s27 + $0x3b0] sm:$0xf0]  ;;  %v7369_v49 = vor.u32 %v8243_v30, %v7366_v53 }
 0x3ba   : > { %4984 = vmatpush.bf16.msra.mxu3 %v7069_v56  ;;  %v7266_v56 = vld [vmem:[%s9428_s27 + $0x58c] sm:$0xf0]  ;;  %v7032_v46 = vld [vmem:[%s9428_s27 + $0x3a0] sm:$0xf] }
 0x3bb   : > { %4946 = vmatpush.bf16.msra.mxu0 %v6569_v63  ;;  %v7746_v63 = vld [vmem:[%s9428_s27 + $0x94c] sm:$0xf0]  ;;  %v7269_v0 = vor.u32 %v8218_v55, %v7266_v56  ;;  %v6713_v56 = vor.u32 %v8081_v41, %v6712_v25  ;;  %v6792_v30 = vld [vmem:[%s9428_s27 + $0x1c0] sm:$0xf] }
 0x3bc   : > { %4959 = vmatpush.bf16.msra.mxu1 %v6729_v3  ;;  %v8213_v3 = vld [vmem:[%s9428_s27 + $0x554] sm:$0xf]  ;;  %v7749_v7 = vor.u32 %v8338_v62, %v7746_v63  ;;  %v8116_v63 = vld [vmem:[%s9428_s27 + $0x248] sm:$0xf0] }
 0x3bd   : > { %4972 = vmatpush.bf16.msra.mxu2 %v6889_v4  ;;  %v7246_v4 = vld [vmem:[%s9428_s27 + $0x564] sm:$0xf0] }
 0x3be   : > { %4985 = vmatpush.bf16.msra.mxu3 %v7049_v8  ;;  %4947 = vmatmul.bf16.vlgmr.msra.gmra.mxu0 %v10754_v32  ;;  %v7406_v8 = vld [vmem:[%s9428_s27 + $0x6a4] sm:$0xf0]  ;;  %v7249_v13 = vor.u32 %v8213_v3, %v7246_v4  ;;  %v8196_v3 = vld [vmem:[%s9428_s27 + $0x4c8] sm:$0xf0]  ;;  %v6693_v4 = vor.u32 %v8076_v61, %v6692_v60  ;;  %v6592_v60 = vld [vmem:[%s9428_s27 + $0x30] sm:$0xf] }
 0x3bf   : > { %4991 = vmatpush.bf16.msrb.mxu0 %v7349_v9  ;;  %4960 = vmatmul.bf16.vlgmr.msra.gmra.mxu1 %v10760_v24  ;;  %v8293_v9 = vld [vmem:[%s9428_s27 + $0x7d4] sm:$0xf]  ;;  %v7409_v14 = vor.u32 %v8253_v5, %v7406_v8  ;;  %v6853_v5 = vor.u32 %v8116_v63, %v6852_v51  ;;  %v6672_v8 = vld [vmem:[%s9428_s27 + $0xd0] sm:$0xf]  ;;  %v8051_v61 = vld [vmem:[%s9428_s27 + $0x40] sm:$0xf0] }
 0x3c0   : > { %5004 = vmatpush.bf16.msrb.mxu1 %v7509_v10  ;;  %4973 = vmatmul.bf16.vlgmr.msra.gmra.mxu2 %v10752_v39  ;;  %v7566_v10 = vld [vmem:[%s9428_s27 + $0x7e4] sm:$0xf0]  ;;  %v6752_v51 = vld [vmem:[%s9428_s27 + $0x170] sm:$0xf]  ;;  %v8091_v63 = vld [vmem:[%s9428_s27 + $0x180] sm:$0xf0] }
 0x3c1   : > { %5017 = vmatpush.bf16.msrb.mxu2 %v7669_v12  ;;  %4986 = vmatmul.bf16.vlgmr.msra.gmra.mxu3 %v10756_v40  ;;  %v8333_v12 = vld [vmem:[%s9428_s27 + $0x914] sm:$0xf] }
 0x3c2   : > { %5030 = vmatpush.bf16.msrb.mxu3 %v7829_v15  ;;  %v7569_v15 = vor.u32 %v8293_v9, %v7566_v10  ;;  %v7729_v19 = vor.u32 %v8333_v12, %v7726_v57  ;;  %v8071_v9 = vld [vmem:[%s9428_s27 + $0xe0] sm:$0xf0]  ;;  %v6832_v10 = vld [vmem:[%s9428_s27 + $0x210] sm:$0xf] }
 0x3c3   : > { %4992 = vmatpush.bf16.msrb.mxu0 %v7329_v20  ;;  %v8288_v20 = vld [vmem:[%s9428_s27 + $0x7ac] sm:$0xf]  ;;  %v8111_v57 = vld [vmem:[%s9428_s27 + $0x220] sm:$0xf0] }
 0x3c4   : > { %5005 = vmatpush.bf16.msrb.mxu1 %v7489_v21  ;;  %v7546_v21 = vld [vmem:[%s9428_s27 + $0x7bc] sm:$0xf0]  ;;  %v6833_v17 = vor.u32 %v8111_v57, %v6832_v10  ;;  %v6732_v10 = vld [vmem:[%s9428_s27 + $0x148] sm:$0xf] }
 0x3c5   : > { %5018 = vmatpush.bf16.msrb.mxu2 %v7649_v22  ;;  %v8328_v22 = vld [vmem:[%s9428_s27 + $0x8ec] sm:$0xf]  ;;  %v7549_v26 = vor.u32 %v8288_v20, %v7546_v21  ;;  %v8106_v20 = vld [vmem:[%s9428_s27 + $0x1f8] sm:$0xf0]  ;;  %v6972_v21 = vld [vmem:[%s9428_s27 + $0x328] sm:$0xf] }
 0x3c6   : > { %5031 = vmatpush.bf16.msrb.mxu3 %v7809_v29  ;;  %v7206_v29 = vld [vmem:[%s9428_s27 + $0x514] sm:$0xf0]  ;;  %v6892_v57 = vld [vmem:[%s9428_s27 + $0x288] sm:$0xf] }
 0x3c7   : > { %4993 = vmatpush.bf16.msrb.mxu0 %v7309_v35  ;;  %v7709_v35 = vor.u32 %v8328_v22, %v7706_v23  ;;  %v7209_v44 = vor.u32 %v8203_v28, %v7206_v29  ;;  %v8146_v22 = vld [vmem:[%s9428_s27 + $0x338] sm:$0xf0]  ;;  %v6813_v28 = vor.u32 %v8106_v20, %v6812_v27  ;;  %v7672_v27 = vld [vmem:[%s9428_s27 + $0x8a0] sm:$0xf] }
 0x3c8   : > { %5006 = vmatpush.bf16.msrb.mxu1 %v7469_v31  ;;  %v7526_v31 = vld [vmem:[%s9428_s27 + $0x794] sm:$0xf0]  ;;  %v8186_v23 = vld [vmem:[%s9428_s27 + $0x478] sm:$0xf0]  ;;  %v6973_v29 = vor.u32 %v8146_v22, %v6972_v21  ;;  %v7832_v22 = vld [vmem:[%s9428_s27 + $0x9e0] sm:$0xf] }
 0x3c9   : > { %5019 = vmatpush.bf16.msrb.mxu2 %v7629_v36  ;;  %v8323_v36 = vld [vmem:[%s9428_s27 + $0x8c4] sm:$0xf] }
 0x3ca   : > { %5032 = vmatpush.bf16.msrb.mxu3 %v7789_v11  ;;  %v6872_v11 = vld [vmem:[%s9428_s27 + $0x260] sm:$0xf]  ;;  %v7689_v55 = vor.u32 %v8323_v36, %v7686_v38  ;;  %v8181_v38 = vld [vmem:[%s9428_s27 + $0x450] sm:$0xf0] }
 0x3cb   : > { %4994 = vmatpush.bf16.msrb.mxu0 %v7289_v50  ;;  %v7529_v50 = vor.u32 %v8283_v33, %v7526_v31  ;;  %v6873_v58 = vor.u32 %v8121_v45, %v6872_v11  ;;  %v8101_v33 = vld [vmem:[%s9428_s27 + $0x1d0] sm:$0xf0]  ;;  %v7112_v36 = vld [vmem:[%s9428_s27 + $0x440] sm:$0xf]  ;;  %v8056_v45 = vld [vmem:[%s9428_s27 + $0x68] sm:$0xf0] }
 0x3cc   : > { %5007 = vmatpush.bf16.msrb.mxu1 %v7449_v52  ;;  %v7192_v52 = vld [vmem:[%s9428_s27 + $0x4e0] sm:$0xf]  ;;  %v8141_v31 = vld [vmem:[%s9428_s27 + $0x310] sm:$0xf0]  ;;  %v6793_v41 = vor.u32 %v8101_v33, %v6792_v30  ;;  %v7492_v30 = vld [vmem:[%s9428_s27 + $0x738] sm:$0xf] }
 0x3cd   : > { %5020 = vmatpush.bf16.msrb.mxu2 %v7609_v54  ;;  %v8201_v54 = vld [vmem:[%s9428_s27 + $0x4f0] sm:$0xf0]  ;;  %v8276_v33 = vld [vmem:[%s9428_s27 + $0x748] sm:$0xf0] }
 0x3ce   : > { %5033 = vmatpush.bf16.msrb.mxu3 %v7769_v59  ;;  %v7033_v59 = vor.u32 %v8161_v48, %v7032_v46  ;;  %v7193_v62 = vor.u32 %v8201_v54, %v7192_v52  ;;  %v6772_v46 = vld [vmem:[%s9428_s27 + $0x198] sm:$0xf]  ;;  %v7113_v48 = vor.u32 %v8181_v38, %v7112_v36  ;;  %v8136_v52 = vld [vmem:[%s9428_s27 + $0x2e8] sm:$0xf0] }
 0x3cf   : > { %4995 = vmatpush.bf16.msrb.mxu0 %v7269_v0  ;;  %v7012_v0 = vld [vmem:[%s9428_s27 + $0x378] sm:$0xf]  ;;  %v8356_v38 = vld [vmem:[%s9428_s27 + $0x9c8] sm:$0xf0] }
 0x3d0   : > { %5008 = vmatpush.bf16.msrb.mxu1 %v7429_v1  ;;  %v8156_v1 = vld [vmem:[%s9428_s27 + $0x388] sm:$0xf0]  ;;  %v7092_v54 = vld [vmem:[%s9428_s27 + $0x418] sm:$0xf] }
 0x3d1   : > { %5021 = vmatpush.bf16.msrb.mxu2 %v7589_v2  ;;  %v7172_v2 = vld [vmem:[%s9428_s27 + $0x4b8] sm:$0xf] }
 0x3d2   : > { %5034 = vmatpush.bf16.msrb.mxu3 %v7749_v7  ;;  %v7013_v7 = vor.u32 %v8156_v1, %v7012_v0  ;;  %v7173_v12 = vor.u32 %v8196_v3, %v7172_v2  ;;  %v6912_v0 = vld [vmem:[%s9428_s27 + $0x2b0] sm:$0xf]  ;;  %v8131_v1 = vld [vmem:[%s9428_s27 + $0x2c0] sm:$0xf0]  ;;  %v7812_v36 = vld [vmem:[%s9428_s27 + $0x9b8] sm:$0xf] }
 0x3d3   : > { %4996 = vmatpush.bf16.msrb.mxu0 %v7249_v13  ;;  %v6992_v13 = vld [vmem:[%s9428_s27 + $0x350] sm:$0xf]  ;;  %v8171_v3 = vld [vmem:[%s9428_s27 + $0x400] sm:$0xf0] }
 0x3d4   : > { %5009 = vmatpush.bf16.msrb.mxu1 %v7409_v14  ;;  %v8151_v14 = vld [vmem:[%s9428_s27 + $0x360] sm:$0xf0]  ;;  %v7072_v2 = vld [vmem:[%s9428_s27 + $0x3f0] sm:$0xf] }
 0x3d5   : > { %5022 = vmatpush.bf16.msrb.mxu2 %v7569_v15  ;;  %v7152_v15 = vld [vmem:[%s9428_s27 + $0x490] sm:$0xf]  ;;  %v6993_v18 = vor.u32 %v8151_v14, %v6992_v13  ;;  %v7073_v13 = vor.u32 %v8171_v3, %v7072_v2  ;;  %v8126_v14 = vld [vmem:[%s9428_s27 + $0x298] sm:$0xf0]  ;;  %v7272_v3 = vld [vmem:[%s9428_s27 + $0x580] sm:$0xf] }
 0x3d6   : > { %5035 = vmatpush.bf16.msrb.mxu3 %v7729_v19  ;;  %v6652_v19 = vld [vmem:[%s9428_s27 + $0xa8] sm:$0xf]  ;;  %v6893_v21 = vor.u32 %v8126_v14, %v6892_v57  ;;  %v8341_v57 = vld [vmem:[%s9428_s27 + $0x950] sm:$0xf0]  ;;  %v7252_v14 = vld [vmem:[%s9428_s27 + $0x558] sm:$0xf] }
 0x3d7   : > { %4997 = vmatpush.bf16.msrb.mxu0 %v7229_v6 }
 0x3d8   : > { %5010 = vmatpush.bf16.msrb.mxu1 %v7389_v34  ;;  %v6632_v34 = vld [vmem:[%s9428_s27 + $0x80] sm:$0xf] }
 0x3d9   : > { %5023 = vmatpush.bf16.msrb.mxu2 %v7549_v26  ;;  %v8061_v26 = vld [vmem:[%s9428_s27 + $0x90] sm:$0xf0] }
 0x3da   : > { %5036 = vmatpush.bf16.msrb.mxu3 %v7709_v35  ;;  %v6952_v35 = vld [vmem:[%s9428_s27 + $0x300] sm:$0xf]  ;;  %v6633_v25 = vor.u32 %v8061_v26, %v6632_v34  ;;  %v7332_v34 = vld [vmem:[%s9428_s27 + $0x5f8] sm:$0xf]  ;;  %v8236_v26 = vld [vmem:[%s9428_s27 + $0x608] sm:$0xf0] }
 0x3db   : > { %4998 = vmatpush.bf16.msrb.mxu0 %v7209_v44  ;;  %v6953_v11 = vor.u32 %v8141_v31, %v6952_v35  ;;  %v6612_v44 = vld [vmem:[%s9428_s27 + $0x58] sm:$0xf]  ;;  %v8316_v31 = vld [vmem:[%s9428_s27 + $0x888] sm:$0xf0] }
 0x3dc   : > { %5011 = vmatpush.bf16.msrb.mxu1 %v7369_v49  ;;  %v8096_v49 = vld [vmem:[%s9428_s27 + $0x1a8] sm:$0xf0]  ;;  %v7652_v35 = vld [vmem:[%s9428_s27 + $0x878] sm:$0xf] }
 0x3dd   : > { %5024 = vmatpush.bf16.msrb.mxu2 %v7529_v50  ;;  %v6932_v50 = vld [vmem:[%s9428_s27 + $0x2d8] sm:$0xf] }
 0x3de   : > { %5037 = vmatpush.bf16.msrb.mxu3 %v7689_v55  ;;  %4999 = vmatmul.bf16.vlgmr.msrb.gmra.mxu0 %v10806_v42  ;;  %v8066_v42 = vld [vmem:[%s9428_s27 + $0xb8] sm:$0xf0]  ;;  %v8176_v55 = vld [vmem:[%s9428_s27 + $0x428] sm:$0xf0] }
 0x3df   : > { %5043 = vmatpush.bf16.msra.mxu0 %v6713_v56  ;;  %5012 = vmatmul.bf16.vlgmr.msrb.gmra.mxu1 %v10812_v47  ;;  %v7132_v47 = vld [vmem:[%s9428_s27 + $0x468] sm:$0xf]  ;;  %v6653_v6 = vor.u32 %v8066_v42, %v6652_v19  ;;  %v6613_v56 = vor.u32 %v8056_v45, %v6612_v44  ;;  %v8281_v42 = vld [vmem:[%s9428_s27 + $0x770] sm:$0xf0]  ;;  %v7312_v44 = vld [vmem:[%s9428_s27 + $0x5d0] sm:$0xf] }
 0x3e0   : > { %5056 = vmatpush.bf16.msra.mxu1 %v6873_v58  ;;  %5025 = vmatmul.bf16.vlgmr.msrb.gmra.mxu2 %v10803_v37  ;;  %v6673_v37 = vor.u32 %v8071_v9, %v6672_v8  ;;  %v7133_v53 = vor.u32 %v8186_v23, %v7132_v47  ;;  %v6773_v58 = vor.u32 %v8096_v49, %v6772_v46  ;;  %v8361_v47 = vld [vmem:[%s9428_s27 + $0x9f0] sm:$0xf0]  ;;  %v8231_v45 = vld [vmem:[%s9428_s27 + $0x5e0] sm:$0xf0]  ;;  %v7472_v46 = vld [vmem:[%s9428_s27 + $0x710] sm:$0xf] }
 0x3e1   : > { %5069 = vmatpush.bf16.msra.mxu2 %v7033_v59  ;;  %5038 = vmatmul.bf16.vlgmr.msrb.gmra.mxu3 %v10808_v43  ;;  %v7153_v43 = vor.u32 %v8191_v16, %v7152_v15  ;;  %v6933_v59 = vor.u32 %v8136_v52, %v6932_v50  ;;  %v6753_v8 = vor.u32 %v8091_v63, %v6752_v51  ;;  %v7052_v15 = vld [vmem:[%s9428_s27 + $0x3c8] sm:$0xf]  ;;  %v8166_v16 = vld [vmem:[%s9428_s27 + $0x3d8] sm:$0xf0]  ;;  %v8271_v49 = vld [vmem:[%s9428_s27 + $0x720] sm:$0xf0] }
 0x3e2   : > { %5082 = vmatpush.bf16.msra.mxu3 %v7193_v62  ;;  %v7093_v62 = vor.u32 %v8176_v55, %v7092_v54  ;;  %v6913_v9 = vor.u32 %v8131_v1, %v6912_v0  ;;  %v7053_v23 = vor.u32 %v8166_v16, %v7052_v15  ;;  %v7632_v50 = vld [vmem:[%s9428_s27 + $0x850] sm:$0xf]  ;;  %v8311_v52 = vld [vmem:[%s9428_s27 + $0x860] sm:$0xf0]  ;;  %v8266_v51 = vld [vmem:[%s9428_s27 + $0x6f8] sm:$0xf0] }
 0x3e3   : > { %5044 = vmatpush.bf16.msra.mxu0 %v6693_v4  ;;  %v6593_v4 = vor.u32 %v8051_v61, %v6592_v60  ;;  %v7792_v54 = vld [vmem:[%s9428_s27 + $0x990] sm:$0xf]  ;;  %v8351_v55 = vld [vmem:[%s9428_s27 + $0x9a0] sm:$0xf0]  ;;  %v8226_v60 = vld [vmem:[%s9428_s27 + $0x5b8] sm:$0xf0] }
 0x3e4   : > { %5057 = vmatpush.bf16.msra.mxu1 %v6853_v5  ;;  %v6572_v5 = vld [vmem:[%s9428_s27 + $0x8] sm:$0xf] }
 0x3e5   : > { %5070 = vmatpush.bf16.msra.mxu2 %v7013_v7  ;;  %v8046_v7 = vld [vmem:[%s9428_s27 + $0x18] sm:$0xf0]  ;;  %v7452_v61 = vld [vmem:[%s9428_s27 + $0x6e8] sm:$0xf] }
 0x3e6   : > { %5083 = vmatpush.bf16.msra.mxu3 %v7173_v12  ;;  %v8086_v12 = vld [vmem:[%s9428_s27 + $0x158] sm:$0xf0]  ;;  %v6573_v19 = vor.u32 %v8046_v7, %v6572_v5  ;;  %v7772_v63 = vld [vmem:[%s9428_s27 + $0x968] sm:$0xf]  ;;  %v7453_v1 = vor.u32 %v8266_v51, %v7452_v61  ;;  %v7432_v5 = vld [vmem:[%s9428_s27 + $0x6c0] sm:$0xf] }
 0x3e7   : > { %5045 = vmatpush.bf16.msra.mxu0 %v6673_v37  ;;  %v7352_v37 = vld [vmem:[%s9428_s27 + $0x620] sm:$0xf]  ;;  %v6733_v20 = vor.u32 %v8086_v12, %v6732_v10  ;;  %v8301_v10 = vld [vmem:[%s9428_s27 + $0x810] sm:$0xf0]  ;;  %v8159_v51 = vld [vmem:[%s9428_s27 + $0x3a4] sm:$0xf] }
 0x3e8   : > { %5058 = vmatpush.bf16.msra.mxu1 %v6833_v17  ;;  %v8241_v17 = vld [vmem:[%s9428_s27 + $0x630] sm:$0xf0]  ;;  %v7752_v12 = vld [vmem:[%s9428_s27 + $0x940] sm:$0xf] }
 0x3e9   : > { %5071 = vmatpush.bf16.msra.mxu2 %v6993_v18  ;;  %v7512_v18 = vld [vmem:[%s9428_s27 + $0x760] sm:$0xf] }
 0x3ea   : > { %5084 = vmatpush.bf16.msra.mxu3 %v7153_v43  ;;  %v8321_v43 = vld [vmem:[%s9428_s27 + $0x8b0] sm:$0xf0] }
 0x3eb   : > { %5046 = vmatpush.bf16.msra.mxu0 %v6653_v6  ;;  %v7353_v6 = vor.u32 %v8241_v17, %v7352_v37  ;;  %v8216_v37 = vld [vmem:[%s9428_s27 + $0x568] sm:$0xf0]  ;;  %v7412_v17 = vld [vmem:[%s9428_s27 + $0x698] sm:$0xf] }
 0x3ec   : > { %5059 = vmatpush.bf16.msra.mxu1 %v6813_v28  ;;  %v7513_v28 = vor.u32 %v8281_v42, %v7512_v18  ;;  %v8256_v18 = vld [vmem:[%s9428_s27 + $0x6a8] sm:$0xf0]  ;;  %v7572_v42 = vld [vmem:[%s9428_s27 + $0x7d8] sm:$0xf] }
 0x3ed   : > { %5072 = vmatpush.bf16.msra.mxu2 %v6973_v29  ;;  %v7673_v29 = vor.u32 %v8321_v43, %v7672_v27  ;;  %v8296_v27 = vld [vmem:[%s9428_s27 + $0x7e8] sm:$0xf0]  ;;  %v11050_v43 = vld [vmem:[%s9422_s23] sm:$0x1f] }
 0x3ee   : > { %5085 = vmatpush.bf16.msra.mxu3 %v7133_v53  ;;  %v7833_v53 = vor.u32 %v8361_v47, %v7832_v22  ;;  %v7253_v22 = vor.u32 %v8216_v37, %v7252_v14  ;;  %v7232_v47 = vld [vmem:[%s9428_s27 + $0x530] sm:$0xf]  ;;  %v8154_v14 = vld [vmem:[%s9428_s27 + $0x37c] sm:$0xf] }
 0x3ef   : > { %5047 = vmatpush.bf16.msra.mxu0 %v6633_v25  ;;  %v7333_v25 = vor.u32 %v8236_v26, %v7332_v34  ;;  %v3143_v34 = vperm.slane %v11050_v43, 0 }
 0x3f0   : > { %5060 = vmatpush.bf16.msra.mxu1 %v6793_v41  ;;  %v7493_v41 = vor.u32 %v8276_v33, %v7492_v30  ;;  %v8251_v30 = vld [vmem:[%s9428_s27 + $0x680] sm:$0xf0] }
 0x3f1   : > { %5073 = vmatpush.bf16.msra.mxu2 %v6953_v11  ;;  %v7653_v11 = vor.u32 %v8316_v31, %v7652_v35  ;;  %v8291_v33 = vld [vmem:[%s9428_s27 + $0x7c0] sm:$0xf0]  ;;  %v7712_v35 = vld [vmem:[%s9428_s27 + $0x8f0] sm:$0xf] }
 0x3f2   : > { %5086 = vmatpush.bf16.msra.mxu3 %v7113_v48  ;;  %v7813_v48 = vor.u32 %v8356_v38, %v7812_v36  ;;  %v8331_v31 = vld [vmem:[%s9428_s27 + $0x900] sm:$0xf0]  ;;  %v7212_v38 = vld [vmem:[%s9428_s27 + $0x508] sm:$0xf] }
 0x3f3   : > { %5048 = vmatpush.bf16.msra.mxu0 %v6613_v56  ;;  %v7313_v56 = vor.u32 %v8231_v45, %v7312_v44  ;;  %v7372_v45 = vld [vmem:[%s9428_s27 + $0x648] sm:$0xf] }
 0x3f4   : > { %5061 = vmatpush.bf16.msra.mxu1 %v6773_v58  ;;  %v7473_v58 = vor.u32 %v8271_v49, %v7472_v46  ;;  %v8246_v46 = vld [vmem:[%s9428_s27 + $0x658] sm:$0xf0] }
 0x3f5   : > { %5074 = vmatpush.bf16.msra.mxu2 %v6933_v59  ;;  %v7633_v59 = vor.u32 %v8311_v52, %v7632_v50  ;;  %v7713_v52 = vor.u32 %v8331_v31, %v7712_v35 }
 0x3f6   : > { %5087 = vmatpush.bf16.msra.mxu3 %v7093_v62  ;;  %v8306_v62 = vld [vmem:[%s9428_s27 + $0x838] sm:$0xf0] }
 0x3f7   : > { %5049 = vmatpush.bf16.msra.mxu0 %v6593_v4  ;;  %v8221_v4 = vld [vmem:[%s9428_s27 + $0x590] sm:$0xf0] }
 0x3f8   : > { %5062 = vmatpush.bf16.msra.mxu1 %v6753_v8  ;;  %v8261_v8 = vld [vmem:[%s9428_s27 + $0x6d0] sm:$0xf0] }
 0x3f9   : > { %5075 = vmatpush.bf16.msra.mxu2 %v6913_v9  ;;  %v7592_v9 = vld [vmem:[%s9428_s27 + $0x800] sm:$0xf]  ;;  %v7433_v15 = vor.u32 %v8261_v8, %v7432_v5 }
 0x3fa   : > { %5088 = vmatpush.bf16.msra.mxu3 %v7073_v13  ;;  %v7273_v13 = vor.u32 %v8221_v4, %v7272_v3  ;;  %v7593_v16 = vor.u32 %v8301_v10, %v7592_v9  ;;  %v8074_v9 = vld [vmem:[%s9428_s27 + $0xfc] sm:$0xf]  ;;  %v6694_v10 = vld [vmem:[%s9428_s27 + $0x10c] sm:$0xf0] }
 0x3fb   : > { %5050 = vmatpush.bf16.msra.mxu0 %v6573_v19  ;;  %v7753_v19 = vor.u32 %v8341_v57, %v7752_v12  ;;  %v8114_v12 = vld [vmem:[%s9428_s27 + $0x23c] sm:$0xf] }
 0x3fc   : > { %5063 = vmatpush.bf16.msra.mxu1 %v6733_v20  ;;  %v7732_v20 = vld [vmem:[%s9428_s27 + $0x918] sm:$0xf] }
 0x3fd   : > { %5076 = vmatpush.bf16.msra.mxu2 %v6893_v21  ;;  %v8336_v21 = vld [vmem:[%s9428_s27 + $0x928] sm:$0xf0] }
 0x3fe   : > { %5089 = vmatpush.bf16.msra.mxu3 %v7053_v23  ;;  %5051 = vmatmul.bf16.vlgmr.msra.gmra.mxu0 %v10754_v32  ;;  %v7793_v32 = vor.u32 %v8351_v55, %v7792_v54  ;;  %v7413_v23 = vor.u32 %v8256_v18, %v7412_v17  ;;  %v7733_v26 = vor.u32 %v8336_v21, %v7732_v20  ;;  %v8286_v54 = vld [vmem:[%s9428_s27 + $0x798] sm:$0xf0]  ;;  %v7692_v55 = vld [vmem:[%s9428_s27 + $0x8c8] sm:$0xf]  ;;  %v7174_v18 = vld [vmem:[%s9428_s27 + $0x4cc] sm:$0xf0] }
 0x3ff   : > { %5095 = vmatpush.bf16.msrb.mxu0 %v7353_v6  ;;  %5064 = vmatmul.bf16.vlgmr.msra.gmra.mxu1 %v10760_v24  ;;  %v8346_v24 = vld [vmem:[%s9428_s27 + $0x978] sm:$0xf0]  ;;  %v7573_v6 = vor.u32 %v8296_v27, %v7572_v42  ;;  %v6697_v42 = vor.u32 %v8074_v9, %v6694_v10  ;;  %v8069_v21 = vld [vmem:[%s9428_s27 + $0xd4] sm:$0xf] }
 0x400   : > { %5108 = vmatpush.bf16.msrb.mxu1 %v7513_v28  ;;  %5077 = vmatmul.bf16.vlgmr.msra.gmra.mxu2 %v10752_v39  ;;  %v7292_v39 = vld [vmem:[%s9428_s27 + $0x5a8] sm:$0xf]  ;;  %v7773_v7 = vor.u32 %v8346_v24, %v7772_v63  ;;  %v8211_v28 = vld [vmem:[%s9428_s27 + $0x540] sm:$0xf0]  ;;  %v8194_v17 = vld [vmem:[%s9428_s27 + $0x4bc] sm:$0xf] }
 0x401   : > { %5121 = vmatpush.bf16.msrb.mxu2 %v7673_v29  ;;  %5090 = vmatmul.bf16.vlgmr.msra.gmra.mxu3 %v10756_v40  ;;  %v7612_v40 = vld [vmem:[%s9428_s27 + $0x828] sm:$0xf]  ;;  %v7293_v0 = vor.u32 %v8226_v60, %v7292_v39  ;;  %v7392_v29 = vld [vmem:[%s9428_s27 + $0x670] sm:$0xf]  ;;  %v7233_v36 = vor.u32 %v8211_v28, %v7232_v47  ;;  %v8119_v39 = vld [vmem:[%s9428_s27 + $0x264] sm:$0xf] }
 0x402   : > { %5134 = vmatpush.bf16.msrb.mxu3 %v7833_v53  ;;  %v7613_v2 = vor.u32 %v8306_v62, %v7612_v40  ;;  %v7552_v53 = vld [vmem:[%s9428_s27 + $0x7b0] sm:$0xf]  ;;  %v7034_v40 = vld [vmem:[%s9428_s27 + $0x3b4] sm:$0xf0]  ;;  %v7373_v62 = vor.u32 %v8246_v46, %v7372_v45  ;;  %v8199_v24 = vld [vmem:[%s9428_s27 + $0x4e4] sm:$0xf] }
 0x403   : > { %5096 = vmatpush.bf16.msrb.mxu0 %v7333_v25  ;;  %v8206_v25 = vld [vmem:[%s9428_s27 + $0x518] sm:$0xf0]  ;;  %v7553_v44 = vor.u32 %v8291_v33, %v7552_v53  ;;  %v4857_v50 = vpop.f32.mrf.mxu1  ;;  %v7037_v8 = vor.u32 %v8159_v51, %v7034_v40  ;;  %v8109_v47 = vld [vmem:[%s9428_s27 + $0x214] sm:$0xf]  ;;  %v6834_v28 = vld [vmem:[%s9428_s27 + $0x224] sm:$0xf0] }
 0x404   : > { %5109 = vmatpush.bf16.msrb.mxu1 %v7493_v41  ;;  %v4844_v41 = vpop.f32.mrf.mxu0  ;;  %v7213_v61 = vor.u32 %v8206_v25, %v7212_v38  ;;  %v11098_v53 = vld [vmem:[#allocation1 + $0x24] sm:$0xff]  ;;  %v6837_v25 = vor.u32 %v8109_v47, %v6834_v28  ;;  %v8104_v45 = vld [vmem:[%s9428_s27 + $0x1ec] sm:$0xf]  ;;  %v8094_v9 = vld [vmem:[%s9428_s27 + $0x19c] sm:$0xf] }
 0x405   : > { %5122 = vmatpush.bf16.msrb.mxu2 %v7653_v11  ;;  %v7393_v11 = vor.u32 %v8251_v30, %v7392_v29  ;;  %v4845_v49 = vadd.f32 %v4844_v41, %v3143_v34  ;;  %v8149_v29 = vld [vmem:[%s9428_s27 + $0x354] sm:$0xf]  ;;  %v6994_v34 = vld [vmem:[%s9428_s27 + $0x364] sm:$0xf0] }
 0x406   : > { %5135 = vmatpush.bf16.msrb.mxu3 %v7813_v48  ;;  %v7532_v48 = vld [vmem:[%s9428_s27 + $0x788] sm:$0xf]  ;;  %v11101_v33 = vld [vmem:[#allocation1 + $0x3f] sm:$0xff]  ;;  %v6997_v41 = vor.u32 %v8149_v29, %v6994_v34 }
 0x407   : > { %5097 = vmatpush.bf16.msrb.mxu0 %v7313_v56  ;;  %v8326_v56 = vld [vmem:[%s9428_s27 + $0x8d8] sm:$0xf0]  ;;  %v4858_v60 = vadd.f32 %v4857_v50, %v4845_v49  ;;  %v7533_v63 = vor.u32 %v8286_v54, %v7532_v48  ;;  %v7154_v30 = vld [vmem:[%s9428_s27 + $0x4a4] sm:$0xf0]  ;;  %v6814_v48 = vld [vmem:[%s9428_s27 + $0x1fc] sm:$0xf0] }
 0x408   : > { %5110 = vmatpush.bf16.msrb.mxu1 %v7473_v58  ;;  %v8079_v58 = vld [vmem:[%s9428_s27 + $0x124] sm:$0xf]  ;;  %v4883_v5 = vpop.f32.mrf.mxu3  ;;  %v8144_v49 = vld [vmem:[%s9428_s27 + $0x32c] sm:$0xf]  ;;  %v6974_v50 = vld [vmem:[%s9428_s27 + $0x33c] sm:$0xf0] }
 0x409   : > { %5123 = vmatpush.bf16.msrb.mxu2 %v7633_v59  ;;  %v6714_v59 = vld [vmem:[%s9428_s27 + $0x134] sm:$0xf0]  ;;  %v7134_v54 = vld [vmem:[%s9428_s27 + $0x47c] sm:$0xf0]  ;;  %v8089_v47 = vld [vmem:[%s9428_s27 + $0x174] sm:$0xf] }
 0x40a   : > { %5136 = vmatpush.bf16.msrb.mxu3 %v7793_v32  ;;  %v6874_v32 = vld [vmem:[%s9428_s27 + $0x274] sm:$0xf0]  ;;  %v6717_v3 = vor.u32 %v8079_v58, %v6714_v59  ;;  %v6817_v58 = vor.u32 %v8104_v45, %v6814_v48  ;;  %v6977_v59 = vor.u32 %v8144_v49, %v6974_v50  ;;  %v6754_v29 = vld [vmem:[%s9428_s27 + $0x184] sm:$0xf0]  ;;  %v8129_v34 = vld [vmem:[%s9428_s27 + $0x2b4] sm:$0xf] }
 0x40b   : > { %5098 = vmatpush.bf16.msrb.mxu0 %v7293_v0  ;;  %v7194_v0 = vld [vmem:[%s9428_s27 + $0x4f4] sm:$0xf0]  ;;  %v6734_v45 = vld [vmem:[%s9428_s27 + $0x15c] sm:$0xf0] }
 0x40c   : > { %5111 = vmatpush.bf16.msrb.mxu1 %v7453_v1  ;;  %v4870_v1 = vpop.f32.mrf.mxu2  ;;  %v7197_v57 = vor.u32 %v8199_v24, %v7194_v0  ;;  %v4846_v37 = vpop.f32.mrf.mxu0  ;;  %v6954_v24 = vld [vmem:[%s9428_s27 + $0x314] sm:$0xf0]  ;;  %v8179_v0 = vld [vmem:[%s9428_s27 + $0x444] sm:$0xf]  ;;  %v6894_v50 = vld [vmem:[%s9428_s27 + $0x29c] sm:$0xf0] }
 0x40d   : > { %5124 = vmatpush.bf16.msrb.mxu2 %v7613_v2  ;;  %v7693_v2 = vor.u32 %v8326_v56, %v7692_v55  ;;  %v4871_v4 = vadd.f32 %v4870_v1, %v4858_v60  ;;  %v6634_v60 = vld [vmem:[%s9428_s27 + $0x94] sm:$0xf0]  ;;  %v8174_v37 = vld [vmem:[%s9428_s27 + $0x41c] sm:$0xf] }
 0x40e   : > { %5137 = vmatpush.bf16.msrb.mxu3 %v7773_v7  ;;  %v6877_v7 = vor.u32 %v8119_v39, %v6874_v32  ;;  %v8059_v39 = vld [vmem:[%s9428_s27 + $0x84] sm:$0xf]  ;;  %v7114_v1 = vld [vmem:[%s9428_s27 + $0x454] sm:$0xf0] }
 0x40f   : > { %5099 = vmatpush.bf16.msrb.mxu0 %v7273_v13  ;;  %v6854_v13 = vld [vmem:[%s9428_s27 + $0x24c] sm:$0xf0] }
 0x410   : > { %5112 = vmatpush.bf16.msrb.mxu1 %v7433_v15  ;;  %v7014_v15 = vld [vmem:[%s9428_s27 + $0x38c] sm:$0xf0]  ;;  %v6857_v27 = vor.u32 %v8114_v12, %v6854_v13  ;;  %v4885_v38 = vpop.f32.mrf.mxu3  ;;  %v7117_v12 = vor.u32 %v8179_v0, %v7114_v1  ;;  %v8134_v13 = vld [vmem:[%s9428_s27 + $0x2dc] sm:$0xf] }
 0x411   : > { %5125 = vmatpush.bf16.msrb.mxu2 %v7593_v16  ;;  %v4884_v16 = vadd.f32 %v4883_v5, %v4871_v4  ;;  %v7017_v20 = vor.u32 %v8154_v14, %v7014_v15  ;;  %v6934_v14 = vld [vmem:[%s9428_s27 + $0x2ec] sm:$0xf0]  ;;  %v8044_v38 = vld [vmem:[%s9428_s27 + $0xc] sm:$0xf] }
 0x412   : > { %5138 = vmatpush.bf16.msrb.mxu3 %v7753_v19  ;;  %v4859_v19 = vpop.f32.mrf.mxu1 }
 0x413   : > { %5100 = vmatpush.bf16.msrb.mxu0 %v7253_v22  ;;  %v6674_v22 = vld [vmem:[%s9428_s27 + $0xe4] sm:$0xf0] }
 0x414   : > { %5113 = vmatpush.bf16.msrb.mxu1 %v7413_v23  ;;  %v7177_v23 = vor.u32 %v8194_v17, %v7174_v18  ;;  %v4872_v35 = vpop.f32.mrf.mxu2  ;;  %v6677_v31 = vor.u32 %v8069_v21, %v6674_v22  ;;  %v7094_v17 = vld [vmem:[%s9428_s27 + $0x42c] sm:$0xf0]  ;;  %v8049_v21 = vld [vmem:[%s9428_s27 + $0x34] sm:$0xf]  ;;  %v6594_v22 = vld [vmem:[%s9428_s27 + $0x44] sm:$0xf0] }
 0x415   : > { %5126 = vmatpush.bf16.msrb.mxu2 %v7573_v6  ;;  %v11090_v6 = vld [vmem:[#allocation1 + $0x36] sm:$0xff]  ;;  %v7097_v28 = vor.u32 %v8174_v37, %v7094_v17  ;;  %v8269_v17 = vld [vmem:[%s9428_s27 + $0x714] sm:$0xf] }
 0x416   : > { %5139 = vmatpush.bf16.msrb.mxu3 %v7733_v26  ;;  %v8189_v26 = vld [vmem:[%s9428_s27 + $0x494] sm:$0xf]  ;;  %v7074_v35 = vld [vmem:[%s9428_s27 + $0x404] sm:$0xf0] }
 0x417   : > { %5101 = vmatpush.bf16.msrb.mxu0 %v7233_v36  ;;  %v11104_v36 = vld [vmem:[#allocation1 + $0x2d] sm:$0xff]  ;;  %v7157_v46 = vor.u32 %v8189_v26, %v7154_v30  ;;  %v6914_v26 = vld [vmem:[%s9428_s27 + $0x2c4] sm:$0xf0]  ;;  %v8169_v30 = vld [vmem:[%s9428_s27 + $0x3f4] sm:$0xf] }
 0x418   : > { %5114 = vmatpush.bf16.msrb.mxu1 %v7393_v11  ;;  %v8064_v11 = vld [vmem:[%s9428_s27 + $0xac] sm:$0xf]  ;;  %v7077_v49 = vor.u32 %v8169_v30, %v7074_v35  ;;  %v7314_v37 = vld [vmem:[%s9428_s27 + $0x5e4] sm:$0xf0] }
 0x419   : > { %5127 = vmatpush.bf16.msrb.mxu2 %v7553_v44  ;;  %v6654_v44 = vld [vmem:[%s9428_s27 + $0xbc] sm:$0xf0] }
 0x41a   : > { %5140 = vmatpush.bf16.msrb.mxu3 %v7713_v52  ;;  %v8184_v52 = vld [vmem:[%s9428_s27 + $0x46c] sm:$0xf]  ;;  %v6657_v55 = vor.u32 %v8064_v11, %v6654_v44  ;;  %v6917_v11 = vor.u32 %v8129_v34, %v6914_v26  ;;  %v11183_v26 = vld [vmem:[#allocation1 + $0x9] sm:$0xff] }
 0x41b   : > { %5102 = vmatpush.bf16.msrb.mxu0 %v7213_v61  ;;  %v4896_v56 = vpop.f32.mrf.mxu0  ;;  %v8099_v61 = vld [vmem:[%s9428_s27 + $0x1c4] sm:$0xf]  ;;  %v7137_v40 = vor.u32 %v8184_v52, %v7134_v54  ;;  %v8084_v44 = vld [vmem:[%s9428_s27 + $0x14c] sm:$0xf]  ;;  %v7054_v54 = vld [vmem:[%s9428_s27 + $0x3dc] sm:$0xf0] }
 0x41c   : > { %5115 = vmatpush.bf16.msrb.mxu1 %v7373_v62  ;;  %v4897_v32 = vadd.f32 %v4896_v56, %v4884_v16  ;;  %v4909_v51 = vpop.f32.mrf.mxu1  ;;  %v6794_v62 = vld [vmem:[%s9428_s27 + $0x1d4] sm:$0xf0]  ;;  %v8164_v52 = vld [vmem:[%s9428_s27 + $0x3cc] sm:$0xf]  ;;  %v8239_v56 = vld [vmem:[%s9428_s27 + $0x624] sm:$0xf] }
 0x41d   : > { %5128 = vmatpush.bf16.msrb.mxu2 %v7533_v63  ;;  %v8139_v63 = vld [vmem:[%s9428_s27 + $0x304] sm:$0xf]  ;;  %v6797_v4 = vor.u32 %v8099_v61, %v6794_v62  ;;  %v8224_v34 = vld [vmem:[%s9428_s27 + $0x5ac] sm:$0xf] }
 0x41e   : > { %5141 = vmatpush.bf16.msrb.mxu3 %v7693_v2  ;;  %5103 = vmatmul.bf16.vlgmr.msrb.gmra.mxu0 %v11098_v53  ;;  %v4910_v2 = vadd.f32 %v4909_v51, %v4897_v32  ;;  %v6957_v5 = vor.u32 %v8139_v63, %v6954_v24  ;;  %v8319_v61 = vld [vmem:[%s9428_s27 + $0x8a4] sm:$0xf]  ;;  %v7674_v32 = vld [vmem:[%s9428_s27 + $0x8b4] sm:$0xf0]  ;;  %v6737_v51 = vor.u32 %v8084_v44, %v6734_v45  ;;  %v8304_v44 = vld [vmem:[%s9428_s27 + $0x82c] sm:$0xf] }
 0x41f   : > { %5147 = vmatpush.bf16.msra.mxu0 %v6717_v3  ;;  %5116 = vmatmul.bf16.vlgmr.msrb.gmra.mxu1 %v11104_v36  ;;  %v6637_v3 = vor.u32 %v8059_v39, %v6634_v60  ;;  %v7514_v60 = vld [vmem:[%s9428_s27 + $0x774] sm:$0xf0]  ;;  %v8359_v62 = vld [vmem:[%s9428_s27 + $0x9e4] sm:$0xf]  ;;  %v7057_v24 = vor.u32 %v8164_v52, %v7054_v54  ;;  %v7614_v45 = vld [vmem:[%s9428_s27 + $0x83c] sm:$0xf0] }
 0x420   : > { %5160 = vmatpush.bf16.msra.mxu1 %v6877_v7  ;;  %5129 = vmatmul.bf16.vlgmr.msrb.gmra.mxu2 %v11090_v6  ;;  %v8054_v7 = vld [vmem:[%s9428_s27 + $0x5c] sm:$0xf]  ;;  %v7834_v63 = vld [vmem:[%s9428_s27 + $0x9f4] sm:$0xf0]  ;;  %v7617_v52 = vor.u32 %v8304_v44, %v7614_v45  ;;  %v8219_v54 = vld [vmem:[%s9428_s27 + $0x584] sm:$0xf] }
 0x421   : > { %5173 = vmatpush.bf16.msra.mxu2 %v7037_v8  ;;  %5142 = vmatmul.bf16.vlgmr.msrb.gmra.mxu3 %v11101_v33  ;;  %v6614_v8 = vld [vmem:[%s9428_s27 + $0x6c] sm:$0xf0]  ;;  %v8244_v44 = vld [vmem:[%s9428_s27 + $0x64c] sm:$0xf]  ;;  %v7374_v45 = vld [vmem:[%s9428_s27 + $0x65c] sm:$0xf0] }
 0x422   : > { %5186 = vmatpush.bf16.msra.mxu3 %v7197_v57  ;;  %v6774_v57 = vld [vmem:[%s9428_s27 + $0x1ac] sm:$0xf0]  ;;  %v6617_v18 = vor.u32 %v8054_v7, %v6614_v8  ;;  %v7837_v7 = vor.u32 %v8359_v62, %v7834_v63 }
 0x423   : > { %5148 = vmatpush.bf16.msra.mxu0 %v6697_v42  ;;  %v4922_v10 = vpop.f32.mrf.mxu2  ;;  %v4898_v42 = vpop.f32.mrf.mxu0  ;;  %v7494_v8 = vld [vmem:[%s9428_s27 + $0x74c] sm:$0xf0] }
 0x424   : > { %5161 = vmatpush.bf16.msra.mxu1 %v6857_v27  ;;  %v4923_v15 = vadd.f32 %v4922_v10, %v4910_v2  ;;  %v4935_v16 = vpop.f32.mrf.mxu3  ;;  %v6777_v27 = vor.u32 %v8094_v9, %v6774_v57  ;;  %v7677_v2 = vor.u32 %v8319_v61, %v7674_v32  ;;  %v8314_v9 = vld [vmem:[%s9428_s27 + $0x87c] sm:$0xf]  ;;  %v7654_v10 = vld [vmem:[%s9428_s27 + $0x88c] sm:$0xf0]  ;;  %v7474_v42 = vld [vmem:[%s9428_s27 + $0x724] sm:$0xf0] }
 0x425   : > { %5174 = vmatpush.bf16.msra.mxu2 %v7017_v20  ;;  %v6937_v20 = vor.u32 %v8134_v13, %v6934_v14  ;;  %v7814_v57 = vld [vmem:[%s9428_s27 + $0x9cc] sm:$0xf0]  ;;  %v7477_v30 = vor.u32 %v8269_v17, %v7474_v42  ;;  %v8299_v61 = vld [vmem:[%s9428_s27 + $0x804] sm:$0xf]  ;;  %v7594_v32 = vld [vmem:[%s9428_s27 + $0x814] sm:$0xf0] }
 0x426   : > { %5187 = vmatpush.bf16.msra.mxu3 %v7177_v23  ;;  %v11131_v19 = vadd.f32 %v4935_v16, %v4923_v15  ;;  %v4911_v23 = vpop.f32.mrf.mxu1  ;;  %v7657_v15 = vor.u32 %v8314_v9, %v7654_v10  ;;  %v8229_v16 = vld [vmem:[%s9428_s27 + $0x5d4] sm:$0xf]  ;;  %v7574_v9 = vld [vmem:[%s9428_s27 + $0x7ec] sm:$0xf0]  ;;  %v7234_v42 = vld [vmem:[%s9428_s27 + $0x544] sm:$0xf0] }
 0x427   : > { %5149 = vmatpush.bf16.msra.mxu0 %v6677_v31  ;;  %v6597_v31 = vor.u32 %v8049_v21, %v6594_v22  ;;  %v11171_v21 = vld [vmem:[#allocation1 + $0x12] sm:$0xff]  ;;  %v8349_v22 = vld [vmem:[%s9428_s27 + $0x994] sm:$0xf] }
 0x428   : > { %5162 = vmatpush.bf16.msra.mxu1 %v6837_v25  ;;  %v6574_v25 = vld [vmem:[%s9428_s27 + $0x1c] sm:$0xf0]  ;;  %v11176_v23 = vld [vmem:[#allocation1] sm:$0xff] }
 0x429   : > { %5175 = vmatpush.bf16.msra.mxu2 %v6997_v41  ;;  %v6757_v41 = vor.u32 %v8089_v47, %v6754_v29  ;;  %v6577_v39 = vor.u32 %v8044_v38, %v6574_v25  ;;  %v7794_v47 = vld [vmem:[%s9428_s27 + $0x9a4] sm:$0xf0]  ;;  %v7317_v29 = vor.u32 %v8229_v16, %v7314_v37  ;;  %v8264_v38 = vld [vmem:[%s9428_s27 + $0x6ec] sm:$0xf]  ;;  %v3144_v25 = vperm.slane %v11050_v43, 1 }
 0x42a   : > { %5188 = vmatpush.bf16.msra.mxu3 %v7157_v46  ;;  %v8124_v46 = vld [vmem:[%s9428_s27 + $0x28c] sm:$0xf] }
 0x42b   : > { %5150 = vmatpush.bf16.msra.mxu0 %v6657_v55  ;;  %v4924_v48 = vpop.f32.mrf.mxu2 }
 0x42c   : > { %5163 = vmatpush.bf16.msra.mxu1 %v6817_v58  ;;  %v4937_v55 = vpop.f32.mrf.mxu3  ;;  %v7354_v58 = vld [vmem:[%s9428_s27 + $0x634] sm:$0xf0]  ;;  %v7774_v48 = vld [vmem:[%s9428_s27 + $0x97c] sm:$0xf0] }
 0x42d   : > { %5176 = vmatpush.bf16.msra.mxu2 %v6977_v59  ;;  %v8279_v59 = vld [vmem:[%s9428_s27 + $0x764] sm:$0xf]  ;;  %v7357_v0 = vor.u32 %v8239_v56, %v7354_v58  ;;  %v7274_v55 = vld [vmem:[%s9428_s27 + $0x594] sm:$0xf0] }
 0x42e   : > { %5189 = vmatpush.bf16.msra.mxu3 %v7137_v40  ;;  %v6897_v40 = vor.u32 %v8124_v46, %v6894_v50  ;;  %v7517_v1 = vor.u32 %v8279_v59, %v7514_v60  ;;  %v8344_v46 = vld [vmem:[%s9428_s27 + $0x96c] sm:$0xf]  ;;  %v8259_v56 = vld [vmem:[%s9428_s27 + $0x6c4] sm:$0xf]  ;;  %v7434_v60 = vld [vmem:[%s9428_s27 + $0x6d4] sm:$0xf0]  ;;  %v7277_v63 = vor.u32 %v8219_v54, %v7274_v55 }
 0x42f   : > { %5151 = vmatpush.bf16.msra.mxu0 %v6637_v3  ;;  %v8234_v3 = vld [vmem:[%s9428_s27 + $0x5fc] sm:$0xf]  ;;  %v6720_v55 = vld [vmem:[%s9428_s27 + $0x128] sm:$0xf] }
 0x430   : > { %5164 = vmatpush.bf16.msra.mxu1 %v6797_v4  ;;  %v7334_v4 = vld [vmem:[%s9428_s27 + $0x60c] sm:$0xf0] }
 0x431   : > { %5177 = vmatpush.bf16.msra.mxu2 %v6957_v5  ;;  %v8274_v5 = vld [vmem:[%s9428_s27 + $0x73c] sm:$0xf]  ;;  %v7337_v13 = vor.u32 %v8234_v3, %v7334_v4 }
 0x432   : > { %5190 = vmatpush.bf16.msra.mxu3 %v7117_v12  ;;  %v8354_v12 = vld [vmem:[%s9428_s27 + $0x9bc] sm:$0xf]  ;;  %v7497_v14 = vor.u32 %v8274_v5, %v7494_v8 }
 0x433   : > { %5152 = vmatpush.bf16.msra.mxu0 %v6617_v18  ;;  %v7817_v18 = vor.u32 %v8354_v12, %v7814_v57  ;;  %v8254_v3 = vld [vmem:[%s9428_s27 + $0x69c] sm:$0xf] }
 0x434   : > { %5165 = vmatpush.bf16.msra.mxu1 %v6777_v27  ;;  %v8309_v27 = vld [vmem:[%s9428_s27 + $0x854] sm:$0xf]  ;;  %v8294_v8 = vld [vmem:[%s9428_s27 + $0x7dc] sm:$0xf] }
 0x435   : > { %5178 = vmatpush.bf16.msra.mxu2 %v6937_v20  ;;  %v7634_v20 = vld [vmem:[%s9428_s27 + $0x864] sm:$0xf0]  ;;  %v8334_v57 = vld [vmem:[%s9428_s27 + $0x91c] sm:$0xf]  ;;  %v7577_v17 = vor.u32 %v8294_v8, %v7574_v9  ;;  %v7020_v8 = vld [vmem:[%s9428_s27 + $0x380] sm:$0xf] }
 0x436   : > { %5191 = vmatpush.bf16.msra.mxu3 %v7097_v28  ;;  %v11179_v28 = vld [vmem:[#allocation1 + $0x1b] sm:$0xff]  ;;  %v7637_v35 = vor.u32 %v8309_v27, %v7634_v20  ;;  %v8249_v27 = vld [vmem:[%s9428_s27 + $0x674] sm:$0xf] }
 0x437   : > { %5153 = vmatpush.bf16.msra.mxu0 %v6597_v31  ;;  %v7294_v31 = vld [vmem:[%s9428_s27 + $0x5bc] sm:$0xf0]  ;;  %v8157_v9 = vld [vmem:[%s9428_s27 + $0x390] sm:$0xf0] }
 0x438   : > { %5166 = vmatpush.bf16.msra.mxu1 %v6757_v41  ;;  %v7797_v41 = vor.u32 %v8349_v22, %v7794_v47  ;;  %v7394_v47 = vld [vmem:[%s9428_s27 + $0x684] sm:$0xf0] }
 0x439   : > { %5179 = vmatpush.bf16.msra.mxu2 %v6917_v11  ;;  %v7454_v11 = vld [vmem:[%s9428_s27 + $0x6fc] sm:$0xf0] }
 0x43a   : > { %5192 = vmatpush.bf16.msra.mxu3 %v7077_v49  ;;  %v7297_v49 = vor.u32 %v8224_v34, %v7294_v31  ;;  %v7457_v43 = vor.u32 %v8264_v38, %v7454_v11  ;;  %v7554_v34 = vld [vmem:[%s9428_s27 + $0x7c4] sm:$0xf0]  ;;  %v8204_v38 = vld [vmem:[%s9428_s27 + $0x50c] sm:$0xf] }
 0x43b   : > { %5154 = vmatpush.bf16.msra.mxu0 %v6577_v39  ;;  %v4948_v50 = vpop.f32.mrf.mxu0  ;;  %v7777_v39 = vor.u32 %v8344_v46, %v7774_v48  ;;  %v8284_v46 = vld [vmem:[%s9428_s27 + $0x78c] sm:$0xf] }
 0x43c   : > { %5167 = vmatpush.bf16.msra.mxu1 %v6737_v51  ;;  %v4949_v58 = vadd.f32 %v4948_v50, %v3144_v25  ;;  %v4961_v59 = vpop.f32.mrf.mxu1  ;;  %v8339_v51 = vld [vmem:[%s9428_s27 + $0x944] sm:$0xf]  ;;  %v7214_v25 = vld [vmem:[%s9428_s27 + $0x51c] sm:$0xf0] }
 0x43d   : > { %5180 = vmatpush.bf16.msra.mxu2 %v6897_v40  ;;  %v7754_v40 = vld [vmem:[%s9428_s27 + $0x954] sm:$0xf0]  ;;  %v7534_v50 = vld [vmem:[%s9428_s27 + $0x79c] sm:$0xf0] }
 0x43e   : > { %5193 = vmatpush.bf16.msra.mxu3 %v7057_v24  ;;  %5155 = vmatmul.bf16.vlgmr.msra.gmra.mxu0 %v11176_v23  ;;  %v4962_v62 = vadd.f32 %v4961_v59, %v4949_v58  ;;  %v7437_v24 = vor.u32 %v8259_v56, %v7434_v60  ;;  %v7757_v5 = vor.u32 %v8339_v51, %v7754_v40  ;;  %v8082_v56 = vld [vmem:[%s9428_s27 + $0x138] sm:$0xf0]  ;;  %v6880_v58 = vld [vmem:[%s9428_s27 + $0x268] sm:$0xf] }
 0x43f   : > { %5199 = vmatpush.bf16.msrb.mxu0 %v7357_v0  ;;  %5168 = vmatmul.bf16.vlgmr.msra.gmra.mxu1 %v11183_v26  ;;  %v7597_v0 = vor.u32 %v8299_v61, %v7594_v32  ;;  %v7217_v59 = vor.u32 %v8204_v38, %v7214_v25  ;;  %v7040_v60 = vld [vmem:[%s9428_s27 + $0x3a8] sm:$0xf]  ;;  %v8162_v61 = vld [vmem:[%s9428_s27 + $0x3b8] sm:$0xf0]  ;;  %v7377_v32 = vor.u32 %v8244_v44, %v7374_v45  ;;  %v6980_v38 = vld [vmem:[%s9428_s27 + $0x330] sm:$0xf] }
 0x440   : > { %5212 = vmatpush.bf16.msrb.mxu1 %v7517_v1  ;;  %5181 = vmatmul.bf16.vlgmr.msra.gmra.mxu2 %v11171_v21  ;;  %v8214_v1 = vld [vmem:[%s9428_s27 + $0x55c] sm:$0xf]  ;;  %v7537_v51 = vor.u32 %v8284_v46, %v7534_v50  ;;  %v7200_v40 = vld [vmem:[%s9428_s27 + $0x4e8] sm:$0xf]  ;;  %v8147_v25 = vld [vmem:[%s9428_s27 + $0x340] sm:$0xf0] }
 0x441   : > { %5225 = vmatpush.bf16.msrb.mxu2 %v7677_v2  ;;  %5194 = vmatmul.bf16.vlgmr.msra.gmra.mxu3 %v11179_v28  ;;  %v7254_v2 = vld [vmem:[%s9428_s27 + $0x56c] sm:$0xf0]  ;;  %v6981_v46 = vor.u32 %v8147_v25, %v6980_v38  ;;  %v6640_v50 = vld [vmem:[%s9428_s27 + $0x88] sm:$0xf] }
 0x442   : > { %5238 = vmatpush.bf16.msrb.mxu3 %v7837_v7  ;;  %v7414_v7 = vld [vmem:[%s9428_s27 + $0x6ac] sm:$0xf0] }
 0x443   : > { %5200 = vmatpush.bf16.msrb.mxu0 %v7337_v13  ;;  %v4974_v4 = vpop.f32.mrf.mxu2  ;;  %v7734_v13 = vld [vmem:[%s9428_s27 + $0x92c] sm:$0xf0]  ;;  %v4950_v16 = vpop.f32.mrf.mxu0  ;;  %v7417_v37 = vor.u32 %v8254_v3, %v7414_v7  ;;  %v8077_v3 = vld [vmem:[%s9428_s27 + $0x110] sm:$0xf0] }
 0x444   : > { %5213 = vmatpush.bf16.msrb.mxu1 %v7497_v14  ;;  %v4975_v10 = vadd.f32 %v4974_v4, %v4962_v62  ;;  %v4987_v12 = vpop.f32.mrf.mxu3  ;;  %v7257_v14 = vor.u32 %v8214_v1, %v7254_v2  ;;  %v4963_v20 = vpop.f32.mrf.mxu1  ;;  %v7737_v22 = vor.u32 %v8334_v57, %v7734_v13  ;;  %v8202_v62 = vld [vmem:[%s9428_s27 + $0x4f8] sm:$0xf0]  ;;  %v7041_v1 = vor.u32 %v8162_v61, %v7040_v60  ;;  %v6700_v2 = vld [vmem:[%s9428_s27 + $0x100] sm:$0xf]  ;;  %v8117_v7 = vld [vmem:[%s9428_s27 + $0x250] sm:$0xf0] }
 0x445   : > { %5226 = vmatpush.bf16.msrb.mxu2 %v7657_v15  ;;  %v6860_v4 = vld [vmem:[%s9428_s27 + $0x240] sm:$0xf]  ;;  %v6701_v57 = vor.u32 %v8077_v3, %v6700_v2  ;;  %v6680_v16 = vld [vmem:[%s9428_s27 + $0xd8] sm:$0xf]  ;;  %v8152_v20 = vld [vmem:[%s9428_s27 + $0x368] sm:$0xf0] }
 0x446   : > { %5239 = vmatpush.bf16.msrb.mxu3 %v7817_v18  ;;  %v11210_v15 = vadd.f32 %v4987_v12, %v4975_v10  ;;  %v8209_v18 = vld [vmem:[%s9428_s27 + $0x534] sm:$0xf]  ;;  %v7180_v10 = vld [vmem:[%s9428_s27 + $0x4c0] sm:$0xf]  ;;  %v6861_v13 = vor.u32 %v8117_v7, %v6860_v4  ;;  %v8182_v60 = vld [vmem:[%s9428_s27 + $0x458] sm:$0xf0] }
 0x447   : > { %5201 = vmatpush.bf16.msrb.mxu0 %v7317_v29  ;;  %v8289_v29 = vld [vmem:[%s9428_s27 + $0x7b4] sm:$0xf]  ;;  %v7237_v31 = vor.u32 %v8209_v18, %v7234_v42  ;;  %v8112_v42 = vld [vmem:[%s9428_s27 + $0x228] sm:$0xf0]  ;;  %v6940_v3 = vld [vmem:[%s9428_s27 + $0x2e0] sm:$0xf] }
 0x448   : > { %5214 = vmatpush.bf16.msrb.mxu1 %v7477_v30  ;;  %v8329_v30 = vld [vmem:[%s9428_s27 + $0x8f4] sm:$0xf]  ;;  %v7557_v11 = vor.u32 %v8289_v29, %v7554_v34  ;;  %v6900_v38 = vld [vmem:[%s9428_s27 + $0x290] sm:$0xf] }
 0x449   : > { %5227 = vmatpush.bf16.msrb.mxu2 %v7637_v35  ;;  %v7714_v35 = vld [vmem:[%s9428_s27 + $0x904] sm:$0xf0]  ;;  %v8197_v12 = vld [vmem:[%s9428_s27 + $0x4d0] sm:$0xf0] }
 0x44a   : > { %5240 = vmatpush.bf16.msrb.mxu3 %v7797_v41  ;;  %v7397_v41 = vor.u32 %v8249_v27, %v7394_v47  ;;  %v7181_v18 = vor.u32 %v8197_v12, %v7180_v10  ;;  %v7000_v27 = vld [vmem:[%s9428_s27 + $0x358] sm:$0xf]  ;;  %v8192_v47 = vld [vmem:[%s9428_s27 + $0x4a8] sm:$0xf0]  ;;  %v8097_v2 = vld [vmem:[%s9428_s27 + $0x1b0] sm:$0xf0] }
 0x44b   : > { %5202 = vmatpush.bf16.msrb.mxu0 %v7297_v49  ;;  %v4976_v48 = vpop.f32.mrf.mxu2  ;;  %v7717_v49 = vor.u32 %v8329_v30, %v7714_v35  ;;  %v7001_v34 = vor.u32 %v8152_v20, %v7000_v27  ;;  %v6660_v30 = vld [vmem:[%s9428_s27 + $0xb0] sm:$0xf]  ;;  %v8067_v35 = vld [vmem:[%s9428_s27 + $0xc0] sm:$0xf0]  ;;  %v8137_v4 = vld [vmem:[%s9428_s27 + $0x2f0] sm:$0xf0] }
 0x44c   : > { %5215 = vmatpush.bf16.msrb.mxu1 %v7457_v43  ;;  %v8324_v43 = vld [vmem:[%s9428_s27 + $0x8cc] sm:$0xf]  ;;  %v4989_v54 = vpop.f32.mrf.mxu3  ;;  %v8177_v7 = vld [vmem:[%s9428_s27 + $0x430] sm:$0xf0]  ;;  %v6600_v10 = vld [vmem:[%s9428_s27 + $0x38] sm:$0xf] }
 0x44d   : > { %5228 = vmatpush.bf16.msrb.mxu2 %v7617_v52  ;;  %v7694_v52 = vld [vmem:[%s9428_s27 + $0x8dc] sm:$0xf0]  ;;  %v6920_v20 = vld [vmem:[%s9428_s27 + $0x2b8] sm:$0xf] }
 0x44e   : > { %5241 = vmatpush.bf16.msrb.mxu3 %v7777_v39  ;;  %v8122_v39 = vld [vmem:[%s9428_s27 + $0x278] sm:$0xf0] }
 0x44f   : > { %5203 = vmatpush.bf16.msrb.mxu0 %v7277_v63  ;;  %v7697_v63 = vor.u32 %v8324_v43, %v7694_v52  ;;  %v8062_v43 = vld [vmem:[%s9428_s27 + $0x98] sm:$0xf0]  ;;  %v6800_v52 = vld [vmem:[%s9428_s27 + $0x1c8] sm:$0xf] }
 0x450   : > { %5216 = vmatpush.bf16.msrb.mxu1 %v7437_v24  ;;  %v6721_v24 = vor.u32 %v8082_v56, %v6720_v55  ;;  %v8102_v55 = vld [vmem:[%s9428_s27 + $0x1d8] sm:$0xf0]  ;;  %v6960_v56 = vld [vmem:[%s9428_s27 + $0x308] sm:$0xf] }
 0x451   : > { %5229 = vmatpush.bf16.msrb.mxu2 %v7597_v0  ;;  %v6881_v0 = vor.u32 %v8122_v39, %v6880_v58  ;;  %v8142_v58 = vld [vmem:[%s9428_s27 + $0x318] sm:$0xf0]  ;;  %v7120_v39 = vld [vmem:[%s9428_s27 + $0x448] sm:$0xf]  ;;  %v6801_v61 = vor.u32 %v8102_v55, %v6800_v52 }
 0x452   : > { %5242 = vmatpush.bf16.msrb.mxu3 %v7757_v5  ;;  %v7201_v5 = vor.u32 %v8202_v62, %v7200_v40  ;;  %v6620_v40 = vld [vmem:[%s9428_s27 + $0x60] sm:$0xf]  ;;  %v8057_v62 = vld [vmem:[%s9428_s27 + $0x70] sm:$0xf0]  ;;  %v7680_v52 = vld [vmem:[%s9428_s27 + $0x8a8] sm:$0xf] }
 0x453   : > { %5204 = vmatpush.bf16.msrb.mxu0 %v7257_v14  ;;  %v7021_v14 = vor.u32 %v8157_v9, %v7020_v8  ;;  %v6621_v9 = vor.u32 %v8057_v62, %v6620_v40  ;;  %v7500_v40 = vld [vmem:[%s9428_s27 + $0x740] sm:$0xf] }
 0x454   : > { %5217 = vmatpush.bf16.msrb.mxu1 %v7417_v37  ;;  %v8072_v37 = vld [vmem:[%s9428_s27 + $0xe8] sm:$0xf0] }
 0x455   : > { %5230 = vmatpush.bf16.msrb.mxu2 %v7577_v17  ;;  %v6840_v17 = vld [vmem:[%s9428_s27 + $0x218] sm:$0xf] }
 0x456   : > { %5243 = vmatpush.bf16.msrb.mxu3 %v7737_v22  ;;  %v7160_v22 = vld [vmem:[%s9428_s27 + $0x498] sm:$0xf]  ;;  %v6841_v29 = vor.u32 %v8112_v42, %v6840_v17 }
 0x457   : > { %5205 = vmatpush.bf16.msrb.mxu0 %v7237_v31  ;;  %v8107_v31 = vld [vmem:[%s9428_s27 + $0x200] sm:$0xf0] }
 0x458   : > { %5218 = vmatpush.bf16.msrb.mxu1 %v7397_v41  ;;  %v7140_v41 = vld [vmem:[%s9428_s27 + $0x470] sm:$0xf] }
 0x459   : > { %5231 = vmatpush.bf16.msrb.mxu2 %v7557_v11  ;;  %v8187_v11 = vld [vmem:[%s9428_s27 + $0x480] sm:$0xf0] }
 0x45a   : > { %5244 = vmatpush.bf16.msrb.mxu3 %v7717_v49  ;;  %v7141_v54 = vor.u32 %v8187_v11, %v7140_v41  ;;  %v8127_v11 = vld [vmem:[%s9428_s27 + $0x2a0] sm:$0xf0] }
 0x45b   : > { %5206 = vmatpush.bf16.msrb.mxu0 %v7217_v59  ;;  %v5000_v44 = vpop.f32.mrf.mxu0 }
 0x45c   : > { %5219 = vmatpush.bf16.msrb.mxu1 %v7377_v32  ;;  %v5001_v48 = vadd.f32 %v5000_v44, %v11210_v15  ;;  %v5013_v49 = vpop.f32.mrf.mxu1  ;;  %v6641_v15 = vor.u32 %v8062_v43, %v6640_v50  ;;  %v6961_v32 = vor.u32 %v8142_v58, %v6960_v56  ;;  %v8167_v44 = vld [vmem:[%s9428_s27 + $0x3e0] sm:$0xf0]  ;;  %v8282_v43 = vld [vmem:[%s9428_s27 + $0x778] sm:$0xf0]  ;;  %v6901_v56 = vor.u32 %v8127_v11, %v6900_v38  ;;  %v7840_v58 = vld [vmem:[%s9428_s27 + $0x9e8] sm:$0xf] }
 0x45d   : > { %5232 = vmatpush.bf16.msrb.mxu2 %v7537_v51  ;;  %v7440_v38 = vld [vmem:[%s9428_s27 + $0x6c8] sm:$0xf] }
 0x45e   : > { %5245 = vmatpush.bf16.msrb.mxu3 %v7697_v63  ;;  %5207 = vmatmul.bf16.vlgmr.msrb.gmra.mxu0 %v11098_v53  ;;  %v6820_v53 = vld [vmem:[%s9428_s27 + $0x1f0] sm:$0xf]  ;;  %v5014_v59 = vadd.f32 %v5013_v49, %v5001_v48  ;;  %v6780_v63 = vld [vmem:[%s9428_s27 + $0x1a0] sm:$0xf]  ;;  %v8242_v48 = vld [vmem:[%s9428_s27 + $0x638] sm:$0xf0] }
 0x45f   : > { %5251 = vmatpush.bf16.msra.mxu0 %v6721_v24  ;;  %5220 = vmatmul.bf16.vlgmr.msrb.gmra.mxu1 %v11104_v36  ;;  %v6661_v36 = vor.u32 %v8067_v35, %v6660_v30  ;;  %v6821_v45 = vor.u32 %v8107_v31, %v6820_v53  ;;  %v7121_v24 = vor.u32 %v8182_v60, %v7120_v39  ;;  %v6580_v30 = vld [vmem:[%s9428_s27 + $0x10] sm:$0xf]  ;;  %v8087_v31 = vld [vmem:[%s9428_s27 + $0x160] sm:$0xf0]  ;;  %v7520_v49 = vld [vmem:[%s9428_s27 + $0x768] sm:$0xf] }
 0x460   : > { %5264 = vmatpush.bf16.msra.mxu1 %v6881_v0  ;;  %5233 = vmatmul.bf16.vlgmr.msrb.gmra.mxu2 %v11090_v6  ;;  %v6681_v6 = vor.u32 %v8072_v37, %v6680_v16  ;;  %v6760_v16 = vld [vmem:[%s9428_s27 + $0x178] sm:$0xf]  ;;  %v8092_v37 = vld [vmem:[%s9428_s27 + $0x188] sm:$0xf0] }
 0x461   : > { %5277 = vmatpush.bf16.msra.mxu2 %v7041_v1  ;;  %5246 = vmatmul.bf16.vlgmr.msrb.gmra.mxu3 %v11101_v33  ;;  %v7161_v33 = vor.u32 %v8192_v47, %v7160_v22  ;;  %v8132_v22 = vld [vmem:[%s9428_s27 + $0x2c8] sm:$0xf0]  ;;  %v7080_v47 = vld [vmem:[%s9428_s27 + $0x3f8] sm:$0xf]  ;;  %v6761_v35 = vor.u32 %v8092_v37, %v6760_v16 }
 0x462   : > { %5290 = vmatpush.bf16.msra.mxu3 %v7201_v5  ;;  %v7100_v5 = vld [vmem:[%s9428_s27 + $0x420] sm:$0xf]  ;;  %v6921_v53 = vor.u32 %v8132_v22, %v6920_v20  ;;  %v8352_v16 = vld [vmem:[%s9428_s27 + $0x9a8] sm:$0xf0]  ;;  %v11332_v20 = vld [vmem:[%s9422_s23] sm:$0x1f] }
 0x463   : > { %5252 = vmatpush.bf16.msra.mxu0 %v6701_v57  ;;  %v5026_v51 = vpop.f32.mrf.mxu2  ;;  %v5002_v12 = vpop.f32.mrf.mxu0  ;;  %v6781_v57 = vor.u32 %v8097_v2, %v6780_v63  ;;  %v7101_v27 = vor.u32 %v8177_v7, %v7100_v5  ;;  %v8277_v63 = vld [vmem:[%s9428_s27 + $0x750] sm:$0xf0]  ;;  %v7320_v7 = vld [vmem:[%s9428_s27 + $0x5d8] sm:$0xf]  ;;  %v8267_v22 = vld [vmem:[%s9428_s27 + $0x700] sm:$0xf0] }
 0x464   : > { %5265 = vmatpush.bf16.msra.mxu1 %v6861_v13  ;;  %v5027_v0 = vadd.f32 %v5026_v51, %v5014_v59  ;;  %v5039_v1 = vpop.f32.mrf.mxu3  ;;  %v6941_v13 = vor.u32 %v8137_v4, %v6940_v3  ;;  %v5015_v17 = vpop.f32.mrf.mxu1  ;;  %v8362_v59 = vld [vmem:[%s9428_s27 + $0x9f8] sm:$0xf0]  ;;  %v8237_v51 = vld [vmem:[%s9428_s27 + $0x610] sm:$0xf0]  ;;  %v7501_v4 = vor.u32 %v8277_v63, %v7500_v40  ;;  %v8272_v12 = vld [vmem:[%s9428_s27 + $0x728] sm:$0xf0] }
 0x465   : > { %5278 = vmatpush.bf16.msra.mxu2 %v7021_v14  ;;  %v8052_v14 = vld [vmem:[%s9428_s27 + $0x48] sm:$0xf0]  ;;  %v7841_v62 = vor.u32 %v8362_v59, %v7840_v58  ;;  %v8357_v2 = vld [vmem:[%s9428_s27 + $0x9d0] sm:$0xf0]  ;;  %s8541_s23 = smov [#allocation6]  }
 0x466   : > { %5291 = vmatpush.bf16.msra.mxu3 %v7181_v18  ;;  %v5040_v8 = vadd.f32 %v5039_v1, %v5027_v0  ;;  %v5355_v18 = vmax.f32 %v11131_v19, 0.0  ;;  %v8047_v19 = vld [vmem:[%s9428_s27 + $0x20] sm:$0xf0]  ;;  %v8317_v0 = vld [vmem:[%s9428_s27 + $0x890] sm:$0xf0] }
 0x467   : > { %5253 = vmatpush.bf16.msra.mxu0 %v6681_v6  ;;  %v8172_v6 = vld [vmem:[%s9428_s27 + $0x408] sm:$0xf0]  ;;  %v6581_v50 = vor.u32 %v8047_v19, %v6580_v30  ;;  %v7820_v1 = vld [vmem:[%s9428_s27 + $0x9c0] sm:$0xf]  ;;  %v8337_v40 = vld [vmem:[%s9428_s27 + $0x930] sm:$0xf0] }
 0x468   : > { %5266 = vmatpush.bf16.msra.mxu1 %v6841_v29  ;;  %v5356_v42 = vmax.f32 %v5040_v8, 0.0  ;;  %v7081_v41 = vor.u32 %v8172_v6, %v7080_v47  ;;  %v8232_v8 = vld [vmem:[%s9428_s27 + $0x5e8] sm:$0xf0]  ;;  %v7620_v47 = vld [vmem:[%s9428_s27 + $0x830] sm:$0xf] }
 0x469   : > { %5279 = vmatpush.bf16.msra.mxu2 %v7001_v34  ;;  %v6601_v34 = vor.u32 %v8052_v14, %v6600_v10  ;;  %v7821_v10 = vor.u32 %v8357_v2, %v7820_v1  ;;  %v7800_v14 = vld [vmem:[%s9428_s27 + $0x998] sm:$0xf]  ;;  %v7321_v37 = vor.u32 %v8232_v8, %v7320_v7  ;;  %v7780_v6 = vld [vmem:[%s9428_s27 + $0x970] sm:$0xf]  ;;  %v8252_v8 = vld [vmem:[%s9428_s27 + $0x688] sm:$0xf0] }
 0x46a   : > { %5292 = vmatpush.bf16.msra.mxu3 %v7161_v33  ;;  %v11290_v29 = vpack.c.bf16 %v5356_v42, %v5355_v18  ;;  %v6740_v33 = vld [vmem:[%s9428_s27 + $0x150] sm:$0xf]  ;;  %v8227_v42 = vld [vmem:[%s9428_s27 + $0x5c0] sm:$0xf0]  ;;  %v7240_v2 = vld [vmem:[%s9428_s27 + $0x538] sm:$0xf] }
 0x46b   : > { %5254 = vmatpush.bf16.msra.mxu0 %v6661_v36  ;;  %v5028_v25 = vpop.f32.mrf.mxu2  ;;  %v7060_v36 = vld [vmem:[%s9428_s27 + $0x3d0] sm:$0xf]  ;;  %v6741_v55 = vor.u32 %v8087_v31, %v6740_v33  ;;  %v7280_v33 = vld [vmem:[%s9428_s27 + $0x588] sm:$0xf]  ;;  %v8222_v31 = vld [vmem:[%s9428_s27 + $0x598] sm:$0xf0] }
 0x46c   : > { %5267 = vmatpush.bf16.msra.mxu1 %v6821_v45  ;;  %v5041_v45 = vpop.f32.mrf.mxu3  ;;  %v7061_v39 = vor.u32 %v8167_v44, %v7060_v36  ;;  %v8262_v36 = vld [vmem:[%s9428_s27 + $0x6d8] sm:$0xf0]  ;;  %v7600_v44 = vld [vmem:[%s9428_s27 + $0x808] sm:$0xf] }
 0x46d   : > { %5280 = vmatpush.bf16.msra.mxu2 %v6981_v46  ;;  %v7360_v46 = vld [vmem:[%s9428_s27 + $0x628] sm:$0xf]  ;;  %v8302_v45 = vld [vmem:[%s9428_s27 + $0x818] sm:$0xf0] }
 0x46e   : > { %5293 = vmatpush.bf16.msra.mxu3 %v7141_v54  ;;  %v8322_v54 = vld [vmem:[%s9428_s27 + $0x8b8] sm:$0xf0]  ;;  %v7361_v60 = vor.u32 %v8242_v48, %v7360_v46  ;;  %v7760_v46 = vld [vmem:[%s9428_s27 + $0x948] sm:$0xf] }
 0x46f   : > { %5255 = vmatpush.bf16.msra.mxu0 %v6641_v15  ;;  %v7521_v15 = vor.u32 %v8282_v43, %v7520_v49  ;;  %v8342_v48 = vld [vmem:[%s9428_s27 + $0x958] sm:$0xf0]  ;;  %v7441_v43 = vor.u32 %v8262_v36, %v7440_v38 }
 0x470   : > { %5268 = vmatpush.bf16.msra.mxu1 %v6801_v61  ;;  %v7681_v61 = vor.u32 %v8322_v54, %v7680_v52  ;;  %v7601_v52 = vor.u32 %v8302_v45, %v7600_v44  ;;  %v7260_v54 = vld [vmem:[%s9428_s27 + $0x560] sm:$0xf]  ;;  %v7761_v59 = vor.u32 %v8342_v48, %v7760_v46 }
 0x471   : > { %5281 = vmatpush.bf16.msra.mxu2 %v6961_v32  ;;  %v7340_v32 = vld [vmem:[%s9428_s27 + $0x600] sm:$0xf] }
 0x472   : > { %5294 = vmatpush.bf16.msra.mxu3 %v7121_v24  ;;  %v7660_v24 = vld [vmem:[%s9428_s27 + $0x880] sm:$0xf]  ;;  %v7341_v3 = vor.u32 %v8237_v51, %v7340_v32 }
 0x473   : > { %5256 = vmatpush.bf16.msra.mxu0 %v6621_v9  ;;  %v7661_v5 = vor.u32 %v8317_v0, %v7660_v24  ;;  %v7480_v9 = vld [vmem:[%s9428_s27 + $0x718] sm:$0xf]  ;;  %v7740_v51 = vld [vmem:[%s9428_s27 + $0x920] sm:$0xf] }
 0x474   : > { %5269 = vmatpush.bf16.msra.mxu1 %v6781_v57  ;;  %v7640_v57 = vld [vmem:[%s9428_s27 + $0x858] sm:$0xf]  ;;  %v7481_v17 = vor.u32 %v8272_v12, %v7480_v9  ;;  %v7741_v7 = vor.u32 %v8337_v40, %v7740_v51 }
 0x475   : > { %5282 = vmatpush.bf16.msra.mxu2 %v6941_v13  ;;  %v8312_v13 = vld [vmem:[%s9428_s27 + $0x868] sm:$0xf0]  ;;  %v7560_v9 = vld [vmem:[%s9428_s27 + $0x7b8] sm:$0xf] }
 0x476   : > { %5295 = vmatpush.bf16.msra.mxu3 %v7101_v27  ;;  %v7641_v18 = vor.u32 %v8312_v13, %v7640_v57  ;;  %v7460_v27 = vld [vmem:[%s9428_s27 + $0x6f0] sm:$0xf]  ;;  %v7720_v12 = vld [vmem:[%s9428_s27 + $0x8f8] sm:$0xf]  ;;  %v8332_v57 = vld [vmem:[%s9428_s27 + $0x908] sm:$0xf0] }
 0x477   : > { %5257 = vmatpush.bf16.msra.mxu0 %v6601_v34  ;;  %v8347_v34 = vld [vmem:[%s9428_s27 + $0x980] sm:$0xf0] }
 0x478   : > { %5270 = vmatpush.bf16.msra.mxu1 %v6761_v35  ;;  %v7461_v35 = vor.u32 %v8267_v22, %v7460_v27  ;;  %v7781_v11 = vor.u32 %v8347_v34, %v7780_v6  ;;  %v8247_v27 = vld [vmem:[%s9428_s27 + $0x660] sm:$0xf0] }
 0x479   : > { %5283 = vmatpush.bf16.msra.mxu2 %v6921_v53 }
 0x47a   : > { %5296 = vmatpush.bf16.msra.mxu3 %v7081_v41 }
 0x47b   : > { %5258 = vmatpush.bf16.msra.mxu0 %v6581_v50  ;;  %v5052_v19 = vpop.f32.mrf.mxu0  ;;  %v7281_v50 = vor.u32 %v8222_v31, %v7280_v33  ;;  %v8423_v33 = vld [vmem:[#allocation1 + $0x36] sm:$0xff]  ;;  %v8424_v31 = vld [vmem:[#allocation1 + $0x3f] sm:$0xff] }
 0x47c   : > { %5271 = vmatpush.bf16.msra.mxu1 %v6741_v55  ;;  %v5065_v41 = vpop.f32.mrf.mxu1  ;;  %v8217_v55 = vld [vmem:[%s9428_s27 + $0x570] sm:$0xf0] }
 0x47d   : > { %5284 = vmatpush.bf16.msra.mxu2 %v6901_v56  ;;  %v7420_v56 = vld [vmem:[%s9428_s27 + $0x6a0] sm:$0xf] }
 0x47e   : > { %5297 = vmatpush.bf16.msra.mxu3 %v7061_v39  ;;  %5259 = vmatmul.bf16.vlgmr.msra.gmra.mxu0 %v11176_v23  ;;  %v3145_v23 = vperm.slane %v11332_v20, 2  ;;  %v8257_v39 = vld [vmem:[%s9428_s27 + $0x6b0] sm:$0xf0] }
 0x47f   : > { %5303 = vmatpush.bf16.msrb.mxu0 %v7361_v60  ;;  %5272 = vmatmul.bf16.vlgmr.msra.gmra.mxu1 %v11183_v26  ;;  %v8307_v26 = vld [vmem:[%s9428_s27 + $0x840] sm:$0xf0]  ;;  %v7580_v60 = vld [vmem:[%s9428_s27 + $0x7e0] sm:$0xf]  ;;  %v7421_v0 = vor.u32 %v8257_v39, %v7420_v56 }
 0x480   : > { %5316 = vmatpush.bf16.msrb.mxu1 %v7521_v15  ;;  %5285 = vmatmul.bf16.vlgmr.msra.gmra.mxu2 %v11171_v21  ;;  %v7300_v21 = vld [vmem:[%s9428_s27 + $0x5b0] sm:$0xf]  ;;  %v7621_v53 = vor.u32 %v8307_v26, %v7620_v47  ;;  %v5053_v25 = vadd.f32 %v5052_v19, %v3145_v23  ;;  %v8297_v15 = vld [vmem:[%s9428_s27 + $0x7f0] sm:$0xf0]  ;;  %v8327_v26 = vld [vmem:[%s9428_s27 + $0x8e0] sm:$0xf0] }
 0x481   : > { %5329 = vmatpush.bf16.msrb.mxu2 %v7681_v61  ;;  %5298 = vmatmul.bf16.vlgmr.msra.gmra.mxu3 %v11179_v28  ;;  %v7801_v28 = vor.u32 %v8352_v16, %v7800_v14  ;;  %v7301_v30 = vor.u32 %v8227_v42, %v7300_v21  ;;  %v7581_v1 = vor.u32 %v8297_v15, %v7580_v60  ;;  %v8207_v21 = vld [vmem:[%s9428_s27 + $0x520] sm:$0xf0]  ;;  %v7540_v23 = vld [vmem:[%s9428_s27 + $0x790] sm:$0xf] }
 0x482   : > { %5342 = vmatpush.bf16.msrb.mxu3 %v7841_v62  ;;  %v5066_v49 = vadd.f32 %v5065_v41, %v5053_v25  ;;  %v7261_v62 = vor.u32 %v8217_v55, %v7260_v54  ;;  %v7721_v42 = vor.u32 %v8332_v57, %v7720_v12  ;;  %v7700_v47 = vld [vmem:[%s9428_s27 + $0x8d0] sm:$0xf] }
 0x483   : > { %5304 = vmatpush.bf16.msrb.mxu0 %v7341_v3  ;;  %v5078_v58 = vpop.f32.mrf.mxu2  ;;  %v5054_v24 = vpop.f32.mrf.mxu0  ;;  %v8212_v3 = vld [vmem:[%s9428_s27 + $0x548] sm:$0xf0]  ;;  %v7701_v19 = vor.u32 %v8327_v26, %v7700_v47 }
 0x484   : > { %5317 = vmatpush.bf16.msrb.mxu1 %v7501_v4  ;;  %v5079_v61 = vadd.f32 %v5078_v58, %v5066_v49  ;;  %v5091_v32 = vpop.f32.mrf.mxu3  ;;  %v7400_v4 = vld [vmem:[%s9428_s27 + $0x678] sm:$0xf]  ;;  %v7241_v13 = vor.u32 %v8212_v3, %v7240_v2 }
 0x485   : > { %5330 = vmatpush.bf16.msrb.mxu2 %v7661_v5  ;;  %v5067_v5 = vpop.f32.mrf.mxu1  ;;  %v7401_v14 = vor.u32 %v8252_v8, %v7400_v4 }
 0x486   : > { %5343 = vmatpush.bf16.msrb.mxu3 %v7821_v10  ;;  %v5092_v63 = vadd.f32 %v5091_v32, %v5079_v61  ;;  %v8292_v10 = vld [vmem:[%s9428_s27 + $0x7c8] sm:$0xf0] }
 0x487   : > { %5305 = vmatpush.bf16.msrb.mxu0 %v7321_v37  ;;  %v7561_v16 = vor.u32 %v8292_v10, %v7560_v9  ;;  %v7220_v37 = vld [vmem:[%s9428_s27 + $0x510] sm:$0xf]  ;;  %v5366_v10 = vrot.slane %v11290_v29, 3 }
 0x488   : > { %5318 = vmatpush.bf16.msrb.mxu1 %v7481_v17  ;;  %v7380_v17 = vld [vmem:[%s9428_s27 + $0x650] sm:$0xf]  ;;  %v7221_v6 = vor.u32 %v8207_v21, %v7220_v37 }
 0x489   : > { %5331 = vmatpush.bf16.msrb.mxu2 %v7641_v18  ;;  %v7381_v34 = vor.u32 %v8247_v27, %v7380_v17 }
 0x48a   : > { %5344 = vmatpush.bf16.msrb.mxu3 %v7801_v28  ;;  %v8287_v28 = vld [vmem:[%s9428_s27 + $0x7a0] sm:$0xf0]  ;;  %s5411_s27 = sshll.u32 %s8541_s23, 4  ;;  %s5423_s23 = sshll.u32 %s8543_s16, 4  ;;  %s5412_s27 = int_to_ptr.vmem [resolvable:$true] %s5411_s27  ;;  %s5424_s23 = int_to_ptr.vmem [resolvable:$true] %s5423_s23 }
 0x48b   : > { %5306 = vmatpush.bf16.msrb.mxu0 %v7301_v30  ;;  %v5080_v18 = vpop.f32.mrf.mxu2  ;;  %v7541_v30 = vor.u32 %v8287_v28, %v7540_v23  ;;  %8368 = dma.vmem_to_hbm [thread:$0]  (%p8377_p10), %s5412_s27, 32, %s5414_s15, [#allocation7]   ;;  %v3147_v28 = vperm.slane %v11332_v20, 4 }
 0x48c   : > { %5319 = vmatpush.bf16.msrb.mxu1 %v7461_v35  ;;  %v5093_v22 = vpop.f32.mrf.mxu3  ;;  %v8421_v35 = vld [vmem:[#allocation1 + $0x24] sm:$0xff]  ;;  %8370 = dma.vmem_to_hbm [thread:$0]  (%p8377_p10), %s5424_s23, 32, %s5426_s13, [#allocation7]  }
 0x48d   : > { %5332 = vmatpush.bf16.msrb.mxu2 %v7621_v53  ;;  %v8422_v53 = vld [vmem:[#allocation1 + $0x2d] sm:$0xff] }
 0x48e   : > { %5345 = vmatpush.bf16.msrb.mxu3 %v7781_v11 }
 0x48f   : > { %5307 = vmatpush.bf16.msrb.mxu0 %v7281_v50 }
 0x490   : > { %5320 = vmatpush.bf16.msrb.mxu1 %v7441_v43 }
 0x491   : > { %5333 = vmatpush.bf16.msrb.mxu2 %v7601_v52  ;;  %v3146_v52 = vperm.slane %v11332_v20, 3 }
 0x492   : > { %5346 = vmatpush.bf16.msrb.mxu3 %v7761_v59 }
 0x493   : > { %5308 = vmatpush.bf16.msrb.mxu0 %v7261_v62 }
 0x494   : > { %5321 = vmatpush.bf16.msrb.mxu1 %v7421_v0 }
 0x495   : > { %5334 = vmatpush.bf16.msrb.mxu2 %v7581_v1 }
 0x496   : > { %5347 = vmatpush.bf16.msrb.mxu3 %v7741_v7 }
 0x497   : > { %5309 = vmatpush.bf16.msrb.mxu0 %v7241_v13 }
 0x498   : > { %5322 = vmatpush.bf16.msrb.mxu1 %v7401_v14 }
 0x499   : > { %5335 = vmatpush.bf16.msrb.mxu2 %v7561_v16  ;;  %v5374_v16 = vsel %vm5371_vm7, %v11290_v29, %v5366_v10 }
 0x49a   : > { %5348 = vmatpush.bf16.msrb.mxu3 %v7721_v42 }
 0x49b   : > { %5310 = vmatpush.bf16.msrb.mxu0 %v7221_v6  ;;  %v5104_v38 = vpop.f32.mrf.mxu0 }
 0x49c   : > { %5323 = vmatpush.bf16.msrb.mxu1 %v7381_v34  ;;  %v5105_v25 = vadd.f32 %v5104_v38, %v5092_v63  ;;  %v5117_v41 = vpop.f32.mrf.mxu1 }
 0x49d   : > { %5336 = vmatpush.bf16.msrb.mxu2 %v7541_v30 }
 0x49e   : > { %5349 = vmatpush.bf16.msrb.mxu3 %v7701_v19  ;;  %5311 = vmatmul.bf16.vlgmr.msrb.gmra.mxu0 %v8421_v35  ;;  %v5118_v11 = vadd.f32 %v5117_v41, %v5105_v25 }
 0x49f   : > { %5324 = vmatmul.bf16.vlgmr.msrb.gmra.mxu1 %v8422_v53 }
 0x4a0   : > { %5337 = vmatmul.bf16.vlgmr.msrb.gmra.mxu2 %v8423_v33 }
 0x4a1   : > { %5350 = vmatmul.bf16.vlgmr.msrb.gmra.mxu3 %v8424_v31 }
 0x4a3   : > { %v5130_v36 = vpop.f32.mrf.mxu2  ;;  %v5106_v48 = vpop.f32.mrf.mxu0 }
 0x4a4   : > { %v5131_v44 = vadd.f32 %v5130_v36, %v5118_v11  ;;  %v5143_v45 = vpop.f32.mrf.mxu3  ;;  %v5119_v49 = vpop.f32.mrf.mxu1 }
 0x4a6   : > { %v5144_v46 = vadd.f32 %v5143_v45, %v5131_v44 }
 0x4a8   : > { %v5357_v8 = vmax.f32 %v5144_v46, 0.0 }
 0x4ab   : > { %v5132_v50 = vpop.f32.mrf.mxu2 }
 0x4ac   : > { %v5145_v43 = vpop.f32.mrf.mxu3 }
 0x4bb   : > { %v5156_v54 = vpop.f32.mrf.mxu0 }
 0x4bc   : > { %v5157_v55 = vadd.f32 %v5156_v54, %v3146_v52  ;;  %v5169_v56 = vpop.f32.mrf.mxu1 }
 0x4be   : > { %v5170_v58 = vadd.f32 %v5169_v56, %v5157_v55 }
 0x4c3   : > { %v5182_v59 = vpop.f32.mrf.mxu2  ;;  %v5158_v61 = vpop.f32.mrf.mxu0 }
 0x4c4   : > { %v5183_v39 = vadd.f32 %v5182_v59, %v5170_v58  ;;  %v5195_v60 = vpop.f32.mrf.mxu3  ;;  %v5171_v32 = vpop.f32.mrf.mxu1 }
 0x4c6   : > { %v5196_v15 = vadd.f32 %v5195_v60, %v5183_v39 }
 0x4cb   : > { %v5184_v51 = vpop.f32.mrf.mxu2 }
 0x4cc   : > { %v5197_v40 = vpop.f32.mrf.mxu3 }
 0x4db   : > { %v5208_v62 = vpop.f32.mrf.mxu0 }
 0x4dc   : > { %v5209_v63 = vadd.f32 %v5208_v62, %v5196_v15  ;;  %v5221_v24 = vpop.f32.mrf.mxu1 }
 0x4de   : > { %v5222_v0 = vadd.f32 %v5221_v24, %v5209_v63 }
 0x4e3   : > { %v5234_v1 = vpop.f32.mrf.mxu2  ;;  %v5210_v5 = vpop.f32.mrf.mxu0 }
 0x4e4   : > { %v5235_v2 = vadd.f32 %v5234_v1, %v5222_v0  ;;  %v5247_v3 = vpop.f32.mrf.mxu3  ;;  %v5223_v7 = vpop.f32.mrf.mxu1 }
 0x4e6   : > { %v5248_v4 = vadd.f32 %v5247_v3, %v5235_v2 }
 0x4e8   : > { %v5358_v9 = vmax.f32 %v5248_v4, 0.0 }
 0x4ea   : > { %v5361_v12 = vpack.c.bf16 %v5358_v9, %v5357_v8 }
 0x4eb   : > { %v5236_v57 = vpop.f32.mrf.mxu2 }
 0x4ec   : > { %v5367_v13 = vrot.slane %v5361_v12, 6  ;;  %v5249_v14 = vpop.f32.mrf.mxu3  ;;  %v5368_v45 = vrot.slane %v5361_v12, 1 }
 0x4ee   : > { %v5377_v37 = vsel %vm5375_vm8, %v5374_v16, %v5367_v13 }
 0x4fb   : > { %v5260_v21 = vpop.f32.mrf.mxu0 }
 0x4fc   : > { %v5273_v17 = vpop.f32.mrf.mxu1  ;;  %v5261_v26 = vadd.f32 %v5260_v21, %v3147_v28 }
 0x4fe   : > { %v5274_v6 = vadd.f32 %v5273_v17, %v5261_v26 }
 0x503   : > { %v5286_v18 = vpop.f32.mrf.mxu2  ;;  %v5262_v27 = vpop.f32.mrf.mxu0 }
 0x504   : > { %v5299_v42 = vpop.f32.mrf.mxu3  ;;  %v5275_v23 = vpop.f32.mrf.mxu1  ;;  %v5287_v34 = vadd.f32 %v5286_v18, %v5274_v6 }
 0x506   : > { %v5300_v30 = vadd.f32 %v5299_v42, %v5287_v34 }
 0x50b   : > { %v5288_v22 = vpop.f32.mrf.mxu2 }
 0x50c   : > { %v5301_v47 = vpop.f32.mrf.mxu3 }
 0x51b   : > { %v5312_v19 = vpop.f32.mrf.mxu0 }
 0x51c   : > { %v5325_v35 = vpop.f32.mrf.mxu1  ;;  %v5313_v53 = vadd.f32 %v5312_v19, %v5300_v30 }
 0x51e   : > { %v5326_v33 = vadd.f32 %v5325_v35, %v5313_v53 }
 0x523   : > { %v5338_v29 = vpop.f32.mrf.mxu2  ;;  %v5314_v25 = vpop.f32.mrf.mxu0 }
 0x524   : > { %v5339_v31 = vadd.f32 %v5338_v29, %v5326_v33  ;;  %v5351_v38 = vpop.f32.mrf.mxu3  ;;  %v5327_v41 = vpop.f32.mrf.mxu1 }
 0x526   : > { %v5352_v11 = vadd.f32 %v5351_v38, %v5339_v31 }
 0x528   : > { %v5359_v36 = vmax.f32 %v5352_v11, 0.0 }
 0x52a   : > { %v5362_v20 = vpack.c.bf16 %v5359_v36, %v5359_v36 }
 0x52b   : > { %v5340_v44 = vpop.f32.mrf.mxu2 }
 0x52c   : > { %v5369_v46 = vrot.slane %v5362_v20, 4  ;;  %v5370_v48 = vrot.slane %v5362_v20, 7  ;;  %v5353_v49 = vpop.f32.mrf.mxu3 }
 0x52e   : > { %v5381_v50 = vsel %vm5378_vm9, %v5368_v45, %v5369_v46 }
 0x52f   : > { %v5384_v43 = vsel %vm5382_vm10, %v5381_v50, %v5370_v48 }
 0x530   : > { %v5386_v52 = vsel %vm5385_vm11, %v5377_v37, %v5384_v43 }
 0x531   : > { %5388 = vst [vmem:[%s11427_s22] sm:$0x1f] %v5386_v52 }
 0x532   : > { %8522 = dma.done.wait (%p8377_p10), [#allocation5], 32  }
 0x533   : > { %8524 = vsyncadd (%p8377_p10), [#allocation5], 4294967264 }
 0x534   : > { %8526 = dma.done.wait (%p8377_p10), [#allocation7], 64  }
 0x535   : > { %8528 = vsyncadd (%p8377_p10), [#allocation7], 4294967232 }
 0x536 PF: > { %p21_p11 = scmp.ge.s32.totalorder %s8623_s21, 7   ;;  %s11428_s17 = smov %s8535_s18 }
 0x537   : > { %s11429_s18 = smov %s8632_s24  ;;  %s11430_s19 = smov %s8623_s21 }
 0x538   :  { %23 = sbr.rel (!%p21_p11) target bundleno = 3 (0x3), region = 151 }
 0x53d   :  { %5460 = vsyncpa [#allocation5], 1 }
 0x53e   :  { %5462 = vsyncpa [#allocation5 + $0x1], 1 }
 0x53f   :  { %5463 = vsyncpa [#allocation7], 1 }

// kernel: vae_forward.11
= control target key start
LH: loop header
LB: loop body
LE: loop exit
PB: predicated region body
PF: predicated region fallthrough
CT: control target
= control target key end

     0   :  { %vm771_vm0 = vcmask 261120   ;;  %s3504_s1 = inlined_call_operand.vmem [shape: bf16[288,128], index: 1, kind: input, shape index: {}]   ;;  %s3505_s0 = inlined_call_operand.vmem [shape: bf16[512,288], index: 0, kind: input, shape index: {}]   ;;  %s3506_s2 = inlined_call_operand.vmem [shape: f32[1,128], index: 2, kind: input, shape index: {}]   ;;  %s3507_s3 = inlined_call_operand.vmem [shape: f32[512,128], index: 3, kind: output, shape index: {}]  }
   0x1   :  { %v2290_v0 = vld [vmem:[%s3504_s1 + $0x38] sm:$0xff]  ;;  %v2475_v1 = vld [vmem:[%s3504_s1 + $0x88] sm:$0xff]  ;;  %v2289_v3 = vld [vmem:[%s3504_s1 + $0x30] sm:$0xff] }
   0x2   :  { %v2298_v2 = vld [vmem:[%s3504_s1 + $0x78] sm:$0xff]  ;;  %868 = vmatpush.bf16.msra.mxu0 %v2290_v0  ;;  %2301 = vmatpush.bf16.msra.mxu3 %v2290_v0  ;;  %v2486_v4 = vld [vmem:[%s3504_s1 + $0x80] sm:$0xff]  ;;  %v2297_v5 = vld [vmem:[%s3504_s1 + $0x70] sm:$0xff] }
   0x3   :  { %1212 = vmatpush.bf16.msra.mxu2 %v2475_v1  ;;  %1037 = vmatpush.bf16.msra.mxu1 %v2298_v2  ;;  %v1709_v6 = vld [vmem:[%s3505_s0 + $0x8] sm:$0xf]  ;;  %v2189_v7 = vld [vmem:[%s3505_s0 + $0x10] sm:$0xf0]  ;;  %v2287_v11 = vld [vmem:[%s3504_s1 + $0x20] sm:$0xff] }
   0x4   :  { %v1710_v8 = vor.u32 %v2189_v7, %v1709_v6  ;;  %v2288_v9 = vld [vmem:[%s3504_s1 + $0x28] sm:$0xff]  ;;  %v2295_v12 = vld [vmem:[%s3504_s1 + $0x60] sm:$0xff]  ;;  %v2286_v13 = vld [vmem:[%s3504_s1 + $0x18] sm:$0xff] }
   0x5   :  { %v2296_v10 = vld [vmem:[%s3504_s1 + $0x68] sm:$0xff]  ;;  %v2294_v14 = vld [vmem:[%s3504_s1 + $0x58] sm:$0xff]  ;;  %v2285_v15 = vld [vmem:[%s3504_s1 + $0x10] sm:$0xff] }
   0x6   :  { %869 = vmatpush.bf16.msra.mxu0 %v2289_v3  ;;  %2302 = vmatpush.bf16.msra.mxu3 %v2289_v3  ;;  %v2293_v16 = vld [vmem:[%s3504_s1 + $0x50] sm:$0xff]  ;;  %v1721_v17 = vld [vmem:[%s3505_s0 + $0x20] sm:$0xf]  ;;  %v2192_v18 = vld [vmem:[%s3505_s0 + $0x28] sm:$0xf0] }
   0x7   :  { %1213 = vmatpush.bf16.msra.mxu2 %v2486_v4  ;;  %1038 = vmatpush.bf16.msra.mxu1 %v2297_v5  ;;  %v1722_v19 = vor.u32 %v2192_v18, %v1721_v17  ;;  %v2284_v20 = vld [vmem:[%s3504_s1 + $0x8] sm:$0xff]  ;;  %v2283_v22 = vld [vmem:[%s3504_s1] sm:$0xff]  ;;  %v1703_v29 = vld [vmem:[%s3505_s0 + $0xc] sm:$0xf0] }
   0x8   :  { %v2292_v21 = vld [vmem:[%s3504_s1 + $0x48] sm:$0xff]  ;;  %v2291_v23 = vld [vmem:[%s3504_s1 + $0x40] sm:$0xff]  ;;  %v1733_v33 = vld [vmem:[%s3505_s0 + $0x38] sm:$0xf] }
   0x9   :  { %v1701_v24 = vld [vmem:[%s3505_s0] sm:$0xf]  ;;  %v2188_v25 = vld [vmem:[%s3505_s0 + $0x8] sm:$0xf0]  ;;  %v2187_v28 = vld [vmem:[%s3505_s0 + $0x4] sm:$0xf] }
   0xa   :  { %2155 = vmatmul.msk.bf16.vlgmr.msra.gmra.mxu2 %vm771_vm0, %v1710_v8  ;;  %870 = vmatpush.bf16.msra.mxu0 %v2288_v9  ;;  %v1989_v26 = vld [vmem:[%s3505_s0 + $0x240] sm:$0xf]  ;;  %v2260_v27 = vld [vmem:[%s3505_s0 + $0x248] sm:$0xf0]  ;;  %v1702_v30 = vor.u32 %v2188_v25, %v1701_v24  ;;  %v1706_v32 = vor.u32 %v2187_v28, %v1703_v29  ;;  %v2195_v34 = vld [vmem:[%s3505_s0 + $0x40] sm:$0xf0] }
   0xb   :  { %2303 = vmatpush.bf16.msra.mxu3 %v2288_v9  ;;  %1039 = vmatpush.bf16.msra.mxu1 %v2296_v10  ;;  %v1990_v31 = vor.u32 %v2260_v27, %v1989_v26  ;;  %v1734_v35 = vor.u32 %v2195_v34, %v1733_v33  ;;  %v1713_v36 = vld [vmem:[%s3505_s0 + $0x18] sm:$0xf]  ;;  %v2191_v37 = vld [vmem:[%s3505_s0 + $0x20] sm:$0xf0]  ;;  %v2190_v40 = vld [vmem:[%s3505_s0 + $0x1c] sm:$0xf] }
   0xc   :  { %v2001_v38 = vld [vmem:[%s3505_s0 + $0x258] sm:$0xf]  ;;  %v2263_v39 = vld [vmem:[%s3505_s0 + $0x260] sm:$0xf0]  ;;  %v1715_v41 = vld [vmem:[%s3505_s0 + $0x24] sm:$0xf0]  ;;  %v1714_v42 = vor.u32 %v2191_v37, %v1713_v36 }
   0xd   :  { %v2002_v43 = vor.u32 %v2263_v39, %v2001_v38  ;;  %v1718_v44 = vor.u32 %v2190_v40, %v1715_v41  ;;  %v1745_v45 = vld [vmem:[%s3505_s0 + $0x50] sm:$0xf]  ;;  %v2198_v46 = vld [vmem:[%s3505_s0 + $0x58] sm:$0xf0]  ;;  %v2193_v52 = vld [vmem:[%s3505_s0 + $0x34] sm:$0xf] }
   0xe   :  { %871 = vmatpush.bf16.msra.mxu0 %v2287_v11  ;;  %v1746_v47 = vor.u32 %v2198_v46, %v1745_v45  ;;  %v1725_v48 = vld [vmem:[%s3505_s0 + $0x30] sm:$0xf]  ;;  %v2194_v49 = vld [vmem:[%s3505_s0 + $0x38] sm:$0xf0]  ;;  %v1727_v53 = vld [vmem:[%s3505_s0 + $0x3c] sm:$0xf0] }
   0xf   :  { %2304 = vmatpush.bf16.msra.mxu3 %v2287_v11  ;;  %1040 = vmatpush.bf16.msra.mxu1 %v2295_v12  ;;  %v2013_v50 = vld [vmem:[%s3505_s0 + $0x270] sm:$0xf]  ;;  %v2266_v51 = vld [vmem:[%s3505_s0 + $0x278] sm:$0xf0]  ;;  %v1726_v54 = vor.u32 %v2194_v49, %v1725_v48  ;;  %v1730_v56 = vor.u32 %v2193_v52, %v1727_v53  ;;  %v1757_v57 = vld [vmem:[%s3505_s0 + $0x68] sm:$0xf] }
  0x10   :  { %v2014_v55 = vor.u32 %v2266_v51, %v2013_v50  ;;  %v2201_v58 = vld [vmem:[%s3505_s0 + $0x70] sm:$0xf0]  ;;  %v1737_v60 = vld [vmem:[%s3505_s0 + $0x48] sm:$0xf]  ;;  %v2196_v0 = vld [vmem:[%s3505_s0 + $0x4c] sm:$0xf] }
  0x11   :  { %v1758_v59 = vor.u32 %v2201_v58, %v1757_v57  ;;  %v2197_v61 = vld [vmem:[%s3505_s0 + $0x50] sm:$0xf0]  ;;  %v2025_v62 = vld [vmem:[%s3505_s0 + $0x288] sm:$0xf]  ;;  %v2204_v6 = vld [vmem:[%s3505_s0 + $0x88] sm:$0xf0] }
  0x12   :  { %872 = vmatpush.bf16.msra.mxu0 %v2286_v13  ;;  %v2269_v63 = vld [vmem:[%s3505_s0 + $0x290] sm:$0xf0]  ;;  %v1749_v8 = vld [vmem:[%s3505_s0 + $0x60] sm:$0xf]  ;;  %v2200_v9 = vld [vmem:[%s3505_s0 + $0x68] sm:$0xf0] }
  0x13   :  { %2305 = vmatpush.bf16.msra.mxu3 %v2286_v13  ;;  %1041 = vmatpush.bf16.msra.mxu1 %v2294_v14  ;;  %v2026_v3 = vor.u32 %v2269_v63, %v2025_v62  ;;  %v2272_v11 = vld [vmem:[%s3505_s0 + $0x2a8] sm:$0xf0]  ;;  %v1751_v13 = vld [vmem:[%s3505_s0 + $0x6c] sm:$0xf0]  ;;  %v1781_v17 = vld [vmem:[%s3505_s0 + $0x98] sm:$0xf] }
  0x14   :  { %v2207_v18 = vld [vmem:[%s3505_s0 + $0xa0] sm:$0xf0]  ;;  %v2202_v24 = vld [vmem:[%s3505_s0 + $0x7c] sm:$0xf]  ;;  %v1763_v25 = vld [vmem:[%s3505_s0 + $0x84] sm:$0xf0] }
  0x15   :  { %v1766_v28 = vor.u32 %v2202_v24, %v1763_v25  ;;  %v1793_v29 = vld [vmem:[%s3505_s0 + $0xb0] sm:$0xf]  ;;  %v2206_v33 = vld [vmem:[%s3505_s0 + $0x98] sm:$0xf0]  ;;  %v2205_v36 = vld [vmem:[%s3505_s0 + $0x94] sm:$0xf] }
  0x16   :  { %873 = vmatpush.bf16.msra.mxu0 %v2285_v15  ;;  %v2061_v34 = vld [vmem:[%s3505_s0 + $0x2d0] sm:$0xf]  ;;  %v1775_v37 = vld [vmem:[%s3505_s0 + $0x9c] sm:$0xf0]  ;;  %v1805_v41 = vld [vmem:[%s3505_s0 + $0xc8] sm:$0xf] }
  0x17   :  { %2306 = vmatpush.bf16.msra.mxu3 %v2285_v15  ;;  %1042 = vmatpush.bf16.msra.mxu1 %v2293_v16  ;;  %v1778_v40 = vor.u32 %v2205_v36, %v1775_v37  ;;  %v2209_v45 = vld [vmem:[%s3505_s0 + $0xb0] sm:$0xf0]  ;;  %v2073_v46 = vld [vmem:[%s3505_s0 + $0x2e8] sm:$0xf]  ;;  %v2208_v48 = vld [vmem:[%s3505_s0 + $0xac] sm:$0xf] }
  0x18   :  { %v1787_v49 = vld [vmem:[%s3505_s0 + $0xb4] sm:$0xf0]  ;;  %v2747_v58 = vld [vmem:[%s3506_s2] ss:$0 sm:$0xff]  ;;  %v1991_v62 = vld [vmem:[%s3505_s0 + $0x24c] sm:$0xf0] }
  0x19   :  { %v1790_v53 = vor.u32 %v2208_v48, %v1787_v49  ;;  %v2211_v63 = vld [vmem:[%s3505_s0 + $0xc4] sm:$0xf]  ;;  %v2003_v24 = vld [vmem:[%s3505_s0 + $0x264] sm:$0xf0]  ;;  %v2214_v25 = vld [vmem:[%s3505_s0 + $0xdc] sm:$0xf] }
  0x1a   :  { %2156 = vmatmul.msk.bf16.gmra.mxu2 %vm771_vm0, %v1722_v19  ;;  %874 = vmatpush.bf16.msra.mxu0 %v2284_v20  ;;  %v1782_v19 = vor.u32 %v2207_v18, %v1781_v17 }
  0x1b   :  { %2307 = vmatpush.bf16.msra.mxu3 %v2284_v20  ;;  %1043 = vmatpush.bf16.msra.mxu1 %v2292_v21  ;;  %v1761_v20 = vld [vmem:[%s3505_s0 + $0x78] sm:$0xf] }
  0x1e   :  { %875 = vmatpush.bf16.msra.mxu0 %v2283_v22 }
  0x1f   :  { %2308 = vmatpush.bf16.msra.mxu3 %v2283_v22  ;;  %1044 = vmatpush.bf16.msra.mxu1 %v2291_v23  ;;  %v2049_v22 = vld [vmem:[%s3505_s0 + $0x2b8] sm:$0xf] }
  0x21   :  { %876 = vmatmul.bf16.vlgmr.msra.gmra.mxu0 %v1702_v30  ;;  %v2210_v30 = vld [vmem:[%s3505_s0 + $0xb8] sm:$0xf0] }
  0x22   :  { %996 = vmatmul.bf16.vlgmr.msra.gmra.mxu3 %v1990_v31  ;;  %1045 = vmatmul.bf16.vlgmr.msra.gmra.mxu1 %v1706_v32  ;;  %v1794_v31 = vor.u32 %v2210_v30, %v1793_v29  ;;  %v1773_v32 = vld [vmem:[%s3505_s0 + $0x90] sm:$0xf] }
  0x23   :  { %2309 = vmatpush.bf16.msrb.mxu3 %v2298_v2  ;;  %v1738_v2 = vor.u32 %v2197_v61, %v1737_v60  ;;  %v1774_v38 = vor.u32 %v2206_v33, %v1773_v32  ;;  %v2212_v60 = vld [vmem:[%s3505_s0 + $0xc8] sm:$0xf0]  ;;  %v2259_v61 = vld [vmem:[%s3505_s0 + $0x244] sm:$0xf] }
  0x27   :  { %2310 = vmatpush.bf16.msrb.mxu3 %v2297_v5  ;;  %v1769_v5 = vld [vmem:[%s3505_s0 + $0x80] sm:$0xf] }
  0x28   :  { %v1770_v7 = vor.u32 %v2204_v6, %v1769_v5 }
  0x2a   :  { %2157 = vmatmul.msk.bf16.gmra.mxu2 %vm771_vm0, %v1734_v35  ;;  %v2278_v35 = vld [vmem:[%s3505_s0 + $0x2d8] sm:$0xf0] }
  0x2b   :  { %2311 = vmatpush.bf16.msrb.mxu3 %v2296_v10  ;;  %v2037_v10 = vld [vmem:[%s3505_s0 + $0x2a0] sm:$0xf]  ;;  %v2062_v39 = vor.u32 %v2278_v35, %v2061_v34 }
  0x2c   :  { %v2038_v15 = vor.u32 %v2272_v11, %v2037_v10  ;;  %v1829_v10 = vld [vmem:[%s3505_s0 + $0xf8] sm:$0xf]  ;;  %v2219_v11 = vld [vmem:[%s3505_s0 + $0x100] sm:$0xf0] }
  0x2f   :  { %2312 = vmatpush.bf16.msrb.mxu3 %v2295_v12  ;;  %v2199_v12 = vld [vmem:[%s3505_s0 + $0x64] sm:$0xf] }
  0x31   :  { %881 = vmatmul.bf16.gmra.mxu0 %v1714_v42  ;;  %v2213_v42 = vld [vmem:[%s3505_s0 + $0xd0] sm:$0xf0] }
  0x32   :  { %1001 = vmatmul.bf16.gmra.mxu3 %v2002_v43  ;;  %1050 = vmatmul.bf16.gmra.mxu1 %v1718_v44  ;;  %v1806_v43 = vor.u32 %v2213_v42, %v1805_v41  ;;  %v1785_v44 = vld [vmem:[%s3505_s0 + $0xa8] sm:$0xf]  ;;  %v1841_v41 = vld [vmem:[%s3505_s0 + $0x110] sm:$0xf]  ;;  %v2222_v42 = vld [vmem:[%s3505_s0 + $0x118] sm:$0xf0] }
  0x33   :  { %2313 = vmatpush.bf16.msrb.mxu3 %v2294_v14  ;;  %v1750_v14 = vor.u32 %v2200_v9, %v1749_v8  ;;  %v1786_v51 = vor.u32 %v2209_v45, %v1785_v44  ;;  %v1842_v49 = vor.u32 %v2222_v42, %v1841_v41 }
  0x37   :  { %2314 = vmatpush.bf16.msrb.mxu3 %v2293_v16  ;;  %v1754_v16 = vor.u32 %v2199_v12, %v1751_v13 }
  0x3a   :  { %2158 = vmatmul.msk.bf16.gmra.mxu2 %vm771_vm0, %v1746_v47  ;;  %v2281_v47 = vld [vmem:[%s3505_s0 + $0x2f0] sm:$0xf0] }
  0x3b   :  { %2315 = vmatpush.bf16.msrb.mxu3 %v2292_v21  ;;  %v2203_v21 = vld [vmem:[%s3505_s0 + $0x80] sm:$0xf0]  ;;  %v2074_v52 = vor.u32 %v2281_v47, %v2073_v46 }
  0x3c   :  { %v1762_v26 = vor.u32 %v2203_v21, %v1761_v20  ;;  %v1809_v20 = vld [vmem:[%s3505_s0 + $0xd8] sm:$0xf]  ;;  %v2215_v21 = vld [vmem:[%s3505_s0 + $0xe0] sm:$0xf0] }
  0x3f   :  { %2316 = vmatpush.bf16.msrb.mxu3 %v2291_v23  ;;  %v2275_v23 = vld [vmem:[%s3505_s0 + $0x2c0] sm:$0xf0] }
  0x40   :  { %v2050_v27 = vor.u32 %v2275_v23, %v2049_v22  ;;  %v2262_v22 = vld [vmem:[%s3505_s0 + $0x25c] sm:$0xf] }
  0x41   :  { %886 = vmatmul.bf16.gmra.mxu0 %v1726_v54  ;;  %v1817_v54 = vld [vmem:[%s3505_s0 + $0xe0] sm:$0xf]  ;;  %v2006_v34 = vor.u32 %v2262_v22, %v2003_v24 }
  0x42   :  { %1006 = vmatmul.bf16.gmra.mxu3 %v2014_v55  ;;  %1055 = vmatmul.bf16.gmra.mxu1 %v1730_v56  ;;  %v2216_v55 = vld [vmem:[%s3505_s0 + $0xe8] sm:$0xf0] }
  0x43   :  { %2317 = vmatpush.bf16.msra.mxu3 %v2475_v1  ;;  %v1739_v1 = vld [vmem:[%s3505_s0 + $0x54] sm:$0xf0]  ;;  %v1818_v57 = vor.u32 %v2216_v55, %v1817_v54  ;;  %v1821_v54 = vld [vmem:[%s3505_s0 + $0xf0] sm:$0xf]  ;;  %v2218_v55 = vld [vmem:[%s3505_s0 + $0xf8] sm:$0xf0] }
  0x47   :  { %2318 = vmatpush.bf16.msra.mxu3 %v2486_v4  ;;  %v1742_v4 = vor.u32 %v2196_v0, %v1739_v1  ;;  %v1799_v0 = vld [vmem:[%s3505_s0 + $0xcc] sm:$0xf0] }
  0x48   :  { %v1802_v5 = vor.u32 %v2211_v63, %v1799_v0 }
  0x4a   :  { %2159 = vmatmul.msk.bf16.gmra.mxu2 %vm771_vm0, %v1758_v59  ;;  %v1797_v59 = vld [vmem:[%s3505_s0 + $0xc0] sm:$0xf] }
  0x51   :  { %891 = vmatmul.bf16.gmra.mxu0 %v1738_v2  ;;  %v1798_v2 = vor.u32 %v2212_v60, %v1797_v59  ;;  %v2015_v59 = vld [vmem:[%s3505_s0 + $0x27c] sm:$0xf0]  ;;  %v2217_v60 = vld [vmem:[%s3505_s0 + $0xf4] sm:$0xf] }
  0x52   :  { %1011 = vmatmul.bf16.gmra.mxu3 %v2026_v3  ;;  %1060 = vmatmul.bf16.gmra.mxu1 %v1742_v4  ;;  %v1994_v4 = vor.u32 %v2259_v61, %v1991_v62  ;;  %v1823_v61 = vld [vmem:[%s3505_s0 + $0xfc] sm:$0xf0] }
  0x5a   :  { %2160 = vmatmul.msk.bf16.gmra.mxu2 %vm771_vm0, %v1770_v7 }
  0x61   :  { %896 = vmatmul.bf16.gmra.mxu0 %v1750_v14 }
  0x62   :  { %1016 = vmatmul.bf16.gmra.mxu3 %v2038_v15  ;;  %1065 = vmatmul.bf16.gmra.mxu1 %v1754_v16  ;;  %v1830_v16 = vor.u32 %v2219_v11, %v1829_v10 }
  0x6a   :  { %2161 = vmatmul.msk.bf16.gmra.mxu2 %vm771_vm0, %v1782_v19 }
  0x71   :  { %901 = vmatmul.bf16.gmra.mxu0 %v1762_v26  ;;  %v1811_v26 = vld [vmem:[%s3505_s0 + $0xe4] sm:$0xf0] }
  0x72   :  { %1021 = vmatmul.bf16.gmra.mxu3 %v2050_v27  ;;  %1070 = vmatmul.bf16.gmra.mxu1 %v1766_v28  ;;  %v1814_v35 = vor.u32 %v2214_v25, %v1811_v26  ;;  %v1833_v26 = vld [vmem:[%s3505_s0 + $0x108] sm:$0xf] }
  0x7a   :  { %2162 = vmatmul.msk.bf16.gmra.mxu2 %vm771_vm0, %v1794_v31  ;;  %v1810_v31 = vor.u32 %v2215_v21, %v1809_v20 }
  0x81   :  { %906 = vmatmul.bf16.gmra.mxu0 %v1774_v38 }
  0x82   :  { %1026 = vmatmul.bf16.gmra.mxu3 %v2062_v39  ;;  %1075 = vmatmul.bf16.gmra.mxu1 %v1778_v40 }
  0x8a   :  { %2163 = vmatmul.msk.bf16.gmra.mxu2 %vm771_vm0, %v1806_v43 }
  0x8d   :  { %v1215_v50 = vpop.f32.mrf.mxu2 }
  0x91   :  { %911 = vmatmul.bf16.gmra.mxu0 %v1786_v51 }
  0x92   :  { %1031 = vmatmul.bf16.gmra.mxu3 %v2074_v52  ;;  %1080 = vmatmul.bf16.gmra.mxu1 %v1790_v53 }
  0x95   :  { %v1217_v56 = vpop.f32.mrf.mxu2 }
  0x9a   :  { %2164 = vmatmul.msk.bf16.gmra.mxu2 %vm771_vm0, %v1818_v57 }
  0x9d   :  { %v1220_v1 = vpop.f32.mrf.mxu2 }
  0x9e   :  { %v877_v3 = vpop.f32.mrf.mxu0 }
  0x9f   :  { %v878_v6 = vadd.f32 %v2747_v58, %v877_v3  ;;  %v1046_v7 = vpop.f32.mrf.mxu1 }
  0xa1   :  { %v1047_v8 = vadd.f32 %v1046_v7, %v878_v6  ;;  %916 = vmatmul.bf16.gmra.mxu0 %v1798_v2  ;;  %v1822_v2 = vor.u32 %v2218_v55, %v1821_v54  ;;  %v1826_v6 = vor.u32 %v2217_v60, %v1823_v61 }
  0xa2   :  { %1165 = vmatmul.bf16.vlgmr.msrb.gmra.mxu3 %v1994_v4  ;;  %1085 = vmatmul.bf16.gmra.mxu1 %v1802_v5 }
  0xa3   :  { %v1216_v9 = vadd.f32 %v1215_v50, %v1047_v8 }
  0xa5   :  { %v1375_v12 = vmul.f32 0.5, %v1216_v9  ;;  %v2775_v13 = vpop.f32.mrf.mxu3  ;;  %v1222_v14 = vpop.f32.mrf.mxu2 }
  0xa6   :  { %v879_v15 = vpop.f32.mrf.mxu0 }
  0xa7   :  { %2320 = vtanh.f32 %v1375_v12  ;;  %v880_v17 = vadd.f32 %v2747_v58, %v879_v15  ;;  %v1048_v18 = vpop.f32.mrf.mxu1  ;;  %v1853_v12 = vld [vmem:[%s3505_s0 + $0x128] sm:$0xf] }
  0xa9   :  { %v1049_v19 = vadd.f32 %v1048_v18, %v880_v17 }
  0xaa   :  { %2165 = vmatmul.msk.bf16.gmra.mxu2 %vm771_vm0, %v1830_v16 }
  0xab   :  { %v1218_v23 = vadd.f32 %v1217_v56, %v1049_v19  ;;  %v2265_v56 = vld [vmem:[%s3505_s0 + $0x274] sm:$0xf] }
  0xac   :  { %v2018_v5 = vor.u32 %v2265_v56, %v2015_v59 }
  0xad   :  { %v2321_v27 = vpop.eup %2320  ;;  %v1376_v28 = vmul.f32 0.5, %v1218_v23  ;;  %v2797_v29 = vpop.f32.mrf.mxu3 }
  0xae   :  { %v1225_v30 = vpop.f32.mrf.mxu2  ;;  %v1503_v32 = vadd.f32 1.0, %v2321_v27  ;;  %v882_v33 = vpop.f32.mrf.mxu0  ;;  %v2221_v27 = vld [vmem:[%s3505_s0 + $0x110] sm:$0xf0] }
  0xaf   :  { %2322 = vtanh.f32 %v1376_v28  ;;  %v883_v36 = vadd.f32 %v2747_v58, %v882_v33  ;;  %v1051_v37 = vpop.f32.mrf.mxu1  ;;  %v2268_v28 = vld [vmem:[%s3505_s0 + $0x28c] sm:$0xf]  ;;  %v1835_v33 = vld [vmem:[%s3505_s0 + $0x114] sm:$0xf0] }
  0xb0   :  { %v1567_v38 = vmul.f32 0.5, %v1503_v32  ;;  %v2220_v32 = vld [vmem:[%s3505_s0 + $0x10c] sm:$0xf] }
  0xb1   :  { %v1052_v39 = vadd.f32 %v1051_v37, %v883_v36  ;;  %921 = vmatmul.bf16.gmra.mxu0 %v1810_v31  ;;  %v2027_v31 = vld [vmem:[%s3505_s0 + $0x294] sm:$0xf0]  ;;  %v1838_v42 = vor.u32 %v2220_v32, %v1835_v33 }
  0xb2   :  { %1631 = vst [vmem:[%s3507_s3] sm:$0xff] %v1567_v38  ;;  %1170 = vmatmul.bf16.gmra.mxu3 %v2006_v34  ;;  %1090 = vmatmul.bf16.gmra.mxu1 %v1814_v35  ;;  %v1834_v38 = vor.u32 %v2221_v27, %v1833_v26  ;;  %v2030_v41 = vor.u32 %v2268_v28, %v2027_v31 }
  0xb3   :  { %v1221_v40 = vadd.f32 %v1220_v1, %v1052_v39 }
  0xb5   :  { %v2323_v43 = vpop.eup %2322  ;;  %v1377_v44 = vmul.f32 0.5, %v1221_v40  ;;  %v2809_v45 = vpop.f32.mrf.mxu3 }
  0xb6   :  { %v1227_v46 = vpop.f32.mrf.mxu2  ;;  %v1504_v47 = vadd.f32 1.0, %v2323_v43  ;;  %v884_v48 = vpop.f32.mrf.mxu0 }
  0xb7   :  { %2324 = vtanh.f32 %v1377_v44  ;;  %v885_v50 = vadd.f32 %v2747_v58, %v884_v48  ;;  %v1053_v51 = vpop.f32.mrf.mxu1 }
  0xb8   :  { %v1568_v52 = vmul.f32 0.5, %v1504_v47 }
  0xb9   :  { %v1054_v53 = vadd.f32 %v1053_v51, %v885_v50  ;;  %v2228_v50 = vld [vmem:[%s3505_s0 + $0x148] sm:$0xf0] }
  0xba   :  { %1632 = vst [vmem:[%s3507_s3 + $0x8] sm:$0xff] %v1568_v52  ;;  %2166 = vmatmul.msk.bf16.gmra.mxu2 %vm771_vm0, %v1842_v49  ;;  %v1865_v49 = vld [vmem:[%s3505_s0 + $0x140] sm:$0xf] }
  0xbb   :  { %v1223_v57 = vadd.f32 %v1222_v14, %v1054_v53  ;;  %v2225_v14 = vld [vmem:[%s3505_s0 + $0x130] sm:$0xf0] }
  0xbc   :  { %v1854_v21 = vor.u32 %v2225_v14, %v1853_v12 }
  0xbd   :  { %v2325_v62 = vpop.eup %2324  ;;  %v1378_v63 = vmul.f32 0.5, %v1223_v57  ;;  %v2834_v0 = vpop.f32.mrf.mxu3  ;;  %v1866_v57 = vor.u32 %v2228_v50, %v1865_v49 }
  0xbe   :  { %v1230_v1 = vpop.f32.mrf.mxu2  ;;  %v1505_v3 = vadd.f32 1.0, %v2325_v62  ;;  %v887_v4 = vpop.f32.mrf.mxu0 }
  0xbf   :  { %2326 = vtanh.f32 %v1378_v63  ;;  %v888_v7 = vadd.f32 %v2747_v58, %v887_v4  ;;  %v1056_v8 = vpop.f32.mrf.mxu1  ;;  %v1845_v63 = vld [vmem:[%s3505_s0 + $0x120] sm:$0xf]  ;;  %v2039_v4 = vld [vmem:[%s3505_s0 + $0x2ac] sm:$0xf0] }
  0xc0   :  { %v1569_v9 = vmul.f32 0.5, %v1505_v3 }
  0xc1   :  { %v1057_v10 = vadd.f32 %v1056_v8, %v888_v7  ;;  %926 = vmatmul.bf16.gmra.mxu0 %v1822_v2  ;;  %v2271_v2 = vld [vmem:[%s3505_s0 + $0x2a4] sm:$0xf] }
  0xc2   :  { %1633 = vst [vmem:[%s3507_s3 + $0x10] sm:$0xff] %v1569_v9  ;;  %1175 = vmatmul.bf16.gmra.mxu3 %v2018_v5  ;;  %1095 = vmatmul.bf16.gmra.mxu1 %v1826_v6  ;;  %v2223_v5 = vld [vmem:[%s3505_s0 + $0x124] sm:$0xf]  ;;  %v1847_v6 = vld [vmem:[%s3505_s0 + $0x12c] sm:$0xf0] }
  0xc3   :  { %v1226_v11 = vadd.f32 %v1225_v30, %v1057_v10 }
  0xc5   :  { %v2327_v15 = vpop.eup %2326  ;;  %v1379_v16 = vmul.f32 0.5, %v1226_v11  ;;  %v2846_v17 = vpop.f32.mrf.mxu3 }
  0xc6   :  { %v1232_v18 = vpop.f32.mrf.mxu2  ;;  %v1506_v19 = vadd.f32 1.0, %v2327_v15  ;;  %v889_v20 = vpop.f32.mrf.mxu0  ;;  %v2042_v15 = vor.u32 %v2271_v2, %v2039_v4 }
  0xc7   :  { %2328 = vtanh.f32 %v1379_v16  ;;  %v890_v22 = vadd.f32 %v2747_v58, %v889_v20  ;;  %v1058_v23 = vpop.f32.mrf.mxu1  ;;  %v1850_v16 = vor.u32 %v2223_v5, %v1847_v6 }
  0xc8   :  { %v1570_v24 = vmul.f32 0.5, %v1506_v19 }
  0xc9   :  { %v1059_v25 = vadd.f32 %v1058_v23, %v890_v22  ;;  %v1877_v23 = vld [vmem:[%s3505_s0 + $0x158] sm:$0xf] }
  0xca   :  { %1634 = vst [vmem:[%s3507_s3 + $0x18] sm:$0xff] %v1570_v24  ;;  %2167 = vmatmul.msk.bf16.gmra.mxu2 %vm771_vm0, %v1854_v21  ;;  %v2231_v24 = vld [vmem:[%s3505_s0 + $0x160] sm:$0xf0] }
  0xcb   :  { %v1228_v30 = vadd.f32 %v1227_v46, %v1059_v25  ;;  %v1878_v32 = vor.u32 %v2231_v24, %v1877_v23 }
  0xcd   :  { %v2329_v34 = vpop.eup %2328  ;;  %v1380_v35 = vmul.f32 0.5, %v1228_v30  ;;  %v2871_v36 = vpop.f32.mrf.mxu3 }
  0xce   :  { %v1235_v37 = vpop.f32.mrf.mxu2  ;;  %v1507_v39 = vadd.f32 1.0, %v2329_v34  ;;  %v892_v40 = vpop.f32.mrf.mxu0 }
  0xcf   :  { %2330 = vtanh.f32 %v1380_v35  ;;  %v893_v43 = vadd.f32 %v2747_v58, %v892_v40  ;;  %v1061_v44 = vpop.f32.mrf.mxu1  ;;  %v2274_v40 = vld [vmem:[%s3505_s0 + $0x2bc] sm:$0xf] }
  0xd0   :  { %v1571_v46 = vmul.f32 0.5, %v1507_v39  ;;  %v2227_v39 = vld [vmem:[%s3505_s0 + $0x140] sm:$0xf0] }
  0xd1   :  { %v1062_v47 = vadd.f32 %v1061_v44, %v893_v43  ;;  %931 = vmatmul.bf16.gmra.mxu0 %v1834_v38  ;;  %v1857_v38 = vld [vmem:[%s3505_s0 + $0x138] sm:$0xf]  ;;  %v2226_v43 = vld [vmem:[%s3505_s0 + $0x13c] sm:$0xf]  ;;  %v1859_v44 = vld [vmem:[%s3505_s0 + $0x144] sm:$0xf0] }
  0xd2   :  { %1635 = vst [vmem:[%s3507_s3 + $0x20] sm:$0xff] %v1571_v46  ;;  %1180 = vmatmul.bf16.gmra.mxu3 %v2030_v41  ;;  %1100 = vmatmul.bf16.gmra.mxu1 %v1838_v42  ;;  %v2051_v42 = vld [vmem:[%s3505_s0 + $0x2c4] sm:$0xf0]  ;;  %v1858_v50 = vor.u32 %v2227_v39, %v1857_v38 }
  0xd3   :  { %v1231_v48 = vadd.f32 %v1230_v1, %v1062_v47  ;;  %v2224_v1 = vld [vmem:[%s3505_s0 + $0x128] sm:$0xf0]  ;;  %v1901_v39 = vld [vmem:[%s3505_s0 + $0x188] sm:$0xf] }
  0xd4   :  { %v1846_v11 = vor.u32 %v2224_v1, %v1845_v63  ;;  %v2234_v63 = vld [vmem:[%s3505_s0 + $0x178] sm:$0xf0] }
  0xd5   :  { %v2331_v51 = vpop.eup %2330  ;;  %v1381_v52 = vmul.f32 0.5, %v1231_v48  ;;  %v2883_v53 = vpop.f32.mrf.mxu3 }
  0xd6   :  { %v1237_v54 = vpop.f32.mrf.mxu2  ;;  %v1508_v55 = vadd.f32 1.0, %v2331_v51  ;;  %v894_v56 = vpop.f32.mrf.mxu0 }
  0xd7   :  { %2332 = vtanh.f32 %v1381_v52  ;;  %v895_v59 = vadd.f32 %v2747_v58, %v894_v56  ;;  %v1063_v60 = vpop.f32.mrf.mxu1 }
  0xd8   :  { %v1572_v61 = vmul.f32 0.5, %v1508_v55  ;;  %v1862_v55 = vor.u32 %v2226_v43, %v1859_v44 }
  0xd9   :  { %v1064_v62 = vadd.f32 %v1063_v60, %v895_v59 }
  0xda   :  { %1636 = vst [vmem:[%s3507_s3 + $0x28] sm:$0xff] %v1572_v61  ;;  %2168 = vmatmul.msk.bf16.gmra.mxu2 %vm771_vm0, %v1866_v57 }
  0xdb   :  { %v1233_v3 = vadd.f32 %v1232_v18, %v1064_v62  ;;  %v1889_v62 = vld [vmem:[%s3505_s0 + $0x170] sm:$0xf] }
  0xdd   :  { %v2333_v7 = vpop.eup %2332  ;;  %v1382_v8 = vmul.f32 0.5, %v1233_v3  ;;  %v2908_v9 = vpop.f32.mrf.mxu3 }
  0xde   :  { %v1240_v10 = vpop.f32.mrf.mxu2  ;;  %v1509_v12 = vadd.f32 1.0, %v2333_v7  ;;  %v897_v14 = vpop.f32.mrf.mxu0  ;;  %v1890_v7 = vor.u32 %v2234_v63, %v1889_v62  ;;  %v1883_v62 = vld [vmem:[%s3505_s0 + $0x174] sm:$0xf0] }
  0xdf   :  { %2334 = vtanh.f32 %v1382_v8  ;;  %v898_v18 = vadd.f32 %v2747_v58, %v897_v14  ;;  %v1066_v19 = vpop.f32.mrf.mxu1  ;;  %v1869_v14 = vld [vmem:[%s3505_s0 + $0x150] sm:$0xf] }
  0xe0   :  { %v1573_v20 = vmul.f32 0.5, %v1509_v12 }
  0xe1   :  { %v1067_v21 = vadd.f32 %v1066_v19, %v898_v18  ;;  %936 = vmatmul.bf16.gmra.mxu0 %v1846_v11  ;;  %v2063_v19 = vld [vmem:[%s3505_s0 + $0x2dc] sm:$0xf0] }
  0xe2   :  { %1637 = vst [vmem:[%s3507_s3 + $0x30] sm:$0xff] %v1573_v20  ;;  %1185 = vmatmul.bf16.gmra.mxu3 %v2042_v15  ;;  %1105 = vmatmul.bf16.gmra.mxu1 %v1850_v16  ;;  %v2230_v15 = vld [vmem:[%s3505_s0 + $0x158] sm:$0xf0]  ;;  %v2277_v16 = vld [vmem:[%s3505_s0 + $0x2d4] sm:$0xf] }
  0xe3   :  { %v1236_v22 = vadd.f32 %v1235_v37, %v1067_v21  ;;  %v2229_v20 = vld [vmem:[%s3505_s0 + $0x154] sm:$0xf]  ;;  %v1871_v21 = vld [vmem:[%s3505_s0 + $0x15c] sm:$0xf0] }
  0xe5   :  { %v2335_v25 = vpop.eup %2334  ;;  %v1383_v26 = vmul.f32 0.5, %v1236_v22  ;;  %v2920_v27 = vpop.f32.mrf.mxu3 }
  0xe6   :  { %v1242_v28 = vpop.f32.mrf.mxu2  ;;  %v1510_v30 = vadd.f32 1.0, %v2335_v25  ;;  %v899_v31 = vpop.f32.mrf.mxu0 }
  0xe7   :  { %2336 = vtanh.f32 %v1383_v26  ;;  %v900_v33 = vadd.f32 %v2747_v58, %v899_v31  ;;  %v1068_v34 = vpop.f32.mrf.mxu1  ;;  %v1870_v26 = vor.u32 %v2230_v15, %v1869_v14  ;;  %v2066_v31 = vor.u32 %v2277_v16, %v2063_v19  ;;  %v2240_v19 = vld [vmem:[%s3505_s0 + $0x1a8] sm:$0xf0] }
  0xe8   :  { %v1574_v35 = vmul.f32 0.5, %v1510_v30 }
  0xe9   :  { %v1069_v37 = vadd.f32 %v1068_v34, %v900_v33 }
  0xea   :  { %1638 = vst [vmem:[%s3507_s3 + $0x38] sm:$0xff] %v1574_v35  ;;  %2169 = vmatmul.msk.bf16.gmra.mxu2 %vm771_vm0, %v1878_v32  ;;  %v1874_v32 = vor.u32 %v2229_v20, %v1871_v21 }
  0xeb   :  { %v1238_v41 = vadd.f32 %v1237_v54, %v1069_v37  ;;  %v2054_v54 = vor.u32 %v2274_v40, %v2051_v42  ;;  %v2237_v40 = vld [vmem:[%s3505_s0 + $0x190] sm:$0xf0] }
  0xed   :  { %v2337_v46 = vpop.eup %2336  ;;  %v1384_v47 = vmul.f32 0.5, %v1238_v41  ;;  %v2945_v48 = vpop.f32.mrf.mxu3 }
  0xee   :  { %v1245_v49 = vpop.f32.mrf.mxu2  ;;  %v1511_v51 = vadd.f32 1.0, %v2337_v46  ;;  %v902_v52 = vpop.f32.mrf.mxu0 }
  0xef   :  { %2338 = vtanh.f32 %v1384_v47  ;;  %v903_v56 = vadd.f32 %v2747_v58, %v902_v52  ;;  %v1071_v57 = vpop.f32.mrf.mxu1 }
  0xf0   :  { %v1575_v59 = vmul.f32 0.5, %v1511_v51 }
  0xf1   :  { %v1072_v60 = vadd.f32 %v1071_v57, %v903_v56  ;;  %941 = vmatmul.bf16.gmra.mxu0 %v1858_v50  ;;  %v1902_v50 = vor.u32 %v2237_v40, %v1901_v39  ;;  %v2233_v56 = vld [vmem:[%s3505_s0 + $0x170] sm:$0xf0]  ;;  %v2280_v57 = vld [vmem:[%s3505_s0 + $0x2ec] sm:$0xf]  ;;  %v2267_v39 = vld [vmem:[%s3505_s0 + $0x280] sm:$0xf0] }
  0xf2   :  { %1639 = vst [vmem:[%s3507_s3 + $0x40] sm:$0xff] %v1575_v59  ;;  %1190 = vmatmul.bf16.gmra.mxu3 %v2054_v54  ;;  %1110 = vmatmul.bf16.gmra.mxu1 %v1862_v55  ;;  %v1881_v55 = vld [vmem:[%s3505_s0 + $0x168] sm:$0xf]  ;;  %v2235_v40 = vld [vmem:[%s3505_s0 + $0x184] sm:$0xf] }
  0xf3   :  { %v1241_v61 = vadd.f32 %v1240_v10, %v1072_v60  ;;  %v2075_v60 = vld [vmem:[%s3505_s0 + $0x2f4] sm:$0xf0] }
  0xf5   :  { %v2339_v1 = vpop.eup %2338  ;;  %v1385_v2 = vmul.f32 0.5, %v1241_v61  ;;  %v2957_v3 = vpop.f32.mrf.mxu3  ;;  %v2232_v61 = vld [vmem:[%s3505_s0 + $0x16c] sm:$0xf] }
  0xf6   :  { %v1247_v4 = vpop.f32.mrf.mxu2  ;;  %v1512_v5 = vadd.f32 1.0, %v2339_v1  ;;  %v904_v6 = vpop.f32.mrf.mxu0 }
  0xf7   :  { %2340 = vtanh.f32 %v1385_v2  ;;  %v905_v8 = vadd.f32 %v2747_v58, %v904_v6  ;;  %v1073_v10 = vpop.f32.mrf.mxu1  ;;  %v1882_v6 = vor.u32 %v2233_v56, %v1881_v55 }
  0xf8   :  { %v1576_v11 = vmul.f32 0.5, %v1512_v5 }
  0xf9   :  { %v1074_v12 = vadd.f32 %v1073_v10, %v905_v8  ;;  %v2078_v8 = vor.u32 %v2280_v57, %v2075_v60  ;;  %v1886_v10 = vor.u32 %v2232_v61, %v1883_v62  ;;  %v1925_v61 = vld [vmem:[%s3505_s0 + $0x1b8] sm:$0xf]  ;;  %v2243_v62 = vld [vmem:[%s3505_s0 + $0x1c0] sm:$0xf0] }
  0xfa   :  { %1640 = vst [vmem:[%s3507_s3 + $0x48] sm:$0xff] %v1576_v11  ;;  %2170 = vmatmul.msk.bf16.gmra.mxu2 %vm771_vm0, %v1890_v7 }
  0xfb   :  { %v1243_v18 = vadd.f32 %v1242_v28, %v1074_v12 }
  0xfd   :  { %v2341_v22 = vpop.eup %2340  ;;  %v1386_v23 = vmul.f32 0.5, %v1243_v18  ;;  %v2982_v24 = vpop.f32.mrf.mxu3  ;;  %v1913_v18 = vld [vmem:[%s3505_s0 + $0x1a0] sm:$0xf] }
  0xfe   :  { %v1250_v25 = vpop.f32.mrf.mxu2  ;;  %v1513_v30 = vadd.f32 1.0, %v2341_v22  ;;  %v907_v28 = vpop.f32.mrf.mxu0 }
  0xff   :  { %2342 = vtanh.f32 %v1386_v23  ;;  %v908_v33 = vadd.f32 %v2747_v58, %v907_v28  ;;  %v1076_v34 = vpop.f32.mrf.mxu1  ;;  %v1914_v28 = vor.u32 %v2240_v19, %v1913_v18  ;;  %v1905_v18 = vld [vmem:[%s3505_s0 + $0x198] sm:$0xf]  ;;  %v2033_v19 = vld [vmem:[%s3505_s0 + $0x290] sm:$0xf] }
 0x100   :  { %v1577_v35 = vmul.f32 0.5, %v1513_v30 }
 0x101   :  { %v1077_v37 = vadd.f32 %v1076_v34, %v908_v33  ;;  %946 = vmatmul.bf16.gmra.mxu0 %v1870_v26  ;;  %v1893_v34 = vld [vmem:[%s3505_s0 + $0x180] sm:$0xf] }
 0x102   :  { %1641 = vst [vmem:[%s3507_s3 + $0x50] sm:$0xff] %v1577_v35  ;;  %1195 = vmatmul.bf16.gmra.mxu3 %v2066_v31  ;;  %1115 = vmatmul.bf16.gmra.mxu1 %v1874_v32  ;;  %v2236_v35 = vld [vmem:[%s3505_s0 + $0x188] sm:$0xf0] }
 0x103   :  { %v1246_v38 = vadd.f32 %v1245_v49, %v1077_v37  ;;  %v2021_v37 = vld [vmem:[%s3505_s0 + $0x278] sm:$0xf] }
 0x105   :  { %v2343_v41 = vpop.eup %2342  ;;  %v1387_v42 = vmul.f32 0.5, %v1246_v38  ;;  %v2994_v43 = vpop.f32.mrf.mxu3 }
 0x106   :  { %v1252_v44 = vpop.f32.mrf.mxu2  ;;  %v1514_v46 = vadd.f32 1.0, %v2343_v41  ;;  %v909_v47 = vpop.f32.mrf.mxu0  ;;  %v1895_v41 = vld [vmem:[%s3505_s0 + $0x18c] sm:$0xf0] }
 0x107   :  { %2344 = vtanh.f32 %v1387_v42  ;;  %v910_v51 = vadd.f32 %v2747_v58, %v909_v47  ;;  %v1078_v49 = vpop.f32.mrf.mxu1 }
 0x108   :  { %v1578_v52 = vmul.f32 0.5, %v1514_v46 }
 0x109   :  { %v1079_v54 = vadd.f32 %v1078_v49, %v910_v51  ;;  %v1894_v51 = vor.u32 %v2236_v35, %v1893_v34 }
 0x10a   :  { %1642 = vst [vmem:[%s3507_s3 + $0x58] sm:$0xff] %v1578_v52  ;;  %2171 = vmatmul.msk.bf16.gmra.mxu2 %vm771_vm0, %v1902_v50  ;;  %v2022_v52 = vor.u32 %v2267_v39, %v2021_v37 }
 0x10b   :  { %v1248_v59 = vadd.f32 %v1247_v4, %v1079_v54  ;;  %v1898_v54 = vor.u32 %v2235_v40, %v1895_v41 }
 0x10d   :  { %v2345_v63 = vpop.eup %2344  ;;  %v1388_v1 = vmul.f32 0.5, %v1248_v59  ;;  %v3019_v2 = vpop.f32.mrf.mxu3 }
 0x10e   :  { %v1255_v5 = vpop.f32.mrf.mxu2  ;;  %v1515_v7 = vadd.f32 1.0, %v2345_v63  ;;  %v912_v4 = vpop.f32.mrf.mxu0  ;;  %v998_v63 = vadd.f32 %v2747_v58, %v2775_v13  ;;  %v2239_v13 = vld [vmem:[%s3505_s0 + $0x1a0] sm:$0xf0] }
 0x10f   :  { %2346 = vtanh.f32 %v1388_v1  ;;  %v913_v11 = vadd.f32 %v2747_v58, %v912_v4  ;;  %v1081_v12 = vpop.f32.mrf.mxu1 }
 0x110   :  { %v1579_v14 = vmul.f32 0.5, %v1515_v7 }
 0x111   :  { %v1082_v15 = vadd.f32 %v1081_v12, %v913_v11  ;;  %951 = vmatmul.bf16.gmra.mxu0 %v1882_v6 }
 0x112   :  { %1643 = vst [vmem:[%s3507_s3 + $0x60] sm:$0xff] %v1579_v14  ;;  %1200 = vmatmul.bf16.gmra.mxu3 %v2078_v8  ;;  %1120 = vmatmul.bf16.gmra.mxu1 %v1886_v10 }
 0x113   :  { %v1251_v16 = vadd.f32 %v1250_v25, %v1082_v15 }
 0x115   :  { %v2347_v20 = vpop.eup %2346  ;;  %v1389_v21 = vmul.f32 0.5, %v1251_v16  ;;  %v3031_v22 = vpop.f32.mrf.mxu3 }
 0x116   :  { %v1257_v23 = vpop.f32.mrf.mxu2  ;;  %v1516_v26 = vadd.f32 1.0, %v2347_v20  ;;  %v914_v30 = vpop.f32.mrf.mxu0 }
 0x117   :  { %2348 = vtanh.f32 %v1389_v21  ;;  %v915_v31 = vadd.f32 %v2747_v58, %v914_v30  ;;  %v1083_v25 = vpop.f32.mrf.mxu1  ;;  %v2270_v21 = vld [vmem:[%s3505_s0 + $0x298] sm:$0xf0]  ;;  %v1907_v30 = vld [vmem:[%s3505_s0 + $0x1a4] sm:$0xf0] }
 0x118   :  { %v1580_v32 = vmul.f32 0.5, %v1516_v26  ;;  %v2238_v26 = vld [vmem:[%s3505_s0 + $0x19c] sm:$0xf] }
 0x119   :  { %v1084_v33 = vadd.f32 %v1083_v25, %v915_v31  ;;  %v1910_v39 = vor.u32 %v2238_v26, %v1907_v30 }
 0x11a   :  { %1644 = vst [vmem:[%s3507_s3 + $0x68] sm:$0xff] %v1580_v32  ;;  %2172 = vmatmul.msk.bf16.gmra.mxu2 %vm771_vm0, %v1914_v28  ;;  %v1000_v28 = vadd.f32 %v2747_v58, %v2797_v29 }
 0x11b   :  { %v1253_v38 = vadd.f32 %v1252_v44, %v1084_v33 }
 0x11d   :  { %v2349_v42 = vpop.eup %2348  ;;  %v1390_v46 = vmul.f32 0.5, %v1253_v38  ;;  %v3056_v47 = vpop.f32.mrf.mxu3  ;;  %v2034_v38 = vor.u32 %v2270_v21, %v2033_v19 }
 0x11e   :  { %v1260_v50 = vpop.f32.mrf.mxu2  ;;  %v1517_v49 = vadd.f32 1.0, %v2349_v42  ;;  %v917_v44 = vpop.f32.mrf.mxu0 }
 0x11f   :  { %2350 = vtanh.f32 %v1390_v46  ;;  %v918_v55 = vadd.f32 %v2747_v58, %v917_v44  ;;  %v1086_v56 = vpop.f32.mrf.mxu1  ;;  %v1003_v44 = vadd.f32 %v2747_v58, %v2809_v45  ;;  %v2242_v45 = vld [vmem:[%s3505_s0 + $0x1b8] sm:$0xf0] }
 0x120   :  { %v1581_v57 = vmul.f32 0.5, %v1517_v49  ;;  %v2246_v49 = vld [vmem:[%s3505_s0 + $0x1d8] sm:$0xf0] }
 0x121   :  { %v1087_v59 = vadd.f32 %v1086_v56, %v918_v55  ;;  %956 = vmatmul.bf16.gmra.mxu0 %v1894_v51  ;;  %v1937_v51 = vld [vmem:[%s3505_s0 + $0x1d0] sm:$0xf] }
 0x122   :  { %1645 = vst [vmem:[%s3507_s3 + $0x70] sm:$0xff] %v1581_v57  ;;  %2181 = vmatmul.msk.bf16.vlgmr.msra.gmra.mxu3 %vm771_vm0, %v2022_v52  ;;  %1125 = vmatmul.bf16.gmra.mxu1 %v1898_v54 }
 0x123   :  { %v1256_v60 = vadd.f32 %v1255_v5, %v1087_v59  ;;  %v1926_v5 = vor.u32 %v2243_v62, %v1925_v61 }
 0x125   :  { %v2351_v1 = vpop.eup %2350  ;;  %v1391_v6 = vmul.f32 0.5, %v1256_v60  ;;  %v1166_v7 = vpop.f32.mrf.mxu3 }
 0x126   :  { %v1262_v4 = vpop.f32.mrf.mxu2  ;;  %v1518_v8 = vadd.f32 1.0, %v2351_v1  ;;  %v3071_v10 = vadd.f32 %v1166_v7, %v998_v63  ;;  %v919_v11 = vpop.f32.mrf.mxu0  ;;  %v2045_v7 = vld [vmem:[%s3505_s0 + $0x2a8] sm:$0xf] }
 0x127   :  { %2352 = vtanh.f32 %v1391_v6  ;;  %v920_v12 = vadd.f32 %v2747_v58, %v919_v11  ;;  %v1088_v14 = vpop.f32.mrf.mxu1  ;;  %v1917_v6 = vld [vmem:[%s3505_s0 + $0x1b0] sm:$0xf]  ;;  %v2273_v11 = vld [vmem:[%s3505_s0 + $0x2b0] sm:$0xf0] }
 0x128   :  { %v1582_v15 = vmul.f32 0.5, %v1518_v8  ;;  %v2046_v26 = vor.u32 %v2273_v11, %v2045_v7 }
 0x129   :  { %v1089_v16 = vadd.f32 %v1088_v14, %v920_v12  ;;  %v1919_v12 = vld [vmem:[%s3505_s0 + $0x1bc] sm:$0xf0]  ;;  %v1005_v14 = vadd.f32 %v2747_v58, %v2834_v0 }
 0x12a   :  { %1646 = vst [vmem:[%s3507_s3 + $0x78] sm:$0xff] %v1582_v15  ;;  %2173 = vmatmul.msk.bf16.gmra.mxu2 %vm771_vm0, %v1926_v5  ;;  %v2241_v5 = vld [vmem:[%s3505_s0 + $0x1b4] sm:$0xf] }
 0x12b   :  { %v1258_v20 = vadd.f32 %v1257_v23, %v1089_v16  ;;  %v1906_v23 = vor.u32 %v2239_v13, %v1905_v18  ;;  %v1922_v30 = vor.u32 %v2241_v5, %v1919_v12 }
 0x12d   :  { %v2353_v31 = vpop.eup %2352  ;;  %v1392_v25 = vmul.f32 0.5, %v1258_v20  ;;  %v1168_v32 = vpop.f32.mrf.mxu3 }
 0x12e   :  { %v1265_v33 = vpop.f32.mrf.mxu2  ;;  %v1519_v34 = vadd.f32 1.0, %v2353_v31  ;;  %v3098_v35 = vadd.f32 %v1168_v32, %v1000_v28  ;;  %v922_v37 = vpop.f32.mrf.mxu0 }
 0x12f   :  { %2354 = vtanh.f32 %v1392_v25  ;;  %v923_v40 = vadd.f32 %v2747_v58, %v922_v37  ;;  %v1091_v41 = vpop.f32.mrf.mxu1  ;;  %v1008_v37 = vadd.f32 %v2747_v58, %v2846_v17  ;;  %v2245_v17 = vld [vmem:[%s3505_s0 + $0x1d0] sm:$0xf0] }
 0x130   :  { %v1583_v42 = vmul.f32 0.5, %v1519_v34  ;;  %v2249_v34 = vld [vmem:[%s3505_s0 + $0x1f0] sm:$0xf0] }
 0x131   :  { %v1092_v46 = vadd.f32 %v1091_v41, %v923_v40  ;;  %961 = vmatmul.bf16.gmra.mxu0 %v1906_v23  ;;  %v1949_v23 = vld [vmem:[%s3505_s0 + $0x1e8] sm:$0xf] }
 0x132   :  { %1647 = vst [vmem:[%s3507_s3 + $0x80] sm:$0xff] %v1583_v42  ;;  %2182 = vmatmul.msk.bf16.gmra.mxu3 %vm771_vm0, %v2034_v38  ;;  %1130 = vmatmul.bf16.gmra.mxu1 %v1910_v39 }
 0x133   :  { %v1261_v29 = vadd.f32 %v1260_v50, %v1092_v46  ;;  %v1938_v50 = vor.u32 %v2246_v49, %v1937_v51 }
 0x135   :  { %v2355_v52 = vpop.eup %2354  ;;  %v1393_v54 = vmul.f32 0.5, %v1261_v29  ;;  %v1171_v55 = vpop.f32.mrf.mxu3 }
 0x136   :  { %v1267_v56 = vpop.f32.mrf.mxu2  ;;  %v1520_v57 = vadd.f32 1.0, %v2355_v52  ;;  %v3113_v59 = vadd.f32 %v1171_v55, %v1003_v44  ;;  %v924_v60 = vpop.f32.mrf.mxu0  ;;  %v2057_v55 = vld [vmem:[%s3505_s0 + $0x2c0] sm:$0xf] }
 0x137   :  { %2356 = vtanh.f32 %v1393_v54  ;;  %v925_v61 = vadd.f32 %v2747_v58, %v924_v60  ;;  %v1093_v62 = vpop.f32.mrf.mxu1  ;;  %v1929_v54 = vld [vmem:[%s3505_s0 + $0x1c8] sm:$0xf]  ;;  %v2276_v60 = vld [vmem:[%s3505_s0 + $0x2c8] sm:$0xf0] }
 0x138   :  { %v1584_v63 = vmul.f32 0.5, %v1520_v57  ;;  %v2058_v5 = vor.u32 %v2276_v60, %v2057_v55 }
 0x139   :  { %v1094_v1 = vadd.f32 %v1093_v62, %v925_v61  ;;  %v1931_v61 = vld [vmem:[%s3505_s0 + $0x1d4] sm:$0xf0]  ;;  %v1010_v62 = vadd.f32 %v2747_v58, %v2871_v36 }
 0x13a   :  { %1648 = vst [vmem:[%s3507_s3 + $0x88] sm:$0xff] %v1584_v63  ;;  %2174 = vmatmul.msk.bf16.gmra.mxu2 %vm771_vm0, %v1938_v50  ;;  %v2244_v50 = vld [vmem:[%s3505_s0 + $0x1cc] sm:$0xf] }
 0x13b   :  { %v1263_v8 = vadd.f32 %v1262_v4, %v1094_v1  ;;  %v1918_v4 = vor.u32 %v2242_v45, %v1917_v6  ;;  %v1934_v12 = vor.u32 %v2244_v50, %v1931_v61 }
 0x13d   :  { %v2357_v15 = vpop.eup %2356  ;;  %v1394_v16 = vmul.f32 0.5, %v1263_v8  ;;  %v1173_v18 = vpop.f32.mrf.mxu3 }
 0x13e   :  { %v1270_v13 = vpop.f32.mrf.mxu2  ;;  %v1521_v19 = vadd.f32 1.0, %v2357_v15  ;;  %v3140_v20 = vadd.f32 %v1173_v18, %v1005_v14  ;;  %v927_v21 = vpop.f32.mrf.mxu0 }
 0x13f   :  { %2358 = vtanh.f32 %v1394_v16  ;;  %v928_v28 = vadd.f32 %v2747_v58, %v927_v21  ;;  %v1096_v31 = vpop.f32.mrf.mxu1  ;;  %v1013_v21 = vadd.f32 %v2747_v58, %v2883_v53  ;;  %v2248_v53 = vld [vmem:[%s3505_s0 + $0x1e8] sm:$0xf0] }
 0x140   :  { %v1585_v25 = vmul.f32 0.5, %v1521_v19  ;;  %v2252_v19 = vld [vmem:[%s3505_s0 + $0x208] sm:$0xf0] }
 0x141   :  { %v1097_v32 = vadd.f32 %v1096_v31, %v928_v28  ;;  %966 = vmatmul.bf16.gmra.mxu0 %v1918_v4  ;;  %v1961_v4 = vld [vmem:[%s3505_s0 + $0x200] sm:$0xf] }
 0x142   :  { %1649 = vst [vmem:[%s3507_s3 + $0x90] sm:$0xff] %v1585_v25  ;;  %2183 = vmatmul.msk.bf16.gmra.mxu3 %vm771_vm0, %v2046_v26  ;;  %1135 = vmatmul.bf16.gmra.mxu1 %v1922_v30 }
 0x143   :  { %v1266_v0 = vadd.f32 %v1265_v33, %v1097_v32  ;;  %v1950_v33 = vor.u32 %v2249_v34, %v1949_v23 }
 0x145   :  { %v2359_v38 = vpop.eup %2358  ;;  %v1395_v39 = vmul.f32 0.5, %v1266_v0  ;;  %v1176_v40 = vpop.f32.mrf.mxu3 }
 0x146   :  { %v1272_v41 = vpop.f32.mrf.mxu2  ;;  %v1522_v42 = vadd.f32 1.0, %v2359_v38  ;;  %v3155_v46 = vadd.f32 %v1176_v40, %v1008_v37  ;;  %v929_v29 = vpop.f32.mrf.mxu0 }
 0x147   :  { %2360 = vtanh.f32 %v1395_v39  ;;  %v930_v51 = vadd.f32 %v2747_v58, %v929_v29  ;;  %v1098_v49 = vpop.f32.mrf.mxu1  ;;  %v1941_v39 = vld [vmem:[%s3505_s0 + $0x1e0] sm:$0xf]  ;;  %v2247_v29 = vld [vmem:[%s3505_s0 + $0x1e4] sm:$0xf] }
 0x148   :  { %v1586_v44 = vmul.f32 0.5, %v1522_v42  ;;  %v2279_v42 = vld [vmem:[%s3505_s0 + $0x2e0] sm:$0xf0] }
 0x149   :  { %v1099_v52 = vadd.f32 %v1098_v49, %v930_v51  ;;  %v3227_v51 = vld [vmem:[%s3506_s2] ss:$0 sm:$0xff] }
 0x14a   :  { %1650 = vst [vmem:[%s3507_s3 + $0x98] sm:$0xff] %v1586_v44  ;;  %2175 = vmatmul.msk.bf16.gmra.mxu2 %vm771_vm0, %v1950_v33  ;;  %v1943_v33 = vld [vmem:[%s3505_s0 + $0x1ec] sm:$0xf0] }
 0x14b   :  { %v1268_v57 = vadd.f32 %v1267_v56, %v1099_v52  ;;  %v1930_v56 = vor.u32 %v2245_v17, %v1929_v54  ;;  %v1942_v17 = vor.u32 %v2248_v53, %v1941_v39  ;;  %v1946_v61 = vor.u32 %v2247_v29, %v1943_v33 }
 0x14d   :  { %v2361_v63 = vpop.eup %2360  ;;  %v1396_v1 = vmul.f32 0.5, %v1268_v57  ;;  %v1178_v6 = vpop.f32.mrf.mxu3 }
 0x14e   :  { %v3182_v45 = vpop.f32.mrf.mxu2  ;;  %v1523_v7 = vadd.f32 1.0, %v2361_v63  ;;  %v3184_v8 = vadd.f32 %v1178_v6, %v1010_v62  ;;  %v932_v11 = vpop.f32.mrf.mxu0 }
 0x14f   :  { %2362 = vtanh.f32 %v1396_v1  ;;  %v933_v14 = vadd.f32 %v2747_v58, %v932_v11  ;;  %v1101_v15 = vpop.f32.mrf.mxu1  ;;  %v1018_v11 = vadd.f32 %v3227_v51, %v2920_v27  ;;  %v2251_v27 = vld [vmem:[%s3505_s0 + $0x200] sm:$0xf0] }
 0x150   :  { %v1587_v16 = vmul.f32 0.5, %v1523_v7  ;;  %v2255_v7 = vld [vmem:[%s3505_s0 + $0x220] sm:$0xf0] }
 0x151   :  { %v1102_v18 = vadd.f32 %v1101_v15, %v933_v14  ;;  %971 = vmatmul.bf16.gmra.mxu0 %v1930_v56  ;;  %v1973_v56 = vld [vmem:[%s3505_s0 + $0x218] sm:$0xf] }
 0x152   :  { %1651 = vst [vmem:[%s3507_s3 + $0xa0] sm:$0xff] %v1587_v16  ;;  %2184 = vmatmul.msk.bf16.gmra.mxu3 %vm771_vm0, %v2058_v5  ;;  %1140 = vmatmul.bf16.gmra.mxu1 %v1934_v12 }
 0x153   :  { %v1271_v36 = vadd.f32 %v1270_v13, %v1102_v18  ;;  %v1962_v13 = vor.u32 %v2252_v19, %v1961_v4 }
 0x155   :  { %v2363_v26 = vpop.eup %2362  ;;  %v1397_v30 = vmul.f32 0.5, %v1271_v36  ;;  %v1181_v28 = vpop.f32.mrf.mxu3 }
 0x156   :  { %v1277_v31 = vpop.f32.mrf.mxu2  ;;  %v1524_v25 = vadd.f32 1.0, %v2363_v26  ;;  %v3199_v32 = vadd.f32 %v1181_v28, %v1013_v21  ;;  %v934_v0 = vpop.f32.mrf.mxu0  ;;  %v2081_v28 = vld [vmem:[%s3505_s0 + $0x2f0] sm:$0xf] }
 0x157   :  { %2364 = vtanh.f32 %v1397_v30  ;;  %v935_v23 = vadd.f32 %v2747_v58, %v934_v0  ;;  %v1103_v34 = vpop.f32.mrf.mxu1  ;;  %v2069_v58 = vld [vmem:[%s3505_s0 + $0x2d8] sm:$0xf]  ;;  %v2282_v0 = vld [vmem:[%s3505_s0 + $0x2f8] sm:$0xf0] }
 0x158   :  { %v1588_v37 = vmul.f32 0.5, %v1524_v25  ;;  %v2070_v50 = vor.u32 %v2279_v42, %v2069_v58  ;;  %v1953_v30 = vld [vmem:[%s3505_s0 + $0x1f8] sm:$0xf]  ;;  %v2082_v29 = vor.u32 %v2282_v0, %v2081_v28 }
 0x159   :  { %v1104_v38 = vadd.f32 %v1103_v34, %v935_v23  ;;  %v1955_v23 = vld [vmem:[%s3505_s0 + $0x204] sm:$0xf0]  ;;  %v1020_v34 = vadd.f32 %v3227_v51, %v2945_v48 }
 0x15a   :  { %1652 = vst [vmem:[%s3507_s3 + $0xa8] sm:$0xff] %v1588_v37  ;;  %2176 = vmatmul.msk.bf16.gmra.mxu2 %vm771_vm0, %v1962_v13  ;;  %v2250_v13 = vld [vmem:[%s3505_s0 + $0x1fc] sm:$0xf] }
 0x15b   :  { %v1273_v40 = vadd.f32 %v1272_v41, %v1104_v38  ;;  %v1015_v41 = vadd.f32 %v3227_v51, %v2908_v9  ;;  %v1958_v33 = vor.u32 %v2250_v13, %v1955_v23 }
 0x15d   :  { %v2365_v49 = vpop.eup %2364  ;;  %v1398_v44 = vmul.f32 0.5, %v1273_v40  ;;  %v1183_v52 = vpop.f32.mrf.mxu3 }
 0x15e   :  { %v1280_v54 = vpop.f32.mrf.mxu2  ;;  %v1525_v55 = vadd.f32 1.0, %v2365_v49  ;;  %v3231_v57 = vadd.f32 %v1183_v52, %v1015_v41  ;;  %v937_v60 = vpop.f32.mrf.mxu0 }
 0x15f   :  { %2366 = vtanh.f32 %v1398_v44  ;;  %v938_v62 = vadd.f32 %v3227_v51, %v937_v60  ;;  %v1106_v63 = vpop.f32.mrf.mxu1  ;;  %v1023_v60 = vadd.f32 %v3227_v51, %v2957_v3  ;;  %v1965_v3 = vld [vmem:[%s3505_s0 + $0x210] sm:$0xf] }
 0x160   :  { %v1589_v1 = vmul.f32 0.5, %v1525_v55  ;;  %v2258_v55 = vld [vmem:[%s3505_s0 + $0x238] sm:$0xf0] }
 0x161   :  { %v1107_v6 = vadd.f32 %v1106_v63, %v938_v62  ;;  %976 = vmatmul.bf16.gmra.mxu0 %v1942_v17  ;;  %v1985_v17 = vld [vmem:[%s3505_s0 + $0x230] sm:$0xf] }
 0x162   :  { %1653 = vst [vmem:[%s3507_s3 + $0xb0] sm:$0xff] %v1589_v1  ;;  %2185 = vmatmul.msk.bf16.gmra.mxu3 %vm771_vm0, %v2070_v50  ;;  %1145 = vmatmul.bf16.gmra.mxu1 %v1946_v61 }
 0x163   :  { %v1276_v9 = vadd.f32 %v3182_v45, %v1107_v6  ;;  %v1974_v45 = vor.u32 %v2255_v7, %v1973_v56 }
 0x165   :  { %v2367_v5 = vpop.eup %2366  ;;  %v1399_v12 = vmul.f32 0.5, %v1276_v9  ;;  %v1186_v14 = vpop.f32.mrf.mxu3 }
 0x166   :  { %v1282_v15 = vpop.f32.mrf.mxu2  ;;  %v1526_v16 = vadd.f32 1.0, %v2367_v5  ;;  %v3247_v18 = vadd.f32 %v1186_v14, %v1018_v11  ;;  %v939_v36 = vpop.f32.mrf.mxu0 }
 0x167   :  { %2368 = vtanh.f32 %v1399_v12  ;;  %v940_v4 = vadd.f32 %v3227_v51, %v939_v36  ;;  %v1108_v19 = vpop.f32.mrf.mxu1  ;;  %v2254_v12 = vld [vmem:[%s3505_s0 + $0x218] sm:$0xf0]  ;;  %v1967_v36 = vld [vmem:[%s3505_s0 + $0x21c] sm:$0xf0] }
 0x168   :  { %v1590_v21 = vmul.f32 0.5, %v1526_v16  ;;  %v2253_v16 = vld [vmem:[%s3505_s0 + $0x214] sm:$0xf] }
 0x169   :  { %v1109_v26 = vadd.f32 %v1108_v19, %v940_v4 }
 0x16a   :  { %1654 = vst [vmem:[%s3507_s3 + $0xb8] sm:$0xff] %v1590_v21  ;;  %2177 = vmatmul.msk.bf16.gmra.mxu2 %vm771_vm0, %v1974_v45  ;;  %v1025_v45 = vadd.f32 %v3227_v51, %v2982_v24 }
 0x16b   :  { %v1278_v25 = vadd.f32 %v1277_v31, %v1109_v26  ;;  %v1954_v31 = vor.u32 %v2251_v27, %v1953_v30  ;;  %v1966_v30 = vor.u32 %v2254_v12, %v1965_v3 }
 0x16d   :  { %v2369_v37 = vpop.eup %2368  ;;  %v1400_v38 = vmul.f32 0.5, %v1278_v25  ;;  %v1188_v39 = vpop.f32.mrf.mxu3  ;;  %v1970_v25 = vor.u32 %v2253_v16, %v1967_v36 }
 0x16e   :  { %v1285_v53 = vpop.f32.mrf.mxu2  ;;  %v1527_v58 = vadd.f32 1.0, %v2369_v37  ;;  %v3274_v40 = vadd.f32 %v1188_v39, %v1020_v34  ;;  %v942_v42 = vpop.f32.mrf.mxu0  ;;  %v1997_v37 = vld [vmem:[%s3505_s0 + $0x248] sm:$0xf]  ;;  %v1028_v39 = vadd.f32 %v3227_v51, %v2994_v43 }
 0x16f   :  { %2370 = vtanh.f32 %v1400_v38  ;;  %v943_v41 = vadd.f32 %v3227_v51, %v942_v42  ;;  %v1111_v49 = vpop.f32.mrf.mxu1  ;;  %v2261_v38 = vld [vmem:[%s3505_s0 + $0x250] sm:$0xf0]  ;;  %v1977_v43 = vld [vmem:[%s3505_s0 + $0x228] sm:$0xf] }
 0x170   :  { %v1591_v44 = vmul.f32 0.5, %v1527_v58 }
 0x171   :  { %v1112_v52 = vadd.f32 %v1111_v49, %v943_v41  ;;  %981 = vmatmul.bf16.gmra.mxu0 %v1954_v31 }
 0x172   :  { %1655 = vst [vmem:[%s3507_s3 + $0xc0] sm:$0xff] %v1591_v44  ;;  %2186 = vmatmul.msk.bf16.gmra.mxu3 %vm771_vm0, %v2082_v29  ;;  %1150 = vmatmul.bf16.gmra.mxu1 %v1958_v33 }
 0x173   :  { %v1281_v48 = vadd.f32 %v1280_v54, %v1112_v52  ;;  %v1986_v54 = vor.u32 %v2258_v55, %v1985_v17  ;;  %v2257_v55 = vld [vmem:[%s3505_s0 + $0x230] sm:$0xf0] }
 0x175   :  { %v2371_v50 = vpop.eup %2370  ;;  %v1401_v61 = vmul.f32 0.5, %v1281_v48  ;;  %v1191_v62 = vpop.f32.mrf.mxu3 }
 0x176   :  { %v1287_v63 = vpop.f32.mrf.mxu2  ;;  %v1528_v1 = vadd.f32 1.0, %v2371_v50  ;;  %v3289_v6 = vadd.f32 %v1191_v62, %v1023_v60  ;;  %v944_v9 = vpop.f32.mrf.mxu0  ;;  %v2256_v50 = vld [vmem:[%s3505_s0 + $0x22c] sm:$0xf]  ;;  %v1030_v62 = vadd.f32 %v3227_v51, %v3019_v2 }
 0x177   :  { %2372 = vtanh.f32 %v1401_v61  ;;  %v945_v56 = vadd.f32 %v3227_v51, %v944_v9  ;;  %v1113_v7 = vpop.f32.mrf.mxu1  ;;  %v1979_v61 = vld [vmem:[%s3505_s0 + $0x234] sm:$0xf0] }
 0x178   :  { %v1592_v11 = vmul.f32 0.5, %v1528_v1  ;;  %v1982_v3 = vor.u32 %v2256_v50, %v1979_v61 }
 0x179   :  { %v1114_v5 = vadd.f32 %v1113_v7, %v945_v56  ;;  %v1978_v7 = vor.u32 %v2257_v55, %v1977_v43 }
 0x17a   :  { %1656 = vst [vmem:[%s3507_s3 + $0xc8] sm:$0xff] %v1592_v11  ;;  %2178 = vmatmul.msk.bf16.gmra.mxu2 %vm771_vm0, %v1986_v54 }
 0x17b   :  { %v1283_v14 = vadd.f32 %v1282_v15, %v1114_v5 }
 0x17d   :  { %v2373_v4 = vpop.eup %2372  ;;  %v1402_v19 = vmul.f32 0.5, %v1283_v14  ;;  %v1193_v21 = vpop.f32.mrf.mxu3 }
 0x17e   :  { %v1290_v26 = vpop.f32.mrf.mxu2  ;;  %v1529_v27 = vadd.f32 1.0, %v2373_v4  ;;  %v3310_v28 = vadd.f32 %v1193_v21, %v1025_v45  ;;  %v947_v15 = vpop.f32.mrf.mxu0  ;;  %v2009_v45 = vld [vmem:[%s3505_s0 + $0x260] sm:$0xf]  ;;  %v2264_v4 = vld [vmem:[%s3505_s0 + $0x268] sm:$0xf0] }
 0x17f   :  { %2374 = vtanh.f32 %v1402_v19  ;;  %v948_v0 = vadd.f32 %v3227_v51, %v947_v15  ;;  %v1116_v13 = vpop.f32.mrf.mxu1  ;;  %v1033_v19 = vadd.f32 %v3227_v51, %v3031_v22 }
 0x180   :  { %v1593_v23 = vmul.f32 0.5, %v1529_v27 }
 0x181   :  { %v1117_v34 = vadd.f32 %v1116_v13, %v948_v0  ;;  %986 = vmatmul.bf16.gmra.mxu0 %v1966_v30 }
 0x182   :  { %1657 = vst [vmem:[%s3507_s3 + $0xd0] sm:$0xff] %v1593_v23  ;;  %1155 = vmatmul.bf16.gmra.mxu1 %v1970_v25 }
 0x183   :  { %v1286_v24 = vadd.f32 %v1285_v53, %v1117_v34  ;;  %v1998_v53 = vor.u32 %v2261_v38, %v1997_v37  ;;  %v1035_v38 = vadd.f32 %v3227_v51, %v3056_v47 }
 0x185   :  { %v2375_v31 = vpop.eup %2374  ;;  %v1403_v58 = vmul.f32 0.5, %v1286_v24  ;;  %v1196_v42 = vpop.f32.mrf.mxu3 }
 0x186   :  { %v1292_v29 = vpop.f32.mrf.mxu2  ;;  %v1530_v33 = vadd.f32 1.0, %v2375_v31  ;;  %v3324_v41 = vadd.f32 %v1196_v42, %v1028_v39  ;;  %v949_v49 = vpop.f32.mrf.mxu0 }
 0x187   :  { %2376 = vtanh.f32 %v1403_v58  ;;  %v950_v44 = vadd.f32 %v3227_v51, %v949_v49  ;;  %v1118_v52 = vpop.f32.mrf.mxu1 }
 0x188   :  { %v1594_v48 = vmul.f32 0.5, %v1530_v33 }
 0x189   :  { %v1119_v17 = vadd.f32 %v1118_v52, %v950_v44 }
 0x18a   :  { %1658 = vst [vmem:[%s3507_s3 + $0xd8] sm:$0xff] %v1594_v48  ;;  %2179 = vmatmul.msk.bf16.gmra.mxu2 %vm771_vm0, %v1998_v53 }
 0x18b   :  { %v1288_v60 = vadd.f32 %v1287_v63, %v1119_v17 }
 0x18d   :  { %v2377_v1 = vpop.eup %2376  ;;  %v1404_v9 = vmul.f32 0.5, %v1288_v60  ;;  %v1198_v54 = vpop.f32.mrf.mxu3 }
 0x18e   :  { %v1295_v56 = vpop.f32.mrf.mxu2  ;;  %v1531_v11 = vadd.f32 1.0, %v2377_v1  ;;  %v3345_v5 = vadd.f32 %v1198_v54, %v1030_v62  ;;  %v952_v63 = vpop.f32.mrf.mxu0 }
 0x18f   :  { %2378 = vtanh.f32 %v1404_v9  ;;  %v953_v12 = vadd.f32 %v3227_v51, %v952_v63  ;;  %v1121_v14 = vpop.f32.mrf.mxu1 }
 0x190   :  { %v1595_v16 = vmul.f32 0.5, %v1531_v11 }
 0x191   :  { %v1122_v36 = vadd.f32 %v1121_v14, %v953_v12  ;;  %991 = vmatmul.bf16.gmra.mxu0 %v1978_v7 }
 0x192   :  { %1659 = vst [vmem:[%s3507_s3 + $0xe0] sm:$0xff] %v1595_v16  ;;  %1160 = vmatmul.bf16.gmra.mxu1 %v1982_v3 }
 0x193   :  { %v1291_v2 = vadd.f32 %v1290_v26, %v1122_v36  ;;  %v2010_v26 = vor.u32 %v2264_v4, %v2009_v45 }
 0x195   :  { %v2379_v21 = vpop.eup %2378  ;;  %v1405_v30 = vmul.f32 0.5, %v1291_v2  ;;  %v1201_v27 = vpop.f32.mrf.mxu3 }
 0x196   :  { %v1297_v15 = vpop.f32.mrf.mxu2  ;;  %v1532_v25 = vadd.f32 1.0, %v2379_v21  ;;  %v3359_v0 = vadd.f32 %v1201_v27, %v1033_v19  ;;  %v954_v13 = vpop.f32.mrf.mxu0 }
 0x197   :  { %2380 = vtanh.f32 %v1405_v30  ;;  %v955_v23 = vadd.f32 %v3227_v51, %v954_v13  ;;  %v1123_v34 = vpop.f32.mrf.mxu1 }
 0x198   :  { %v1596_v24 = vmul.f32 0.5, %v1532_v25 }
 0x199   :  { %v1124_v37 = vadd.f32 %v1123_v34, %v955_v23 }
 0x19a   :  { %1660 = vst [vmem:[%s3507_s3 + $0xe8] sm:$0xff] %v1596_v24  ;;  %2180 = vmatmul.msk.bf16.gmra.mxu2 %vm771_vm0, %v2010_v26 }
 0x19b   :  { %v1293_v22 = vadd.f32 %v1292_v29, %v1124_v37 }
 0x19d   :  { %v2381_v39 = vpop.eup %2380  ;;  %v1406_v31 = vmul.f32 0.5, %v1293_v22  ;;  %v1203_v58 = vpop.f32.mrf.mxu3 }
 0x19e   :  { %v1300_v42 = vpop.f32.mrf.mxu2  ;;  %v1533_v33 = vadd.f32 1.0, %v2381_v39  ;;  %v3368_v49 = vadd.f32 %v1203_v58, %v1035_v38  ;;  %v957_v53 = vpop.f32.mrf.mxu0 }
 0x19f   :  { %2382 = vtanh.f32 %v1406_v31  ;;  %v958_v44 = vadd.f32 %v3227_v51, %v957_v53  ;;  %v1126_v52 = vpop.f32.mrf.mxu1 }
 0x1a0   :  { %v1597_v48 = vmul.f32 0.5, %v1533_v33 }
 0x1a1   :  { %v1127_v17 = vadd.f32 %v1126_v52, %v958_v44 }
 0x1a2   :  { %1661 = vst [vmem:[%s3507_s3 + $0xf0] sm:$0xff] %v1597_v48 }
 0x1a3   :  { %v1296_v29 = vadd.f32 %v1295_v56, %v1127_v17 }
 0x1a5   :  { %v2383_v47 = vpop.eup %2382  ;;  %v1407_v43 = vmul.f32 0.5, %v1296_v29  ;;  %v1345_v60 = vpop.f32.mrf.mxu3 }
 0x1a6   :  { %v1302_v55 = vpop.f32.mrf.mxu2  ;;  %v1534_v50 = vadd.f32 1.0, %v2383_v47  ;;  %v1346_v61 = vadd.f32 %v1345_v60, %v3155_v46  ;;  %v959_v62 = vpop.f32.mrf.mxu0 }
 0x1a7   :  { %2384 = vtanh.f32 %v1407_v43  ;;  %v960_v1 = vadd.f32 %v3227_v51, %v959_v62  ;;  %v1128_v9 = vpop.f32.mrf.mxu1 }
 0x1a8   :  { %v1598_v54 = vmul.f32 0.5, %v1534_v50  ;;  %v1427_v7 = vmul.f32 0.5, %v1346_v61 }
 0x1a9   :  { %v1129_v11 = vadd.f32 %v1128_v9, %v960_v1 }
 0x1aa   :  { %1662 = vst [vmem:[%s3507_s3 + $0xf8] sm:$0xff] %v1598_v54  ;;  %2386 = vtanh.f32 %v1427_v7 }
 0x1ab   :  { %v1298_v56 = vadd.f32 %v1297_v15, %v1129_v11 }
 0x1ad   :  { %v2385_v63 = vpop.eup %2384  ;;  %v1408_v3 = vmul.f32 0.5, %v1298_v56  ;;  %v1347_v14 = vpop.f32.mrf.mxu3 }
 0x1ae   :  { %v1305_v12 = vpop.f32.mrf.mxu2  ;;  %v1535_v16 = vadd.f32 1.0, %v2385_v63  ;;  %v1348_v46 = vadd.f32 %v1347_v14, %v3184_v8  ;;  %v962_v36 = vpop.f32.mrf.mxu0 }
 0x1af   :  { %2388 = vtanh.f32 %v1408_v3  ;;  %v963_v2 = vadd.f32 %v3227_v51, %v962_v36  ;;  %v1131_v45 = vpop.f32.mrf.mxu1 }
 0x1b0   :  { %v2387_v4 = vpop.eup %2386  ;;  %v1599_v19 = vmul.f32 0.5, %v1535_v16  ;;  %v1428_v21 = vmul.f32 0.5, %v1348_v46 }
 0x1b1   :  { %v1555_v30 = vadd.f32 1.0, %v2387_v4  ;;  %v1132_v27 = vadd.f32 %v1131_v45, %v963_v2 }
 0x1b2   :  { %1663 = vst [vmem:[%s3507_s3 + $0x100] sm:$0xff] %v1599_v19  ;;  %2390 = vtanh.f32 %v1428_v21 }
 0x1b3   :  { %v1619_v15 = vmul.f32 0.5, %v1555_v30  ;;  %v1301_v25 = vadd.f32 %v1300_v42, %v1132_v27 }
 0x1b5   :  { %v2389_v13 = vpop.eup %2388  ;;  %1683 = vst [vmem:[%s3507_s3 + $0x1a0] sm:$0xff] %v1619_v15  ;;  %v1409_v8 = vmul.f32 0.5, %v1301_v25  ;;  %v1350_v23 = vpop.f32.mrf.mxu3 }
 0x1b6   :  { %v1307_v26 = vpop.f32.mrf.mxu2  ;;  %v1536_v34 = vadd.f32 1.0, %v2389_v13  ;;  %v1351_v24 = vadd.f32 %v1350_v23, %v3199_v32  ;;  %v964_v37 = vpop.f32.mrf.mxu0 }
 0x1b7   :  { %2392 = vtanh.f32 %v1409_v8  ;;  %v965_v22 = vadd.f32 %v3227_v51, %v964_v37  ;;  %v1133_v38 = vpop.f32.mrf.mxu1 }
 0x1b8   :  { %v2391_v39 = vpop.eup %2390  ;;  %v1600_v31 = vmul.f32 0.5, %v1536_v34  ;;  %v1429_v58 = vmul.f32 0.5, %v1351_v24 }
 0x1b9   :  { %v1556_v42 = vadd.f32 1.0, %v2391_v39  ;;  %v1134_v33 = vadd.f32 %v1133_v38, %v965_v22 }
 0x1ba   :  { %1664 = vst [vmem:[%s3507_s3 + $0x108] sm:$0xff] %v1600_v31  ;;  %2394 = vtanh.f32 %v1429_v58 }
 0x1bb   :  { %v1620_v53 = vmul.f32 0.5, %v1556_v42  ;;  %v1303_v44 = vadd.f32 %v1302_v55, %v1134_v33 }
 0x1bd   :  { %v2393_v52 = vpop.eup %2392  ;;  %1684 = vst [vmem:[%s3507_s3 + $0x1a8] sm:$0xff] %v1620_v53  ;;  %v1410_v32 = vmul.f32 0.5, %v1303_v44  ;;  %v1352_v17 = vpop.f32.mrf.mxu3 }
 0x1be   :  { %v1310_v48 = vpop.f32.mrf.mxu2  ;;  %v1537_v29 = vadd.f32 1.0, %v2393_v52  ;;  %v1353_v47 = vadd.f32 %v1352_v17, %v3231_v57  ;;  %v967_v43 = vpop.f32.mrf.mxu0 }
 0x1bf   :  { %2396 = vtanh.f32 %v1410_v32  ;;  %v968_v60 = vadd.f32 %v3227_v51, %v967_v43  ;;  %v1136_v50 = vpop.f32.mrf.mxu1 }
 0x1c0   :  { %v2395_v61 = vpop.eup %2394  ;;  %v1601_v62 = vmul.f32 0.5, %v1537_v29  ;;  %v1430_v1 = vmul.f32 0.5, %v1353_v47 }
 0x1c1   :  { %v1557_v55 = vadd.f32 1.0, %v2395_v61  ;;  %v1137_v9 = vadd.f32 %v1136_v50, %v968_v60 }
 0x1c2   :  { %1665 = vst [vmem:[%s3507_s3 + $0x110] sm:$0xff] %v1601_v62  ;;  %2398 = vtanh.f32 %v1430_v1 }
 0x1c3   :  { %v1621_v54 = vmul.f32 0.5, %v1557_v55  ;;  %v1306_v7 = vadd.f32 %v1305_v12, %v1137_v9 }
 0x1c5   :  { %v2397_v11 = vpop.eup %2396  ;;  %1685 = vst [vmem:[%s3507_s3 + $0x1b0] sm:$0xff] %v1621_v54  ;;  %v1411_v57 = vmul.f32 0.5, %v1306_v7  ;;  %v1355_v63 = vpop.f32.mrf.mxu3 }
 0x1c6   :  { %v1312_v56 = vpop.f32.mrf.mxu2  ;;  %v1538_v3 = vadd.f32 1.0, %v2397_v11  ;;  %v1356_v14 = vadd.f32 %v1355_v63, %v3247_v18  ;;  %v969_v16 = vpop.f32.mrf.mxu0 }
 0x1c7   :  { %2400 = vtanh.f32 %v1411_v57  ;;  %v970_v46 = vadd.f32 %v3227_v51, %v969_v16  ;;  %v1138_v36 = vpop.f32.mrf.mxu1 }
 0x1c8   :  { %v2399_v2 = vpop.eup %2398  ;;  %v1602_v45 = vmul.f32 0.5, %v1538_v3  ;;  %v1431_v4 = vmul.f32 0.5, %v1356_v14 }
 0x1c9   :  { %v1558_v12 = vadd.f32 1.0, %v2399_v2  ;;  %v1139_v19 = vadd.f32 %v1138_v36, %v970_v46 }
 0x1ca   :  { %1666 = vst [vmem:[%s3507_s3 + $0x118] sm:$0xff] %v1602_v45  ;;  %2402 = vtanh.f32 %v1431_v4 }
 0x1cb   :  { %v1622_v21 = vmul.f32 0.5, %v1558_v12  ;;  %v1308_v30 = vadd.f32 %v1307_v26, %v1139_v19 }
 0x1cd   :  { %v2401_v27 = vpop.eup %2400  ;;  %1686 = vst [vmem:[%s3507_s3 + $0x1b8] sm:$0xff] %v1622_v21  ;;  %v1412_v18 = vmul.f32 0.5, %v1308_v30  ;;  %v1357_v25 = vpop.f32.mrf.mxu3 }
 0x1ce   :  { %v1315_v15 = vpop.f32.mrf.mxu2  ;;  %v1539_v13 = vadd.f32 1.0, %v2401_v27  ;;  %v1358_v8 = vadd.f32 %v1357_v25, %v3274_v40  ;;  %v972_v23 = vpop.f32.mrf.mxu0 }
 0x1cf   :  { %2404 = vtanh.f32 %v1412_v18  ;;  %v973_v34 = vadd.f32 %v3227_v51, %v972_v23  ;;  %v1141_v24 = vpop.f32.mrf.mxu1 }
 0x1d0   :  { %v2403_v37 = vpop.eup %2402  ;;  %v1603_v22 = vmul.f32 0.5, %v1539_v13  ;;  %v1432_v38 = vmul.f32 0.5, %v1358_v8 }
 0x1d1   :  { %v1559_v26 = vadd.f32 1.0, %v2403_v37  ;;  %v1142_v39 = vadd.f32 %v1141_v24, %v973_v34 }
 0x1d2   :  { %1667 = vst [vmem:[%s3507_s3 + $0x120] sm:$0xff] %v1603_v22  ;;  %2406 = vtanh.f32 %v1432_v38 }
 0x1d3   :  { %v1623_v31 = vmul.f32 0.5, %v1559_v26  ;;  %v1311_v58 = vadd.f32 %v1310_v48, %v1142_v39 }
 0x1d5   :  { %v2405_v42 = vpop.eup %2404  ;;  %1687 = vst [vmem:[%s3507_s3 + $0x1c0] sm:$0xff] %v1623_v31  ;;  %v1413_v40 = vmul.f32 0.5, %v1311_v58  ;;  %v1360_v53 = vpop.f32.mrf.mxu3 }
 0x1d6   :  { %v1317_v33 = vpop.f32.mrf.mxu2  ;;  %v1540_v44 = vadd.f32 1.0, %v2405_v42  ;;  %v1361_v52 = vadd.f32 %v1360_v53, %v3289_v6  ;;  %v974_v32 = vpop.f32.mrf.mxu0 }
 0x1d7   :  { %2408 = vtanh.f32 %v1413_v40  ;;  %v975_v17 = vadd.f32 %v3227_v51, %v974_v32  ;;  %v1143_v29 = vpop.f32.mrf.mxu1 }
 0x1d8   :  { %v2407_v47 = vpop.eup %2406  ;;  %v1604_v43 = vmul.f32 0.5, %v1540_v44  ;;  %v1433_v60 = vmul.f32 0.5, %v1361_v52 }
 0x1d9   :  { %v1560_v48 = vadd.f32 1.0, %v2407_v47  ;;  %v1144_v50 = vadd.f32 %v1143_v29, %v975_v17 }
 0x1da   :  { %1668 = vst [vmem:[%s3507_s3 + $0x128] sm:$0xff] %v1604_v43  ;;  %2410 = vtanh.f32 %v1433_v60 }
 0x1db   :  { %v1624_v61 = vmul.f32 0.5, %v1560_v48  ;;  %v1313_v62 = vadd.f32 %v1312_v56, %v1144_v50 }
 0x1dd   :  { %v2409_v1 = vpop.eup %2408  ;;  %1688 = vst [vmem:[%s3507_s3 + $0x1c8] sm:$0xff] %v1624_v61  ;;  %v1414_v6 = vmul.f32 0.5, %v1313_v62  ;;  %v1362_v9 = vpop.f32.mrf.mxu3 }
 0x1de   :  { %v1320_v55 = vpop.f32.mrf.mxu2  ;;  %v1541_v54 = vadd.f32 1.0, %v2409_v1  ;;  %v1363_v7 = vadd.f32 %v1362_v9, %v3310_v28  ;;  %v977_v11 = vpop.f32.mrf.mxu0 }
 0x1df   :  { %2412 = vtanh.f32 %v1414_v6  ;;  %v978_v57 = vadd.f32 %v3227_v51, %v977_v11  ;;  %v1146_v63 = vpop.f32.mrf.mxu1 }
 0x1e0   :  { %v2411_v3 = vpop.eup %2410  ;;  %v1605_v14 = vmul.f32 0.5, %v1541_v54  ;;  %v1434_v16 = vmul.f32 0.5, %v1363_v7 }
 0x1e1   :  { %v1561_v56 = vadd.f32 1.0, %v2411_v3  ;;  %v1147_v46 = vadd.f32 %v1146_v63, %v978_v57 }
 0x1e2   :  { %1669 = vst [vmem:[%s3507_s3 + $0x130] sm:$0xff] %v1605_v14  ;;  %2414 = vtanh.f32 %v1434_v16 }
 0x1e3   :  { %v1625_v36 = vmul.f32 0.5, %v1561_v56  ;;  %v1316_v2 = vadd.f32 %v1315_v15, %v1147_v46 }
 0x1e5   :  { %v2413_v45 = vpop.eup %2412  ;;  %1689 = vst [vmem:[%s3507_s3 + $0x1d0] sm:$0xff] %v1625_v36  ;;  %v1415_v28 = vmul.f32 0.5, %v1316_v2  ;;  %v1365_v12 = vpop.f32.mrf.mxu3 }
 0x1e6   :  { %v1322_v4 = vpop.f32.mrf.mxu2  ;;  %v1542_v19 = vadd.f32 1.0, %v2413_v45  ;;  %v1366_v21 = vadd.f32 %v1365_v12, %v3324_v41  ;;  %v979_v30 = vpop.f32.mrf.mxu0 }
 0x1e7   :  { %2416 = vtanh.f32 %v1415_v28  ;;  %v980_v27 = vadd.f32 %v3227_v51, %v979_v30  ;;  %v1148_v18 = vpop.f32.mrf.mxu1 }
 0x1e8   :  { %v2415_v25 = vpop.eup %2414  ;;  %v1606_v13 = vmul.f32 0.5, %v1542_v19  ;;  %v1435_v8 = vmul.f32 0.5, %v1366_v21 }
 0x1e9   :  { %v1562_v15 = vadd.f32 1.0, %v2415_v25  ;;  %v1149_v23 = vadd.f32 %v1148_v18, %v980_v27 }
 0x1ea   :  { %1670 = vst [vmem:[%s3507_s3 + $0x138] sm:$0xff] %v1606_v13  ;;  %2418 = vtanh.f32 %v1435_v8 }
 0x1eb   :  { %v1626_v34 = vmul.f32 0.5, %v1562_v15  ;;  %v1318_v24 = vadd.f32 %v1317_v33, %v1149_v23 }
 0x1ed   :  { %v2417_v37 = vpop.eup %2416  ;;  %1690 = vst [vmem:[%s3507_s3 + $0x1d8] sm:$0xff] %v1626_v34  ;;  %v1416_v41 = vmul.f32 0.5, %v1318_v24  ;;  %v1367_v38 = vpop.f32.mrf.mxu3 }
 0x1ee   :  { %v1325_v22 = vpop.f32.mrf.mxu2  ;;  %v1543_v26 = vadd.f32 1.0, %v2417_v37  ;;  %v1368_v39 = vadd.f32 %v1367_v38, %v3345_v5  ;;  %v982_v31 = vpop.f32.mrf.mxu0 }
 0x1ef   :  { %2420 = vtanh.f32 %v1416_v41  ;;  %v983_v58 = vadd.f32 %v3227_v51, %v982_v31  ;;  %v1151_v42 = vpop.f32.mrf.mxu1 }
 0x1f0   :  { %v2419_v40 = vpop.eup %2418  ;;  %v1607_v53 = vmul.f32 0.5, %v1543_v26  ;;  %v1436_v44 = vmul.f32 0.5, %v1368_v39 }
 0x1f1   :  { %v1563_v33 = vadd.f32 1.0, %v2419_v40  ;;  %v1152_v52 = vadd.f32 %v1151_v42, %v983_v58 }
 0x1f2   :  { %1671 = vst [vmem:[%s3507_s3 + $0x140] sm:$0xff] %v1607_v53  ;;  %2422 = vtanh.f32 %v1436_v44 }
 0x1f3   :  { %v1627_v32 = vmul.f32 0.5, %v1563_v33  ;;  %v1321_v17 = vadd.f32 %v1320_v55, %v1152_v52 }
 0x1f5   :  { %v2421_v29 = vpop.eup %2420  ;;  %1691 = vst [vmem:[%s3507_s3 + $0x1e0] sm:$0xff] %v1627_v32  ;;  %v1417_v5 = vmul.f32 0.5, %v1321_v17  ;;  %v1370_v43 = vpop.f32.mrf.mxu3 }
 0x1f6   :  { %v1327_v47 = vpop.f32.mrf.mxu2  ;;  %v1544_v60 = vadd.f32 1.0, %v2421_v29  ;;  %v1371_v48 = vadd.f32 %v1370_v43, %v3359_v0  ;;  %v984_v50 = vpop.f32.mrf.mxu0 }
 0x1f7   :  { %2424 = vtanh.f32 %v1417_v5  ;;  %v985_v61 = vadd.f32 %v3227_v51, %v984_v50  ;;  %v1153_v62 = vpop.f32.mrf.mxu1 }
 0x1f8   :  { %v2423_v1 = vpop.eup %2422  ;;  %v1608_v6 = vmul.f32 0.5, %v1544_v60  ;;  %v1437_v9 = vmul.f32 0.5, %v1371_v48 }
 0x1f9   :  { %v1564_v55 = vadd.f32 1.0, %v2423_v1  ;;  %v1154_v54 = vadd.f32 %v1153_v62, %v985_v61 }
 0x1fa   :  { %1672 = vst [vmem:[%s3507_s3 + $0x148] sm:$0xff] %v1608_v6  ;;  %2426 = vtanh.f32 %v1437_v9 }
 0x1fb   :  { %v1628_v7 = vmul.f32 0.5, %v1564_v55  ;;  %v1323_v11 = vadd.f32 %v1322_v4, %v1154_v54 }
 0x1fd   :  { %v2425_v57 = vpop.eup %2424  ;;  %1692 = vst [vmem:[%s3507_s3 + $0x1e8] sm:$0xff] %v1628_v7  ;;  %v1418_v0 = vmul.f32 0.5, %v1323_v11  ;;  %v1372_v3 = vpop.f32.mrf.mxu3 }
 0x1fe   :  { %v1330_v63 = vpop.f32.mrf.mxu2  ;;  %v1545_v14 = vadd.f32 1.0, %v2425_v57  ;;  %v1373_v16 = vadd.f32 %v1372_v3, %v3368_v49  ;;  %v987_v56 = vpop.f32.mrf.mxu0 }
 0x1ff   :  { %2428 = vtanh.f32 %v1418_v0  ;;  %v988_v46 = vadd.f32 %v3227_v51, %v987_v56  ;;  %v1156_v36 = vpop.f32.mrf.mxu1 }
 0x200   :  { %v2427_v2 = vpop.eup %2426  ;;  %v1609_v45 = vmul.f32 0.5, %v1545_v14  ;;  %v1438_v28 = vmul.f32 0.5, %v1373_v16 }
 0x201   :  { %v1565_v4 = vadd.f32 1.0, %v2427_v2  ;;  %v1157_v12 = vadd.f32 %v1156_v36, %v988_v46 }
 0x202   :  { %1673 = vst [vmem:[%s3507_s3 + $0x150] sm:$0xff] %v1609_v45  ;;  %2430 = vtanh.f32 %v1438_v28 }
 0x203   :  { %v1629_v19 = vmul.f32 0.5, %v1565_v4  ;;  %v1326_v21 = vadd.f32 %v1325_v22, %v1157_v12 }
 0x205   :  { %v2429_v30 = vpop.eup %2428  ;;  %1693 = vst [vmem:[%s3507_s3 + $0x1f0] sm:$0xff] %v1629_v19  ;;  %v1419_v49 = vmul.f32 0.5, %v1326_v21 }
 0x206   :  { %v1332_v27 = vpop.f32.mrf.mxu2  ;;  %v1546_v18 = vadd.f32 1.0, %v2429_v30  ;;  %v989_v25 = vpop.f32.mrf.mxu0 }
 0x207   :  { %2432 = vtanh.f32 %v1419_v49  ;;  %v990_v13 = vadd.f32 %v3227_v51, %v989_v25  ;;  %v1158_v8 = vpop.f32.mrf.mxu1 }
 0x208   :  { %v2431_v15 = vpop.eup %2430  ;;  %v1610_v23 = vmul.f32 0.5, %v1546_v18 }
 0x209   :  { %v1566_v34 = vadd.f32 1.0, %v2431_v15  ;;  %v1159_v24 = vadd.f32 %v1158_v8, %v990_v13 }
 0x20a   :  { %1674 = vst [vmem:[%s3507_s3 + $0x158] sm:$0xff] %v1610_v23 }
 0x20b   :  { %v1630_v37 = vmul.f32 0.5, %v1566_v34  ;;  %v1328_v41 = vadd.f32 %v1327_v47, %v1159_v24 }
 0x20d   :  { %v2433_v22 = vpop.eup %2432  ;;  %1694 = vst [vmem:[%s3507_s3 + $0x1f8] sm:$0xff] %v1630_v37  ;;  %v1420_v38 = vmul.f32 0.5, %v1328_v41 }
 0x20e   :  { %v1335_v26 = vpop.f32.mrf.mxu2  ;;  %v1547_v39 = vadd.f32 1.0, %v2433_v22  ;;  %v992_v58 = vpop.f32.mrf.mxu0 }
 0x20f   :  { %v1336_v31 = vadd.f32 %v1335_v26, %v3071_v10  ;;  %2434 = vtanh.f32 %v1420_v38  ;;  %v993_v42 = vadd.f32 %v3227_v51, %v992_v58  ;;  %v1161_v40 = vpop.f32.mrf.mxu1 }
 0x210   :  { %v1611_v53 = vmul.f32 0.5, %v1547_v39 }
 0x211   :  { %v1423_v44 = vmul.f32 0.5, %v1336_v31  ;;  %v1162_v33 = vadd.f32 %v1161_v40, %v993_v42 }
 0x212   :  { %1675 = vst [vmem:[%s3507_s3 + $0x160] sm:$0xff] %v1611_v53 }
 0x213   :  { %2436 = vtanh.f32 %v1423_v44  ;;  %v1331_v52 = vadd.f32 %v1330_v63, %v1162_v33 }
 0x215   :  { %v2435_v32 = vpop.eup %2434  ;;  %v1421_v17 = vmul.f32 0.5, %v1331_v52 }
 0x216   :  { %v1337_v29 = vpop.f32.mrf.mxu2  ;;  %v1548_v5 = vadd.f32 1.0, %v2435_v32  ;;  %v994_v47 = vpop.f32.mrf.mxu0 }
 0x217   :  { %v1338_v10 = vadd.f32 %v1337_v29, %v3098_v35  ;;  %2438 = vtanh.f32 %v1421_v17  ;;  %v995_v43 = vadd.f32 %v3227_v51, %v994_v47  ;;  %v1163_v60 = vpop.f32.mrf.mxu1 }
 0x218   :  { %v1612_v50 = vmul.f32 0.5, %v1548_v5 }
 0x219   :  { %v2437_v48 = vpop.eup %2436  ;;  %v1424_v61 = vmul.f32 0.5, %v1338_v10  ;;  %v1164_v1 = vadd.f32 %v1163_v60, %v995_v43 }
 0x21a   :  { %v1551_v62 = vadd.f32 1.0, %v2437_v48  ;;  %1676 = vst [vmem:[%s3507_s3 + $0x168] sm:$0xff] %v1612_v50 }
 0x21b   :  { %2440 = vtanh.f32 %v1424_v61  ;;  %v1333_v9 = vadd.f32 %v1332_v27, %v1164_v1 }
 0x21c   :  { %v1615_v6 = vmul.f32 0.5, %v1551_v62 }
 0x21d   :  { %v2439_v55 = vpop.eup %2438  ;;  %v1422_v35 = vmul.f32 0.5, %v1333_v9 }
 0x21e   :  { %1679 = vst [vmem:[%s3507_s3 + $0x180] sm:$0xff] %v1615_v6  ;;  %v1340_v51 = vpop.f32.mrf.mxu2  ;;  %v1549_v54 = vadd.f32 1.0, %v2439_v55 }
 0x21f   :  { %v1341_v7 = vadd.f32 %v1340_v51, %v3113_v59  ;;  %2442 = vtanh.f32 %v1422_v35 }
 0x220   :  { %v1613_v57 = vmul.f32 0.5, %v1549_v54 }
 0x221   :  { %v2441_v11 = vpop.eup %2440  ;;  %v1425_v0 = vmul.f32 0.5, %v1341_v7 }
 0x222   :  { %v1552_v63 = vadd.f32 1.0, %v2441_v11  ;;  %1677 = vst [vmem:[%s3507_s3 + $0x170] sm:$0xff] %v1613_v57 }
 0x223   :  { %2444 = vtanh.f32 %v1425_v0 }
 0x224   :  { %v1616_v3 = vmul.f32 0.5, %v1552_v63 }
 0x225   :  { %v2443_v14 = vpop.eup %2442 }
 0x226   :  { %1680 = vst [vmem:[%s3507_s3 + $0x188] sm:$0xff] %v1616_v3  ;;  %v1342_v16 = vpop.f32.mrf.mxu2  ;;  %v1550_v56 = vadd.f32 1.0, %v2443_v14 }
 0x227   :  { %v1343_v59 = vadd.f32 %v1342_v16, %v3140_v20 }
 0x228   :  { %v1614_v36 = vmul.f32 0.5, %v1550_v56 }
 0x229   :  { %v2445_v46 = vpop.eup %2444  ;;  %v1426_v2 = vmul.f32 0.5, %v1343_v59 }
 0x22a   :  { %v1553_v45 = vadd.f32 1.0, %v2445_v46  ;;  %1678 = vst [vmem:[%s3507_s3 + $0x178] sm:$0xff] %v1614_v36 }
 0x22b   :  { %2446 = vtanh.f32 %v1426_v2 }
 0x22c   :  { %v1617_v28 = vmul.f32 0.5, %v1553_v45 }
 0x22e   :  { %1681 = vst [vmem:[%s3507_s3 + $0x190] sm:$0xff] %v1617_v28 }
 0x231   :  { %v2447_v4 = vpop.eup %2446 }
 0x232   :  { %v1554_v12 = vadd.f32 1.0, %v2447_v4 }
 0x234   :  { %v1618_v19 = vmul.f32 0.5, %v1554_v12 }
 0x236   :  { %1682 = vst [vmem:[%s3507_s3 + $0x198] sm:$0xff] %v1618_v19 }

</bundles_post_ra>
